<compile_context>
chip_gen: v7x
topology: tpu7x:2x2x1
jax: 0.10.0
libtpu: 0.0.40
codegen_flags: <defaults>
</compile_context>

<pallas_src>
import jax
import jax.numpy as jnp
from jax.experimental import pallas as pl
from jax.experimental.pallas import tpu as pltpu

# ----------------------------- configuration --------------------------------
B = 2
IN_SIZE = 64
NUM_CLASSES = 10
NP_CLS = 128                                                # lane-padded class dim
LAYER_DIMS = [(256, 32), (64, 64), (16, 128), (16, 128)]    # (tokens L_i, channels C_i)
NUM_LAYERS = len(LAYER_DIMS)
GLOBAL_DIM = 128                                            # == last stage channels
USE_LAYERS = [True, True, True, True]
USE_SELECTIONS = [True, True, True, True]
NUM_SELECTS = [32, 16, 8, 8]
NUM_JOINTS = sum(n for n in NUM_SELECTS if n != 0)          # 64
GCN_J0 = NUM_JOINTS // 32                                   # 2 (padded to 8 in-kernel)
BN_EPS = 1e-5
LN_EPS = 1e-5

assert all(USE_LAYERS) and all(USE_SELECTIONS)

TOK = [B * L for (L, _) in LAYER_DIMS]                      # [512, 128, 32, 32]
OFFS = [0]
for _t in TOK:
    OFFS.append(OFFS[-1] + _t)
TOTAL_TOK = OFFS[-1]                                        # 704


# ------------------------------ helpers --------------------------------------
def _fs(shape):
    """Full-array BlockSpec for a single-step grid."""
    zeros = (0,) * len(shape)
    return pl.BlockSpec(tuple(shape), lambda i, _z=zeros: _z)


def cross_entropy(logits, labels):
    logp = jax.nn.log_softmax(logits, axis=-1)
    return -jnp.mean(jnp.take_along_axis(logp, labels[:, None], axis=-1)[:, 0])


def accuracy(logits, labels):
    return jnp.mean((jnp.argmax(logits, axis=-1) == labels).astype(jnp.float32))


# -------------------------- kernel 1: extractor -------------------------------
# Synthetic per-stage patch embed (stand-in for Swin-L). One grid step, 4 outputs.
def _extractor_kernel(p0_ref, p1_ref, p23_ref,
                      w0_ref, b0_ref, w1_ref, b1_ref,
                      w2_ref, b2_ref, w3_ref, b3_ref,
                      o0_ref, o1_ref, o2_ref, o3_ref):
    def emb(p, w_ref, b_ref):
        y = jnp.dot(p, w_ref[...], preferred_element_type=jnp.float32) + b_ref[...]
        return y.astype(jnp.bfloat16)

    o0_ref[...] = emb(p0_ref[...].astype(jnp.bfloat16), w0_ref, b0_ref)
    o1_ref[...] = emb(p1_ref[...].astype(jnp.bfloat16), w1_ref, b1_ref)
    p23 = p23_ref[...].astype(jnp.bfloat16)
    o2_ref[...] = emb(p23, w2_ref, b2_ref)
    o3_ref[...] = emb(p23, w3_ref, b3_ref)


def extractor_forward(params, x):
    Bn = x.shape[0]

    def patches(P):
        S = IN_SIZE // P
        t = x.reshape(Bn, 3, S, P, S, P)
        return jnp.transpose(t, (0, 2, 4, 1, 3, 5)).reshape(Bn * S * S, 3 * P * P)

    p0, p1, p23 = patches(4), patches(8), patches(16)       # K = 48 / 192 / 768 (no pad)
    out_shapes = [jax.ShapeDtypeStruct((TOK[i], GLOBAL_DIM), jnp.bfloat16)
                  for i in range(NUM_LAYERS)]
    args = (p0, p1, p23,
            params["pe_w0"], params["pe_b0"], params["pe_w1"], params["pe_b1"],
            params["pe_w2"], params["pe_b2"], params["pe_w3"], params["pe_b3"])
    return pl.pallas_call(
        _extractor_kernel,
        out_shape=out_shapes,
        grid=(1,),
        in_specs=[_fs(a.shape) for a in args],
        out_specs=[_fs(s.shape) for s in out_shapes],
        compiler_params=pltpu.CompilerParams(dimension_semantics=("arbitrary",)),
    )(*args)


# ------------------ kernel 2: fused FPN + classifiers + 'ori' -----------------
def _fpn_cls_ori_kernel(x0_ref, x1_ref, x2_ref, x3_ref,
                        fw1_ref, fb1_ref, fw2_ref, fb2_ref,
                        u2w_ref, u2b_ref, u1w_ref, u1b_ref,
                        cw1_ref, cb1_ref, cw2_ref, cb2_ref,
                        lng_ref, lnb_ref, hw_ref, hb_ref,
                        feat_ref, logit_ref, ori_ref):
    def fpn_mlp(x_bf, i):
        h = jnp.dot(x_bf, fw1_ref[i], preferred_element_type=jnp.float32) + fb1_ref[i]
        h = jnp.maximum(h, 0.0).astype(jnp.bfloat16)
        return jnp.dot(h, fw2_ref[i], preferred_element_type=jnp.float32) + fb2_ref[i]

    def classify(fv, i):
        h = jnp.dot(fv.astype(jnp.bfloat16), cw1_ref[i],
                    preferred_element_type=jnp.float32) + cb1_ref[i]
        h = jnp.maximum(h, 0.0).astype(jnp.bfloat16)
        return jnp.dot(h, cw2_ref[i], preferred_element_type=jnp.float32) + cb2_ref[i]

    # ---- top-down FPN (all intermediates stay resident in VMEM) ----
    f3 = fpn_mlp(x3_ref[...], 3)                                            # (32, 128)
    f2 = fpn_mlp(x2_ref[...], 2) + f3                                       # (32, 128)
    up2 = jnp.dot(u2w_ref[...], f2.astype(jnp.bfloat16),
                  preferred_element_type=jnp.float32) + u2b_ref[...]        # (128, 128)
    f1 = fpn_mlp(x1_ref[...], 1) + up2                                      # (128, 128)
    up1 = jnp.dot(u1w_ref[...], f1.astype(jnp.bfloat16),
                  preferred_element_type=jnp.float32) + u1b_ref[...]        # (512, 128)
    f0 = fpn_mlp(x0_ref[...], 0) + up1                                      # (512, 128)

    fs = (f0, f1, f2, f3)
    for i in range(NUM_LAYERS):
        feat_ref[OFFS[i]:OFFS[i + 1], :] = fs[i].astype(jnp.bfloat16)
        logit_ref[OFFS[i]:OFFS[i + 1], :] = classify(fs[i], i)

    # ---- 'ori' head: LayerNorm + per-batch token mean + head matmul ----
    mu = jnp.mean(f3, axis=-1, keepdims=True)
    xc = f3 - mu
    var = jnp.mean(xc * xc, axis=-1, keepdims=True)
    xn = xc * jax.lax.rsqrt(var + LN_EPS) * lng_ref[...] + lnb_ref[...]     # (32, 128)
    L3 = LAYER_DIMS[-1][0]
    pooled = jnp.concatenate(
        [jnp.mean(xn[b * L3:(b + 1) * L3, :], axis=0, keepdims=True) for b in range(B)],
        axis=0)                                                             # (B, 128)
    ori_ref[...] = jnp.dot(pooled.astype(jnp.bfloat16), hw_ref[...],
                           preferred_element_type=jnp.float32) + hb_ref[...]


def fpn_cls_ori(params, l0, l1, l2, l3):
    out_shapes = (jax.ShapeDtypeStruct((TOTAL_TOK, GLOBAL_DIM), jnp.bfloat16),
                  jax.ShapeDtypeStruct((TOTAL_TOK, NP_CLS), jnp.float32),
                  jax.ShapeDtypeStruct((B, NP_CLS), jnp.float32))
    args = (l0, l1, l2, l3,
            params["fpn_w1"], params["fpn_b1"], params["fpn_w2"], params["fpn_b2"],
            params["up2_w"], params["up2_b"], params["up1_w"], params["up1_b"],
            params["cls_w1"], params["cls_b1"], params["cls_w2"], params["cls_b2"],
            params["ln_g"], params["ln_b"], params["head_w"], params["head_b"])
    return pl.pallas_call(
        _fpn_cls_ori_kernel,
        out_shape=out_shapes,
        grid=(1,),
        in_specs=[_fs(a.shape) for a in args],
        out_specs=[_fs(s.shape) for s in out_shapes],
        compiler_params=pltpu.CompilerParams(dimension_semantics=("arbitrary",)),
    )(*args)


# ------------------------- kernel 3: fused lane-dense GCN ---------------------
# Layout: joints on sublanes (j0=2 padded to 8), 128-feature dim on lanes everywhere.
def _gcn_kernel(sel_ref, p1w_ref, row_ref, small_ref, c1wT_ref, clswT_ref, o_ref):
    rows = row_ref[...]                                    # (8, 128) packed row params
    qw_row = rows[0:1, :]
    kw_row = rows[1:2, :]
    c1b_row = rows[2:3, :]
    bns_row = rows[3:4, :]
    bnb_row = rows[4:5, :]
    clsb_row = rows[5:6, :]
    small = small_ref[...]                                 # (8, 128) packed small params
    p1b_col = small[:, 0:1]
    p4w_col = small[:, 1:2]
    adj = small[:, 8:16]                                   # padded (symmetric) adjacency
    amask = small[:, 16:24]                                # alpha1 inside valid j0 block
    dbmat = small[:, 24:32]                                # mean(q_bias) - mean(k_bias)
    p1w_bf = p1w_ref[...].astype(jnp.bfloat16)             # (8, J)
    c1wT = c1wT_ref[...]
    clswT = clswT_ref[...]

    outs = []
    for b in range(B):
        selb = sel_ref[b]                                                  # (J, F) bf16
        x0 = jnp.dot(p1w_bf, selb,
                     preferred_element_type=jnp.float32) + p1b_col          # (8, F)
        # q as a row (QK^T-style contraction), k as a column (lane reduce)
        q1r = jax.lax.dot_general(qw_row, x0, (((1,), (1,)), ((), ())),
                                  preferred_element_type=jnp.float32)       # (1, 8)
        k1c = jnp.sum(x0 * kw_row, axis=1, keepdims=True)                   # (8, 1)
        a1t = adj + amask * jnp.tanh(q1r - k1c + dbmat)                     # (8, 8) = A1^T
        x1 = jnp.dot(x0.astype(jnp.bfloat16), c1wT,
                     preferred_element_type=jnp.float32) + c1b_row           # (8, F)
        y = jnp.dot(a1t, x1, preferred_element_type=jnp.float32)             # (8, F)
        y = y * bns_row + bnb_row                                            # BatchNorm (eval)
        pooled = jnp.sum(y * p4w_col, axis=0, keepdims=True)                 # (1, F) pool4
        outs.append(jnp.dot(pooled.astype(jnp.bfloat16), clswT,
                            preferred_element_type=jnp.float32) + clsb_row)  # (1, NP_CLS)
    o_ref[...] = jnp.concatenate(outs, axis=0)                               # (B, NP_CLS)


def gcn_forward(g, sel):
    args = (sel, g["p1w"], g["rowpack"], g["smallpack"], g["c1wT"], g["cls_wT"])
    out = pl.pallas_call(
        _gcn_kernel,
        out_shape=jax.ShapeDtypeStruct((B, NP_CLS), jnp.float32),
        grid=(1,),
        in_specs=[_fs(a.shape) for a in args],
        out_specs=_fs((B, NP_CLS)),
        compiler_params=pltpu.CompilerParams(dimension_semantics=("arbitrary",)),
    )(*args)
    return out[:, :NUM_CLASSES]


# ------------------------------ parameters -----------------------------------
def make_params(key):
    keys = iter(jax.random.split(key, 64))

    def rnd(shape):
        return 0.02 * jax.random.normal(next(keys), shape, jnp.float32)

    p = {}

    # synthetic per-stage patch embed  # TODO(synk): real Swin-L backbone
    def pe(P, C):
        K = 3 * P * P
        w = jnp.zeros((K, GLOBAL_DIM), jnp.float32).at[:, :C].set(rnd((K, C)))
        b = jnp.zeros((1, GLOBAL_DIM), jnp.float32).at[0, :C].set(rnd((C,)))
        return w.astype(jnp.bfloat16), b

    p["pe_w0"], p["pe_b0"] = pe(4, LAYER_DIMS[0][1])
    p["pe_w1"], p["pe_b1"] = pe(8, LAYER_DIMS[1][1])
    p["pe_w2"], p["pe_b2"] = pe(16, LAYER_DIMS[2][1])
    p["pe_w3"], p["pe_b3"] = pe(16, LAYER_DIMS[3][1])

    # FPN: Linear(C,C) -> ReLU -> Linear(C, GLOBAL); channel-padded to 128, stacked.
    fw1, fb1, fw2, fb2 = [], [], [], []
    for (_, C) in LAYER_DIMS:
        w1 = jnp.zeros((GLOBAL_DIM, GLOBAL_DIM), jnp.float32).at[:C, :C].set(rnd((C, C)))
        b1 = jnp.zeros((1, GLOBAL_DIM), jnp.float32).at[0, :C].set(rnd((C,)))
        w2 = jnp.zeros((GLOBAL_DIM, GLOBAL_DIM), jnp.float32).at[:C, :].set(rnd((C, GLOBAL_DIM)))
        b2 = rnd((1, GLOBAL_DIM))
        fw1.append(w1); fb1.append(b1); fw2.append(w2); fb2.append(b2)
    p["fpn_w1"] = jnp.stack(fw1).astype(jnp.bfloat16)        # (4, 128, 128)
    p["fpn_b1"] = jnp.stack(fb1)                             # (4, 1, 128)
    p["fpn_w2"] = jnp.stack(fw2).astype(jnp.bfloat16)
    p["fpn_b2"] = jnp.stack(fb2)

    # upsample_i (Conv1d over token axis) as block-diagonal batch matmuls
    def up_blockdiag(Lout, Lin):
        w = rnd((Lout, Lin))
        bvec = rnd((Lout,))
        wd = jnp.zeros((B * Lout, B * Lin), jnp.float32)
        for b in range(B):
            wd = wd.at[b * Lout:(b + 1) * Lout, b * Lin:(b + 1) * Lin].set(w)
        bd = jnp.tile(bvec, (B,)).reshape(B * Lout, 1)
        return wd.astype(jnp.bfloat16), bd

    p["up2_w"], p["up2_b"] = up_blockdiag(LAYER_DIMS[1][0], LAYER_DIMS[2][0])   # 16 -> 64
    p["up1_w"], p["up1_b"] = up_blockdiag(LAYER_DIMS[0][0], LAYER_DIMS[1][0])   # 64 -> 256

    # classifier_l_i: Conv2d(g,g,1) -> BN2d (eval, folded) -> ReLU -> Conv2d(g,ncls,1)
    cw1s, cb1s, cw2s, cb2s = [], [], [], []
    for _ in range(NUM_LAYERS):
        cw1 = rnd((GLOBAL_DIM, GLOBAL_DIM))
        cb1 = rnd((GLOBAL_DIM,))
        cw2 = rnd((NUM_CLASSES, GLOBAL_DIM))
        cb2 = rnd((NUM_CLASSES,))
        gamma = jnp.ones((GLOBAL_DIM,), jnp.float32)
        beta = jnp.zeros((GLOBAL_DIM,), jnp.float32)
        rm = jnp.zeros((GLOBAL_DIM,), jnp.float32)
        rv = jnp.ones((GLOBAL_DIM,), jnp.float32)
        s = gamma / jnp.sqrt(rv + BN_EPS)
        w1f = cw1.T * s[None, :]                              # BN folded, [in, out]
        b1f = cb1 * s + beta - rm * s
        w2p = jnp.zeros((GLOBAL_DIM, NP_CLS), jnp.float32).at[:, :NUM_CLASSES].set(cw2.T)
        b2p = jnp.zeros((NP_CLS,), jnp.float32).at[:NUM_CLASSES].set(cb2)
        cw1s.append(w1f); cb1s.append(b1f.reshape(1, GLOBAL_DIM))
        cw2s.append(w2p); cb2s.append(b2p.reshape(1, NP_CLS))
    p["cls_w1"] = jnp.stack(cw1s).astype(jnp.bfloat16)        # (4, 128, 128)
    p["cls_b1"] = jnp.stack(cb1s)                             # (4, 1, 128)
    p["cls_w2"] = jnp.stack(cw2s).astype(jnp.bfloat16)
    p["cls_b2"] = jnp.stack(cb2s)

    # 'ori' head: LayerNorm + Linear(GLOBAL, ncls) (class dim lane-padded)
    p["ln_g"] = jnp.ones((1, GLOBAL_DIM), jnp.float32)
    p["ln_b"] = jnp.zeros((1, GLOBAL_DIM), jnp.float32)
    p["head_w"] = (jnp.zeros((GLOBAL_DIM, NP_CLS), jnp.float32)
                   .at[:, :NUM_CLASSES].set(rnd((GLOBAL_DIM, NUM_CLASSES)))).astype(jnp.bfloat16)
    p["head_b"] = jnp.zeros((1, NP_CLS), jnp.float32).at[0, :NUM_CLASSES].set(rnd((NUM_CLASSES,)))

    # ---- GCN (packed for the single fused lane-dense kernel; j0=2 padded to 8) ----
    p1w = rnd((GCN_J0, NUM_JOINTS))
    p1b = rnd((GCN_J0,))
    qw = rnd((GLOBAL_DIM // 4, GLOBAL_DIM)); qb = rnd((GLOBAL_DIM // 4,))
    kw = rnd((GLOBAL_DIM // 4, GLOBAL_DIM)); kb = rnd((GLOBAL_DIM // 4,))
    c1w = rnd((GLOBAL_DIM, GLOBAL_DIM)); c1b = rnd((GLOBAL_DIM,))
    p4w = rnd((1, GCN_J0)); p4b = rnd((1,))
    clsw = rnd((NUM_CLASSES, GLOBAL_DIM)); clsb = rnd((NUM_CLASSES,))
    alpha1 = jnp.float32(0.0)                                 # nn.Parameter(zeros(1)) init
    # BatchNorm1d eval-mode fold (default running stats)
    bns = jnp.full((GLOBAL_DIM,), 1.0 / jnp.sqrt(1.0 + BN_EPS), jnp.float32)
    bnb = jnp.zeros((GLOBAL_DIM,), jnp.float32)

    g = {}
    g["p1w"] = jnp.zeros((8, NUM_JOINTS), jnp.float32).at[:GCN_J0].set(p1w)
    rowpack = jnp.zeros((8, GLOBAL_DIM), jnp.float32)
    rowpack = rowpack.at[0].set(jnp.mean(qw, axis=0))         # mean over q out-channels
    rowpack = rowpack.at[1].set(jnp.mean(kw, axis=0))
    rowpack = rowpack.at[2].set(c1b)
    rowpack = rowpack.at[3].set(bns)
    rowpack = rowpack.at[4].set(bnb)
    cls_b_eff = jnp.zeros((NP_CLS,), jnp.float32).at[:NUM_CLASSES].set(
        clsb + p4b[0] * jnp.sum(clsw, axis=1))                # pool4 bias folded in
    rowpack = rowpack.at[5].set(cls_b_eff)
    g["rowpack"] = rowpack

    db = jnp.mean(qb) - jnp.mean(kb)
    adj = jnp.eye(GCN_J0, dtype=jnp.float32) / 100.0 + 1.0 / 100.0
    small = jnp.zeros((8, GLOBAL_DIM), jnp.float32)
    small = small.at[:GCN_J0, 0].set(p1b)                     # pool1 bias (column)
    small = small.at[:GCN_J0, 1].set(p4w[0])                  # pool4 weight (column)
    small = small.at[:GCN_J0, 8:8 + GCN_J0].set(adj)          # (symmetric) adjacency
    small = small.at[:GCN_J0, 16:16 + GCN_J0].set(alpha1)     # alpha1 mask
    small = small.at[:, 24:32].set(db)                        # q/k bias-mean delta
    g["smallpack"] = small

    g["c1wT"] = c1w.T.astype(jnp.bfloat16)                    # (128, 128)
    g["cls_wT"] = (jnp.zeros((GLOBAL_DIM, NP_CLS), jnp.float32)
                   .at[:, :NUM_CLASSES].set(clsw.T)).astype(jnp.bfloat16)
    p["gcn"] = g
    return p


# ------------------------------ model forward --------------------------------
def forward(params, x, labels):
    assert x.shape[0] == B, "stage offsets / block-diag upsample weights are baked for B"
    Bn = B
    logits, accs, losses = {}, {}, {}

    # (1) synthetic extractor -> per-stage token slabs (B*L_i, 128), bf16
    l0, l1, l2, l3 = extractor_forward(params, x)

    # (2) fused FPN + classifiers + ori head
    feat_slab, logit_slab, ori_out = fpn_cls_ori(params, l0, l1, l2, l3)

    selected_features = []
    for i in range(NUM_LAYERS):
        L = LAYER_DIMS[i][0]
        S = int(round(L ** 0.5))
        ns = NUM_SELECTS[i]
        o0, o1 = OFFS[i], OFFS[i + 1]
        lg = logit_slab[o0:o1, :NUM_CLASSES].reshape(Bn, L, NUM_CLASSES)   # f32
        fi = feat_slab[o0:o1, :].reshape(Bn, L, GLOBAL_DIM)                # bf16
        logits[f"l_{i}"] = jnp.transpose(lg, (0, 2, 1)).reshape(Bn, NUM_CLASSES, S, S)

        probs = jax.nn.softmax(lg, axis=-1)
        maxp = jnp.max(probs, axis=-1)                                     # (B, L)
        _, idx = jax.lax.top_k(maxp, ns)                                   # (B, ns)
        sel_l = jnp.take_along_axis(lg, idx[:, :, None], axis=1)           # (B, ns, ncls)
        sel_f = jnp.take_along_axis(fi, idx[:, :, None], axis=1)           # (B, ns, 128)
        selected_features.append(sel_f)

        losses[f"l{i}_selected"] = jnp.zeros((), jnp.float32)              # loss1 == 0 in ref
        t_all = jnp.sum((jnp.tanh(lg) + 1.0) ** 2)
        t_sel = jnp.sum((jnp.tanh(sel_l) + 1.0) ** 2)
        losses[f"l{i}_not_selected"] = 5.0 * (t_all - t_sel) / (Bn * (L - ns) * NUM_CLASSES)

        preds = jnp.argmax(lg, axis=-1)
        corr_all = jnp.sum(preds == labels[:, None])
        preds_sel = jnp.take_along_axis(preds, idx, axis=1)
        corr_sel = jnp.sum(preds_sel == labels[:, None])
        accs[f"l{i}_selected"] = corr_sel / (Bn * ns)
        accs[f"l{i}_not_selected"] = (corr_all - corr_sel) / (Bn * L)      # reproduces ref quirk
        logits[f"l{i}_selected"] = sel_l

        merged = jnp.mean(lg, axis=1)                                      # (B, ncls)
        losses[f"l_{i}"] = 0.5 * cross_entropy(merged, labels)
        accs[f"l_{i}"] = accuracy(merged, labels)

    # 'ori' head (computed inside the fused kernel)
    logits["ori"] = ori_out[:, :NUM_CLASSES]
    losses["ori"] = cross_entropy(logits["ori"], labels)
    accs["ori"] = accuracy(logits["ori"], labels)

    # (3) GCN over selected features: one fused lane-dense kernel
    sel = jnp.concatenate(selected_features, axis=1)                       # (B, 64, 128) bf16
    logits["gcn"] = gcn_forward(params["gcn"], sel)
    losses["gcn"] = cross_entropy(logits["gcn"], labels)
    accs["gcn"] = accuracy(logits["gcn"], labels)

    return losses, accs, logits


# ----------------------------------- main -------------------------------------
if __name__ == "__main__":
    key = jax.random.PRNGKey(0)
    pkey, xkey, lkey = jax.random.split(key, 3)
    params = make_params(pkey)
    x = jax.random.normal(xkey, (B, 3, IN_SIZE, IN_SIZE), jnp.float32)     # NCHW like PyTorch
    labels = jax.random.randint(lkey, (B,), 0, NUM_CLASSES)

    fwd = jax.jit(forward)
    losses, accs, logits = fwd(params, x, labels)
    jax.block_until_ready((losses, accs, logits))

    for k, v in losses.items():
        assert bool(jnp.all(jnp.isfinite(jnp.asarray(v)))), f"non-finite loss {k}"
    print("KERNEL_OK")
</pallas_src>

<mosaic_0001>
module attributes {stable_mosaic.version = 11 : i64} {
  func.func @_extractor_kernel(%arg0: i32, %arg1: memref<512x48xf32, #tpu.memory_space<vmem>>, %arg2: memref<128x192xf32, #tpu.memory_space<vmem>>, %arg3: memref<32x768xf32, #tpu.memory_space<vmem>>, %arg4: memref<48x128xbf16, #tpu.memory_space<vmem>>, %arg5: memref<1x128xf32, #tpu.memory_space<vmem>>, %arg6: memref<192x128xbf16, #tpu.memory_space<vmem>>, %arg7: memref<1x128xf32, #tpu.memory_space<vmem>>, %arg8: memref<768x128xbf16, #tpu.memory_space<vmem>>, %arg9: memref<1x128xf32, #tpu.memory_space<vmem>>, %arg10: memref<768x128xbf16, #tpu.memory_space<vmem>>, %arg11: memref<1x128xf32, #tpu.memory_space<vmem>>, %arg12: memref<512x128xbf16, #tpu.memory_space<vmem>>, %arg13: memref<128x128xbf16, #tpu.memory_space<vmem>>, %arg14: memref<32x128xbf16, #tpu.memory_space<vmem>>, %arg15: memref<32x128xbf16, #tpu.memory_space<vmem>>) attributes {dimension_semantics = [#tpu.dimension_semantics<arbitrary>], iteration_bounds = array<i64: 1>, scalar_prefetch = 0 : i64, scratch_operands = 0 : i64, tpu.core_type = #tpu.core_type<tc>, window_params = [{pipeline_mode = #tpu.pipeline_mode<synchronous>, transform_indices = @transform_0, window_bounds = array<i64: 512, 48>}, {pipeline_mode = #tpu.pipeline_mode<synchronous>, transform_indices = @transform_1, window_bounds = array<i64: 128, 192>}, {pipeline_mode = #tpu.pipeline_mode<synchronous>, transform_indices = @transform_2, window_bounds = array<i64: 32, 768>}, {pipeline_mode = #tpu.pipeline_mode<synchronous>, transform_indices = @transform_3, window_bounds = array<i64: 48, 128>}, {pipeline_mode = #tpu.pipeline_mode<synchronous>, transform_indices = @transform_4, window_bounds = array<i64: 1, 128>}, {pipeline_mode = #tpu.pipeline_mode<synchronous>, transform_indices = @transform_5, window_bounds = array<i64: 192, 128>}, {pipeline_mode = #tpu.pipeline_mode<synchronous>, transform_indices = @transform_6, window_bounds = array<i64: 1, 128>}, {pipeline_mode = #tpu.pipeline_mode<synchronous>, transform_indices = @transform_7, window_bounds = array<i64: 768, 128>}, {pipeline_mode = #tpu.pipeline_mode<synchronous>, transform_indices = @transform_8, window_bounds = array<i64: 1, 128>}, {pipeline_mode = #tpu.pipeline_mode<synchronous>, transform_indices = @transform_9, window_bounds = array<i64: 768, 128>}, {pipeline_mode = #tpu.pipeline_mode<synchronous>, transform_indices = @transform_10, window_bounds = array<i64: 1, 128>}, {pipeline_mode = #tpu.pipeline_mode<synchronous>, transform_indices = @transform_11, window_bounds = array<i64: 512, 128>}, {pipeline_mode = #tpu.pipeline_mode<synchronous>, transform_indices = @transform_12, window_bounds = array<i64: 128, 128>}, {pipeline_mode = #tpu.pipeline_mode<synchronous>, transform_indices = @transform_13, window_bounds = array<i64: 32, 128>}, {pipeline_mode = #tpu.pipeline_mode<synchronous>, transform_indices = @transform_14, window_bounds = array<i64: 32, 128>}]} {
    %c0 = arith.constant 0 : index
    %c0_0 = arith.constant 0 : index
    %0 = vector.load %arg1[%c0, %c0_0] : memref<512x48xf32, #tpu.memory_space<vmem>>, vector<512x48xf32>
    %1 = arith.truncf %0 : vector<512x48xf32> to vector<512x48xbf16>
    %c0_1 = arith.constant 0 : index
    %c0_2 = arith.constant 0 : index
    %2 = vector.load %arg4[%c0_1, %c0_2] : memref<48x128xbf16, #tpu.memory_space<vmem>>, vector<48x128xbf16>
    %cst = arith.constant dense<0.000000e+00> : vector<512x128xf32>
    %3 = tpu.matmul %1, %2, %cst {dimension_numbers = #tpu.dot_dimension_numbers<[1], [0], [0], [1], [0, 0, 1, 1], [], []>} : vector<512x48xbf16>, vector<48x128xbf16>, vector<512x128xf32> -> vector<512x128xf32>
    %c0_3 = arith.constant 0 : index
    %c0_4 = arith.constant 0 : index
    %4 = vector.load %arg5[%c0_3, %c0_4] : memref<1x128xf32, #tpu.memory_space<vmem>>, vector<1x128xf32>
    %5 = vector.broadcast %4 : vector<1x128xf32> to vector<512x128xf32>
    %6 = arith.addf %3, %5 : vector<512x128xf32>
    %7 = arith.truncf %6 : vector<512x128xf32> to vector<512x128xbf16>
    %c0_5 = arith.constant 0 : index
    %c0_6 = arith.constant 0 : index
    %8 = vector.load %arg12[%c0_5, %c0_6] : memref<512x128xbf16, #tpu.memory_space<vmem>>, vector<512x128xbf16>
    tpu.vector_store %arg12[%c0_5, %c0_6], %7 {strides = array<i32>} : memref<512x128xbf16, #tpu.memory_space<vmem>>, vector<512x128xbf16>,
    %c0_7 = arith.constant 0 : index
    %c0_8 = arith.constant 0 : index
    %9 = vector.load %arg2[%c0_7, %c0_8] : memref<128x192xf32, #tpu.memory_space<vmem>>, vector<128x192xf32>
    %10 = arith.truncf %9 : vector<128x192xf32> to vector<128x192xbf16>
    %c0_9 = arith.constant 0 : index
    %c0_10 = arith.constant 0 : index
    %11 = vector.load %arg6[%c0_9, %c0_10] : memref<192x128xbf16, #tpu.memory_space<vmem>>, vector<192x128xbf16>
    %cst_11 = arith.constant dense<0.000000e+00> : vector<128x128xf32>
    %12 = tpu.matmul %10, %11, %cst_11 {dimension_numbers = #tpu.dot_dimension_numbers<[1], [0], [0], [1], [0, 0, 1, 1], [], []>} : vector<128x192xbf16>, vector<192x128xbf16>, vector<128x128xf32> -> vector<128x128xf32>
    %c0_12 = arith.constant 0 : index
    %c0_13 = arith.constant 0 : index
    %13 = vector.load %arg7[%c0_12, %c0_13] : memref<1x128xf32, #tpu.memory_space<vmem>>, vector<1x128xf32>
    %14 = vector.broadcast %13 : vector<1x128xf32> to vector<128x128xf32>
    %15 = arith.addf %12, %14 : vector<128x128xf32>
    %16 = arith.truncf %15 : vector<128x128xf32> to vector<128x128xbf16>
    %c0_14 = arith.constant 0 : index
    %c0_15 = arith.constant 0 : index
    %17 = vector.load %arg13[%c0_14, %c0_15] : memref<128x128xbf16, #tpu.memory_space<vmem>>, vector<128x128xbf16>
    tpu.vector_store %arg13[%c0_14, %c0_15], %16 {strides = array<i32>} : memref<128x128xbf16, #tpu.memory_space<vmem>>, vector<128x128xbf16>,
    %c0_16 = arith.constant 0 : index
    %c0_17 = arith.constant 0 : index
    %18 = vector.load %arg3[%c0_16, %c0_17] : memref<32x768xf32, #tpu.memory_space<vmem>>, vector<32x768xf32>
    %19 = arith.truncf %18 : vector<32x768xf32> to vector<32x768xbf16>
    %c0_18 = arith.constant 0 : index
    %c0_19 = arith.constant 0 : index
    %20 = vector.load %arg8[%c0_18, %c0_19] : memref<768x128xbf16, #tpu.memory_space<vmem>>, vector<768x128xbf16>
    %cst_20 = arith.constant dense<0.000000e+00> : vector<32x128xf32>
    %21 = tpu.matmul %19, %20, %cst_20 {dimension_numbers = #tpu.dot_dimension_numbers<[1], [0], [0], [1], [0, 0, 1, 1], [], []>} : vector<32x768xbf16>, vector<768x128xbf16>, vector<32x128xf32> -> vector<32x128xf32>
    %c0_21 = arith.constant 0 : index
    %c0_22 = arith.constant 0 : index
    %22 = vector.load %arg9[%c0_21, %c0_22] : memref<1x128xf32, #tpu.memory_space<vmem>>, vector<1x128xf32>
    %23 = vector.broadcast %22 : vector<1x128xf32> to vector<32x128xf32>
    %24 = arith.addf %21, %23 : vector<32x128xf32>
    %25 = arith.truncf %24 : vector<32x128xf32> to vector<32x128xbf16>
    %c0_23 = arith.constant 0 : index
    %c0_24 = arith.constant 0 : index
    %26 = vector.load %arg14[%c0_23, %c0_24] : memref<32x128xbf16, #tpu.memory_space<vmem>>, vector<32x128xbf16>
    tpu.vector_store %arg14[%c0_23, %c0_24], %25 {strides = array<i32>} : memref<32x128xbf16, #tpu.memory_space<vmem>>, vector<32x128xbf16>,
    %c0_25 = arith.constant 0 : index
    %c0_26 = arith.constant 0 : index
    %27 = vector.load %arg10[%c0_25, %c0_26] : memref<768x128xbf16, #tpu.memory_space<vmem>>, vector<768x128xbf16>
    %cst_27 = arith.constant dense<0.000000e+00> : vector<32x128xf32>
    %28 = tpu.matmul %19, %27, %cst_27 {dimension_numbers = #tpu.dot_dimension_numbers<[1], [0], [0], [1], [0, 0, 1, 1], [], []>} : vector<32x768xbf16>, vector<768x128xbf16>, vector<32x128xf32> -> vector<32x128xf32>
    %c0_28 = arith.constant 0 : index
    %c0_29 = arith.constant 0 : index
    %29 = vector.load %arg11[%c0_28, %c0_29] : memref<1x128xf32, #tpu.memory_space<vmem>>, vector<1x128xf32>
    %30 = vector.broadcast %29 : vector<1x128xf32> to vector<32x128xf32>
    %31 = arith.addf %28, %30 : vector<32x128xf32>
    %32 = arith.truncf %31 : vector<32x128xf32> to vector<32x128xbf16>
    %c0_30 = arith.constant 0 : index
    %c0_31 = arith.constant 0 : index
    %33 = vector.load %arg15[%c0_30, %c0_31] : memref<32x128xbf16, #tpu.memory_space<vmem>>, vector<32x128xbf16>
    tpu.vector_store %arg15[%c0_30, %c0_31], %32 {strides = array<i32>} : memref<32x128xbf16, #tpu.memory_space<vmem>>, vector<32x128xbf16>,
    return
  }
  func.func @transform_0(%arg0: i32) -> (i32, i32) {
    %c0_i32 = arith.constant 0 : i32
    %c0_i32_0 = arith.constant 0 : i32
    %c0_i32_1 = arith.constant 0 : i32
    return %c0_i32, %c0_i32_0 : i32, i32
  }
  func.func @transform_1(%arg0: i32) -> (i32, i32) {
    %c0_i32 = arith.constant 0 : i32
    %c0_i32_0 = arith.constant 0 : i32
    %c0_i32_1 = arith.constant 0 : i32
    return %c0_i32, %c0_i32_0 : i32, i32
  }
  func.func @transform_2(%arg0: i32) -> (i32, i32) {
    %c0_i32 = arith.constant 0 : i32
    %c0_i32_0 = arith.constant 0 : i32
    %c0_i32_1 = arith.constant 0 : i32
    return %c0_i32, %c0_i32_0 : i32, i32
  }
  func.func @transform_3(%arg0: i32) -> (i32, i32) {
    %c0_i32 = arith.constant 0 : i32
    %c0_i32_0 = arith.constant 0 : i32
    %c0_i32_1 = arith.constant 0 : i32
    return %c0_i32, %c0_i32_0 : i32, i32
  }
  func.func @transform_4(%arg0: i32) -> (i32, i32) {
    %c0_i32 = arith.constant 0 : i32
    %c0_i32_0 = arith.constant 0 : i32
    %c0_i32_1 = arith.constant 0 : i32
    return %c0_i32, %c0_i32_0 : i32, i32
  }
  func.func @transform_5(%arg0: i32) -> (i32, i32) {
    %c0_i32 = arith.constant 0 : i32
    %c0_i32_0 = arith.constant 0 : i32
    %c0_i32_1 = arith.constant 0 : i32
    return %c0_i32, %c0_i32_0 : i32, i32
  }
  func.func @transform_6(%arg0: i32) -> (i32, i32) {
    %c0_i32 = arith.constant 0 : i32
    %c0_i32_0 = arith.constant 0 : i32
    %c0_i32_1 = arith.constant 0 : i32
    return %c0_i32, %c0_i32_0 : i32, i32
  }
  func.func @transform_7(%arg0: i32) -> (i32, i32) {
    %c0_i32 = arith.constant 0 : i32
    %c0_i32_0 = arith.constant 0 : i32
    %c0_i32_1 = arith.constant 0 : i32
    return %c0_i32, %c0_i32_0 : i32, i32
  }
  func.func @transform_8(%arg0: i32) -> (i32, i32) {
    %c0_i32 = arith.constant 0 : i32
    %c0_i32_0 = arith.constant 0 : i32
    %c0_i32_1 = arith.constant 0 : i32
    return %c0_i32, %c0_i32_0 : i32, i32
  }
  func.func @transform_9(%arg0: i32) -> (i32, i32) {
    %c0_i32 = arith.constant 0 : i32
    %c0_i32_0 = arith.constant 0 : i32
    %c0_i32_1 = arith.constant 0 : i32
    return %c0_i32, %c0_i32_0 : i32, i32
  }
  func.func @transform_10(%arg0: i32) -> (i32, i32) {
    %c0_i32 = arith.constant 0 : i32
    %c0_i32_0 = arith.constant 0 : i32
    %c0_i32_1 = arith.constant 0 : i32
    return %c0_i32, %c0_i32_0 : i32, i32
  }
  func.func @transform_11(%arg0: i32) -> (i32, i32) {
    %c0_i32 = arith.constant 0 : i32
    %c0_i32_0 = arith.constant 0 : i32
    %c0_i32_1 = arith.constant 0 : i32
    return %c0_i32, %c0_i32_0 : i32, i32
  }
  func.func @transform_12(%arg0: i32) -> (i32, i32) {
    %c0_i32 = arith.constant 0 : i32
    %c0_i32_0 = arith.constant 0 : i32
    %c0_i32_1 = arith.constant 0 : i32
    return %c0_i32, %c0_i32_0 : i32, i32
  }
  func.func @transform_13(%arg0: i32) -> (i32, i32) {
    %c0_i32 = arith.constant 0 : i32
    %c0_i32_0 = arith.constant 0 : i32
    %c0_i32_1 = arith.constant 0 : i32
    return %c0_i32, %c0_i32_0 : i32, i32
  }
  func.func @transform_14(%arg0: i32) -> (i32, i32) {
    %c0_i32 = arith.constant 0 : i32
    %c0_i32_0 = arith.constant 0 : i32
    %c0_i32_1 = arith.constant 0 : i32
    return %c0_i32, %c0_i32_0 : i32, i32
  }
}

module attributes {stable_mosaic.version = 11 : i64} {
  func.func @_fpn_cls_ori_kernel(%arg0: i32, %arg1: memref<512x128xbf16, #tpu.memory_space<vmem>>, %arg2: memref<128x128xbf16, #tpu.memory_space<vmem>>, %arg3: memref<32x128xbf16, #tpu.memory_space<vmem>>, %arg4: memref<32x128xbf16, #tpu.memory_space<vmem>>, %arg5: memref<4x128x128xbf16, #tpu.memory_space<vmem>>, %arg6: memref<4x1x128xf32, #tpu.memory_space<vmem>>, %arg7: memref<4x128x128xbf16, #tpu.memory_space<vmem>>, %arg8: memref<4x1x128xf32, #tpu.memory_space<vmem>>, %arg9: memref<128x32xbf16, #tpu.memory_space<vmem>>, %arg10: memref<128x1xf32, #tpu.memory_space<vmem>>, %arg11: memref<512x128xbf16, #tpu.memory_space<vmem>>, %arg12: memref<512x1xf32, #tpu.memory_space<vmem>>, %arg13: memref<4x128x128xbf16, #tpu.memory_space<vmem>>, %arg14: memref<4x1x128xf32, #tpu.memory_space<vmem>>, %arg15: memref<4x128x128xbf16, #tpu.memory_space<vmem>>, %arg16: memref<4x1x128xf32, #tpu.memory_space<vmem>>, %arg17: memref<1x128xf32, #tpu.memory_space<vmem>>, %arg18: memref<1x128xf32, #tpu.memory_space<vmem>>, %arg19: memref<128x128xbf16, #tpu.memory_space<vmem>>, %arg20: memref<1x128xf32, #tpu.memory_space<vmem>>, %arg21: memref<704x128xbf16, #tpu.memory_space<vmem>>, %arg22: memref<704x128xf32, #tpu.memory_space<vmem>>, %arg23: memref<2x128xf32, #tpu.memory_space<vmem>>) attributes {dimension_semantics = [#tpu.dimension_semantics<arbitrary>], iteration_bounds = array<i64: 1>, scalar_prefetch = 0 : i64, scratch_operands = 0 : i64, tpu.core_type = #tpu.core_type<tc>, window_params = [{pipeline_mode = #tpu.pipeline_mode<synchronous>, transform_indices = @transform_0, window_bounds = array<i64: 512, 128>}, {pipeline_mode = #tpu.pipeline_mode<synchronous>, transform_indices = @transform_1, window_bounds = array<i64: 128, 128>}, {pipeline_mode = #tpu.pipeline_mode<synchronous>, transform_indices = @transform_2, window_bounds = array<i64: 32, 128>}, {pipeline_mode = #tpu.pipeline_mode<synchronous>, transform_indices = @transform_3, window_bounds = array<i64: 32, 128>}, {pipeline_mode = #tpu.pipeline_mode<synchronous>, transform_indices = @transform_4, window_bounds = array<i64: 4, 128, 128>}, {pipeline_mode = #tpu.pipeline_mode<synchronous>, transform_indices = @transform_5, window_bounds = array<i64: 4, 1, 128>}, {pipeline_mode = #tpu.pipeline_mode<synchronous>, transform_indices = @transform_6, window_bounds = array<i64: 4, 128, 128>}, {pipeline_mode = #tpu.pipeline_mode<synchronous>, transform_indices = @transform_7, window_bounds = array<i64: 4, 1, 128>}, {pipeline_mode = #tpu.pipeline_mode<synchronous>, transform_indices = @transform_8, window_bounds = array<i64: 128, 32>}, {pipeline_mode = #tpu.pipeline_mode<synchronous>, transform_indices = @transform_9, window_bounds = array<i64: 128, 1>}, {pipeline_mode = #tpu.pipeline_mode<synchronous>, transform_indices = @transform_10, window_bounds = array<i64: 512, 128>}, {pipeline_mode = #tpu.pipeline_mode<synchronous>, transform_indices = @transform_11, window_bounds = array<i64: 512, 1>}, {pipeline_mode = #tpu.pipeline_mode<synchronous>, transform_indices = @transform_12, window_bounds = array<i64: 4, 128, 128>}, {pipeline_mode = #tpu.pipeline_mode<synchronous>, transform_indices = @transform_13, window_bounds = array<i64: 4, 1, 128>}, {pipeline_mode = #tpu.pipeline_mode<synchronous>, transform_indices = @transform_14, window_bounds = array<i64: 4, 128, 128>}, {pipeline_mode = #tpu.pipeline_mode<synchronous>, transform_indices = @transform_15, window_bounds = array<i64: 4, 1, 128>}, {pipeline_mode = #tpu.pipeline_mode<synchronous>, transform_indices = @transform_16, window_bounds = array<i64: 1, 128>}, {pipeline_mode = #tpu.pipeline_mode<synchronous>, transform_indices = @transform_17, window_bounds = array<i64: 1, 128>}, {pipeline_mode = #tpu.pipeline_mode<synchronous>, transform_indices = @transform_18, window_bounds = array<i64: 128, 128>}, {pipeline_mode = #tpu.pipeline_mode<synchronous>, transform_indices = @transform_19, window_bounds = array<i64: 1, 128>}, {pipeline_mode = #tpu.pipeline_mode<synchronous>, transform_indices = @transform_20, window_bounds = array<i64: 704, 128>}, {pipeline_mode = #tpu.pipeline_mode<synchronous>, transform_indices = @transform_21, window_bounds = array<i64: 704, 128>}, {pipeline_mode = #tpu.pipeline_mode<synchronous>, transform_indices = @transform_22, window_bounds = array<i64: 2, 128>}]} {
    %c0 = arith.constant 0 : index
    %c0_0 = arith.constant 0 : index
    %0 = vector.load %arg4[%c0, %c0_0] : memref<32x128xbf16, #tpu.memory_space<vmem>>, vector<32x128xbf16>
    %c3 = arith.constant 3 : index
    %c0_1 = arith.constant 0 : index
    %c0_2 = arith.constant 0 : index
    %1 = vector.load %arg5[%c3, %c0_1, %c0_2] : memref<4x128x128xbf16, #tpu.memory_space<vmem>>, vector<1x128x128xbf16>
    %2 = vector.shape_cast %1 : vector<1x128x128xbf16> to vector<128x128xbf16>
    %cst = arith.constant dense<0.000000e+00> : vector<32x128xf32>
    %3 = tpu.matmul %0, %2, %cst {dimension_numbers = #tpu.dot_dimension_numbers<[1], [0], [0], [1], [0, 0, 1, 1], [], []>} : vector<32x128xbf16>, vector<128x128xbf16>, vector<32x128xf32> -> vector<32x128xf32>
    %c3_3 = arith.constant 3 : index
    %c0_4 = arith.constant 0 : index
    %c0_5 = arith.constant 0 : index
    %4 = vector.load %arg6[%c3_3, %c0_4, %c0_5] : memref<4x1x128xf32, #tpu.memory_space<vmem>>, vector<1x1x128xf32>
    %5 = vector.shape_cast %4 : vector<1x1x128xf32> to vector<1x128xf32>
    %6 = vector.broadcast %5 : vector<1x128xf32> to vector<32x128xf32>
    %7 = arith.addf %3, %6 : vector<32x128xf32>
    %cst_6 = arith.constant 0.000000e+00 : f32
    %8 = vector.broadcast %cst_6 : f32 to vector<32x128xf32>
    %9 = arith.maximumf %7, %8 : vector<32x128xf32>
    %10 = arith.truncf %9 : vector<32x128xf32> to vector<32x128xbf16>
    %c3_7 = arith.constant 3 : index
    %c0_8 = arith.constant 0 : index
    %c0_9 = arith.constant 0 : index
    %11 = vector.load %arg7[%c3_7, %c0_8, %c0_9] : memref<4x128x128xbf16, #tpu.memory_space<vmem>>, vector<1x128x128xbf16>
    %12 = vector.shape_cast %11 : vector<1x128x128xbf16> to vector<128x128xbf16>
    %cst_10 = arith.constant dense<0.000000e+00> : vector<32x128xf32>
    %13 = tpu.matmul %10, %12, %cst_10 {dimension_numbers = #tpu.dot_dimension_numbers<[1], [0], [0], [1], [0, 0, 1, 1], [], []>} : vector<32x128xbf16>, vector<128x128xbf16>, vector<32x128xf32> -> vector<32x128xf32>
    %c3_11 = arith.constant 3 : index
    %c0_12 = arith.constant 0 : index
    %c0_13 = arith.constant 0 : index
    %14 = vector.load %arg8[%c3_11, %c0_12, %c0_13] : memref<4x1x128xf32, #tpu.memory_space<vmem>>, vector<1x1x128xf32>
    %15 = vector.shape_cast %14 : vector<1x1x128xf32> to vector<1x128xf32>
    %16 = vector.broadcast %15 : vector<1x128xf32> to vector<32x128xf32>
    %17 = arith.addf %13, %16 : vector<32x128xf32>
    %c0_14 = arith.constant 0 : index
    %c0_15 = arith.constant 0 : index
    %18 = vector.load %arg3[%c0_14, %c0_15] : memref<32x128xbf16, #tpu.memory_space<vmem>>, vector<32x128xbf16>
    %c2 = arith.constant 2 : index
    %c0_16 = arith.constant 0 : index
    %c0_17 = arith.constant 0 : index
    %19 = vector.load %arg5[%c2, %c0_16, %c0_17] : memref<4x128x128xbf16, #tpu.memory_space<vmem>>, vector<1x128x128xbf16>
    %20 = vector.shape_cast %19 : vector<1x128x128xbf16> to vector<128x128xbf16>
    %cst_18 = arith.constant dense<0.000000e+00> : vector<32x128xf32>
    %21 = tpu.matmul %18, %20, %cst_18 {dimension_numbers = #tpu.dot_dimension_numbers<[1], [0], [0], [1], [0, 0, 1, 1], [], []>} : vector<32x128xbf16>, vector<128x128xbf16>, vector<32x128xf32> -> vector<32x128xf32>
    %c2_19 = arith.constant 2 : index
    %c0_20 = arith.constant 0 : index
    %c0_21 = arith.constant 0 : index
    %22 = vector.load %arg6[%c2_19, %c0_20, %c0_21] : memref<4x1x128xf32, #tpu.memory_space<vmem>>, vector<1x1x128xf32>
    %23 = vector.shape_cast %22 : vector<1x1x128xf32> to vector<1x128xf32>
    %24 = vector.broadcast %23 : vector<1x128xf32> to vector<32x128xf32>
    %25 = arith.addf %21, %24 : vector<32x128xf32>
    %cst_22 = arith.constant 0.000000e+00 : f32
    %26 = vector.broadcast %cst_22 : f32 to vector<32x128xf32>
    %27 = arith.maximumf %25, %26 : vector<32x128xf32>
    %28 = arith.truncf %27 : vector<32x128xf32> to vector<32x128xbf16>
    %c2_23 = arith.constant 2 : index
    %c0_24 = arith.constant 0 : index
    %c0_25 = arith.constant 0 : index
    %29 = vector.load %arg7[%c2_23, %c0_24, %c0_25] : memref<4x128x128xbf16, #tpu.memory_space<vmem>>, vector<1x128x128xbf16>
    %30 = vector.shape_cast %29 : vector<1x128x128xbf16> to vector<128x128xbf16>
    %cst_26 = arith.constant dense<0.000000e+00> : vector<32x128xf32>
    %31 = tpu.matmul %28, %30, %cst_26 {dimension_numbers = #tpu.dot_dimension_numbers<[1], [0], [0], [1], [0, 0, 1, 1], [], []>} : vector<32x128xbf16>, vector<128x128xbf16>, vector<32x128xf32> -> vector<32x128xf32>
    %c2_27 = arith.constant 2 : index
    %c0_28 = arith.constant 0 : index
    %c0_29 = arith.constant 0 : index
    %32 = vector.load %arg8[%c2_27, %c0_28, %c0_29] : memref<4x1x128xf32, #tpu.memory_space<vmem>>, vector<1x1x128xf32>
    %33 = vector.shape_cast %32 : vector<1x1x128xf32> to vector<1x128xf32>
    %34 = vector.broadcast %33 : vector<1x128xf32> to vector<32x128xf32>
    %35 = arith.addf %31, %34 : vector<32x128xf32>
    %36 = arith.addf %35, %17 : vector<32x128xf32>
    %c0_30 = arith.constant 0 : index
    %c0_31 = arith.constant 0 : index
    %37 = vector.load %arg9[%c0_30, %c0_31] : memref<128x32xbf16, #tpu.memory_space<vmem>>, vector<128x32xbf16>
    %38 = arith.truncf %36 : vector<32x128xf32> to vector<32x128xbf16>
    %cst_32 = arith.constant dense<0.000000e+00> : vector<128x128xf32>
    %39 = tpu.matmul %37, %38, %cst_32 {dimension_numbers = #tpu.dot_dimension_numbers<[1], [0], [0], [1], [0, 0, 1, 1], [], []>} : vector<128x32xbf16>, vector<32x128xbf16>, vector<128x128xf32> -> vector<128x128xf32>
    %c0_33 = arith.constant 0 : index
    %c0_34 = arith.constant 0 : index
    %40 = vector.load %arg10[%c0_33, %c0_34] : memref<128x1xf32, #tpu.memory_space<vmem>>, vector<128x1xf32>
    %41 = vector.broadcast %40 : vector<128x1xf32> to vector<128x128xf32>
    %42 = arith.addf %39, %41 : vector<128x128xf32>
    %c0_35 = arith.constant 0 : index
    %c0_36 = arith.constant 0 : index
    %43 = vector.load %arg2[%c0_35, %c0_36] : memref<128x128xbf16, #tpu.memory_space<vmem>>, vector<128x128xbf16>
    %c1 = arith.constant 1 : index
    %c0_37 = arith.constant 0 : index
    %c0_38 = arith.constant 0 : index
    %44 = vector.load %arg5[%c1, %c0_37, %c0_38] : memref<4x128x128xbf16, #tpu.memory_space<vmem>>, vector<1x128x128xbf16>
    %45 = vector.shape_cast %44 : vector<1x128x128xbf16> to vector<128x128xbf16>
    %cst_39 = arith.constant dense<0.000000e+00> : vector<128x128xf32>
    %46 = tpu.matmul %43, %45, %cst_39 {dimension_numbers = #tpu.dot_dimension_numbers<[1], [0], [0], [1], [0, 0, 1, 1], [], []>} : vector<128x128xbf16>, vector<128x128xbf16>, vector<128x128xf32> -> vector<128x128xf32>
    %c1_40 = arith.constant 1 : index
    %c0_41 = arith.constant 0 : index
    %c0_42 = arith.constant 0 : index
    %47 = vector.load %arg6[%c1_40, %c0_41, %c0_42] : memref<4x1x128xf32, #tpu.memory_space<vmem>>, vector<1x1x128xf32>
    %48 = vector.shape_cast %47 : vector<1x1x128xf32> to vector<1x128xf32>
    %49 = vector.broadcast %48 : vector<1x128xf32> to vector<128x128xf32>
    %50 = arith.addf %46, %49 : vector<128x128xf32>
    %cst_43 = arith.constant 0.000000e+00 : f32
    %51 = vector.broadcast %cst_43 : f32 to vector<128x128xf32>
    %52 = arith.maximumf %50, %51 : vector<128x128xf32>
    %53 = arith.truncf %52 : vector<128x128xf32> to vector<128x128xbf16>
    %c1_44 = arith.constant 1 : index
    %c0_45 = arith.constant 0 : index
    %c0_46 = arith.constant 0 : index
    %54 = vector.load %arg7[%c1_44, %c0_45, %c0_46] : memref<4x128x128xbf16, #tpu.memory_space<vmem>>, vector<1x128x128xbf16>
    %55 = vector.shape_cast %54 : vector<1x128x128xbf16> to vector<128x128xbf16>
    %cst_47 = arith.constant dense<0.000000e+00> : vector<128x128xf32>
    %56 = tpu.matmul %53, %55, %cst_47 {dimension_numbers = #tpu.dot_dimension_numbers<[1], [0], [0], [1], [0, 0, 1, 1], [], []>} : vector<128x128xbf16>, vector<128x128xbf16>, vector<128x128xf32> -> vector<128x128xf32>
    %c1_48 = arith.constant 1 : index
    %c0_49 = arith.constant 0 : index
    %c0_50 = arith.constant 0 : index
    %57 = vector.load %arg8[%c1_48, %c0_49, %c0_50] : memref<4x1x128xf32, #tpu.memory_space<vmem>>, vector<1x1x128xf32>
    %58 = vector.shape_cast %57 : vector<1x1x128xf32> to vector<1x128xf32>
    %59 = vector.broadcast %58 : vector<1x128xf32> to vector<128x128xf32>
    %60 = arith.addf %56, %59 : vector<128x128xf32>
    %61 = arith.addf %60, %42 : vector<128x128xf32>
    %c0_51 = arith.constant 0 : index
    %c0_52 = arith.constant 0 : index
    %62 = vector.load %arg11[%c0_51, %c0_52] : memref<512x128xbf16, #tpu.memory_space<vmem>>, vector<512x128xbf16>
    %63 = arith.truncf %61 : vector<128x128xf32> to vector<128x128xbf16>
    %cst_53 = arith.constant dense<0.000000e+00> : vector<512x128xf32>
    %64 = tpu.matmul %62, %63, %cst_53 {dimension_numbers = #tpu.dot_dimension_numbers<[1], [0], [0], [1], [0, 0, 1, 1], [], []>} : vector<512x128xbf16>, vector<128x128xbf16>, vector<512x128xf32> -> vector<512x128xf32>
    %c0_54 = arith.constant 0 : index
    %c0_55 = arith.constant 0 : index
    %65 = vector.load %arg12[%c0_54, %c0_55] : memref<512x1xf32, #tpu.memory_space<vmem>>, vector<512x1xf32>
    %66 = vector.broadcast %65 : vector<512x1xf32> to vector<512x128xf32>
    %67 = arith.addf %64, %66 : vector<512x128xf32>
    %c0_56 = arith.constant 0 : index
    %c0_57 = arith.constant 0 : index
    %68 = vector.load %arg1[%c0_56, %c0_57] : memref<512x128xbf16, #tpu.memory_space<vmem>>, vector<512x128xbf16>
    %c0_58 = arith.constant 0 : index
    %c0_59 = arith.constant 0 : index
    %c0_60 = arith.constant 0 : index
    %69 = vector.load %arg5[%c0_58, %c0_59, %c0_60] : memref<4x128x128xbf16, #tpu.memory_space<vmem>>, vector<1x128x128xbf16>
    %70 = vector.shape_cast %69 : vector<1x128x128xbf16> to vector<128x128xbf16>
    %cst_61 = arith.constant dense<0.000000e+00> : vector<512x128xf32>
    %71 = tpu.matmul %68, %70, %cst_61 {dimension_numbers = #tpu.dot_dimension_numbers<[1], [0], [0], [1], [0, 0, 1, 1], [], []>} : vector<512x128xbf16>, vector<128x128xbf16>, vector<512x128xf32> -> vector<512x128xf32>
    %c0_62 = arith.constant 0 : index
    %c0_63 = arith.constant 0 : index
    %c0_64 = arith.constant 0 : index
    %72 = vector.load %arg6[%c0_62, %c0_63, %c0_64] : memref<4x1x128xf32, #tpu.memory_space<vmem>>, vector<1x1x128xf32>
    %73 = vector.shape_cast %72 : vector<1x1x128xf32> to vector<1x128xf32>
    %74 = vector.broadcast %73 : vector<1x128xf32> to vector<512x128xf32>
    %75 = arith.addf %71, %74 : vector<512x128xf32>
    %cst_65 = arith.constant 0.000000e+00 : f32
    %76 = vector.broadcast %cst_65 : f32 to vector<512x128xf32>
    %77 = arith.maximumf %75, %76 : vector<512x128xf32>
    %78 = arith.truncf %77 : vector<512x128xf32> to vector<512x128xbf16>
    %c0_66 = arith.constant 0 : index
    %c0_67 = arith.constant 0 : index
    %c0_68 = arith.constant 0 : index
    %79 = vector.load %arg7[%c0_66, %c0_67, %c0_68] : memref<4x128x128xbf16, #tpu.memory_space<vmem>>, vector<1x128x128xbf16>
    %80 = vector.shape_cast %79 : vector<1x128x128xbf16> to vector<128x128xbf16>
    %cst_69 = arith.constant dense<0.000000e+00> : vector<512x128xf32>
    %81 = tpu.matmul %78, %80, %cst_69 {dimension_numbers = #tpu.dot_dimension_numbers<[1], [0], [0], [1], [0, 0, 1, 1], [], []>} : vector<512x128xbf16>, vector<128x128xbf16>, vector<512x128xf32> -> vector<512x128xf32>
    %c0_70 = arith.constant 0 : index
    %c0_71 = arith.constant 0 : index
    %c0_72 = arith.constant 0 : index
    %82 = vector.load %arg8[%c0_70, %c0_71, %c0_72] : memref<4x1x128xf32, #tpu.memory_space<vmem>>, vector<1x1x128xf32>
    %83 = vector.shape_cast %82 : vector<1x1x128xf32> to vector<1x128xf32>
    %84 = vector.broadcast %83 : vector<1x128xf32> to vector<512x128xf32>
    %85 = arith.addf %81, %84 : vector<512x128xf32>
    %86 = arith.addf %85, %67 : vector<512x128xf32>
    %87 = arith.truncf %86 : vector<512x128xf32> to vector<512x128xbf16>
    %c0_73 = arith.constant 0 : index
    %c0_74 = arith.constant 0 : index
    %88 = vector.load %arg21[%c0_73, %c0_74] : memref<704x128xbf16, #tpu.memory_space<vmem>>, vector<512x128xbf16>
    tpu.vector_store %arg21[%c0_73, %c0_74], %87 {strides = array<i32>} : memref<704x128xbf16, #tpu.memory_space<vmem>>, vector<512x128xbf16>,
    %89 = arith.truncf %86 : vector<512x128xf32> to vector<512x128xbf16>
    %c0_75 = arith.constant 0 : index
    %c0_76 = arith.constant 0 : index
    %c0_77 = arith.constant 0 : index
    %90 = vector.load %arg13[%c0_75, %c0_76, %c0_77] : memref<4x128x128xbf16, #tpu.memory_space<vmem>>, vector<1x128x128xbf16>
    %91 = vector.shape_cast %90 : vector<1x128x128xbf16> to vector<128x128xbf16>
    %cst_78 = arith.constant dense<0.000000e+00> : vector<512x128xf32>
    %92 = tpu.matmul %89, %91, %cst_78 {dimension_numbers = #tpu.dot_dimension_numbers<[1], [0], [0], [1], [0, 0, 1, 1], [], []>} : vector<512x128xbf16>, vector<128x128xbf16>, vector<512x128xf32> -> vector<512x128xf32>
    %c0_79 = arith.constant 0 : index
    %c0_80 = arith.constant 0 : index
    %c0_81 = arith.constant 0 : index
    %93 = vector.load %arg14[%c0_79, %c0_80, %c0_81] : memref<4x1x128xf32, #tpu.memory_space<vmem>>, vector<1x1x128xf32>
    %94 = vector.shape_cast %93 : vector<1x1x128xf32> to vector<1x128xf32>
    %95 = vector.broadcast %94 : vector<1x128xf32> to vector<512x128xf32>
    %96 = arith.addf %92, %95 : vector<512x128xf32>
    %cst_82 = arith.constant 0.000000e+00 : f32
    %97 = vector.broadcast %cst_82 : f32 to vector<512x128xf32>
    %98 = arith.maximumf %96, %97 : vector<512x128xf32>
    %99 = arith.truncf %98 : vector<512x128xf32> to vector<512x128xbf16>
    %c0_83 = arith.constant 0 : index
    %c0_84 = arith.constant 0 : index
    %c0_85 = arith.constant 0 : index
    %100 = vector.load %arg15[%c0_83, %c0_84, %c0_85] : memref<4x128x128xbf16, #tpu.memory_space<vmem>>, vector<1x128x128xbf16>
    %101 = vector.shape_cast %100 : vector<1x128x128xbf16> to vector<128x128xbf16>
    %cst_86 = arith.constant dense<0.000000e+00> : vector<512x128xf32>
    %102 = tpu.matmul %99, %101, %cst_86 {dimension_numbers = #tpu.dot_dimension_numbers<[1], [0], [0], [1], [0, 0, 1, 1], [], []>} : vector<512x128xbf16>, vector<128x128xbf16>, vector<512x128xf32> -> vector<512x128xf32>
    %c0_87 = arith.constant 0 : index
    %c0_88 = arith.constant 0 : index
    %c0_89 = arith.constant 0 : index
    %103 = vector.load %arg16[%c0_87, %c0_88, %c0_89] : memref<4x1x128xf32, #tpu.memory_space<vmem>>, vector<1x1x128xf32>
    %104 = vector.shape_cast %103 : vector<1x1x128xf32> to vector<1x128xf32>
    %105 = vector.broadcast %104 : vector<1x128xf32> to vector<512x128xf32>
    %106 = arith.addf %102, %105 : vector<512x128xf32>
    %c0_90 = arith.constant 0 : index
    %c0_91 = arith.constant 0 : index
    %107 = vector.load %arg22[%c0_90, %c0_91] : memref<704x128xf32, #tpu.memory_space<vmem>>, vector<512x128xf32>
    tpu.vector_store %arg22[%c0_90, %c0_91], %106 {strides = array<i32>} : memref<704x128xf32, #tpu.memory_space<vmem>>, vector<512x128xf32>,
    %108 = arith.truncf %61 : vector<128x128xf32> to vector<128x128xbf16>
    %c512 = arith.constant 512 : index
    %c0_92 = arith.constant 0 : index
    %109 = vector.load %arg21[%c512, %c0_92] : memref<704x128xbf16, #tpu.memory_space<vmem>>, vector<128x128xbf16>
    tpu.vector_store %arg21[%c512, %c0_92], %108 {strides = array<i32>} : memref<704x128xbf16, #tpu.memory_space<vmem>>, vector<128x128xbf16>,
    %110 = arith.truncf %61 : vector<128x128xf32> to vector<128x128xbf16>
    %c1_93 = arith.constant 1 : index
    %c0_94 = arith.constant 0 : index
    %c0_95 = arith.constant 0 : index
    %111 = vector.load %arg13[%c1_93, %c0_94, %c0_95] : memref<4x128x128xbf16, #tpu.memory_space<vmem>>, vector<1x128x128xbf16>
    %112 = vector.shape_cast %111 : vector<1x128x128xbf16> to vector<128x128xbf16>
    %cst_96 = arith.constant dense<0.000000e+00> : vector<128x128xf32>
    %113 = tpu.matmul %110, %112, %cst_96 {dimension_numbers = #tpu.dot_dimension_numbers<[1], [0], [0], [1], [0, 0, 1, 1], [], []>} : vector<128x128xbf16>, vector<128x128xbf16>, vector<128x128xf32> -> vector<128x128xf32>
    %c1_97 = arith.constant 1 : index
    %c0_98 = arith.constant 0 : index
    %c0_99 = arith.constant 0 : index
    %114 = vector.load %arg14[%c1_97, %c0_98, %c0_99] : memref<4x1x128xf32, #tpu.memory_space<vmem>>, vector<1x1x128xf32>
    %115 = vector.shape_cast %114 : vector<1x1x128xf32> to vector<1x128xf32>
    %116 = vector.broadcast %115 : vector<1x128xf32> to vector<128x128xf32>
    %117 = arith.addf %113, %116 : vector<128x128xf32>
    %cst_100 = arith.constant 0.000000e+00 : f32
    %118 = vector.broadcast %cst_100 : f32 to vector<128x128xf32>
    %119 = arith.maximumf %117, %118 : vector<128x128xf32>
    %120 = arith.truncf %119 : vector<128x128xf32> to vector<128x128xbf16>
    %c1_101 = arith.constant 1 : index
    %c0_102 = arith.constant 0 : index
    %c0_103 = arith.constant 0 : index
    %121 = vector.load %arg15[%c1_101, %c0_102, %c0_103] : memref<4x128x128xbf16, #tpu.memory_space<vmem>>, vector<1x128x128xbf16>
    %122 = vector.shape_cast %121 : vector<1x128x128xbf16> to vector<128x128xbf16>
    %cst_104 = arith.constant dense<0.000000e+00> : vector<128x128xf32>
    %123 = tpu.matmul %120, %122, %cst_104 {dimension_numbers = #tpu.dot_dimension_numbers<[1], [0], [0], [1], [0, 0, 1, 1], [], []>} : vector<128x128xbf16>, vector<128x128xbf16>, vector<128x128xf32> -> vector<128x128xf32>
    %c1_105 = arith.constant 1 : index
    %c0_106 = arith.constant 0 : index
    %c0_107 = arith.constant 0 : index
    %124 = vector.load %arg16[%c1_105, %c0_106, %c0_107] : memref<4x1x128xf32, #tpu.memory_space<vmem>>, vector<1x1x128xf32>
    %125 = vector.shape_cast %124 : vector<1x1x128xf32> to vector<1x128xf32>
    %126 = vector.broadcast %125 : vector<1x128xf32> to vector<128x128xf32>
    %127 = arith.addf %123, %126 : vector<128x128xf32>
    %c512_108 = arith.constant 512 : index
    %c0_109 = arith.constant 0 : index
    %128 = vector.load %arg22[%c512_108, %c0_109] : memref<704x128xf32, #tpu.memory_space<vmem>>, vector<128x128xf32>
    tpu.vector_store %arg22[%c512_108, %c0_109], %127 {strides = array<i32>} : memref<704x128xf32, #tpu.memory_space<vmem>>, vector<128x128xf32>,
    %129 = arith.truncf %36 : vector<32x128xf32> to vector<32x128xbf16>
    %c640 = arith.constant 640 : index
    %c0_110 = arith.constant 0 : index
    %130 = vector.load %arg21[%c640, %c0_110] : memref<704x128xbf16, #tpu.memory_space<vmem>>, vector<32x128xbf16>
    tpu.vector_store %arg21[%c640, %c0_110], %129 {strides = array<i32>} : memref<704x128xbf16, #tpu.memory_space<vmem>>, vector<32x128xbf16>,
    %131 = arith.truncf %36 : vector<32x128xf32> to vector<32x128xbf16>
    %c2_111 = arith.constant 2 : index
    %c0_112 = arith.constant 0 : index
    %c0_113 = arith.constant 0 : index
    %132 = vector.load %arg13[%c2_111, %c0_112, %c0_113] : memref<4x128x128xbf16, #tpu.memory_space<vmem>>, vector<1x128x128xbf16>
    %133 = vector.shape_cast %132 : vector<1x128x128xbf16> to vector<128x128xbf16>
    %cst_114 = arith.constant dense<0.000000e+00> : vector<32x128xf32>
    %134 = tpu.matmul %131, %133, %cst_114 {dimension_numbers = #tpu.dot_dimension_numbers<[1], [0], [0], [1], [0, 0, 1, 1], [], []>} : vector<32x128xbf16>, vector<128x128xbf16>, vector<32x128xf32> -> vector<32x128xf32>
    %c2_115 = arith.constant 2 : index
    %c0_116 = arith.constant 0 : index
    %c0_117 = arith.constant 0 : index
    %135 = vector.load %arg14[%c2_115, %c0_116, %c0_117] : memref<4x1x128xf32, #tpu.memory_space<vmem>>, vector<1x1x128xf32>
    %136 = vector.shape_cast %135 : vector<1x1x128xf32> to vector<1x128xf32>
    %137 = vector.broadcast %136 : vector<1x128xf32> to vector<32x128xf32>
    %138 = arith.addf %134, %137 : vector<32x128xf32>
    %cst_118 = arith.constant 0.000000e+00 : f32
    %139 = vector.broadcast %cst_118 : f32 to vector<32x128xf32>
    %140 = arith.maximumf %138, %139 : vector<32x128xf32>
    %141 = arith.truncf %140 : vector<32x128xf32> to vector<32x128xbf16>
    %c2_119 = arith.constant 2 : index
    %c0_120 = arith.constant 0 : index
    %c0_121 = arith.constant 0 : index
    %142 = vector.load %arg15[%c2_119, %c0_120, %c0_121] : memref<4x128x128xbf16, #tpu.memory_space<vmem>>, vector<1x128x128xbf16>
    %143 = vector.shape_cast %142 : vector<1x128x128xbf16> to vector<128x128xbf16>
    %cst_122 = arith.constant dense<0.000000e+00> : vector<32x128xf32>
    %144 = tpu.matmul %141, %143, %cst_122 {dimension_numbers = #tpu.dot_dimension_numbers<[1], [0], [0], [1], [0, 0, 1, 1], [], []>} : vector<32x128xbf16>, vector<128x128xbf16>, vector<32x128xf32> -> vector<32x128xf32>
    %c2_123 = arith.constant 2 : index
    %c0_124 = arith.constant 0 : index
    %c0_125 = arith.constant 0 : index
    %145 = vector.load %arg16[%c2_123, %c0_124, %c0_125] : memref<4x1x128xf32, #tpu.memory_space<vmem>>, vector<1x1x128xf32>
    %146 = vector.shape_cast %145 : vector<1x1x128xf32> to vector<1x128xf32>
    %147 = vector.broadcast %146 : vector<1x128xf32> to vector<32x128xf32>
    %148 = arith.addf %144, %147 : vector<32x128xf32>
    %c640_126 = arith.constant 640 : index
    %c0_127 = arith.constant 0 : index
    %149 = vector.load %arg22[%c640_126, %c0_127] : memref<704x128xf32, #tpu.memory_space<vmem>>, vector<32x128xf32>
    tpu.vector_store %arg22[%c640_126, %c0_127], %148 {strides = array<i32>} : memref<704x128xf32, #tpu.memory_space<vmem>>, vector<32x128xf32>,
    %150 = arith.truncf %17 : vector<32x128xf32> to vector<32x128xbf16>
    %c672 = arith.constant 672 : index
    %c0_128 = arith.constant 0 : index
    %151 = vector.load %arg21[%c672, %c0_128] : memref<704x128xbf16, #tpu.memory_space<vmem>>, vector<32x128xbf16>
    tpu.vector_store %arg21[%c672, %c0_128], %150 {strides = array<i32>} : memref<704x128xbf16, #tpu.memory_space<vmem>>, vector<32x128xbf16>,
    %152 = arith.truncf %17 : vector<32x128xf32> to vector<32x128xbf16>
    %c3_129 = arith.constant 3 : index
    %c0_130 = arith.constant 0 : index
    %c0_131 = arith.constant 0 : index
    %153 = vector.load %arg13[%c3_129, %c0_130, %c0_131] : memref<4x128x128xbf16, #tpu.memory_space<vmem>>, vector<1x128x128xbf16>
    %154 = vector.shape_cast %153 : vector<1x128x128xbf16> to vector<128x128xbf16>
    %cst_132 = arith.constant dense<0.000000e+00> : vector<32x128xf32>
    %155 = tpu.matmul %152, %154, %cst_132 {dimension_numbers = #tpu.dot_dimension_numbers<[1], [0], [0], [1], [0, 0, 1, 1], [], []>} : vector<32x128xbf16>, vector<128x128xbf16>, vector<32x128xf32> -> vector<32x128xf32>
    %c3_133 = arith.constant 3 : index
    %c0_134 = arith.constant 0 : index
    %c0_135 = arith.constant 0 : index
    %156 = vector.load %arg14[%c3_133, %c0_134, %c0_135] : memref<4x1x128xf32, #tpu.memory_space<vmem>>, vector<1x1x128xf32>
    %157 = vector.shape_cast %156 : vector<1x1x128xf32> to vector<1x128xf32>
    %158 = vector.broadcast %157 : vector<1x128xf32> to vector<32x128xf32>
    %159 = arith.addf %155, %158 : vector<32x128xf32>
    %cst_136 = arith.constant 0.000000e+00 : f32
    %160 = vector.broadcast %cst_136 : f32 to vector<32x128xf32>
    %161 = arith.maximumf %159, %160 : vector<32x128xf32>
    %162 = arith.truncf %161 : vector<32x128xf32> to vector<32x128xbf16>
    %c3_137 = arith.constant 3 : index
    %c0_138 = arith.constant 0 : index
    %c0_139 = arith.constant 0 : index
    %163 = vector.load %arg15[%c3_137, %c0_138, %c0_139] : memref<4x128x128xbf16, #tpu.memory_space<vmem>>, vector<1x128x128xbf16>
    %164 = vector.shape_cast %163 : vector<1x128x128xbf16> to vector<128x128xbf16>
    %cst_140 = arith.constant dense<0.000000e+00> : vector<32x128xf32>
    %165 = tpu.matmul %162, %164, %cst_140 {dimension_numbers = #tpu.dot_dimension_numbers<[1], [0], [0], [1], [0, 0, 1, 1], [], []>} : vector<32x128xbf16>, vector<128x128xbf16>, vector<32x128xf32> -> vector<32x128xf32>
    %c3_141 = arith.constant 3 : index
    %c0_142 = arith.constant 0 : index
    %c0_143 = arith.constant 0 : index
    %166 = vector.load %arg16[%c3_141, %c0_142, %c0_143] : memref<4x1x128xf32, #tpu.memory_space<vmem>>, vector<1x1x128xf32>
    %167 = vector.shape_cast %166 : vector<1x1x128xf32> to vector<1x128xf32>
    %168 = vector.broadcast %167 : vector<1x128xf32> to vector<32x128xf32>
    %169 = arith.addf %165, %168 : vector<32x128xf32>
    %c672_144 = arith.constant 672 : index
    %c0_145 = arith.constant 0 : index
    %170 = vector.load %arg22[%c672_144, %c0_145] : memref<704x128xf32, #tpu.memory_space<vmem>>, vector<32x128xf32>
    tpu.vector_store %arg22[%c672_144, %c0_145], %169 {strides = array<i32>} : memref<704x128xf32, #tpu.memory_space<vmem>>, vector<32x128xf32>,
    %cst_146 = arith.constant dense<0.000000e+00> : vector<32xf32>
    %171 = vector.multi_reduction <add>, %17, %cst_146 [1] : vector<32x128xf32> to vector<32xf32>
    %172 = vector.shape_cast %171 : vector<32xf32> to vector<32x1xf32>
    %cst_147 = arith.constant 1.280000e+02 : f32
    %173 = vector.broadcast %cst_147 : f32 to vector<32x1xf32>
    %174 = arith.divf %172, %173 : vector<32x1xf32>
    %175 = vector.broadcast %174 : vector<32x1xf32> to vector<32x128xf32>
    %176 = arith.subf %17, %175 : vector<32x128xf32>
    %177 = arith.mulf %176, %176 : vector<32x128xf32>
    %cst_148 = arith.constant dense<0.000000e+00> : vector<32xf32>
    %178 = vector.multi_reduction <add>, %177, %cst_148 [1] : vector<32x128xf32> to vector<32xf32>
    %179 = vector.shape_cast %178 : vector<32xf32> to vector<32x1xf32>
    %cst_149 = arith.constant 1.280000e+02 : f32
    %180 = vector.broadcast %cst_149 : f32 to vector<32x1xf32>
    %181 = arith.divf %179, %180 : vector<32x1xf32>
    %cst_150 = arith.constant 9.99999974E-6 : f32
    %182 = vector.broadcast %cst_150 : f32 to vector<32x1xf32>
    %183 = arith.addf %181, %182 : vector<32x1xf32>
    %184 = math.rsqrt %183 : vector<32x1xf32>
    %185 = vector.broadcast %184 : vector<32x1xf32> to vector<32x128xf32>
    %186 = arith.mulf %176, %185 : vector<32x128xf32>
    %c0_151 = arith.constant 0 : index
    %c0_152 = arith.constant 0 : index
    %187 = vector.load %arg17[%c0_151, %c0_152] : memref<1x128xf32, #tpu.memory_space<vmem>>, vector<1x128xf32>
    %188 = vector.broadcast %187 : vector<1x128xf32> to vector<32x128xf32>
    %189 = arith.mulf %186, %188 : vector<32x128xf32>
    %c0_153 = arith.constant 0 : index
    %c0_154 = arith.constant 0 : index
    %190 = vector.load %arg18[%c0_153, %c0_154] : memref<1x128xf32, #tpu.memory_space<vmem>>, vector<1x128xf32>
    %191 = vector.broadcast %190 : vector<1x128xf32> to vector<32x128xf32>
    %192 = arith.addf %189, %191 : vector<32x128xf32>
    %193 = vector.extract_strided_slice %192 {offsets = [0, 0], sizes = [16, 128], strides = [1, 1]} : vector<32x128xf32> to vector<16x128xf32>
    %cst_155 = arith.constant dense<0.000000e+00> : vector<128xf32>
    %194 = vector.multi_reduction <add>, %193, %cst_155 [0] : vector<16x128xf32> to vector<128xf32>
    %195 = vector.shape_cast %194 : vector<128xf32> to vector<1x128xf32>
    %cst_156 = arith.constant 1.600000e+01 : f32
    %196 = vector.broadcast %cst_156 : f32 to vector<1x128xf32>
    %197 = arith.divf %195, %196 : vector<1x128xf32>
    %198 = vector.extract_strided_slice %192 {offsets = [16, 0], sizes = [16, 128], strides = [1, 1]} : vector<32x128xf32> to vector<16x128xf32>
    %cst_157 = arith.constant dense<0.000000e+00> : vector<128xf32>
    %199 = vector.multi_reduction <add>, %198, %cst_157 [0] : vector<16x128xf32> to vector<128xf32>
    %200 = vector.shape_cast %199 : vector<128xf32> to vector<1x128xf32>
    %cst_158 = arith.constant 1.600000e+01 : f32
    %201 = vector.broadcast %cst_158 : f32 to vector<1x128xf32>
    %202 = arith.divf %200, %201 : vector<1x128xf32>
    %203 = tpu.concatenate %197, %202 in 0 : vector<1x128xf32>, vector<1x128xf32> -> vector<2x128xf32>
    %204 = arith.truncf %203 : vector<2x128xf32> to vector<2x128xbf16>
    %c0_159 = arith.constant 0 : index
    %c0_160 = arith.constant 0 : index
    %205 = vector.load %arg19[%c0_159, %c0_160] : memref<128x128xbf16, #tpu.memory_space<vmem>>, vector<128x128xbf16>
    %cst_161 = arith.constant dense<0.000000e+00> : vector<2x128xf32>
    %206 = tpu.matmul %204, %205, %cst_161 {dimension_numbers = #tpu.dot_dimension_numbers<[1], [0], [0], [1], [0, 0, 1, 1], [], []>} : vector<2x128xbf16>, vector<128x128xbf16>, vector<2x128xf32> -> vector<2x128xf32>
    %c0_162 = arith.constant 0 : index
    %c0_163 = arith.constant 0 : index
    %207 = vector.load %arg20[%c0_162, %c0_163] : memref<1x128xf32, #tpu.memory_space<vmem>>, vector<1x128xf32>
    %208 = vector.broadcast %207 : vector<1x128xf32> to vector<2x128xf32>
    %209 = arith.addf %206, %208 : vector<2x128xf32>
    %c0_164 = arith.constant 0 : index
    %c0_165 = arith.constant 0 : index
    %210 = vector.load %arg23[%c0_164, %c0_165] : memref<2x128xf32, #tpu.memory_space<vmem>>, vector<2x128xf32>
    tpu.vector_store %arg23[%c0_164, %c0_165], %209 {strides = array<i32>} : memref<2x128xf32, #tpu.memory_space<vmem>>, vector<2x128xf32>,
    return
  }
  func.func @transform_0(%arg0: i32) -> (i32, i32) {
    %c0_i32 = arith.constant 0 : i32
    %c0_i32_0 = arith.constant 0 : i32
    %c0_i32_1 = arith.constant 0 : i32
    return %c0_i32, %c0_i32_0 : i32, i32
  }
  func.func @transform_1(%arg0: i32) -> (i32, i32) {
    %c0_i32 = arith.constant 0 : i32
    %c0_i32_0 = arith.constant 0 : i32
    %c0_i32_1 = arith.constant 0 : i32
    return %c0_i32, %c0_i32_0 : i32, i32
  }
  func.func @transform_2(%arg0: i32) -> (i32, i32) {
    %c0_i32 = arith.constant 0 : i32
    %c0_i32_0 = arith.constant 0 : i32
    %c0_i32_1 = arith.constant 0 : i32
    return %c0_i32, %c0_i32_0 : i32, i32
  }
  func.func @transform_3(%arg0: i32) -> (i32, i32) {
    %c0_i32 = arith.constant 0 : i32
    %c0_i32_0 = arith.constant 0 : i32
    %c0_i32_1 = arith.constant 0 : i32
    return %c0_i32, %c0_i32_0 : i32, i32
  }
  func.func @transform_4(%arg0: i32) -> (i32, i32, i32) {
    %c0_i32 = arith.constant 0 : i32
    %c0_i32_0 = arith.constant 0 : i32
    %c0_i32_1 = arith.constant 0 : i32
    %c0_i32_2 = arith.constant 0 : i32
    return %c0_i32, %c0_i32_0, %c0_i32_1 : i32, i32, i32
  }
  func.func @transform_5(%arg0: i32) -> (i32, i32, i32) {
    %c0_i32 = arith.constant 0 : i32
    %c0_i32_0 = arith.constant 0 : i32
    %c0_i32_1 = arith.constant 0 : i32
    %c0_i32_2 = arith.constant 0 : i32
    return %c0_i32, %c0_i32_0, %c0_i32_1 : i32, i32, i32
  }
  func.func @transform_6(%arg0: i32) -> (i32, i32, i32) {
    %c0_i32 = arith.constant 0 : i32
    %c0_i32_0 = arith.constant 0 : i32
    %c0_i32_1 = arith.constant 0 : i32
    %c0_i32_2 = arith.constant 0 : i32
    return %c0_i32, %c0_i32_0, %c0_i32_1 : i32, i32, i32
  }
  func.func @transform_7(%arg0: i32) -> (i32, i32, i32) {
    %c0_i32 = arith.constant 0 : i32
    %c0_i32_0 = arith.constant 0 : i32
    %c0_i32_1 = arith.constant 0 : i32
    %c0_i32_2 = arith.constant 0 : i32
    return %c0_i32, %c0_i32_0, %c0_i32_1 : i32, i32, i32
  }
  func.func @transform_8(%arg0: i32) -> (i32, i32) {
    %c0_i32 = arith.constant 0 : i32
    %c0_i32_0 = arith.constant 0 : i32
    %c0_i32_1 = arith.constant 0 : i32
    return %c0_i32, %c0_i32_0 : i32, i32
  }
  func.func @transform_9(%arg0: i32) -> (i32, i32) {
    %c0_i32 = arith.constant 0 : i32
    %c0_i32_0 = arith.constant 0 : i32
    %c0_i32_1 = arith.constant 0 : i32
    return %c0_i32, %c0_i32_0 : i32, i32
  }
  func.func @transform_10(%arg0: i32) -> (i32, i32) {
    %c0_i32 = arith.constant 0 : i32
    %c0_i32_0 = arith.constant 0 : i32
    %c0_i32_1 = arith.constant 0 : i32
    return %c0_i32, %c0_i32_0 : i32, i32
  }
  func.func @transform_11(%arg0: i32) -> (i32, i32) {
    %c0_i32 = arith.constant 0 : i32
    %c0_i32_0 = arith.constant 0 : i32
    %c0_i32_1 = arith.constant 0 : i32
    return %c0_i32, %c0_i32_0 : i32, i32
  }
  func.func @transform_12(%arg0: i32) -> (i32, i32, i32) {
    %c0_i32 = arith.constant 0 : i32
    %c0_i32_0 = arith.constant 0 : i32
    %c0_i32_1 = arith.constant 0 : i32
    %c0_i32_2 = arith.constant 0 : i32
    return %c0_i32, %c0_i32_0, %c0_i32_1 : i32, i32, i32
  }
  func.func @transform_13(%arg0: i32) -> (i32, i32, i32) {
    %c0_i32 = arith.constant 0 : i32
    %c0_i32_0 = arith.constant 0 : i32
    %c0_i32_1 = arith.constant 0 : i32
    %c0_i32_2 = arith.constant 0 : i32
    return %c0_i32, %c0_i32_0, %c0_i32_1 : i32, i32, i32
  }
  func.func @transform_14(%arg0: i32) -> (i32, i32, i32) {
    %c0_i32 = arith.constant 0 : i32
    %c0_i32_0 = arith.constant 0 : i32
    %c0_i32_1 = arith.constant 0 : i32
    %c0_i32_2 = arith.constant 0 : i32
    return %c0_i32, %c0_i32_0, %c0_i32_1 : i32, i32, i32
  }
  func.func @transform_15(%arg0: i32) -> (i32, i32, i32) {
    %c0_i32 = arith.constant 0 : i32
    %c0_i32_0 = arith.constant 0 : i32
    %c0_i32_1 = arith.constant 0 : i32
    %c0_i32_2 = arith.constant 0 : i32
    return %c0_i32, %c0_i32_0, %c0_i32_1 : i32, i32, i32
  }
  func.func @transform_16(%arg0: i32) -> (i32, i32) {
    %c0_i32 = arith.constant 0 : i32
    %c0_i32_0 = arith.constant 0 : i32
    %c0_i32_1 = arith.constant 0 : i32
    return %c0_i32, %c0_i32_0 : i32, i32
  }
  func.func @transform_17(%arg0: i32) -> (i32, i32) {
    %c0_i32 = arith.constant 0 : i32
    %c0_i32_0 = arith.constant 0 : i32
    %c0_i32_1 = arith.constant 0 : i32
    return %c0_i32, %c0_i32_0 : i32, i32
  }
  func.func @transform_18(%arg0: i32) -> (i32, i32) {
    %c0_i32 = arith.constant 0 : i32
    %c0_i32_0 = arith.constant 0 : i32
    %c0_i32_1 = arith.constant 0 : i32
    return %c0_i32, %c0_i32_0 : i32, i32
  }
  func.func @transform_19(%arg0: i32) -> (i32, i32) {
    %c0_i32 = arith.constant 0 : i32
    %c0_i32_0 = arith.constant 0 : i32
    %c0_i32_1 = arith.constant 0 : i32
    return %c0_i32, %c0_i32_0 : i32, i32
  }
  func.func @transform_20(%arg0: i32) -> (i32, i32) {
    %c0_i32 = arith.constant 0 : i32
    %c0_i32_0 = arith.constant 0 : i32
    %c0_i32_1 = arith.constant 0 : i32
    return %c0_i32, %c0_i32_0 : i32, i32
  }
  func.func @transform_21(%arg0: i32) -> (i32, i32) {
    %c0_i32 = arith.constant 0 : i32
    %c0_i32_0 = arith.constant 0 : i32
    %c0_i32_1 = arith.constant 0 : i32
    return %c0_i32, %c0_i32_0 : i32, i32
  }
  func.func @transform_22(%arg0: i32) -> (i32, i32) {
    %c0_i32 = arith.constant 0 : i32
    %c0_i32_0 = arith.constant 0 : i32
    %c0_i32_1 = arith.constant 0 : i32
    return %c0_i32, %c0_i32_0 : i32, i32
  }
}

module attributes {stable_mosaic.version = 11 : i64} {
  func.func @_gcn_kernel(%arg0: i32, %arg1: memref<2x64x128xbf16, #tpu.memory_space<vmem>>, %arg2: memref<8x64xf32, #tpu.memory_space<vmem>>, %arg3: memref<8x128xf32, #tpu.memory_space<vmem>>, %arg4: memref<8x128xf32, #tpu.memory_space<vmem>>, %arg5: memref<128x128xbf16, #tpu.memory_space<vmem>>, %arg6: memref<128x128xbf16, #tpu.memory_space<vmem>>, %arg7: memref<2x128xf32, #tpu.memory_space<vmem>>) attributes {dimension_semantics = [#tpu.dimension_semantics<arbitrary>], iteration_bounds = array<i64: 1>, scalar_prefetch = 0 : i64, scratch_operands = 0 : i64, tpu.core_type = #tpu.core_type<tc>, window_params = [{pipeline_mode = #tpu.pipeline_mode<synchronous>, transform_indices = @transform_0, window_bounds = array<i64: 2, 64, 128>}, {pipeline_mode = #tpu.pipeline_mode<synchronous>, transform_indices = @transform_1, window_bounds = array<i64: 8, 64>}, {pipeline_mode = #tpu.pipeline_mode<synchronous>, transform_indices = @transform_2, window_bounds = array<i64: 8, 128>}, {pipeline_mode = #tpu.pipeline_mode<synchronous>, transform_indices = @transform_3, window_bounds = array<i64: 8, 128>}, {pipeline_mode = #tpu.pipeline_mode<synchronous>, transform_indices = @transform_4, window_bounds = array<i64: 128, 128>}, {pipeline_mode = #tpu.pipeline_mode<synchronous>, transform_indices = @transform_5, window_bounds = array<i64: 128, 128>}, {pipeline_mode = #tpu.pipeline_mode<synchronous>, transform_indices = @transform_6, window_bounds = array<i64: 2, 128>}]} {
    %c0 = arith.constant 0 : index
    %c0_0 = arith.constant 0 : index
    %0 = vector.load %arg3[%c0, %c0_0] : memref<8x128xf32, #tpu.memory_space<vmem>>, vector<8x128xf32>
    %1 = vector.extract_strided_slice %0 {offsets = [0, 0], sizes = [1, 128], strides = [1, 1]} : vector<8x128xf32> to vector<1x128xf32>
    %2 = vector.extract_strided_slice %0 {offsets = [1, 0], sizes = [1, 128], strides = [1, 1]} : vector<8x128xf32> to vector<1x128xf32>
    %3 = vector.extract_strided_slice %0 {offsets = [2, 0], sizes = [1, 128], strides = [1, 1]} : vector<8x128xf32> to vector<1x128xf32>
    %4 = vector.extract_strided_slice %0 {offsets = [3, 0], sizes = [1, 128], strides = [1, 1]} : vector<8x128xf32> to vector<1x128xf32>
    %5 = vector.extract_strided_slice %0 {offsets = [4, 0], sizes = [1, 128], strides = [1, 1]} : vector<8x128xf32> to vector<1x128xf32>
    %6 = vector.extract_strided_slice %0 {offsets = [5, 0], sizes = [1, 128], strides = [1, 1]} : vector<8x128xf32> to vector<1x128xf32>
    %c0_1 = arith.constant 0 : index
    %c0_2 = arith.constant 0 : index
    %7 = vector.load %arg4[%c0_1, %c0_2] : memref<8x128xf32, #tpu.memory_space<vmem>>, vector<8x128xf32>
    %8 = vector.extract_strided_slice %7 {offsets = [0, 0], sizes = [8, 1], strides = [1, 1]} : vector<8x128xf32> to vector<8x1xf32>
    %9 = vector.extract_strided_slice %7 {offsets = [0, 1], sizes = [8, 1], strides = [1, 1]} : vector<8x128xf32> to vector<8x1xf32>
    %10 = vector.extract_strided_slice %7 {offsets = [0, 8], sizes = [8, 8], strides = [1, 1]} : vector<8x128xf32> to vector<8x8xf32>
    %11 = vector.extract_strided_slice %7 {offsets = [0, 16], sizes = [8, 8], strides = [1, 1]} : vector<8x128xf32> to vector<8x8xf32>
    %12 = vector.extract_strided_slice %7 {offsets = [0, 24], sizes = [8, 8], strides = [1, 1]} : vector<8x128xf32> to vector<8x8xf32>
    %c0_3 = arith.constant 0 : index
    %c0_4 = arith.constant 0 : index
    %13 = vector.load %arg2[%c0_3, %c0_4] : memref<8x64xf32, #tpu.memory_space<vmem>>, vector<8x64xf32>
    %14 = arith.truncf %13 : vector<8x64xf32> to vector<8x64xbf16>
    %c0_5 = arith.constant 0 : index
    %c0_6 = arith.constant 0 : index
    %15 = vector.load %arg5[%c0_5, %c0_6] : memref<128x128xbf16, #tpu.memory_space<vmem>>, vector<128x128xbf16>
    %c0_7 = arith.constant 0 : index
    %c0_8 = arith.constant 0 : index
    %16 = vector.load %arg6[%c0_7, %c0_8] : memref<128x128xbf16, #tpu.memory_space<vmem>>, vector<128x128xbf16>
    %c0_9 = arith.constant 0 : index
    %c0_10 = arith.constant 0 : index
    %c0_11 = arith.constant 0 : index
    %17 = vector.load %arg1[%c0_9, %c0_10, %c0_11] : memref<2x64x128xbf16, #tpu.memory_space<vmem>>, vector<1x64x128xbf16>
    %18 = vector.shape_cast %17 : vector<1x64x128xbf16> to vector<64x128xbf16>
    %cst = arith.constant dense<0.000000e+00> : vector<8x128xf32>
    %19 = tpu.matmul %14, %18, %cst {dimension_numbers = #tpu.dot_dimension_numbers<[1], [0], [0], [1], [0, 0, 1, 1], [], []>} : vector<8x64xbf16>, vector<64x128xbf16>, vector<8x128xf32> -> vector<8x128xf32>
    %20 = vector.broadcast %8 : vector<8x1xf32> to vector<8x128xf32>
    %21 = arith.addf %19, %20 : vector<8x128xf32>
    %cst_12 = arith.constant dense<0.000000e+00> : vector<1x8xf32>
    %22 = tpu.matmul %1, %21, %cst_12 {dimension_numbers = #tpu.dot_dimension_numbers<[1], [1], [0], [0], [0, 0, 1, 0], [], []>} : vector<1x128xf32>, vector<8x128xf32>, vector<1x8xf32> -> vector<1x8xf32>
    %23 = vector.broadcast %2 : vector<1x128xf32> to vector<8x128xf32>
    %24 = arith.mulf %21, %23 : vector<8x128xf32>
    %cst_13 = arith.constant dense<0.000000e+00> : vector<8xf32>
    %25 = vector.multi_reduction <add>, %24, %cst_13 [1] : vector<8x128xf32> to vector<8xf32>
    %26 = vector.shape_cast %25 : vector<8xf32> to vector<8x1xf32>
    %27 = vector.broadcast %22 : vector<1x8xf32> to vector<8x8xf32>
    %28 = vector.broadcast %26 : vector<8x1xf32> to vector<8x8xf32>
    %29 = arith.subf %27, %28 : vector<8x8xf32>
    %30 = arith.addf %29, %12 : vector<8x8xf32>
    %31 = math.tanh %30 : vector<8x8xf32>
    %32 = arith.mulf %11, %31 : vector<8x8xf32>
    %33 = arith.addf %10, %32 : vector<8x8xf32>
    %34 = arith.truncf %21 : vector<8x128xf32> to vector<8x128xbf16>
    %cst_14 = arith.constant dense<0.000000e+00> : vector<8x128xf32>
    %35 = tpu.matmul %34, %15, %cst_14 {dimension_numbers = #tpu.dot_dimension_numbers<[1], [0], [0], [1], [0, 0, 1, 1], [], []>} : vector<8x128xbf16>, vector<128x128xbf16>, vector<8x128xf32> -> vector<8x128xf32>
    %36 = vector.broadcast %3 : vector<1x128xf32> to vector<8x128xf32>
    %37 = arith.addf %35, %36 : vector<8x128xf32>
    %cst_15 = arith.constant dense<0.000000e+00> : vector<8x128xf32>
    %38 = tpu.matmul %33, %37, %cst_15 {dimension_numbers = #tpu.dot_dimension_numbers<[1], [0], [0], [1], [0, 0, 1, 1], [], []>} : vector<8x8xf32>, vector<8x128xf32>, vector<8x128xf32> -> vector<8x128xf32>
    %39 = vector.broadcast %4 : vector<1x128xf32> to vector<8x128xf32>
    %40 = arith.mulf %38, %39 : vector<8x128xf32>
    %41 = vector.broadcast %5 : vector<1x128xf32> to vector<8x128xf32>
    %42 = arith.addf %40, %41 : vector<8x128xf32>
    %43 = vector.broadcast %9 : vector<8x1xf32> to vector<8x128xf32>
    %44 = arith.mulf %42, %43 : vector<8x128xf32>
    %cst_16 = arith.constant dense<0.000000e+00> : vector<128xf32>
    %45 = vector.multi_reduction <add>, %44, %cst_16 [0] : vector<8x128xf32> to vector<128xf32>
    %46 = vector.shape_cast %45 : vector<128xf32> to vector<1x128xf32>
    %47 = arith.truncf %46 : vector<1x128xf32> to vector<1x128xbf16>
    %cst_17 = arith.constant dense<0.000000e+00> : vector<1x128xf32>
    %48 = tpu.matmul %47, %16, %cst_17 {dimension_numbers = #tpu.dot_dimension_numbers<[1], [0], [0], [1], [0, 0, 1, 1], [], []>} : vector<1x128xbf16>, vector<128x128xbf16>, vector<1x128xf32> -> vector<1x128xf32>
    %49 = arith.addf %48, %6 : vector<1x128xf32>
    %c1 = arith.constant 1 : index
    %c0_18 = arith.constant 0 : index
    %c0_19 = arith.constant 0 : index
    %50 = vector.load %arg1[%c1, %c0_18, %c0_19] : memref<2x64x128xbf16, #tpu.memory_space<vmem>>, vector<1x64x128xbf16>
    %51 = vector.shape_cast %50 : vector<1x64x128xbf16> to vector<64x128xbf16>
    %cst_20 = arith.constant dense<0.000000e+00> : vector<8x128xf32>
    %52 = tpu.matmul %14, %51, %cst_20 {dimension_numbers = #tpu.dot_dimension_numbers<[1], [0], [0], [1], [0, 0, 1, 1], [], []>} : vector<8x64xbf16>, vector<64x128xbf16>, vector<8x128xf32> -> vector<8x128xf32>
    %53 = vector.broadcast %8 : vector<8x1xf32> to vector<8x128xf32>
    %54 = arith.addf %52, %53 : vector<8x128xf32>
    %cst_21 = arith.constant dense<0.000000e+00> : vector<1x8xf32>
    %55 = tpu.matmul %1, %54, %cst_21 {dimension_numbers = #tpu.dot_dimension_numbers<[1], [1], [0], [0], [0, 0, 1, 0], [], []>} : vector<1x128xf32>, vector<8x128xf32>, vector<1x8xf32> -> vector<1x8xf32>
    %56 = vector.broadcast %2 : vector<1x128xf32> to vector<8x128xf32>
    %57 = arith.mulf %54, %56 : vector<8x128xf32>
    %cst_22 = arith.constant dense<0.000000e+00> : vector<8xf32>
    %58 = vector.multi_reduction <add>, %57, %cst_22 [1] : vector<8x128xf32> to vector<8xf32>
    %59 = vector.shape_cast %58 : vector<8xf32> to vector<8x1xf32>
    %60 = vector.broadcast %55 : vector<1x8xf32> to vector<8x8xf32>
    %61 = vector.broadcast %59 : vector<8x1xf32> to vector<8x8xf32>
    %62 = arith.subf %60, %61 : vector<8x8xf32>
    %63 = arith.addf %62, %12 : vector<8x8xf32>
    %64 = math.tanh %63 : vector<8x8xf32>
    %65 = arith.mulf %11, %64 : vector<8x8xf32>
    %66 = arith.addf %10, %65 : vector<8x8xf32>
    %67 = arith.truncf %54 : vector<8x128xf32> to vector<8x128xbf16>
    %cst_23 = arith.constant dense<0.000000e+00> : vector<8x128xf32>
    %68 = tpu.matmul %67, %15, %cst_23 {dimension_numbers = #tpu.dot_dimension_numbers<[1], [0], [0], [1], [0, 0, 1, 1], [], []>} : vector<8x128xbf16>, vector<128x128xbf16>, vector<8x128xf32> -> vector<8x128xf32>
    %69 = vector.broadcast %3 : vector<1x128xf32> to vector<8x128xf32>
    %70 = arith.addf %68, %69 : vector<8x128xf32>
    %cst_24 = arith.constant dense<0.000000e+00> : vector<8x128xf32>
    %71 = tpu.matmul %66, %70, %cst_24 {dimension_numbers = #tpu.dot_dimension_numbers<[1], [0], [0], [1], [0, 0, 1, 1], [], []>} : vector<8x8xf32>, vector<8x128xf32>, vector<8x128xf32> -> vector<8x128xf32>
    %72 = vector.broadcast %4 : vector<1x128xf32> to vector<8x128xf32>
    %73 = arith.mulf %71, %72 : vector<8x128xf32>
    %74 = vector.broadcast %5 : vector<1x128xf32> to vector<8x128xf32>
    %75 = arith.addf %73, %74 : vector<8x128xf32>
    %76 = vector.broadcast %9 : vector<8x1xf32> to vector<8x128xf32>
    %77 = arith.mulf %75, %76 : vector<8x128xf32>
    %cst_25 = arith.constant dense<0.000000e+00> : vector<128xf32>
    %78 = vector.multi_reduction <add>, %77, %cst_25 [0] : vector<8x128xf32> to vector<128xf32>
    %79 = vector.shape_cast %78 : vector<128xf32> to vector<1x128xf32>
    %80 = arith.truncf %79 : vector<1x128xf32> to vector<1x128xbf16>
    %cst_26 = arith.constant dense<0.000000e+00> : vector<1x128xf32>
    %81 = tpu.matmul %80, %16, %cst_26 {dimension_numbers = #tpu.dot_dimension_numbers<[1], [0], [0], [1], [0, 0, 1, 1], [], []>} : vector<1x128xbf16>, vector<128x128xbf16>, vector<1x128xf32> -> vector<1x128xf32>
    %82 = arith.addf %81, %6 : vector<1x128xf32>
    %83 = tpu.concatenate %49, %82 in 0 : vector<1x128xf32>, vector<1x128xf32> -> vector<2x128xf32>
    %c0_27 = arith.constant 0 : index
    %c0_28 = arith.constant 0 : index
    %84 = vector.load %arg7[%c0_27, %c0_28] : memref<2x128xf32, #tpu.memory_space<vmem>>, vector<2x128xf32>
    tpu.vector_store %arg7[%c0_27, %c0_28], %83 {strides = array<i32>} : memref<2x128xf32, #tpu.memory_space<vmem>>, vector<2x128xf32>,
    return
  }
  func.func @transform_0(%arg0: i32) -> (i32, i32, i32) {
    %c0_i32 = arith.constant 0 : i32
    %c0_i32_0 = arith.constant 0 : i32
    %c0_i32_1 = arith.constant 0 : i32
    %c0_i32_2 = arith.constant 0 : i32
    return %c0_i32, %c0_i32_0, %c0_i32_1 : i32, i32, i32
  }
  func.func @transform_1(%arg0: i32) -> (i32, i32) {
    %c0_i32 = arith.constant 0 : i32
    %c0_i32_0 = arith.constant 0 : i32
    %c0_i32_1 = arith.constant 0 : i32
    return %c0_i32, %c0_i32_0 : i32, i32
  }
  func.func @transform_2(%arg0: i32) -> (i32, i32) {
    %c0_i32 = arith.constant 0 : i32
    %c0_i32_0 = arith.constant 0 : i32
    %c0_i32_1 = arith.constant 0 : i32
    return %c0_i32, %c0_i32_0 : i32, i32
  }
  func.func @transform_3(%arg0: i32) -> (i32, i32) {
    %c0_i32 = arith.constant 0 : i32
    %c0_i32_0 = arith.constant 0 : i32
    %c0_i32_1 = arith.constant 0 : i32
    return %c0_i32, %c0_i32_0 : i32, i32
  }
  func.func @transform_4(%arg0: i32) -> (i32, i32) {
    %c0_i32 = arith.constant 0 : i32
    %c0_i32_0 = arith.constant 0 : i32
    %c0_i32_1 = arith.constant 0 : i32
    return %c0_i32, %c0_i32_0 : i32, i32
  }
  func.func @transform_5(%arg0: i32) -> (i32, i32) {
    %c0_i32 = arith.constant 0 : i32
    %c0_i32_0 = arith.constant 0 : i32
    %c0_i32_1 = arith.constant 0 : i32
    return %c0_i32, %c0_i32_0 : i32, i32
  }
  func.func @transform_6(%arg0: i32) -> (i32, i32) {
    %c0_i32 = arith.constant 0 : i32
    %c0_i32_0 = arith.constant 0 : i32
    %c0_i32_1 = arith.constant 0 : i32
    return %c0_i32, %c0_i32_0 : i32, i32
  }
}

</mosaic_0001>

<bundles_post_ra>
// kernel: forward.3
= control target key start
LH: loop header
LB: loop body
LE: loop exit
PB: predicated region body
PF: predicated region fallthrough
CT: control target
= control target key end

     0   :  { %v3389_v0 = vmov 0   ;;  %vm170_vm0 = vcmask 392192   ;;  %vm1027_vm1 = vcmask 523264   ;;  %s4486_s3 = inlined_call_operand.vmem [shape: bf16[48,128], index: 3, kind: input, shape index: {}]   ;;  %s4487_s5 = inlined_call_operand.vmem [shape: bf16[192,128], index: 5, kind: input, shape index: {}]   ;;  %s4488_s0 = inlined_call_operand.vmem [shape: f32[512,48], index: 0, kind: input, shape index: {}]   ;;  %s4489_s7 = inlined_call_operand.vmem [shape: bf16[768,128], index: 7, kind: input, shape index: {}]   ;;  %s4490_s1 = inlined_call_operand.vmem [shape: f32[128,192], index: 1, kind: input, shape index: {}]   ;;  %s4491_s2 = inlined_call_operand.vmem [shape: f32[32,768], index: 2, kind: input, shape index: {}]   ;;  %s4492_s9 = inlined_call_operand.vmem [shape: bf16[768,128], index: 9, kind: input, shape index: {}]   ;;  %s4493_s4 = inlined_call_operand.vmem [shape: f32[1,128], index: 4, kind: input, shape index: {}]   ;;  %s4494_s11 = inlined_call_operand.vmem [shape: bf16[512,128], index: 11, kind: output, shape index: {0}]   ;;  %s4495_s6 = inlined_call_operand.vmem [shape: f32[1,128], index: 6, kind: input, shape index: {}]   ;;  %s4496_s12 = inlined_call_operand.vmem [shape: bf16[128,128], index: 12, kind: output, shape index: {1}]   ;;  %s4497_s8 = inlined_call_operand.vmem [shape: f32[1,128], index: 8, kind: input, shape index: {}]   ;;  %s4498_s13 = inlined_call_operand.vmem [shape: bf16[32,128], index: 13, kind: output, shape index: {2}]   ;;  %s4499_s10 = inlined_call_operand.vmem [shape: f32[1,128], index: 10, kind: input, shape index: {}]   ;;  %s4500_s14 = inlined_call_operand.vmem [shape: bf16[32,128], index: 14, kind: output, shape index: {3}]  }
   0x1   :  { %1052 = vmatprep.subr.bf16.mxu1 %v3389_v0  ;;  %v3278_v1 = vld [vmem:[%s4486_s3] sm:$0xff]   ;;  %v3280_v3 = vld [vmem:[%s4486_s3 + $0x8] sm:$0xff]   ;;  %v3282_v5 = vld [vmem:[%s4486_s3 + $0x10] sm:$0xff]  }
   0x2   :  { %v3279_v2 = vld [vmem:[%s4487_s5] sm:$0xff]   ;;  %3191 = vmatprep.subr.bf16.mxu0 %v3278_v1  ;;  %v3281_v4 = vld [vmem:[%s4487_s5 + $0x8] sm:$0xff]   ;;  %v3283_v6 = vld [vmem:[%s4487_s5 + $0x10] sm:$0xff]  }
   0x3   :  { %1053 = vmatpush1.bf16.msra.mxu1 %v3279_v2  ;;  %3192 = vmatpush3.bf16.msra.mxu0 %v3278_v1  ;;  %v43_v7 = vld [vmem:[%s4488_s0] sm:$0xff]  ;;  %v44_v8 = vld [vmem:[%s4488_s0 + $0x8] sm:$0xff]  ;;  %v45_v9 = vld [vmem:[%s4488_s0 + $0x10] sm:$0xff] }
   0x4   :  { %1054 = vmatprep.subr.bf16.mxu1 %v3389_v0  ;;  %3193 = vmatprep.subr.bf16.mxu0 %v3280_v3  ;;  %v107_v10 = vpack.c.bf16 %v44_v8, %v43_v7  ;;  %v46_v11 = vld [vmem:[%s4488_s0 + $0x18] sm:$0xff]  ;;  %v3285_v12 = vld [vmem:[%s4489_s7 + $0xc0] sm:$0xff]   ;;  %v48_v17 = vld [vmem:[%s4488_s0 + $0x28] sm:$0xff] }
   0x5   :  { %v108_v13 = vpack.c.bf16 %v46_v11, %v45_v9  ;;  %v3284_v14 = vld [vmem:[%s4487_s5 + $0x18] sm:$0xff]   ;;  %v3287_v15 = vld [vmem:[%s4489_s7 + $0x80] sm:$0xff]   ;;  %v49_v20 = vld [vmem:[%s4488_s0 + $0x30] sm:$0xff] }
   0x6   :  { %3197 = vmatprep.mubr.msk.bf16.mxu0 %vm170_vm0, %v107_v10  ;;  %v47_v16 = vld [vmem:[%s4488_s0 + $0x20] sm:$0xff]  ;;  %v50_v21 = vld [vmem:[%s4488_s0 + $0x38] sm:$0xff]  ;;  %v52_v23 = vld [vmem:[%s4488_s0 + $0x48] sm:$0xff] }
   0x7   :  { %1055 = vmatpush1.bf16.msra.mxu1 %v3281_v4  ;;  %3194 = vmatpush3.bf16.msra.mxu0 %v3280_v3  ;;  %v109_v18 = vpack.c.bf16 %v48_v17, %v47_v16  ;;  %v3286_v19 = vld [vmem:[%s4487_s5 + $0x20] sm:$0xff]   ;;  %v3291_v24 = vld [vmem:[%s4489_s7 + $0xc8] sm:$0xff]   ;;  %v110_v25 = vpack.c.bf16 %v50_v21, %v49_v20  ;;  %v3289_v29 = vld [vmem:[%s4487_s5 + $0x30] sm:$0xff]  }
   0x8   :  { %1056 = vmatprep.subr.bf16.mxu1 %v3389_v0  ;;  %3195 = vmatprep.subr.bf16.mxu0 %v3282_v5  ;;  %v51_v22 = vld [vmem:[%s4488_s0 + $0x40] sm:$0xff]  ;;  %v3288_v26 = vld [vmem:[%s4487_s5 + $0x28] sm:$0xff]   ;;  %v53_v30 = vld [vmem:[%s4488_s0 + $0x50] sm:$0xff] }
   0x9   :  { %v111_v27 = vpack.c.bf16 %v52_v23, %v51_v22  ;;  %v3293_v28 = vld [vmem:[%s4489_s7 + $0x88] sm:$0xff]   ;;  %v54_v31 = vld [vmem:[%s4488_s0 + $0x58] sm:$0xff]  ;;  %v55_v32 = vld [vmem:[%s4488_s0 + $0x60] sm:$0xff] }
   0xa   :  { %v56_v33 = vld [vmem:[%s4488_s0 + $0x68] sm:$0xff]  ;;  %v112_v35 = vpack.c.bf16 %v54_v31, %v53_v30  ;;  %v879_v36 = vld [vmem:[%s4490_s1 + $0x18] sm:$0xff]  ;;  %v3298_v40 = vld [vmem:[%s4489_s7 + $0xd0] sm:$0xff]  }
   0xb   :  { %1057 = vmatpush1.bf16.msra.mxu1 %v3283_v6  ;;  %3196 = vmatpush3.bf16.msra.mxu0 %v3282_v5  ;;  %v877_v34 = vld [vmem:[%s4490_s1 + $0x8] sm:$0xff]  ;;  %v3290_v37 = vld [vmem:[%s4487_s5 + $0x38] sm:$0xff]   ;;  %v113_v38 = vpack.c.bf16 %v56_v33, %v55_v32  ;;  %v3300_v41 = vld [vmem:[%s4489_s7 + $0x90] sm:$0xff]  }
   0xc   :  { %1058 = vmatprep.subr.bf16.mxu1 %v3389_v0  ;;  %3051 = vmatprep.subr.bf16.mxu0 %v3285_v12  ;;  %v909_v39 = vpack.c.bf16 %v879_v36, %v877_v34  ;;  %v3292_v42 = vld [vmem:[%s4487_s5 + $0x40] sm:$0xff]   ;;  %v57_v43 = vld [vmem:[%s4488_s0 + $0x70] sm:$0xff]  ;;  %v58_v44 = vld [vmem:[%s4488_s0 + $0x78] sm:$0xff] }
   0xd   :  { %v59_v45 = vld [vmem:[%s4488_s0 + $0x80] sm:$0xff]  ;;  %v60_v46 = vld [vmem:[%s4488_s0 + $0x88] sm:$0xff]  ;;  %v114_v47 = vpack.c.bf16 %v58_v44, %v57_v43  ;;  %v3295_v50 = vld [vmem:[%s4487_s5 + $0x50] sm:$0xff]  }
   0xe   :  { %3198 = vmatmul.mubr.msk.bf16.vlgmr.msra.gmra.mrb[0].mxu0 %vm170_vm0, %v108_v13  ;;  %2510 = vmatprep.mubr.msk.bf16.mxu1 %vm1027_vm1, %v909_v39  ;;  %v3294_v48 = vld [vmem:[%s4487_s5 + $0x48] sm:$0xff]   ;;  %v115_v49 = vpack.c.bf16 %v60_v46, %v59_v45  ;;  %v61_v51 = vld [vmem:[%s4488_s0 + $0x90] sm:$0xff]  ;;  %v62_v52 = vld [vmem:[%s4488_s0 + $0x98] sm:$0xff] }
   0xf   :  { %1059 = vmatpush1.bf16.msra.mxu1 %v3284_v14  ;;  %3052 = vmatpush3.bf16.msra.mxu0 %v3287_v15  ;;  %v63_v53 = vld [vmem:[%s4488_s0 + $0xa0] sm:$0xff]  ;;  %v64_v54 = vld [vmem:[%s4488_s0 + $0xa8] sm:$0xff]  ;;  %v3304_v55 = vld [vmem:[%s4489_s7 + $0xd8] sm:$0xff]   ;;  %v116_v56 = vpack.c.bf16 %v62_v52, %v61_v51 }
  0x10   :  { %1060 = vmatprep.subr.bf16.mxu1 %v3389_v0  ;;  %3201 = vmatprep.mubr.msk.bf16.mxu0 %vm170_vm0, %v109_v18  ;;  %v3306_v57 = vld [vmem:[%s4489_s7 + $0x98] sm:$0xff]   ;;  %v876_v59 = vld [vmem:[%s4490_s1] sm:$0xff]  ;;  %v878_v60 = vld [vmem:[%s4490_s1 + $0x10] sm:$0xff]  ;;  %v117_v61 = vpack.c.bf16 %v64_v54, %v63_v53 }
  0x11   :  { %3053 = vmatprep.subr.bf16.mxu0 %v3291_v24  ;;  %v3296_v58 = vld [vmem:[%s4487_s5 + $0x58] sm:$0xff]   ;;  %v3297_v62 = vld [vmem:[%s4489_s7 + $0x40] sm:$0xff]   ;;  %v881_v63 = vld [vmem:[%s4490_s1 + $0x28] sm:$0xff]  ;;  %v908_v2 = vpack.c.bf16 %v878_v60, %v876_v59 }
  0x12   :  { %v883_v1 = vld [vmem:[%s4490_s1 + $0x38] sm:$0xff]  ;;  %v65_v3 = vld [vmem:[%s4488_s0 + $0xb0] sm:$0xff]  ;;  %v3301_v6 = vld [vmem:[%s4489_s7 + $0x48] sm:$0xff]  }
  0x13   :  { %1061 = vmatpush1.bf16.msra.mxu1 %v3286_v19  ;;  %3054 = vmatpush3.bf16.msra.mxu0 %v3293_v28  ;;  %v66_v4 = vld [vmem:[%s4488_s0 + $0xb8] sm:$0xff]  ;;  %v911_v5 = vpack.c.bf16 %v883_v1, %v881_v63  ;;  %v67_v7 = vld [vmem:[%s4488_s0 + $0xc0] sm:$0xff]  ;;  %v68_v8 = vld [vmem:[%s4488_s0 + $0xc8] sm:$0xff] }
  0x14   :  { %1062 = vmatprep.subr.bf16.mxu1 %v3389_v0  ;;  %3055 = vmatprep.subr.bf16.mxu0 %v3298_v40  ;;  %v880_v9 = vld [vmem:[%s4490_s1 + $0x20] sm:$0xff]  ;;  %v882_v10 = vld [vmem:[%s4490_s1 + $0x30] sm:$0xff]  ;;  %v3302_v11 = vld [vmem:[%s4489_s7 + $0x8] sm:$0xff]   ;;  %v118_v12 = vpack.c.bf16 %v66_v4, %v65_v3  ;;  %v119_v15 = vpack.c.bf16 %v68_v8, %v67_v7 }
  0x15   :  { %v885_v13 = vld [vmem:[%s4490_s1 + $0x48] sm:$0xff]  ;;  %v887_v14 = vld [vmem:[%s4490_s1 + $0x58] sm:$0xff]  ;;  %v3310_v16 = vld [vmem:[%s4489_s7 + $0xe0] sm:$0xff]   ;;  %v910_v19 = vpack.c.bf16 %v882_v10, %v880_v9 }
  0x16   :  { %3202 = vmatmul.mubr.msk.bf16.gmra.mrb[4].mxu0 %vm170_vm0, %v110_v25  ;;  %v3303_v17 = vld [vmem:[%s4489_s7 + $0x50] sm:$0xff]   ;;  %v3312_v18 = vld [vmem:[%s4489_s7 + $0xa0] sm:$0xff]   ;;  %v70_v21 = vld [vmem:[%s4488_s0 + $0xd8] sm:$0xff]  ;;  %v913_v22 = vpack.c.bf16 %v887_v14, %v885_v13 }
  0x17   :  { %1063 = vmatpush1.bf16.msra.mxu1 %v3288_v26  ;;  %3205 = vmatprep.mubr.msk.bf16.mxu0 %vm170_vm0, %v111_v27  ;;  %v69_v20 = vld [vmem:[%s4488_s0 + $0xd0] sm:$0xff]  ;;  %v71_v24 = vld [vmem:[%s4488_s0 + $0xe0] sm:$0xff]  ;;  %v72_v25 = vld [vmem:[%s4488_s0 + $0xe8] sm:$0xff] }
  0x18   :  { %1064 = vmatprep.subr.bf16.mxu1 %v3389_v0  ;;  %3056 = vmatpush3.bf16.msra.mxu0 %v3300_v41  ;;  %v3305_v23 = vld [vmem:[%s4489_s7 + $0x10] sm:$0xff]   ;;  %v3307_v26 = vld [vmem:[%s4489_s7 + $0x58] sm:$0xff]   ;;  %v120_v27 = vpack.c.bf16 %v70_v21, %v69_v20  ;;  %v884_v28 = vld [vmem:[%s4490_s1 + $0x40] sm:$0xff]  ;;  %v121_v30 = vpack.c.bf16 %v72_v25, %v71_v24 }
  0x19   :  { %3057 = vmatprep.subr.bf16.mxu0 %v3304_v55  ;;  %v3308_v31 = vld [vmem:[%s4489_s7 + $0x18] sm:$0xff]   ;;  %v889_v32 = vld [vmem:[%s4490_s1 + $0x68] sm:$0xff]  ;;  %v3309_v34 = vld [vmem:[%s4489_s7 + $0x60] sm:$0xff]  }
  0x1a   :  { %v891_v33 = vld [vmem:[%s4490_s1 + $0x78] sm:$0xff]  ;;  %v75_v39 = vld [vmem:[%s4488_s0 + $0x100] sm:$0xff]  ;;  %v76_v40 = vld [vmem:[%s4488_s0 + $0x108] sm:$0xff] }
  0x1b   :  { %1065 = vmatpush1.bf16.msra.mxu1 %v3289_v29  ;;  %v886_v29 = vld [vmem:[%s4490_s1 + $0x50] sm:$0xff]  ;;  %v74_v36 = vld [vmem:[%s4488_s0 + $0xf8] sm:$0xff]  ;;  %v3316_v41 = vld [vmem:[%s4489_s7 + $0xe8] sm:$0xff]  }
  0x1c   :  { %1066 = vmatprep.subr.bf16.mxu1 %v3389_v0  ;;  %3058 = vmatpush3.bf16.msra.mxu0 %v3306_v57  ;;  %v3313_v43 = vld [vmem:[%s4489_s7 + $0x68] sm:$0xff]   ;;  %v888_v46 = vld [vmem:[%s4490_s1 + $0x60] sm:$0xff]  ;;  %v3315_v52 = vld [vmem:[%s4489_s7 + $0x70] sm:$0xff]  }
  0x1d   :  { %3059 = vmatprep.subr.bf16.mxu0 %v3310_v16  ;;  %v3318_v44 = vld [vmem:[%s4489_s7 + $0xa8] sm:$0xff]   ;;  %v77_v54 = vld [vmem:[%s4488_s0 + $0x110] sm:$0xff]  ;;  %v78_v55 = vld [vmem:[%s4488_s0 + $0x118] sm:$0xff] }
  0x1e   :  { %3206 = vmatmul.mubr.msk.bf16.gmra.mrb[8].mxu0 %vm170_vm0, %v112_v35  ;;  %v73_v35 = vld [vmem:[%s4488_s0 + $0xf0] sm:$0xff]  ;;  %v3314_v51 = vld [vmem:[%s4489_s7 + $0x28] sm:$0xff]   ;;  %v79_v57 = vld [vmem:[%s4488_s0 + $0x120] sm:$0xff]  ;;  %v124_v1 = vpack.c.bf16 %v78_v55, %v77_v54 }
  0x1f   :  { %1067 = vmatpush1.bf16.msra.mxu1 %v3290_v37  ;;  %3209 = vmatprep.mubr.msk.bf16.mxu0 %vm170_vm0, %v113_v38  ;;  %v3311_v37 = vld [vmem:[%s4489_s7 + $0x20] sm:$0xff]   ;;  %v912_v38 = vpack.c.bf16 %v886_v29, %v884_v28  ;;  %v122_v45 = vpack.c.bf16 %v74_v36, %v73_v35  ;;  %v80_v59 = vld [vmem:[%s4488_s0 + $0x128] sm:$0xff]  ;;  %v3319_v60 = vld [vmem:[%s4489_s7 + $0x78] sm:$0xff]  }
  0x20   :  { %1068 = vmatprep.subr.bf16.mxu1 %v3389_v0  ;;  %3060 = vmatpush3.bf16.msra.mxu0 %v3312_v18  ;;  %v3320_v63 = vld [vmem:[%s4489_s7 + $0x38] sm:$0xff]   ;;  %v3322_v3 = vld [vmem:[%s4489_s7 + $0xf0] sm:$0xff]   ;;  %v125_v4 = vpack.c.bf16 %v80_v59, %v79_v57  ;;  %v896_v14 = vld [vmem:[%s4490_s1 + $0xa0] sm:$0xff] }
  0x21   :  { %3061 = vmatprep.subr.bf16.mxu0 %v3316_v41  ;;  %v81_v8 = vld [vmem:[%s4488_s0 + $0x130] sm:$0xff]  ;;  %v82_v9 = vld [vmem:[%s4488_s0 + $0x138] sm:$0xff]  ;;  %v88_v25 = vld [vmem:[%s4488_s0 + $0x168] sm:$0xff] }
  0x22   :  { %v126_v13 = vpack.c.bf16 %v82_v9, %v81_v8  ;;  %v903_v18 = vld [vmem:[%s4490_s1 + $0xd8] sm:$0xff]  ;;  %v900_v28 = vld [vmem:[%s4490_s1 + $0xc0] sm:$0xff]  ;;  %v902_v29 = vld [vmem:[%s4490_s1 + $0xd0] sm:$0xff] }
  0x23   :  { %1069 = vmatpush1.bf16.msra.mxu1 %v3292_v42  ;;  %v915_v42 = vpack.c.bf16 %v891_v33, %v889_v32  ;;  %v86_v20 = vld [vmem:[%s4488_s0 + $0x158] sm:$0xff]  ;;  %v920_v33 = vpack.c.bf16 %v902_v29, %v900_v28  ;;  %v906_v41 = vld [vmem:[%s4490_s1 + $0xf0] sm:$0xff]  ;;  %v3323_v59 = vld [vmem:[%s4489_s7 + $0x100] sm:$0xff]  }
  0x24   :  { %1070 = vmatprep.subr.bf16.mxu1 %v3389_v0  ;;  %3062 = vmatpush3.bf16.msra.mxu0 %v3318_v44  ;;  %v907_v32 = vld [vmem:[%s4490_s1 + $0xf8] sm:$0xff]  ;;  %v3341_v44 = vld [vmem:[%s4492_s9 + $0x40] sm:$0xff]   ;;  %v1235_v54 = vld [vmem:[%s4491_s2 + $0x30] sm:$0xff] }
  0x25   :  { %3063 = vmatprep.subr.bf16.mxu0 %v3322_v3  ;;  %v90_v35 = vld [vmem:[%s4488_s0 + $0x178] sm:$0xff]  ;;  %v1241_v3 = vld [vmem:[%s4491_s2 + $0x60] sm:$0xff]  ;;  %v1234_v8 = vld [vmem:[%s4491_s2 + $0x28] sm:$0xff] }
  0x26   :  { %3210 = vmatmul.mubr.msk.bf16.gmra.mrb[12].mxu0 %vm170_vm0, %v114_v47  ;;  %v890_v47 = vld [vmem:[%s4490_s1 + $0x70] sm:$0xff]  ;;  %v1248_v57 = vld [vmem:[%s4491_s2 + $0x98] sm:$0xff]  ;;  %v3336_v29 = vld [vmem:[%s4489_s7 + $0x128] sm:$0xff]  }
  0x27   :  { %1071 = vmatpush1.bf16.msra.mxu1 %v3294_v48  ;;  %3213 = vmatprep.mubr.msk.bf16.mxu0 %vm170_vm0, %v115_v49  ;;  %v893_v48 = vld [vmem:[%s4490_s1 + $0x88] sm:$0xff]  ;;  %v123_v49 = vpack.c.bf16 %v76_v40, %v75_v39  ;;  %v914_v53 = vpack.c.bf16 %v890_v47, %v888_v46  ;;  %v904_v40 = vld [vmem:[%s4490_s1 + $0xe0] sm:$0xff]  ;;  %v93_v46 = vld [vmem:[%s4488_s0 + $0x190] sm:$0xff] }
  0x28   :  { %1072 = vmatprep.subr.bf16.mxu1 %v3389_v0  ;;  %v922_v47 = vpack.c.bf16 %v906_v41, %v904_v40  ;;  %v1240_v9 = vld [vmem:[%s4491_s2 + $0x58] sm:$0xff] }
  0x29   :  { %v1244_v40 = vld [vmem:[%s4491_s2 + $0x78] sm:$0xff] }
  0x2b   :  { %1073 = vmatpush1.bf16.msra.mxu1 %v3295_v50  ;;  %v895_v50 = vld [vmem:[%s4490_s1 + $0x98] sm:$0xff] }
  0x2c   :  { %1074 = vmatprep.subr.bf16.mxu1 %v3389_v0  ;;  %v3299_v0 = vld [vmem:[%s4489_s7] sm:$0xff]  }
  0x2e   :  { %3214 = vmatmul.mubr.msk.bf16.gmra.mrb[16].mxu0 %vm170_vm0, %v116_v56  ;;  %v917_v56 = vpack.c.bf16 %v895_v50, %v893_v48  ;;  %v94_v48 = vld [vmem:[%s4488_s0 + $0x198] sm:$0xff]  ;;  %v95_v50 = vld [vmem:[%s4488_s0 + $0x1a0] sm:$0xff] }
  0x2f   :  { %1075 = vmatpush1.bf16.msra.mxu1 %v3296_v58  ;;  %3217 = vmatprep.mubr.msk.bf16.mxu0 %vm170_vm0, %v117_v61  ;;  %v3317_v58 = vld [vmem:[%s4489_s7 + $0x30] sm:$0xff]   ;;  %v892_v61 = vld [vmem:[%s4490_s1 + $0x80] sm:$0xff] }
  0x30   :  { %3023 = vmatprep.subr.bf16.mxu1 %v3297_v62  ;;  %v894_v62 = vld [vmem:[%s4490_s1 + $0x90] sm:$0xff] }
  0x31   :  { %v916_v7 = vpack.c.bf16 %v894_v62, %v892_v61  ;;  %v98_v61 = vld [vmem:[%s4488_s0 + $0x1b8] sm:$0xff] }
  0x32   :  { %1085 = vmatmul.mubr.bf16.vlgmr.msra.gmra.mrb[0].mxu1 %v908_v2  ;;  %v897_v2 = vld [vmem:[%s4490_s1 + $0xa8] sm:$0xff] }
  0x33   :  { %3024 = vmatpush3.bf16.msra.mxu1 %v3299_v0  ;;  %2511 = vmatprep.mubr.msk.bf16.mxu1 %vm1027_vm1, %v911_v5  ;;  %v899_v0 = vld [vmem:[%s4490_s1 + $0xb8] sm:$0xff]  ;;  %v3321_v5 = vld [vmem:[%s4489_s7 + $0x140] sm:$0xff]  }
  0x34   :  { %3025 = vmatprep.subr.bf16.mxu1 %v3301_v6  ;;  %v3324_v6 = vld [vmem:[%s4489_s7 + $0xb0] sm:$0xff]   ;;  %v919_v10 = vpack.c.bf16 %v899_v0, %v897_v2  ;;  %v100_v2 = vld [vmem:[%s4488_s0 + $0x1c8] sm:$0xff] }
  0x35   :  { %3064 = vmatpush3.bf16.msra.mxu0 %v3324_v6  ;;  %v3326_v0 = vld [vmem:[%s4489_s7 + $0x108] sm:$0xff]   ;;  %v1247_v6 = vld [vmem:[%s4491_s2 + $0x90] sm:$0xff] }
  0x36   :  { %3218 = vmatmul.mubr.msk.bf16.gmra.mrb[20].mxu0 %vm170_vm0, %v118_v12  ;;  %v84_v12 = vld [vmem:[%s4488_s0 + $0x148] sm:$0xff] }
  0x37   :  { %3026 = vmatpush3.bf16.msra.mxu1 %v3302_v11  ;;  %3221 = vmatprep.mubr.msk.bf16.mxu0 %vm170_vm0, %v119_v15  ;;  %v83_v11 = vld [vmem:[%s4488_s0 + $0x140] sm:$0xff]  ;;  %v898_v15 = vld [vmem:[%s4490_s1 + $0xb0] sm:$0xff] }
  0x38   :  { %3027 = vmatprep.subr.bf16.mxu1 %v3303_v17  ;;  %v127_v16 = vpack.c.bf16 %v84_v12, %v83_v11  ;;  %v901_v17 = vld [vmem:[%s4490_s1 + $0xc8] sm:$0xff]  ;;  %v918_v21 = vpack.c.bf16 %v898_v15, %v896_v14  ;;  %v101_v11 = vld [vmem:[%s4488_s0 + $0x1d0] sm:$0xff]  ;;  %v3329_v12 = vld [vmem:[%s4489_s7 + $0x158] sm:$0xff]   ;;  %v3993_v14 = vpack.c.bf16 %v1247_v6, %v1241_v3 }
  0x39   :  { %v921_v24 = vpack.c.bf16 %v903_v18, %v901_v17  ;;  %v103_v15 = vld [vmem:[%s4488_s0 + $0x1e0] sm:$0xff]  ;;  %v104_v17 = vld [vmem:[%s4488_s0 + $0x1e8] sm:$0xff]  ;;  %v3353_v3 = vld [vmem:[%s4492_s9 + $0x90] sm:$0xff]  }
  0x3a   :  { %1093 = vmatmul.mubr.bf16.gmra.mrb[4].mxu1 %v910_v19  ;;  %v85_v19 = vld [vmem:[%s4488_s0 + $0x150] sm:$0xff]  ;;  %v3356_v6 = vld [vmem:[%s4492_s9 + $0x60] sm:$0xff]  }
  0x3b   :  { %2512 = vmatprep.mubr.msk.bf16.mxu1 %vm1027_vm1, %v913_v22  ;;  %3028 = vmatpush3.bf16.msra.mxu1 %v3305_v23  ;;  %v87_v22 = vld [vmem:[%s4488_s0 + $0x160] sm:$0xff]  ;;  %v3332_v23 = vld [vmem:[%s4489_s7 + $0xf8] sm:$0xff]  }
  0x3c   :  { %3029 = vmatprep.subr.bf16.mxu1 %v3307_v26  ;;  %3065 = vmatprep.subr.bf16.mxu0 %v3332_v23  ;;  %v3334_v26 = vld [vmem:[%s4489_s7 + $0xb8] sm:$0xff]   ;;  %v105_v23 = vld [vmem:[%s4488_s0 + $0x1f0] sm:$0xff] }
  0x3d   :  { %3066 = vmatpush3.bf16.msra.mxu0 %v3334_v26  ;;  %v1232_v26 = vld [vmem:[%s4491_s2 + $0x18] sm:$0xff] }
  0x3e   :  { %3222 = vmatmul.mubr.msk.bf16.gmra.mrb[24].mxu0 %vm170_vm0, %v120_v27  ;;  %v128_v27 = vpack.c.bf16 %v86_v20, %v85_v19  ;;  %3107 = vmatprep.subr.bf16.mxu0 %v3341_v44  ;;  %v3330_v19 = vld [vmem:[%s4489_s7 + $0x118] sm:$0xff]   ;;  %v137_v20 = vpack.c.bf16 %v104_v17, %v103_v15  ;;  %v3344_v44 = vld [vmem:[%s4492_s9 + $0x48] sm:$0xff]   ;;  %v3366_v17 = vld [vmem:[%s4492_s9 + $0x30] sm:$0xff]  }
  0x3f   :  { %3225 = vmatprep.mubr.msk.bf16.mxu0 %vm170_vm0, %v121_v30  ;;  %3030 = vmatpush3.bf16.msra.mxu1 %v3308_v31  ;;  %v129_v30 = vpack.c.bf16 %v88_v25, %v87_v22  ;;  %v905_v31 = vld [vmem:[%s4490_s1 + $0xe8] sm:$0xff]  ;;  %v3333_v22 = vld [vmem:[%s4489_s7 + $0x120] sm:$0xff]   ;;  %v106_v25 = vld [vmem:[%s4488_s0 + $0x1f8] sm:$0xff] }
  0x40   :  { %3031 = vmatprep.subr.bf16.mxu1 %v3309_v34  ;;  %v89_v34 = vld [vmem:[%s4488_s0 + $0x170] sm:$0xff]  ;;  %v923_v36 = vpack.c.bf16 %v907_v32, %v905_v31  ;;  %v138_v28 = vpack.c.bf16 %v106_v25, %v105_v23  ;;  %v3365_v15 = vld [vmem:[%s4492_s9 + $0xa8] sm:$0xff]   ;;  %v3373_v23 = vld [vmem:[%s4492_s9 + $0x140] sm:$0xff]  }
  0x41   :  { %v130_v39 = vpack.c.bf16 %v90_v35, %v89_v34  ;;  %v3337_v31 = vld [vmem:[%s4489_s7 + $0x170] sm:$0xff]   ;;  %v1237_v34 = vld [vmem:[%s4491_s2 + $0x40] sm:$0xff]  ;;  %v3339_v35 = vld [vmem:[%s4489_s7 + $0x178] sm:$0xff]  }
  0x42   :  { %1101 = vmatmul.mubr.bf16.gmra.mrb[8].mxu1 %v912_v38  ;;  %v92_v38 = vld [vmem:[%s4488_s0 + $0x188] sm:$0xff]  ;;  %v3338_v32 = vld [vmem:[%s4489_s7 + $0x130] sm:$0xff]   ;;  %v3374_v25 = vld [vmem:[%s4492_s9 + $0x100] sm:$0xff]  }
  0x43   :  { %2513 = vmatprep.mubr.msk.bf16.mxu1 %vm1027_vm1, %v915_v42  ;;  %3032 = vmatpush3.bf16.msra.mxu1 %v3311_v37  ;;  %v91_v37 = vld [vmem:[%s4488_s0 + $0x180] sm:$0xff] }
  0x44   :  { %3033 = vmatprep.subr.bf16.mxu1 %v3313_v43  ;;  %v131_v42 = vpack.c.bf16 %v92_v38, %v91_v37  ;;  %v1230_v43 = vld [vmem:[%s4491_s2 + $0x8] sm:$0xff]  ;;  %v3342_v37 = vld [vmem:[%s4492_s9] sm:$0xff]  }
  0x45   :  { %v1233_v38 = vld [vmem:[%s4491_s2 + $0x20] sm:$0xff] }
  0x46   :  { %3226 = vmatmul.mubr.msk.bf16.gmra.mrb[28].mxu0 %vm170_vm0, %v122_v45  ;;  %v1236_v45 = vld [vmem:[%s4491_s2 + $0x38] sm:$0xff] }
  0x47   :  { %3229 = vmatprep.mubr.msk.bf16.mxu0 %vm170_vm0, %v123_v49  ;;  %3034 = vmatpush3.bf16.msra.mxu1 %v3314_v51  ;;  %v3915_v49 = vpack.c.bf16 %v1236_v45, %v1230_v43  ;;  %v96_v51 = vld [vmem:[%s4488_s0 + $0x1a8] sm:$0xff]  ;;  %v3343_v43 = vld [vmem:[%s4492_s9 + $0xc0] sm:$0xff]  }
  0x48   :  { %3035 = vmatprep.subr.bf16.mxu1 %v3315_v52  ;;  %v132_v52 = vpack.c.bf16 %v94_v48, %v93_v46  ;;  %v133_v55 = vpack.c.bf16 %v96_v51, %v95_v50  ;;  %v3345_v45 = vld [vmem:[%s4492_s9 + $0x80] sm:$0xff]   ;;  %v3346_v46 = vld [vmem:[%s4492_s9 + $0x8] sm:$0xff]   ;;  %v1243_v48 = vld [vmem:[%s4491_s2 + $0x70] sm:$0xff] }
  0x49   :  { %v1246_v50 = vld [vmem:[%s4491_s2 + $0x88] sm:$0xff] }
  0x4a   :  { %1109 = vmatmul.mubr.bf16.gmra.mrb[12].mxu1 %v914_v53  ;;  %v1229_v53 = vld [vmem:[%s4491_s2] sm:$0xff] }
  0x4b   :  { %2514 = vmatprep.mubr.msk.bf16.mxu1 %vm1027_vm1, %v917_v56  ;;  %3036 = vmatpush3.bf16.msra.mxu1 %v3317_v58  ;;  %v1242_v56 = vld [vmem:[%s4491_s2 + $0x68] sm:$0xff]  ;;  %v3937_v58 = vpack.c.bf16 %v1235_v54, %v1229_v53  ;;  %v1252_v53 = vld [vmem:[%s4491_s2 + $0xb8] sm:$0xff]  ;;  %v1249_v54 = vld [vmem:[%s4491_s2 + $0xa0] sm:$0xff] }
  0x4c   :  { %3037 = vmatprep.subr.bf16.mxu1 %v3319_v60  ;;  %v97_v60 = vld [vmem:[%s4488_s0 + $0x1b0] sm:$0xff]  ;;  %v3949_v62 = vpack.c.bf16 %v1248_v57, %v1242_v56  ;;  %v3349_v56 = vld [vmem:[%s4492_s9 + $0x88] sm:$0xff]  }
  0x4d   :  { %v3350_v57 = vld [vmem:[%s4492_s9 + $0x10] sm:$0xff]  }
  0x4e   :  { %3230 = vmatmul.mubr.msk.bf16.gmra.mrb[32].mxu0 %vm170_vm0, %v124_v1  ;;  %v99_v1 = vld [vmem:[%s4488_s0 + $0x1c0] sm:$0xff] }
  0x4f   :  { %3233 = vmatprep.mubr.msk.bf16.mxu0 %vm170_vm0, %v125_v4  ;;  %3038 = vmatpush3.bf16.msra.mxu1 %v3320_v63  ;;  %v3325_v63 = vld [vmem:[%s4489_s7 + $0x148] sm:$0xff]   ;;  %v134_v4 = vpack.c.bf16 %v98_v61, %v97_v60  ;;  %v1245_v60 = vld [vmem:[%s4491_s2 + $0x80] sm:$0xff]  ;;  %v4122_v61 = vpack.c.bf16 %v1249_v54, %v1243_v48 }
  0x50   :  { %3079 = vmatprep.subr.bf16.mxu1 %v3321_v5  ;;  %v3327_v5 = vld [vmem:[%s4489_s7 + $0x150] sm:$0xff]  }
  0x52   :  { %1117 = vmatmul.mubr.bf16.gmra.mrb[16].mxu1 %v916_v7  ;;  %v135_v7 = vpack.c.bf16 %v100_v2, %v99_v1  ;;  %v3351_v1 = vld [vmem:[%s4492_s9 + $0xd0] sm:$0xff]   ;;  %v3352_v2 = vld [vmem:[%s4492_s9 + $0x58] sm:$0xff]  }
  0x53   :  { %2515 = vmatprep.mubr.msk.bf16.mxu1 %vm1027_vm1, %v919_v10  ;;  %v3328_v10 = vld [vmem:[%s4489_s7 + $0x110] sm:$0xff]  }
  0x56   :  { %3234 = vmatmul.mubr.msk.bf16.gmra.mrb[36].mxu0 %vm170_vm0, %v126_v13  ;;  %v102_v13 = vld [vmem:[%s4488_s0 + $0x1d8] sm:$0xff] }
  0x57   :  { %3237 = vmatprep.mubr.msk.bf16.mxu0 %vm170_vm0, %v127_v16  ;;  %v3999_v16 = vpack.c.bf16 %v1240_v9, %v1234_v8  ;;  %v136_v18 = vpack.c.bf16 %v102_v13, %v101_v11  ;;  %v3358_v8 = vld [vmem:[%s4492_s9 + $0x20] sm:$0xff]   ;;  %v3362_v11 = vld [vmem:[%s4492_s9 + $0x28] sm:$0xff]   ;;  %v3364_v13 = vld [vmem:[%s4492_s9 + $0x70] sm:$0xff]  }
  0x58   :  { %v3359_v9 = vld [vmem:[%s4492_s9 + $0xe0] sm:$0xff]  }
  0x5a   :  { %1125 = vmatmul.mubr.bf16.gmra.mrb[20].mxu1 %v918_v21  ;;  %v3331_v21 = vld [vmem:[%s4489_s7 + $0x160] sm:$0xff]  }
  0x5b   :  { %2516 = vmatprep.mubr.msk.bf16.mxu1 %vm1027_vm1, %v921_v24  ;;  %v3335_v24 = vld [vmem:[%s4489_s7 + $0x168] sm:$0xff]  }
  0x5e   :  { %3238 = vmatmul.mubr.msk.bf16.gmra.mrb[40].mxu0 %vm170_vm0, %v128_v27  ;;  %v1238_v27 = vld [vmem:[%s4491_s2 + $0x48] sm:$0xff] }
  0x5f   :  { %3241 = vmatprep.mubr.msk.bf16.mxu0 %vm170_vm0, %v129_v30  ;;  %v4035_v30 = vpack.c.bf16 %v1238_v27, %v1232_v26  ;;  %v3375_v26 = vld [vmem:[%s4492_s9 + $0x148] sm:$0xff]  }
  0x60   :  { %v3376_v27 = vld [vmem:[%s4492_s9 + $0x108] sm:$0xff]  }
  0x62   :  { %1133 = vmatmul.mubr.bf16.gmra.mrb[24].mxu1 %v920_v33  ;;  %v1231_v33 = vld [vmem:[%s4491_s2 + $0x10] sm:$0xff] }
  0x63   :  { %2517 = vmatprep.mubr.msk.bf16.mxu1 %vm1027_vm1, %v923_v36  ;;  %v3340_v36 = vld [vmem:[%s4489_s7 + $0x138] sm:$0xff]   ;;  %v4069_v41 = vpack.c.bf16 %v1237_v34, %v1231_v33  ;;  %v3386_v33 = vld [vmem:[%s4492_s9 + $0x130] sm:$0xff]  }
  0x64   :  { %v3387_v34 = vld [vmem:[%s4492_s9 + $0x178] sm:$0xff]  }
  0x66   :  { %3242 = vmatmul.mubr.msk.bf16.gmra.mrb[44].mxu0 %vm170_vm0, %v130_v39  ;;  %v1239_v39 = vld [vmem:[%s4491_s2 + $0x50] sm:$0xff] }
  0x67   :  { %3245 = vmatprep.mubr.msk.bf16.mxu0 %vm170_vm0, %v131_v42  ;;  %v1250_v42 = vld [vmem:[%s4491_s2 + $0xa8] sm:$0xff]  ;;  %v4095_v51 = vpack.c.bf16 %v1239_v39, %v1233_v38 }
  0x6a   :  { %1141 = vmatmul.mubr.bf16.gmra.mrb[28].mxu1 %v922_v47  ;;  %v4086_v47 = vpack.c.bf16 %v1250_v42, %v1244_v40 }
  0x6b   :  { %1688 = vmatprep.mubr.bf16.mxu1 %v3915_v49 }
  0x6e   :  { %3246 = vmatmul.mubr.msk.bf16.gmra.mrb[48].mxu0 %vm170_vm0, %v132_v52  ;;  %v3347_v52 = vld [vmem:[%s4492_s9 + $0xc8] sm:$0xff]  }
  0x6f   :  { %3249 = vmatprep.mubr.msk.bf16.mxu0 %vm170_vm0, %v133_v55  ;;  %v3348_v55 = vld [vmem:[%s4492_s9 + $0x50] sm:$0xff]  }
  0x72   :  { %1689 = vmatmul.mubr.bf16.vlgmr.msra.gmra.mrb[32].mxu1 %v3937_v58 }
  0x73   :  { %3080 = vmatpush3.bf16.msra.mxu1 %v3323_v59  ;;  %1696 = vmatprep.mubr.bf16.mxu1 %v3949_v62  ;;  %v4116_v59 = vpack.c.bf16 %v1252_v53, %v1246_v50 }
  0x74   :  { %3081 = vmatprep.subr.bf16.mxu1 %v3325_v63  ;;  %v1251_v63 = vld [vmem:[%s4491_s2 + $0xb0] sm:$0xff] }
  0x76   :  { %3250 = vmatmul.mubr.msk.bf16.gmra.mrb[52].mxu0 %vm170_vm0, %v134_v4  ;;  %v3354_v4 = vld [vmem:[%s4492_s9 + $0x18] sm:$0xff]  }
  0x77   :  { %3082 = vmatpush3.bf16.msra.mxu1 %v3326_v0  ;;  %3253 = vmatprep.mubr.msk.bf16.mxu0 %vm170_vm0, %v135_v7  ;;  %v4135_v0 = vpack.c.bf16 %v1251_v63, %v1245_v60  ;;  %v3357_v7 = vld [vmem:[%s4492_s9 + $0x98] sm:$0xff]  }
  0x78   :  { %3083 = vmatprep.subr.bf16.mxu1 %v3327_v5  ;;  %v3355_v5 = vld [vmem:[%s4492_s9 + $0xd8] sm:$0xff]  }
  0x7a   :  { %1697 = vmatmul.mubr.bf16.gmra.mrb[36].mxu1 %v3993_v14 }
  0x7b   :  { %3084 = vmatpush3.bf16.msra.mxu1 %v3328_v10  ;;  %1786 = vmatprep.mubr.bf16.mxu1 %v3999_v16  ;;  %v3361_v10 = vld [vmem:[%s4492_s9 + $0xa0] sm:$0xff]  }
  0x7c   :  { %3085 = vmatprep.subr.bf16.mxu1 %v3329_v12  ;;  %v3363_v12 = vld [vmem:[%s4492_s9 + $0xe8] sm:$0xff]  }
  0x7e   :  { %3254 = vmatmul.mubr.msk.bf16.gmra.mrb[56].mxu0 %vm170_vm0, %v136_v18  ;;  %v3367_v18 = vld [vmem:[%s4492_s9 + $0xf0] sm:$0xff]  }
  0x7f   :  { %3086 = vmatpush3.bf16.msra.mxu1 %v3330_v19  ;;  %3257 = vmatprep.mubr.msk.bf16.mxu0 %vm170_vm0, %v137_v20  ;;  %v3368_v19 = vld [vmem:[%s4492_s9 + $0x78] sm:$0xff]   ;;  %v3369_v20 = vld [vmem:[%s4492_s9 + $0xb0] sm:$0xff]  }
  0x80   :  { %3087 = vmatprep.subr.bf16.mxu1 %v3331_v21  ;;  %v3370_v21 = vld [vmem:[%s4492_s9 + $0x38] sm:$0xff]  }
  0x83   :  { %3088 = vmatpush3.bf16.msra.mxu1 %v3333_v22  ;;  %v3371_v22 = vld [vmem:[%s4492_s9 + $0xf8] sm:$0xff]  }
  0x84   :  { %3089 = vmatprep.subr.bf16.mxu1 %v3335_v24  ;;  %v3372_v24 = vld [vmem:[%s4492_s9 + $0xb8] sm:$0xff]  }
  0x86   :  { %3258 = vmatmul.mubr.msk.bf16.gmra.mrb[60].mxu0 %vm170_vm0, %v138_v28  ;;  %v3377_v28 = vld [vmem:[%s4492_s9 + $0x150] sm:$0xff]  }
  0x87   :  { %3090 = vmatpush3.bf16.msra.mxu1 %v3336_v29  ;;  %1737 = vmatprep.mubr.bf16.mxu0 %v4035_v30  ;;  %v3379_v29 = vld [vmem:[%s4492_s9 + $0x158] sm:$0xff]  }
  0x88   :  { %3091 = vmatprep.subr.bf16.mxu1 %v3337_v31  ;;  %v3383_v31 = vld [vmem:[%s4492_s9 + $0x168] sm:$0xff]  }
  0x8b   :  { %3092 = vmatpush3.bf16.msra.mxu1 %v3338_v32  ;;  %v3385_v32 = vld [vmem:[%s4492_s9 + $0x170] sm:$0xff]  }
  0x8c   :  { %3093 = vmatprep.subr.bf16.mxu1 %v3339_v35  ;;  %v3388_v35 = vld [vmem:[%s4492_s9 + $0x138] sm:$0xff]  }
  0x8e   :  { %1738 = vmatmul.mubr.bf16.vlgmr.msra.gmra.mrb[64].mxu0 %v4069_v41 }
  0x8f   :  { %3094 = vmatpush3.bf16.msra.mxu1 %v3340_v36  ;;  %3108 = vmatpush3.bf16.msra.mxu0 %v3342_v37  ;;  %v4261_v36 = vld [vmem:[%s4493_s4] ss:$0 sm:$0xff] }
  0x90   :  { %3135 = vmatprep.subr.bf16.mxu1 %v3343_v43  ;;  %3109 = vmatprep.subr.bf16.mxu0 %v3344_v44 }
  0x91   :  { %1745 = vmatprep.mubr.bf16.mxu0 %v4086_v47 }
  0x92   :  { %1787 = vmatmul.mubr.bf16.vlgmr.msra.gmra.mrb[40].mxu1 %v4095_v51 }
  0x93   :  { %3136 = vmatpush3.bf16.msra.mxu1 %v3345_v45  ;;  %3110 = vmatpush3.bf16.msra.mxu0 %v3346_v46 }
  0x94   :  { %3137 = vmatprep.subr.bf16.mxu1 %v3347_v52  ;;  %3111 = vmatprep.subr.bf16.mxu0 %v3348_v55 }
  0x95   :  { %1794 = vmatprep.mubr.bf16.mxu1 %v4116_v59 }
  0x96   :  { %1746 = vmatmul.mubr.bf16.gmra.mrb[68].mxu0 %v4122_v61 }
  0x97   :  { %3138 = vmatpush3.bf16.msra.mxu1 %v3349_v56  ;;  %3112 = vmatpush3.bf16.msra.mxu0 %v3350_v57 }
  0x98   :  { %3139 = vmatprep.subr.bf16.mxu1 %v3351_v1  ;;  %3113 = vmatprep.subr.bf16.mxu0 %v3352_v2 }
  0x99   :  { %2246 = vmatprep.mubr.bf16.mxu0 %v3915_v49  ;;  %v3360_v49 = vld [vmem:[%s4492_s9 + $0x68] sm:$0xff]  }
  0x9a   :  { %1795 = vmatmul.mubr.bf16.gmra.mrb[44].mxu1 %v4135_v0 }
  0x9b   :  { %3140 = vmatpush3.bf16.msra.mxu1 %v3353_v3  ;;  %3114 = vmatpush3.bf16.msra.mxu0 %v3354_v4 }
  0x9c   :  { %3141 = vmatprep.subr.bf16.mxu1 %v3355_v5  ;;  %3115 = vmatprep.subr.bf16.mxu0 %v3356_v6 }
  0x9d   :  { %2295 = vmatprep.mubr.bf16.mxu1 %v4035_v30  ;;  %v3381_v30 = vld [vmem:[%s4492_s9 + $0x160] sm:$0xff]  }
  0x9f   :  { %3142 = vmatpush3.bf16.msra.mxu1 %v3357_v7  ;;  %3116 = vmatpush3.bf16.msra.mxu0 %v3358_v8 }
  0xa0   :  { %3143 = vmatprep.subr.bf16.mxu1 %v3359_v9  ;;  %3117 = vmatprep.subr.bf16.mxu0 %v3360_v49 }
  0xa3   :  { %3144 = vmatpush3.bf16.msra.mxu1 %v3361_v10  ;;  %3118 = vmatpush3.bf16.msra.mxu0 %v3362_v11 }
  0xa4   :  { %3145 = vmatprep.subr.bf16.mxu1 %v3363_v12  ;;  %3119 = vmatprep.subr.bf16.mxu0 %v3364_v13 }
  0xa7   :  { %3146 = vmatpush3.bf16.msra.mxu1 %v3365_v15  ;;  %3120 = vmatpush3.bf16.msra.mxu0 %v3366_v17 }
  0xa8   :  { %3147 = vmatprep.subr.bf16.mxu1 %v3367_v18  ;;  %3121 = vmatprep.subr.bf16.mxu0 %v3368_v19 }
  0xab   :  { %3148 = vmatpush3.bf16.msra.mxu1 %v3369_v20  ;;  %3122 = vmatpush3.bf16.msra.mxu0 %v3370_v21 }
  0xac   :  { %3149 = vmatprep.subr.bf16.mxu1 %v3371_v22  ;;  %3163 = vmatprep.subr.bf16.mxu0 %v3373_v23 }
  0xae   :  { %2247 = vmatmul.mubr.bf16.vlgmr.msra.gmra.mrb[72].mxu0 %v3937_v58  ;;  %v3378_v58 = vld [vmem:[%s4492_s9 + $0x110] sm:$0xff]  }
  0xaf   :  { %3150 = vmatpush3.bf16.msra.mxu1 %v3372_v24  ;;  %3164 = vmatpush3.bf16.msra.mxu0 %v3374_v25  ;;  %v4309_v24 = vld [vmem:[%s4495_s6] ss:$0 sm:$0xff] }
  0xb0   :  { %3261 = vmatprep.subr.bf16.mxu1 %v3373_v23  ;;  %3165 = vmatprep.subr.bf16.mxu0 %v3375_v26 }
  0xb1   :  { %2254 = vmatprep.mubr.bf16.mxu0 %v3949_v62  ;;  %v3380_v62 = vld [vmem:[%s4492_s9 + $0x118] sm:$0xff]  }
  0xb2   :  { %2296 = vmatmul.mubr.bf16.vlgmr.msra.gmra.mrb[48].mxu1 %v4069_v41 }
  0xb3   :  { %3269 = vmatpush3.bf16.msra.mxu1 %v3374_v25  ;;  %3166 = vmatpush3.bf16.msra.mxu0 %v3376_v27 }
  0xb4   :  { %3262 = vmatprep.subr.bf16.mxu1 %v3375_v26  ;;  %3167 = vmatprep.subr.bf16.mxu0 %v3377_v28 }
  0xb5   :  { %2303 = vmatprep.mubr.bf16.mxu1 %v4086_v47 }
  0xb6   :  { %2255 = vmatmul.mubr.bf16.gmra.mrb[76].mxu0 %v3993_v14  ;;  %v3382_v14 = vld [vmem:[%s4492_s9 + $0x120] sm:$0xff]  }
  0xb7   :  { %3270 = vmatpush3.bf16.msra.mxu1 %v3376_v27  ;;  %3168 = vmatpush3.bf16.msra.mxu0 %v3378_v58 }
  0xb8   :  { %3263 = vmatprep.subr.bf16.mxu1 %v3377_v28  ;;  %3169 = vmatprep.subr.bf16.mxu0 %v3379_v29 }
  0xb9   :  { %2344 = vmatprep.mubr.bf16.mxu0 %v3999_v16  ;;  %v3384_v16 = vld [vmem:[%s4492_s9 + $0x128] sm:$0xff]  }
  0xba   :  { %2304 = vmatmul.mubr.bf16.gmra.mrb[52].mxu1 %v4122_v61 }
  0xbb   :  { %3271 = vmatpush3.bf16.msra.mxu1 %v3378_v58  ;;  %3170 = vmatpush3.bf16.msra.mxu0 %v3380_v62 }
  0xbc   :  { %3264 = vmatprep.subr.bf16.mxu1 %v3379_v29  ;;  %3171 = vmatprep.subr.bf16.mxu0 %v3381_v30 }
  0xbd   :  { %2352 = vmatprep.mubr.bf16.mxu1 %v4116_v59 }
  0xbf   :  { %3272 = vmatpush3.bf16.msra.mxu1 %v3380_v62  ;;  %3172 = vmatpush3.bf16.msra.mxu0 %v3382_v14 }
  0xc0   :  { %3265 = vmatprep.subr.bf16.mxu1 %v3381_v30  ;;  %3173 = vmatprep.subr.bf16.mxu0 %v3383_v31 }
  0xc3   :  { %3273 = vmatpush3.bf16.msra.mxu1 %v3382_v14  ;;  %3174 = vmatpush3.bf16.msra.mxu0 %v3384_v16 }
  0xc4   :  { %3266 = vmatprep.subr.bf16.mxu1 %v3383_v31  ;;  %3175 = vmatprep.subr.bf16.mxu0 %v3385_v32 }
  0xc7   :  { %3274 = vmatpush3.bf16.msra.mxu1 %v3384_v16  ;;  %3176 = vmatpush3.bf16.msra.mxu0 %v3386_v33 }
  0xc8   :  { %3267 = vmatprep.subr.bf16.mxu1 %v3385_v32  ;;  %3177 = vmatprep.subr.bf16.mxu0 %v3387_v34 }
  0xcb   :  { %3275 = vmatpush3.bf16.msra.mxu1 %v3386_v33  ;;  %3178 = vmatpush3.bf16.msra.mxu0 %v3388_v35 }
  0xcc   :  { %3268 = vmatprep.subr.bf16.mxu1 %v3387_v34 }
  0xce   :  { %2345 = vmatmul.mubr.bf16.vlgmr.msra.gmra.mrb[80].mxu0 %v4095_v51 }
  0xcf   :  { %3276 = vmatpush3.bf16.msra.mxu1 %v3388_v35 }
  0xd2   :  { %2353 = vmatmul.mubr.bf16.vlgmr.msra.gmra.mrb[56].mxu1 %v4135_v0 }
  0xe1   :  { %v3199_v37 = vpop.f32.mrb[0].mxu0 }
  0xe2   :  { %v310_v38 = vadd.f32 %v3199_v37, %v4261_v36  ;;  %v301_v39 = vpop.f32.mrb[1].mxu0 }
  0xe3   :  { %v302_v40 = vadd.f32 %v4261_v36, %v301_v39  ;;  %v3200_v41 = vpop.f32.mrb[2].mxu0 }
  0xe4   :  { %v313_v42 = vadd.f32 %v3200_v41, %v4261_v36  ;;  %v304_v43 = vpop.f32.mrb[3].mxu0 }
  0xe5   :  { %v305_v44 = vadd.f32 %v4261_v36, %v304_v43 }
  0xe6   :  { %v2736_v45 = vpack.c.bf16 %v313_v42, %v310_v38 }
  0xe7   :  { %v2731_v46 = vpack.c.bf16 %v305_v44, %v302_v40 }
  0xe8   :  { %2948 = vst [vmem:[%s4494_s11 + $0x8] sm:$0xff] %v2736_v45  }
  0xe9   :  { %2732 = vst [vmem:[%s4494_s11] sm:$0xff] %v2731_v46   ;;  %v3203_v47 = vpop.f32.mrb[4].mxu0 }
  0xea   :  { %v326_v48 = vadd.f32 %v3203_v47, %v4261_v36  ;;  %v317_v50 = vpop.f32.mrb[5].mxu0 }
  0xeb   :  { %v318_v51 = vadd.f32 %v4261_v36, %v317_v50  ;;  %v3204_v52 = vpop.f32.mrb[6].mxu0 }
  0xec   :  { %v329_v53 = vadd.f32 %v3204_v52, %v4261_v36  ;;  %v320_v54 = vpop.f32.mrb[7].mxu0 }
  0xed   :  { %v321_v55 = vadd.f32 %v4261_v36, %v320_v54 }
  0xee   :  { %v2746_v56 = vpack.c.bf16 %v329_v53, %v326_v48 }
  0xef   :  { %v2741_v57 = vpack.c.bf16 %v321_v55, %v318_v51 }
  0xf0   :  { %2950 = vst [vmem:[%s4494_s11 + $0x18] sm:$0xff] %v2746_v56  }
  0xf1   :  { %2949 = vst [vmem:[%s4494_s11 + $0x10] sm:$0xff] %v2741_v57   ;;  %v3207_v59 = vpop.f32.mrb[8].mxu0 }
  0xf2   :  { %v342_v60 = vadd.f32 %v3207_v59, %v4261_v36  ;;  %v333_v61 = vpop.f32.mrb[9].mxu0 }
  0xf3   :  { %v334_v63 = vadd.f32 %v4261_v36, %v333_v61  ;;  %v3208_v1 = vpop.f32.mrb[10].mxu0 }
  0xf4   :  { %v345_v2 = vadd.f32 %v3208_v1, %v4261_v36  ;;  %v336_v0 = vpop.f32.mrb[11].mxu0 }
  0xf5   :  { %v337_v3 = vadd.f32 %v4261_v36, %v336_v0 }
  0xf6   :  { %v2756_v4 = vpack.c.bf16 %v345_v2, %v342_v60 }
  0xf7   :  { %v2751_v5 = vpack.c.bf16 %v337_v3, %v334_v63 }
  0xf8   :  { %2952 = vst [vmem:[%s4494_s11 + $0x28] sm:$0xff] %v2756_v4  }
  0xf9   :  { %2951 = vst [vmem:[%s4494_s11 + $0x20] sm:$0xff] %v2751_v5   ;;  %v3211_v6 = vpop.f32.mrb[12].mxu0 }
  0xfa   :  { %v358_v7 = vadd.f32 %v3211_v6, %v4261_v36  ;;  %v349_v8 = vpop.f32.mrb[13].mxu0 }
  0xfb   :  { %v350_v9 = vadd.f32 %v4261_v36, %v349_v8  ;;  %v3212_v49 = vpop.f32.mrb[14].mxu0 }
  0xfc   :  { %v361_v10 = vadd.f32 %v3212_v49, %v4261_v36  ;;  %v352_v11 = vpop.f32.mrb[15].mxu0 }
  0xfd   :  { %v353_v12 = vadd.f32 %v4261_v36, %v352_v11 }
  0xfe   :  { %v2766_v13 = vpack.c.bf16 %v361_v10, %v358_v7 }
  0xff   :  { %v2761_v15 = vpack.c.bf16 %v353_v12, %v350_v9 }
 0x100   :  { %2954 = vst [vmem:[%s4494_s11 + $0x38] sm:$0xff] %v2766_v13  }
 0x101   :  { %2953 = vst [vmem:[%s4494_s11 + $0x30] sm:$0xff] %v2761_v15   ;;  %v3215_v17 = vpop.f32.mrb[16].mxu0 }
 0x102   :  { %v374_v18 = vadd.f32 %v3215_v17, %v4261_v36  ;;  %v365_v19 = vpop.f32.mrb[17].mxu0 }
 0x103   :  { %v366_v20 = vadd.f32 %v4261_v36, %v365_v19  ;;  %v3216_v21 = vpop.f32.mrb[18].mxu0 }
 0x104   :  { %v377_v22 = vadd.f32 %v3216_v21, %v4261_v36  ;;  %v368_v23 = vpop.f32.mrb[19].mxu0 }
 0x105   :  { %v1086_v25 = vpop.f32.mrb[0].mxu1  ;;  %v369_v26 = vadd.f32 %v4261_v36, %v368_v23 }
 0x106   :  { %v2776_v27 = vpack.c.bf16 %v377_v22, %v374_v18  ;;  %v1088_v28 = vpop.f32.mrb[1].mxu1  ;;  %v1087_v62 = vadd.f32 %v4309_v24, %v1086_v25 }
 0x107   :  { %v2771_v58 = vpack.c.bf16 %v369_v26, %v366_v20  ;;  %v1089_v29 = vpop.f32.mrb[2].mxu1 }
 0x108   :  { %2956 = vst [vmem:[%s4494_s11 + $0x48] sm:$0xff] %v2776_v27   ;;  %v1090_v30 = vadd.f32 %v4309_v24, %v1089_v29  ;;  %v1091_v14 = vpop.f32.mrb[3].mxu1 }
 0x109   :  { %2955 = vst [vmem:[%s4494_s11 + $0x40] sm:$0xff] %v2771_v58   ;;  %v3219_v31 = vpop.f32.mrb[20].mxu0 }
 0x10a   :  { %v2891_v16 = vpack.c.bf16 %v1090_v30, %v1087_v62  ;;  %v390_v32 = vadd.f32 %v3219_v31, %v4261_v36  ;;  %v381_v33 = vpop.f32.mrb[21].mxu0 }
 0x10b   :  { %v382_v34 = vadd.f32 %v4261_v36, %v381_v33  ;;  %v3220_v35 = vpop.f32.mrb[22].mxu0 }
 0x10c   :  { %2892 = vst [vmem:[%s4496_s12] sm:$0xff] %v2891_v16   ;;  %v393_v37 = vadd.f32 %v3220_v35, %v4261_v36  ;;  %v384_v38 = vpop.f32.mrb[23].mxu0 }
 0x10d   :  { %v1094_v39 = vpop.f32.mrb[4].mxu1  ;;  %v385_v40 = vadd.f32 %v4261_v36, %v384_v38 }
 0x10e   :  { %v2786_v41 = vpack.c.bf16 %v393_v37, %v390_v32  ;;  %v1096_v42 = vpop.f32.mrb[5].mxu1  ;;  %v1095_v45 = vadd.f32 %v4309_v24, %v1094_v39 }
 0x10f   :  { %v2781_v43 = vpack.c.bf16 %v385_v40, %v382_v34  ;;  %v1097_v44 = vpop.f32.mrb[6].mxu1 }
 0x110   :  { %2958 = vst [vmem:[%s4494_s11 + $0x58] sm:$0xff] %v2786_v41   ;;  %v1098_v46 = vadd.f32 %v4309_v24, %v1097_v44  ;;  %v1099_v47 = vpop.f32.mrb[7].mxu1 }
 0x111   :  { %2957 = vst [vmem:[%s4494_s11 + $0x50] sm:$0xff] %v2781_v43   ;;  %v3223_v48 = vpop.f32.mrb[24].mxu0 }
 0x112   :  { %v2896_v50 = vpack.c.bf16 %v1098_v46, %v1095_v45  ;;  %v406_v51 = vadd.f32 %v3223_v48, %v4261_v36  ;;  %v397_v52 = vpop.f32.mrb[25].mxu0 }
 0x113   :  { %v398_v53 = vadd.f32 %v4261_v36, %v397_v52  ;;  %v3224_v54 = vpop.f32.mrb[26].mxu0 }
 0x114   :  { %2979 = vst [vmem:[%s4496_s12 + $0x8] sm:$0xff] %v2896_v50   ;;  %v409_v55 = vadd.f32 %v3224_v54, %v4261_v36  ;;  %v400_v56 = vpop.f32.mrb[27].mxu0 }
 0x115   :  { %v1102_v57 = vpop.f32.mrb[8].mxu1  ;;  %v401_v59 = vadd.f32 %v4261_v36, %v400_v56 }
 0x116   :  { %v2796_v60 = vpack.c.bf16 %v409_v55, %v406_v51  ;;  %v1104_v61 = vpop.f32.mrb[9].mxu1  ;;  %v1103_v2 = vadd.f32 %v4309_v24, %v1102_v57 }
 0x117   :  { %v2791_v63 = vpack.c.bf16 %v401_v59, %v398_v53  ;;  %v1105_v1 = vpop.f32.mrb[10].mxu1 }
 0x118   :  { %2960 = vst [vmem:[%s4494_s11 + $0x68] sm:$0xff] %v2796_v60   ;;  %v1106_v0 = vadd.f32 %v4309_v24, %v1105_v1  ;;  %v1107_v3 = vpop.f32.mrb[11].mxu1 }
 0x119   :  { %2959 = vst [vmem:[%s4494_s11 + $0x60] sm:$0xff] %v2791_v63   ;;  %v3227_v4 = vpop.f32.mrb[28].mxu0 }
 0x11a   :  { %v2901_v5 = vpack.c.bf16 %v1106_v0, %v1103_v2  ;;  %v422_v6 = vadd.f32 %v3227_v4, %v4261_v36  ;;  %v413_v7 = vpop.f32.mrb[29].mxu0 }
 0x11b   :  { %v414_v8 = vadd.f32 %v4261_v36, %v413_v7  ;;  %v3228_v9 = vpop.f32.mrb[30].mxu0 }
 0x11c   :  { %2980 = vst [vmem:[%s4496_s12 + $0x10] sm:$0xff] %v2901_v5   ;;  %v425_v49 = vadd.f32 %v3228_v9, %v4261_v36  ;;  %v416_v10 = vpop.f32.mrb[31].mxu0 }
 0x11d   :  { %v1110_v11 = vpop.f32.mrb[12].mxu1  ;;  %v417_v12 = vadd.f32 %v4261_v36, %v416_v10 }
 0x11e   :  { %v2806_v13 = vpack.c.bf16 %v425_v49, %v422_v6  ;;  %v1112_v15 = vpop.f32.mrb[13].mxu1  ;;  %v1111_v19 = vadd.f32 %v4309_v24, %v1110_v11 }
 0x11f   :  { %v2801_v17 = vpack.c.bf16 %v417_v12, %v414_v8  ;;  %v1113_v18 = vpop.f32.mrb[14].mxu1 }
 0x120   :  { %2962 = vst [vmem:[%s4494_s11 + $0x78] sm:$0xff] %v2806_v13   ;;  %v1114_v20 = vadd.f32 %v4309_v24, %v1113_v18  ;;  %v1115_v21 = vpop.f32.mrb[15].mxu1 }
 0x121   :  { %2961 = vst [vmem:[%s4494_s11 + $0x70] sm:$0xff] %v2801_v17   ;;  %v3231_v22 = vpop.f32.mrb[32].mxu0 }
 0x122   :  { %v2906_v23 = vpack.c.bf16 %v1114_v20, %v1111_v19  ;;  %v438_v25 = vadd.f32 %v3231_v22, %v4261_v36  ;;  %v429_v26 = vpop.f32.mrb[33].mxu0 }
 0x123   :  { %v430_v27 = vadd.f32 %v4261_v36, %v429_v26  ;;  %v3232_v28 = vpop.f32.mrb[34].mxu0 }
 0x124   :  { %2981 = vst [vmem:[%s4496_s12 + $0x18] sm:$0xff] %v2906_v23   ;;  %v441_v58 = vadd.f32 %v3232_v28, %v4261_v36  ;;  %v432_v29 = vpop.f32.mrb[35].mxu0 }
 0x125   :  { %v1118_v62 = vpop.f32.mrb[16].mxu1  ;;  %v433_v30 = vadd.f32 %v4261_v36, %v432_v29 }
 0x126   :  { %v2816_v14 = vpack.c.bf16 %v441_v58, %v438_v25  ;;  %v1120_v31 = vpop.f32.mrb[17].mxu1  ;;  %v1119_v33 = vadd.f32 %v4309_v24, %v1118_v62 }
 0x127   :  { %v2811_v16 = vpack.c.bf16 %v433_v30, %v430_v27  ;;  %v1121_v32 = vpop.f32.mrb[18].mxu1 }
 0x128   :  { %2964 = vst [vmem:[%s4494_s11 + $0x88] sm:$0xff] %v2816_v14   ;;  %v1122_v34 = vadd.f32 %v4309_v24, %v1121_v32  ;;  %v1123_v35 = vpop.f32.mrb[19].mxu1 }
 0x129   :  { %2963 = vst [vmem:[%s4494_s11 + $0x80] sm:$0xff] %v2811_v16   ;;  %v3235_v37 = vpop.f32.mrb[36].mxu0 }
 0x12a   :  { %v2911_v38 = vpack.c.bf16 %v1122_v34, %v1119_v33  ;;  %v454_v39 = vadd.f32 %v3235_v37, %v4261_v36  ;;  %v445_v40 = vpop.f32.mrb[37].mxu0 }
 0x12b   :  { %v446_v41 = vadd.f32 %v4261_v36, %v445_v40  ;;  %v3236_v42 = vpop.f32.mrb[38].mxu0 }
 0x12c   :  { %2982 = vst [vmem:[%s4496_s12 + $0x20] sm:$0xff] %v2911_v38   ;;  %v457_v43 = vadd.f32 %v3236_v42, %v4261_v36  ;;  %v448_v44 = vpop.f32.mrb[39].mxu0 }
 0x12d   :  { %v1126_v45 = vpop.f32.mrb[20].mxu1  ;;  %v449_v46 = vadd.f32 %v4261_v36, %v448_v44 }
 0x12e   :  { %v2826_v47 = vpack.c.bf16 %v457_v43, %v454_v39  ;;  %v1128_v48 = vpop.f32.mrb[21].mxu1  ;;  %v1127_v52 = vadd.f32 %v4309_v24, %v1126_v45 }
 0x12f   :  { %v2821_v50 = vpack.c.bf16 %v449_v46, %v446_v41  ;;  %v1129_v51 = vpop.f32.mrb[22].mxu1 }
 0x130   :  { %2966 = vst [vmem:[%s4494_s11 + $0x98] sm:$0xff] %v2826_v47   ;;  %v1130_v53 = vadd.f32 %v4309_v24, %v1129_v51  ;;  %v1131_v54 = vpop.f32.mrb[23].mxu1 }
 0x131   :  { %2965 = vst [vmem:[%s4494_s11 + $0x90] sm:$0xff] %v2821_v50   ;;  %v3239_v55 = vpop.f32.mrb[40].mxu0 }
 0x132   :  { %v2916_v56 = vpack.c.bf16 %v1130_v53, %v1127_v52  ;;  %v470_v57 = vadd.f32 %v3239_v55, %v4261_v36  ;;  %v461_v59 = vpop.f32.mrb[41].mxu0 }
 0x133   :  { %v462_v60 = vadd.f32 %v4261_v36, %v461_v59  ;;  %v3240_v61 = vpop.f32.mrb[42].mxu0 }
 0x134   :  { %2983 = vst [vmem:[%s4496_s12 + $0x28] sm:$0xff] %v2916_v56   ;;  %v473_v63 = vadd.f32 %v3240_v61, %v4261_v36  ;;  %v464_v1 = vpop.f32.mrb[43].mxu0 }
 0x135   :  { %v1134_v2 = vpop.f32.mrb[24].mxu1  ;;  %v465_v0 = vadd.f32 %v4261_v36, %v464_v1 }
 0x136   :  { %v2836_v3 = vpack.c.bf16 %v473_v63, %v470_v57  ;;  %v1136_v4 = vpop.f32.mrb[25].mxu1  ;;  %v1135_v7 = vadd.f32 %v4309_v24, %v1134_v2 }
 0x137   :  { %v2831_v5 = vpack.c.bf16 %v465_v0, %v462_v60  ;;  %v1137_v6 = vpop.f32.mrb[26].mxu1 }
 0x138   :  { %2968 = vst [vmem:[%s4494_s11 + $0xa8] sm:$0xff] %v2836_v3   ;;  %v1138_v8 = vadd.f32 %v4309_v24, %v1137_v6  ;;  %v1139_v9 = vpop.f32.mrb[27].mxu1 }
 0x139   :  { %2967 = vst [vmem:[%s4494_s11 + $0xa0] sm:$0xff] %v2831_v5   ;;  %v3243_v49 = vpop.f32.mrb[44].mxu0 }
 0x13a   :  { %v2921_v10 = vpack.c.bf16 %v1138_v8, %v1135_v7  ;;  %v486_v11 = vadd.f32 %v3243_v49, %v4261_v36  ;;  %v477_v12 = vpop.f32.mrb[45].mxu0 }
 0x13b   :  { %v478_v13 = vadd.f32 %v4261_v36, %v477_v12  ;;  %v3244_v15 = vpop.f32.mrb[46].mxu0 }
 0x13c   :  { %2984 = vst [vmem:[%s4496_s12 + $0x30] sm:$0xff] %v2921_v10   ;;  %v489_v17 = vadd.f32 %v3244_v15, %v4261_v36  ;;  %v480_v18 = vpop.f32.mrb[47].mxu0 }
 0x13d   :  { %v1142_v19 = vpop.f32.mrb[28].mxu1  ;;  %v481_v20 = vadd.f32 %v4261_v36, %v480_v18  ;;  %v2534_v18 = vld [vmem:[%s4497_s8] ss:$0 sm:$0xff] }
 0x13e   :  { %v2846_v21 = vpack.c.bf16 %v489_v17, %v486_v11  ;;  %v1144_v22 = vpop.f32.mrb[29].mxu1  ;;  %v1143_v26 = vadd.f32 %v4309_v24, %v1142_v19 }
 0x13f   :  { %v2841_v23 = vpack.c.bf16 %v481_v20, %v478_v13  ;;  %v1145_v25 = vpop.f32.mrb[30].mxu1 }
 0x140   :  { %2970 = vst [vmem:[%s4494_s11 + $0xb8] sm:$0xff] %v2846_v21   ;;  %v1146_v27 = vadd.f32 %v4309_v24, %v1145_v25  ;;  %v1147_v28 = vpop.f32.mrb[31].mxu1 }
 0x141   :  { %2969 = vst [vmem:[%s4494_s11 + $0xb0] sm:$0xff] %v2841_v23   ;;  %v3247_v58 = vpop.f32.mrb[48].mxu0 }
 0x142   :  { %v2926_v29 = vpack.c.bf16 %v1146_v27, %v1143_v26  ;;  %v502_v62 = vadd.f32 %v3247_v58, %v4261_v36  ;;  %v493_v30 = vpop.f32.mrb[49].mxu0 }
 0x143   :  { %v494_v14 = vadd.f32 %v4261_v36, %v493_v30  ;;  %v3248_v31 = vpop.f32.mrb[50].mxu0 }
 0x144   :  { %2985 = vst [vmem:[%s4496_s12 + $0x38] sm:$0xff] %v2926_v29   ;;  %v505_v16 = vadd.f32 %v3248_v31, %v4261_v36  ;;  %v496_v24 = vpop.f32.mrb[51].mxu0 }
 0x145   :  { %v3039_v32 = vpop.f32.mrb[32].mxu1  ;;  %v497_v33 = vadd.f32 %v4261_v36, %v496_v24 }
 0x146   :  { %v2856_v34 = vpack.c.bf16 %v505_v16, %v502_v62  ;;  %v3040_v35 = vpop.f32.mrb[33].mxu1 }
 0x147   :  { %v2851_v37 = vpack.c.bf16 %v497_v33, %v494_v14  ;;  %v3041_v38 = vadd.f32 %v3040_v35, %v3039_v32  ;;  %v3042_v39 = vpop.f32.mrb[34].mxu1 }
 0x148   :  { %2972 = vst [vmem:[%s4494_s11 + $0xc8] sm:$0xff] %v2856_v34   ;;  %v3043_v40 = vpop.f32.mrb[35].mxu1 }
 0x149   :  { %2971 = vst [vmem:[%s4494_s11 + $0xc0] sm:$0xff] %v2851_v37   ;;  %v3044_v41 = vadd.f32 %v3043_v40, %v3042_v39  ;;  %v3251_v42 = vpop.f32.mrb[52].mxu0  ;;  %v1691_v21 = vadd.f32 %v3041_v38, %v2534_v18 }
 0x14a   :  { %v518_v43 = vadd.f32 %v3251_v42, %v4261_v36  ;;  %v509_v44 = vpop.f32.mrb[53].mxu0 }
 0x14b   :  { %v510_v45 = vadd.f32 %v4261_v36, %v509_v44  ;;  %v3252_v46 = vpop.f32.mrb[54].mxu0  ;;  %v1694_v25 = vadd.f32 %v3044_v41, %v2534_v18 }
 0x14c   :  { %v521_v47 = vadd.f32 %v3252_v46, %v4261_v36  ;;  %v512_v48 = vpop.f32.mrb[55].mxu0 }
 0x14d   :  { %v513_v50 = vadd.f32 %v4261_v36, %v512_v48  ;;  %v3045_v51 = vpop.f32.mrb[36].mxu1 }
 0x14e   :  { %v2866_v52 = vpack.c.bf16 %v521_v47, %v518_v43  ;;  %v3046_v53 = vpop.f32.mrb[37].mxu1 }
 0x14f   :  { %v2861_v54 = vpack.c.bf16 %v513_v50, %v510_v45  ;;  %v3047_v55 = vadd.f32 %v3046_v53, %v3045_v51  ;;  %v3048_v56 = vpop.f32.mrb[38].mxu1 }
 0x150   :  { %2974 = vst [vmem:[%s4494_s11 + $0xd8] sm:$0xff] %v2866_v52   ;;  %v3049_v57 = vpop.f32.mrb[39].mxu1 }
 0x151   :  { %2973 = vst [vmem:[%s4494_s11 + $0xd0] sm:$0xff] %v2861_v54   ;;  %v3255_v59 = vpop.f32.mrb[56].mxu0  ;;  %v3050_v60 = vadd.f32 %v3049_v57, %v3048_v56  ;;  %v1699_v33 = vadd.f32 %v3047_v55, %v2534_v18  ;;  %v2587_v55 = vld [vmem:[%s4499_s10] ss:$0 sm:$0xff] }
 0x152   :  { %v534_v61 = vadd.f32 %v3255_v59, %v4261_v36  ;;  %v525_v63 = vpop.f32.mrb[57].mxu0 }
 0x153   :  { %v526_v1 = vadd.f32 %v4261_v36, %v525_v63  ;;  %v3256_v2 = vpop.f32.mrb[58].mxu0  ;;  %v1702_v39 = vadd.f32 %v3050_v60, %v2534_v18 }
 0x154   :  { %v537_v0 = vadd.f32 %v3256_v2, %v4261_v36  ;;  %v528_v3 = vpop.f32.mrb[59].mxu0 }
 0x155   :  { %v529_v4 = vadd.f32 %v4261_v36, %v528_v3 }
 0x156   :  { %v2876_v5 = vpack.c.bf16 %v537_v0, %v534_v61 }
 0x157   :  { %v2871_v6 = vpack.c.bf16 %v529_v4, %v526_v1 }
 0x158   :  { %2976 = vst [vmem:[%s4494_s11 + $0xe8] sm:$0xff] %v2876_v5  }
 0x159   :  { %2975 = vst [vmem:[%s4494_s11 + $0xe0] sm:$0xff] %v2871_v6   ;;  %v3259_v7 = vpop.f32.mrb[60].mxu0 }
 0x15a   :  { %v550_v8 = vadd.f32 %v3259_v7, %v4261_v36  ;;  %v541_v9 = vpop.f32.mrb[61].mxu0 }
 0x15b   :  { %v542_v49 = vadd.f32 %v4261_v36, %v541_v9  ;;  %v3260_v10 = vpop.f32.mrb[62].mxu0 }
 0x15c   :  { %v553_v11 = vadd.f32 %v3260_v10, %v4261_v36  ;;  %v544_v12 = vpop.f32.mrb[63].mxu0 }
 0x15d   :  { %v545_v13 = vadd.f32 %v4261_v36, %v544_v12 }
 0x15e   :  { %v2886_v15 = vpack.c.bf16 %v553_v11, %v550_v8 }
 0x15f   :  { %v2881_v17 = vpack.c.bf16 %v545_v13, %v542_v49 }
 0x160   :  { %2978 = vst [vmem:[%s4494_s11 + $0xf8] sm:$0xff] %v2886_v15  }
 0x161   :  { %2977 = vst [vmem:[%s4494_s11 + $0xf0] sm:$0xff] %v2881_v17   ;;  %v3067_v19 = vpop.f32.mrb[64].mxu0 }
 0x162   :  { %v3068_v20 = vpop.f32.mrb[65].mxu0 }
 0x163   :  { %v3069_v22 = vadd.f32 %v3068_v20, %v3067_v19  ;;  %v3070_v23 = vpop.f32.mrb[66].mxu0 }
 0x164   :  { %v3071_v36 = vpop.f32.mrb[67].mxu0 }
 0x165   :  { %v1740_v26 = vadd.f32 %v3069_v22, %v1691_v21  ;;  %v3095_v27 = vpop.f32.mrb[40].mxu1  ;;  %v3072_v28 = vadd.f32 %v3071_v36, %v3070_v23 }
 0x166   :  { %v3096_v58 = vpop.f32.mrb[41].mxu1 }
 0x167   :  { %v1743_v29 = vadd.f32 %v3072_v28, %v1694_v25  ;;  %v3097_v62 = vadd.f32 %v3096_v58, %v3095_v27  ;;  %v3098_v30 = vpop.f32.mrb[42].mxu1 }
 0x168   :  { %v3099_v14 = vpop.f32.mrb[43].mxu1 }
 0x169   :  { %v1789_v31 = vadd.f32 %v3097_v62, %v1740_v26  ;;  %v3100_v16 = vadd.f32 %v3099_v14, %v3098_v30  ;;  %v3073_v24 = vpop.f32.mrb[68].mxu0 }
 0x16a   :  { %v3074_v32 = vpop.f32.mrb[69].mxu0 }
 0x16b   :  { %v1792_v34 = vadd.f32 %v3100_v16, %v1743_v29  ;;  %v3075_v35 = vadd.f32 %v3074_v32, %v3073_v24  ;;  %v3076_v37 = vpop.f32.mrb[70].mxu0 }
 0x16c   :  { %v3077_v38 = vpop.f32.mrb[71].mxu0 }
 0x16d   :  { %v2931_v40 = vpack.c.bf16 %v1792_v34, %v1789_v31  ;;  %v1748_v41 = vadd.f32 %v3075_v35, %v1699_v33  ;;  %v3101_v42 = vpop.f32.mrb[44].mxu1  ;;  %v3078_v43 = vadd.f32 %v3077_v38, %v3076_v37 }
 0x16e   :  { %v3102_v44 = vpop.f32.mrb[45].mxu1 }
 0x16f   :  { %2932 = vst [vmem:[%s4498_s13] sm:$0xff] %v2931_v40   ;;  %v1751_v45 = vadd.f32 %v3078_v43, %v1702_v39  ;;  %v3103_v46 = vadd.f32 %v3102_v44, %v3101_v42  ;;  %v3104_v47 = vpop.f32.mrb[46].mxu1 }
 0x170   :  { %v3105_v48 = vpop.f32.mrb[47].mxu1 }
 0x171   :  { %v1797_v50 = vadd.f32 %v3103_v46, %v1748_v41  ;;  %v3106_v51 = vadd.f32 %v3105_v48, %v3104_v47 }
 0x173   :  { %v1800_v52 = vadd.f32 %v3106_v51, %v1751_v45 }
 0x175   :  { %v2936_v53 = vpack.c.bf16 %v1800_v52, %v1797_v50 }
 0x177   :  { %2986 = vst [vmem:[%s4498_s13 + $0x8] sm:$0xff] %v2936_v53  }
 0x181   :  { %v3123_v54 = vpop.f32.mrb[72].mxu0 }
 0x182   :  { %v3124_v56 = vpop.f32.mrb[73].mxu0 }
 0x183   :  { %v3125_v57 = vadd.f32 %v3124_v56, %v3123_v54  ;;  %v3126_v59 = vpop.f32.mrb[74].mxu0 }
 0x184   :  { %v3127_v60 = vpop.f32.mrb[75].mxu0 }
 0x185   :  { %v2249_v61 = vadd.f32 %v3125_v57, %v2587_v55  ;;  %v3151_v63 = vpop.f32.mrb[48].mxu1  ;;  %v3128_v1 = vadd.f32 %v3127_v60, %v3126_v59 }
 0x186   :  { %v3152_v2 = vpop.f32.mrb[49].mxu1 }
 0x187   :  { %v2252_v0 = vadd.f32 %v3128_v1, %v2587_v55  ;;  %v3153_v3 = vadd.f32 %v3152_v2, %v3151_v63  ;;  %v3154_v4 = vpop.f32.mrb[50].mxu1 }
 0x188   :  { %v3155_v5 = vpop.f32.mrb[51].mxu1 }
 0x189   :  { %v2298_v6 = vadd.f32 %v3153_v3, %v2249_v61  ;;  %v3156_v7 = vadd.f32 %v3155_v5, %v3154_v4  ;;  %v3129_v8 = vpop.f32.mrb[76].mxu0 }
 0x18a   :  { %v3130_v9 = vpop.f32.mrb[77].mxu0 }
 0x18b   :  { %v2301_v49 = vadd.f32 %v3156_v7, %v2252_v0  ;;  %v3131_v10 = vadd.f32 %v3130_v9, %v3129_v8  ;;  %v3132_v11 = vpop.f32.mrb[78].mxu0 }
 0x18c   :  { %v3133_v12 = vpop.f32.mrb[79].mxu0 }
 0x18d   :  { %v2257_v13 = vadd.f32 %v3131_v10, %v2587_v55  ;;  %v3157_v15 = vpop.f32.mrb[52].mxu1  ;;  %v3134_v17 = vadd.f32 %v3133_v12, %v3132_v11 }
 0x18e   :  { %v3158_v18 = vpop.f32.mrb[53].mxu1 }
 0x18f   :  { %v2260_v19 = vadd.f32 %v3134_v17, %v2587_v55  ;;  %v3159_v20 = vadd.f32 %v3158_v18, %v3157_v15  ;;  %v3160_v21 = vpop.f32.mrb[54].mxu1 }
 0x190   :  { %v3161_v22 = vpop.f32.mrb[55].mxu1 }
 0x191   :  { %v2306_v23 = vadd.f32 %v3159_v20, %v2257_v13  ;;  %v3162_v36 = vadd.f32 %v3161_v22, %v3160_v21 }
 0x193   :  { %v2309_v25 = vadd.f32 %v3162_v36, %v2260_v19 }
 0x1a1   :  { %v3179_v26 = vpop.f32.mrb[80].mxu0 }
 0x1a2   :  { %v3180_v27 = vpop.f32.mrb[81].mxu0 }
 0x1a3   :  { %v3181_v28 = vadd.f32 %v3180_v27, %v3179_v26  ;;  %v3182_v58 = vpop.f32.mrb[82].mxu0 }
 0x1a4   :  { %v3183_v29 = vpop.f32.mrb[83].mxu0 }
 0x1a5   :  { %v2347_v62 = vadd.f32 %v3181_v28, %v2298_v6  ;;  %v3184_v30 = vadd.f32 %v3183_v29, %v3182_v58  ;;  %v3185_v14 = vpop.f32.mrb[56].mxu1 }
 0x1a6   :  { %v3186_v31 = vpop.f32.mrb[57].mxu1 }
 0x1a7   :  { %v2350_v16 = vadd.f32 %v3184_v30, %v2301_v49  ;;  %v3187_v24 = vadd.f32 %v3186_v31, %v3185_v14  ;;  %v3188_v32 = vpop.f32.mrb[58].mxu1 }
 0x1a8   :  { %v3189_v33 = vpop.f32.mrb[59].mxu1 }
 0x1a9   :  { %v2941_v34 = vpack.c.bf16 %v2350_v16, %v2347_v62  ;;  %v2355_v35 = vadd.f32 %v3187_v24, %v2306_v23  ;;  %v3190_v37 = vadd.f32 %v3189_v33, %v3188_v32 }
 0x1ab   :  { %2942 = vst [vmem:[%s4500_s14] sm:$0xff] %v2941_v34   ;;  %v2358_v38 = vadd.f32 %v3190_v37, %v2309_v25 }
 0x1ad   :  { %v2946_v39 = vpack.c.bf16 %v2358_v38, %v2355_v35 }
 0x1af   :  { %2987 = vst [vmem:[%s4500_s14 + $0x8] sm:$0xff] %v2946_v39  }

// kernel: forward.4
= control target key start
LH: loop header
LB: loop body
LE: loop exit
PB: predicated region body
PF: predicated region fallthrough
CT: control target
= control target key end

     0   :  { %v8273_v29 = vmov 0   ;;  %vm759_vm0 = vcmask 261120   ;;  %vm8275_vm1 = vmmov 0   ;;  %vm5680_vm2 = vcmask 1040384   ;;  %s10510_s4 = inlined_call_operand.vmem [shape: bf16[4,128,128], index: 4, kind: input, shape index: {}]   ;;  %s10511_s3 = inlined_call_operand.vmem [shape: bf16[32,128], index: 3, kind: input, shape index: {}]   ;;  %s10512_s2 = inlined_call_operand.vmem [shape: bf16[32,128], index: 2, kind: input, shape index: {}]   ;;  %s10513_s6 = inlined_call_operand.vmem [shape: bf16[4,128,128], index: 6, kind: input, shape index: {}]   ;;  %s10514_s9 = inlined_call_operand.vmem [shape: f32[128,1], index: 9, kind: input, shape index: {}]   ;;  %s10515_s11 = inlined_call_operand.vmem [shape: f32[512,1], index: 11, kind: input, shape index: {}]   ;;  %s10516_s1 = inlined_call_operand.vmem [shape: bf16[128,128], index: 1, kind: input, shape index: {}]   ;;  %s10517_s5 = inlined_call_operand.vmem [shape: f32[4,1,128], index: 5, kind: input, shape index: {}]   ;;  %s10518_s8 = inlined_call_operand.vmem [shape: bf16[128,32], index: 8, kind: input, shape index: {}]   ;;  %s10519_s7 = inlined_call_operand.vmem [shape: f32[4,1,128], index: 7, kind: input, shape index: {}]   ;;  %s10520_s20 = inlined_call_operand.vmem [shape: bf16[704,128], index: 20, kind: output, shape index: {0}]   ;;  %s10521_s0 = inlined_call_operand.vmem [shape: bf16[512,128], index: 0, kind: input, shape index: {}]   ;;  %s10522_s10 = inlined_call_operand.vmem [shape: bf16[512,128], index: 10, kind: input, shape index: {}]   ;;  %s10523_s12 = inlined_call_operand.vmem [shape: bf16[4,128,128], index: 12, kind: input, shape index: {}]   ;;  %s10524_s14 = inlined_call_operand.vmem [shape: bf16[4,128,128], index: 14, kind: input, shape index: {}]   ;;  %s10525_s13 = inlined_call_operand.vmem [shape: f32[4,1,128], index: 13, kind: input, shape index: {}]   ;;  %s10526_s18 = inlined_call_operand.vmem [shape: bf16[128,128], index: 18, kind: input, shape index: {}]   ;;  %s10527_s16 = inlined_call_operand.vmem [shape: f32[1,128], index: 16, kind: input, shape index: {}]   ;;  %s10528_s17 = inlined_call_operand.vmem [shape: f32[1,128], index: 17, kind: input, shape index: {}]   ;;  %s10529_s15 = inlined_call_operand.vmem [shape: f32[4,1,128], index: 15, kind: input, shape index: {}]   ;;  %s10530_s21 = inlined_call_operand.vmem [shape: f32[704,128], index: 21, kind: output, shape index: {1}]   ;;  %s10531_s19 = inlined_call_operand.vmem [shape: f32[1,128], index: 19, kind: input, shape index: {}]   ;;  %s10532_s22 = inlined_call_operand.vmem [shape: f32[2,128], index: 22, kind: output, shape index: {2}]  }
   0x1   :  { %10544 = sst [smem:[#allocation53_spill]] %s10510_s4  ;;  %8032 = vset.pattern.permute.xlu1 %v8273_v29  ;;  %8031 = vset.pattern.permute.xlu0 %v8273_v29 }
   0x2   :  { %10545 = sst [smem:[#allocation54_spill]] %s10511_s3  ;;  %s10551_s29 = sld [smem:[#allocation53_spill]] }
   0x3   :  { %10546 = sst [smem:[#allocation55_spill]] %s10512_s2  ;;  %s10552_s25 = sld [smem:[#allocation54_spill]] }
   0x4   :  { %10547 = sst [smem:[#allocation56_spill]] %s10513_s6  ;;  %s10554_s24 = sld [smem:[#allocation55_spill]] }
   0x5   :  { %10548 = sst [smem:[#allocation57_spill]] %s10514_s9  ;;  %s10553_s23 = sld [smem:[#allocation56_spill]] }
   0x6   :  { %10549 = sst [smem:[#allocation58_spill]] %s10515_s11  ;;  %s10555_s27 = sld [smem:[#allocation57_spill]] }
   0x7   :  { %10550 = sst [smem:[#allocation59_spill]] %s10516_s1  ;;  %s10556_s1 = sld [smem:[#allocation58_spill]] }
   0x8   :  { %v8033_v0 = vld [vmem:[%s10551_s29 + $0xc0] sm:$0xff]   ;;  %v8034_v1 = vld [vmem:[%s10551_s29 + $0xc8] sm:$0xff]   ;;  %v8035_v2 = vld [vmem:[%s10551_s29 + $0xd0] sm:$0xff]   ;;  %s10557_s2 = sld [smem:[#allocation59_spill]] }
   0x9   :  { %7060 = vmatprep.subr.bf16.mxu0 %v8033_v0  ;;  %v8036_v3 = vld [vmem:[%s10551_s29 + $0xd8] sm:$0xff]   ;;  %v8041_v4 = vld [vmem:[%s10552_s25] sm:$0xff]   ;;  %v8038_v6 = vld [vmem:[%s10551_s29 + $0xe8] sm:$0xff]  }
   0xa   :  { %7061 = vmatpush3.bf16.msra.mxu0 %v8033_v0  ;;  %7076 = vmatprep.mubr.bf16.mxu0 %v8041_v4  ;;  %v8037_v5 = vld [vmem:[%s10551_s29 + $0xe0] sm:$0xff]   ;;  %v8039_v7 = vld [vmem:[%s10551_s29 + $0xf0] sm:$0xff]   ;;  %v8040_v10 = vld [vmem:[%s10551_s29 + $0xf8] sm:$0xff]  }
   0xb   :  { %7062 = vmatprep.subr.bf16.mxu0 %v8034_v1  ;;  %v8053_v8 = vld [vmem:[%s10553_s23 + $0xc0] sm:$0xff]   ;;  %v8054_v9 = vld [vmem:[%s10553_s23 + $0xc8] sm:$0xff]   ;;  %v8055_v11 = vld [vmem:[%s10553_s23 + $0xd0] sm:$0xff]  }
   0xc   :  { %7080 = vmatprep.subr.bf16.mxu1 %v8053_v8  ;;  %v8043_v12 = vld [vmem:[%s10551_s29 + $0x80] sm:$0xff]   ;;  %v8056_v13 = vld [vmem:[%s10553_s23 + $0xd8] sm:$0xff]   ;;  %v8042_v14 = vld [vmem:[%s10552_s25 + $0x8] sm:$0xff]  }
   0xd   :  { %7081 = vmatpush3.bf16.msra.mxu1 %v8053_v8  ;;  %v8051_v15 = vld [vmem:[%s10554_s24] sm:$0xff]   ;;  %v8044_v16 = vld [vmem:[%s10551_s29 + $0x88] sm:$0xff]   ;;  %v8045_v18 = vld [vmem:[%s10551_s29 + $0x90] sm:$0xff]  }
   0xe   :  { %7063 = vmatpush3.bf16.msra.mxu0 %v8034_v1  ;;  %7082 = vmatprep.subr.bf16.mxu1 %v8054_v9  ;;  %v8057_v17 = vld [vmem:[%s10553_s23 + $0xe0] sm:$0xff]   ;;  %v8058_v19 = vld [vmem:[%s10553_s23 + $0xe8] sm:$0xff]   ;;  %v8046_v20 = vld [vmem:[%s10551_s29 + $0x98] sm:$0xff]  }
   0xf   :  { %7064 = vmatprep.subr.bf16.mxu0 %v8035_v2  ;;  %v8047_v21 = vld [vmem:[%s10551_s29 + $0xa0] sm:$0xff]   ;;  %v8048_v22 = vld [vmem:[%s10551_s29 + $0xa8] sm:$0xff]   ;;  %v8049_v23 = vld [vmem:[%s10551_s29 + $0xb0] sm:$0xff]  }
  0x10   :  { %v8050_v24 = vld [vmem:[%s10551_s29 + $0xb8] sm:$0xff]   ;;  %v8052_v25 = vld [vmem:[%s10554_s24 + $0x8] sm:$0xff]   ;;  %v8059_v26 = vld [vmem:[%s10553_s23 + $0xf0] sm:$0xff]  }
  0x11   :  { %7083 = vmatpush3.bf16.msra.mxu1 %v8054_v9  ;;  %v8060_v27 = vld [vmem:[%s10553_s23 + $0xf8] sm:$0xff]   ;;  %v8478_v28 = vld [vmem:[%s10553_s23 + $0x80] sm:$0xff]   ;;  %v625_v30 = vld [vmem:[%s10555_s27 + $0x10] sm:$0xff] }
  0x12   :  { %7065 = vmatpush3.bf16.msra.mxu0 %v8035_v2  ;;  %7084 = vmatprep.subr.bf16.mxu1 %v8055_v11  ;;  %v623_v31 = vld [vmem:[%s10555_s27] sm:$0xff]  ;;  %v626_v32 = vld [vmem:[%s10555_s27 + $0x18] sm:$0xff]  ;;  %v624_v33 = vld [vmem:[%s10555_s27 + $0x8] sm:$0xff] }
  0x13   :  { %7066 = vmatprep.subr.bf16.mxu0 %v8036_v3  ;;  %651 = vperm.xlu1 %8032, %v625_v30   ;;  %v628_v34 = vld [vmem:[%s10555_s27 + $0x28] sm:$0xff]  ;;  %v627_v35 = vld [vmem:[%s10555_s27 + $0x20] sm:$0xff]  ;;  %v630_v36 = vld [vmem:[%s10555_s27 + $0x38] sm:$0xff] }
  0x14   :  { %641 = vperm.xlu0 %8031, %v623_v31   ;;  %v629_v37 = vld [vmem:[%s10555_s27 + $0x30] sm:$0xff]  ;;  %v632_v38 = vld [vmem:[%s10555_s27 + $0x48] sm:$0xff]  ;;  %v631_v39 = vld [vmem:[%s10555_s27 + $0x40] sm:$0xff] }
  0x15   :  { %7085 = vmatpush3.bf16.msra.mxu1 %v8055_v11  ;;  %v634_v40 = vld [vmem:[%s10555_s27 + $0x58] sm:$0xff]  ;;  %v633_v41 = vld [vmem:[%s10555_s27 + $0x50] sm:$0xff]  ;;  %v636_v42 = vld [vmem:[%s10555_s27 + $0x68] sm:$0xff] }
  0x16   :  { %7067 = vmatpush3.bf16.msra.mxu0 %v8036_v3  ;;  %7086 = vmatprep.subr.bf16.mxu1 %v8056_v13  ;;  %v635_v43 = vld [vmem:[%s10555_s27 + $0x60] sm:$0xff]  ;;  %v638_v44 = vld [vmem:[%s10555_s27 + $0x78] sm:$0xff]  ;;  %v637_v45 = vld [vmem:[%s10555_s27 + $0x70] sm:$0xff] }
  0x17   :  { %7068 = vmatprep.subr.bf16.mxu0 %v8037_v5  ;;  %656 = vperm.xlu1 %8032, %v626_v32   ;;  %v1398_v46 = vld [vmem:[%s10556_s1 + $0x8] sm:$0xff]  ;;  %v1397_v47 = vld [vmem:[%s10556_s1] sm:$0xff]  ;;  %v1400_v48 = vld [vmem:[%s10556_s1 + $0x18] sm:$0xff] }
  0x18   :  { %646 = vperm.xlu0 %8031, %v624_v33   ;;  %v1399_v49 = vld [vmem:[%s10556_s1 + $0x10] sm:$0xff]  ;;  %v1402_v50 = vld [vmem:[%s10556_s1 + $0x28] sm:$0xff]  ;;  %v1401_v51 = vld [vmem:[%s10556_s1 + $0x20] sm:$0xff] }
  0x19   :  { %7087 = vmatpush3.bf16.msra.mxu1 %v8056_v13  ;;  %v1404_v52 = vld [vmem:[%s10556_s1 + $0x38] sm:$0xff]  ;;  %v1403_v53 = vld [vmem:[%s10556_s1 + $0x30] sm:$0xff]  ;;  %v1406_v54 = vld [vmem:[%s10556_s1 + $0x48] sm:$0xff] }
  0x1a   :  { %7069 = vmatpush3.bf16.msra.mxu0 %v8037_v5  ;;  %7088 = vmatprep.subr.bf16.mxu1 %v8057_v17  ;;  %v1405_v55 = vld [vmem:[%s10556_s1 + $0x40] sm:$0xff]  ;;  %v1408_v56 = vld [vmem:[%s10556_s1 + $0x58] sm:$0xff]  ;;  %v1407_v57 = vld [vmem:[%s10556_s1 + $0x50] sm:$0xff] }
  0x1b   :  { %7070 = vmatprep.subr.bf16.mxu0 %v8038_v6  ;;  %666 = vperm.xlu1 %8032, %v628_v34   ;;  %v1410_v58 = vld [vmem:[%s10556_s1 + $0x68] sm:$0xff]  ;;  %v1409_v59 = vld [vmem:[%s10556_s1 + $0x60] sm:$0xff]  ;;  %v1412_v60 = vld [vmem:[%s10556_s1 + $0x78] sm:$0xff] }
  0x1c   :  { %661 = vperm.xlu0 %8031, %v627_v35   ;;  %v1411_v61 = vld [vmem:[%s10556_s1 + $0x70] sm:$0xff]  ;;  %v1414_v62 = vld [vmem:[%s10556_s1 + $0x88] sm:$0xff]  ;;  %v1413_v63 = vld [vmem:[%s10556_s1 + $0x80] sm:$0xff] }
  0x1d   :  { %7089 = vmatpush3.bf16.msra.mxu1 %v8057_v17  ;;  %v1416_v0 = vld [vmem:[%s10556_s1 + $0x98] sm:$0xff]  ;;  %v1415_v1 = vld [vmem:[%s10556_s1 + $0x90] sm:$0xff]  ;;  %v1418_v2 = vld [vmem:[%s10556_s1 + $0xa8] sm:$0xff] }
  0x1e   :  { %7071 = vmatpush3.bf16.msra.mxu0 %v8038_v6  ;;  %7090 = vmatprep.subr.bf16.mxu1 %v8058_v19  ;;  %v1417_v3 = vld [vmem:[%s10556_s1 + $0xa0] sm:$0xff]  ;;  %v1420_v4 = vld [vmem:[%s10556_s1 + $0xb8] sm:$0xff]  ;;  %v1419_v5 = vld [vmem:[%s10556_s1 + $0xb0] sm:$0xff] }
  0x1f   :  { %7072 = vmatprep.subr.bf16.mxu0 %v8039_v7  ;;  %676 = vperm.xlu1 %8032, %v630_v36   ;;  %v1422_v6 = vld [vmem:[%s10556_s1 + $0xc8] sm:$0xff]  ;;  %v1424_v8 = vld [vmem:[%s10556_s1 + $0xd8] sm:$0xff]  ;;  %v1423_v9 = vld [vmem:[%s10556_s1 + $0xd0] sm:$0xff] }
  0x20   :  { %671 = vperm.xlu0 %8031, %v629_v37   ;;  %v1425_v11 = vld [vmem:[%s10556_s1 + $0xe0] sm:$0xff]  ;;  %v1431_v33 = vld [vmem:[%s10556_s1 + $0x110] sm:$0xff]  ;;  %v8062_v34 = vld [vmem:[%s10553_s23 + $0x88] sm:$0xff]  }
  0x21   :  { %7091 = vmatpush3.bf16.msra.mxu1 %v8058_v19  ;;  %v5824_v13 = vld [vmem:[%s10517_s5 + $0x3] ss:$0 sm:$0xff]  ;;  %v1434_v35 = vld [vmem:[%s10556_s1 + $0x128] sm:$0xff]  ;;  %v8063_v37 = vld [vmem:[%s10553_s23 + $0x90] sm:$0xff]  }
  0x22   :  { %7073 = vmatpush3.bf16.msra.mxu0 %v8039_v7  ;;  %7092 = vmatprep.subr.bf16.mxu1 %v8059_v26  ;;  %v1421_v7 = vld [vmem:[%s10556_s1 + $0xc0] sm:$0xff] }
  0x23   :  { %7074 = vmatprep.subr.bf16.mxu0 %v8040_v10  ;;  %686 = vperm.xlu1 %8032, %v632_v38   ;;  %v1433_v36 = vld [vmem:[%s10556_s1 + $0x120] sm:$0xff]  ;;  %v1436_v38 = vld [vmem:[%s10556_s1 + $0x138] sm:$0xff] }
  0x24   :  { %681 = vperm.xlu0 %8031, %v631_v39   ;;  %v8064_v39 = vld [vmem:[%s10553_s23 + $0x98] sm:$0xff]  }
  0x25   :  { %7093 = vmatpush3.bf16.msra.mxu1 %v8059_v26 }
  0x26   :  { %7075 = vmatpush3.bf16.msra.mxu0 %v8040_v10  ;;  %7094 = vmatprep.subr.bf16.mxu1 %v8060_v27  ;;  %v1426_v10 = vld [vmem:[%s10556_s1 + $0xe8] sm:$0xff] }
  0x27   :  { %7100 = vmatprep.subr.bf16.mxu0 %v8043_v12  ;;  %696 = vperm.xlu1 %8032, %v634_v40   ;;  %v1438_v40 = vld [vmem:[%s10556_s1 + $0x148] sm:$0xff] }
  0x28   :  { %691 = vperm.xlu0 %8031, %v633_v41   ;;  %v1437_v41 = vld [vmem:[%s10556_s1 + $0x140] sm:$0xff] }
  0x29   :  { %7077 = vmatmul.mubr.bf16.vlgmr.msra.gmra.mrb[0].mxu0 %v8042_v14  ;;  %7095 = vmatpush3.bf16.msra.mxu1 %v8060_v27  ;;  %v1432_v27 = vld [vmem:[%s10556_s1 + $0x118] sm:$0xff] }
  0x2a   :  { %7101 = vmatpush3.bf16.msra.mxu0 %v8043_v12  ;;  %7116 = vmatprep.mubr.bf16.mxu0 %v8051_v15  ;;  %v1428_v12 = vld [vmem:[%s10556_s1 + $0xf8] sm:$0xff]  ;;  %v1427_v15 = vld [vmem:[%s10556_s1 + $0xf0] sm:$0xff] }
  0x2b   :  { %7102 = vmatprep.subr.bf16.mxu0 %v8044_v16  ;;  %7120 = vmatprep.subr.bf16.mxu1 %v8478_v28 }
  0x2c   :  { %706 = vperm.xlu1 %8032, %v636_v42   ;;  %701 = vperm.xlu0 %8031, %v635_v43   ;;  %v8065_v42 = vld [vmem:[%s10553_s23 + $0xa0] sm:$0xff]   ;;  %v1440_v43 = vld [vmem:[%s10556_s1 + $0x158] sm:$0xff] }
  0x2e   :  { %7103 = vmatpush3.bf16.msra.mxu0 %v8044_v16 }
  0x2f   :  { %7104 = vmatprep.subr.bf16.mxu0 %v8045_v18 }
  0x30   :  { %716 = vperm.xlu1 %8032, %v638_v44   ;;  %711 = vperm.xlu0 %8031, %v637_v45   ;;  %v1439_v44 = vld [vmem:[%s10556_s1 + $0x150] sm:$0xff]  ;;  %v8066_v45 = vld [vmem:[%s10553_s23 + $0xa8] sm:$0xff]  }
  0x32   :  { %7105 = vmatpush3.bf16.msra.mxu0 %v8045_v18  ;;  %v1430_v18 = vld [vmem:[%s10556_s1 + $0x108] sm:$0xff] }
  0x33   :  { %7106 = vmatprep.subr.bf16.mxu0 %v8046_v20 }
  0x34   :  { %1468 = vperm.xlu1 %8032, %v1398_v46   ;;  %1463 = vperm.xlu0 %8031, %v1397_v47   ;;  %v1442_v46 = vld [vmem:[%s10556_s1 + $0x168] sm:$0xff]  ;;  %v1441_v47 = vld [vmem:[%s10556_s1 + $0x160] sm:$0xff] }
  0x36   :  { %7107 = vmatpush3.bf16.msra.mxu0 %v8046_v20 }
  0x37   :  { %7108 = vmatprep.subr.bf16.mxu0 %v8047_v21 }
  0x38   :  { %1478 = vperm.xlu1 %8032, %v1400_v48   ;;  %1473 = vperm.xlu0 %8031, %v1399_v49   ;;  %v8067_v48 = vld [vmem:[%s10553_s23 + $0xb0] sm:$0xff]   ;;  %v1444_v49 = vld [vmem:[%s10556_s1 + $0x178] sm:$0xff] }
  0x3a   :  { %7109 = vmatpush3.bf16.msra.mxu0 %v8047_v21 }
  0x3b   :  { %7110 = vmatprep.subr.bf16.mxu0 %v8048_v22 }
  0x3c   :  { %1488 = vperm.xlu1 %8032, %v1402_v50   ;;  %1483 = vperm.xlu0 %8031, %v1401_v51   ;;  %v5878_v50 = vld [vmem:[%s10517_s5 + $0x2] ss:$0 sm:$0xff] }
  0x3e   :  { %7111 = vmatpush3.bf16.msra.mxu0 %v8048_v22 }
  0x3f   :  { %7112 = vmatprep.subr.bf16.mxu0 %v8049_v23 }
  0x40   :  { %1498 = vperm.xlu1 %8032, %v1404_v52   ;;  %1493 = vperm.xlu0 %8031, %v1403_v53   ;;  %v1443_v52 = vld [vmem:[%s10556_s1 + $0x170] sm:$0xff] }
  0x42   :  { %7113 = vmatpush3.bf16.msra.mxu0 %v8049_v23 }
  0x43   :  { %7114 = vmatprep.subr.bf16.mxu0 %v8050_v24 }
  0x44   :  { %1508 = vperm.xlu1 %8032, %v1406_v54   ;;  %1503 = vperm.xlu0 %8031, %v1405_v55   ;;  %v8068_v55 = vld [vmem:[%s10553_s23 + $0xb8] sm:$0xff]  }
  0x46   :  { %7115 = vmatpush3.bf16.msra.mxu0 %v8050_v24 }
  0x48   :  { %1518 = vperm.xlu1 %8032, %v1408_v56   ;;  %1513 = vperm.xlu0 %8031, %v1407_v57   ;;  %v1446_v56 = vld [vmem:[%s10556_s1 + $0x188] sm:$0xff] }
  0x49   :  { %7117 = vmatmul.mubr.bf16.vlgmr.msra.gmra.mrb[4].mxu0 %v8052_v25  ;;  %v1429_v25 = vld [vmem:[%s10556_s1 + $0x100] sm:$0xff] }
  0x4c   :  { %1528 = vperm.xlu1 %8032, %v1410_v58   ;;  %1523 = vperm.xlu0 %8031, %v1409_v59  }
  0x50   :  { %1538 = vperm.xlu1 %8032, %v1412_v60   ;;  %1533 = vperm.xlu0 %8031, %v1411_v61  }
  0x54   :  { %1548 = vperm.xlu1 %8032, %v1414_v62   ;;  %1543 = vperm.xlu0 %8031, %v1413_v63   ;;  %v1445_v62 = vld [vmem:[%s10556_s1 + $0x180] sm:$0xff] }
  0x58   :  { %1558 = vperm.xlu1 %8032, %v1416_v0   ;;  %1553 = vperm.xlu0 %8031, %v1415_v1   ;;  %v8069_v1 = vld [vmem:[%s10551_s29 + $0x40] sm:$0xff]  }
  0x5c   :  { %1568 = vperm.xlu1 %8032, %v1418_v2   ;;  %1563 = vperm.xlu0 %8031, %v1417_v3   ;;  %v1448_v2 = vld [vmem:[%s10556_s1 + $0x198] sm:$0xff] }
  0x60   :  { %1578 = vperm.xlu1 %8032, %v1420_v4   ;;  %1573 = vperm.xlu0 %8031, %v1419_v5  }
  0x64   :  { %1588 = vperm.xlu1 %8032, %v1422_v6   ;;  %1583 = vperm.xlu0 %8031, %v1421_v7   ;;  %v8077_v7 = vld [vmem:[%s10557_s2] sm:$0xff]  }
  0x68   :  { %1598 = vperm.xlu1 %8032, %v1424_v8   ;;  %1593 = vperm.xlu0 %8031, %v1423_v9   ;;  %v1447_v8 = vld [vmem:[%s10556_s1 + $0x190] sm:$0xff]  ;;  %v8070_v9 = vld [vmem:[%s10551_s29 + $0x48] sm:$0xff]  }
  0x6c   :  { %1608 = vperm.xlu1 %8032, %v1426_v10   ;;  %1603 = vperm.xlu0 %8031, %v1425_v11   ;;  %v1450_v10 = vld [vmem:[%s10556_s1 + $0x1a8] sm:$0xff]  ;;  %v1449_v11 = vld [vmem:[%s10556_s1 + $0x1a0] sm:$0xff] }
  0x70   :  { %1618 = vperm.xlu1 %8032, %v1428_v12   ;;  %1613 = vperm.xlu0 %8031, %v1427_v15   ;;  %v8071_v12 = vld [vmem:[%s10551_s29 + $0x50] sm:$0xff]   ;;  %v8072_v15 = vld [vmem:[%s10551_s29 + $0x58] sm:$0xff]  }
  0x74   :  { %1628 = vperm.xlu1 %8032, %v1430_v18   ;;  %1623 = vperm.xlu0 %8031, %v1429_v25   ;;  %v8073_v18 = vld [vmem:[%s10551_s29 + $0x60] sm:$0xff]   ;;  %v1460_v25 = vld [vmem:[%s10556_s1 + $0x1f8] sm:$0xff] }
  0x78   :  { %1638 = vperm.xlu1 %8032, %v1432_v27   ;;  %1633 = vperm.xlu0 %8031, %v1431_v33   ;;  %v8076_v27 = vld [vmem:[%s10551_s29 + $0x78] sm:$0xff]   ;;  %v8082_v33 = vld [vmem:[%s10557_s2 + $0x28] sm:$0xff]  }
  0x7c   :  { %1648 = vperm.xlu1 %8032, %v1434_v35   ;;  %1643 = vperm.xlu0 %8031, %v1433_v36   ;;  %v8084_v35 = vld [vmem:[%s10557_s2 + $0x38] sm:$0xff]  }
  0x80   :  { %1658 = vperm.xlu1 %8032, %v1436_v38  }
  0x84   :  { %1668 = vperm.xlu1 %8032, %v1438_v40  }
  0x88   :  { %1678 = vperm.xlu1 %8032, %v1440_v43  }
  0x8c   :  { %1688 = vperm.xlu1 %8032, %v1442_v46  }
  0x90   :  { %1698 = vperm.xlu1 %8032, %v1444_v49  }
  0x93   :  { %v8797_v36 = vpop.permute.xlu0 %641 }
  0x94   :  { %1708 = vperm.xlu1 %8032, %v1446_v56  }
  0x97   :  { %v8801_v38 = vpop.permute.xlu0 %646 }
  0x98   :  { %1718 = vperm.xlu1 %8032, %v1448_v2  }
  0x9c   :  { %1728 = vperm.xlu1 %8032, %v1450_v10  }
  0xfc   :  { %v7078_v14 = vpop.f32.mrb[0].mxu0 }
  0xfd   :  { %v201_v16 = vadd.f32 %v7078_v14, %v5824_v13  ;;  %v192_v17 = vpop.f32.mrb[1].mxu0  ;;  %v1451_v14 = vld [vmem:[%s10556_s1 + $0x1b0] sm:$0xff] }
  0xfe   :  { %v193_v19 = vadd.f32 %v5824_v13, %v192_v17  ;;  %v7079_v20 = vpop.f32.mrb[2].mxu0  ;;  %v1453_v17 = vld [vmem:[%s10556_s1 + $0x1c0] sm:$0xff] }
  0xff   :  { %v209_v21 = vmax.f32 %v201_v16, 0.0  ;;  %v204_v22 = vadd.f32 %v7079_v20, %v5824_v13  ;;  %v195_v23 = vpop.f32.mrb[3].mxu0  ;;  %v1454_v16 = vld [vmem:[%s10556_s1 + $0x1c8] sm:$0xff]  ;;  %v1455_v20 = vld [vmem:[%s10556_s1 + $0x1d0] sm:$0xff] }
 0x100   :  { %v196_v24 = vadd.f32 %v5824_v13, %v195_v23  ;;  %v207_v29 = vmax.f32 %v193_v19, 0.0  ;;  %v1452_v13 = vld [vmem:[%s10556_s1 + $0x1b8] sm:$0xff]  ;;  %v1457_v23 = vld [vmem:[%s10556_s1 + $0x1e0] sm:$0xff] }
 0x101   :  { %v210_v26 = vmax.f32 %v204_v22, 0.0  ;;  %1738 = vperm.xlu1 %8032, %v1452_v13   ;;  %v1456_v19 = vld [vmem:[%s10556_s1 + $0x1d8] sm:$0xff]  ;;  %v1458_v22 = vld [vmem:[%s10556_s1 + $0x1e8] sm:$0xff] }
 0x102   :  { %v208_v30 = vmax.f32 %v196_v24, 0.0  ;;  %v8075_v24 = vld [vmem:[%s10551_s29 + $0x70] sm:$0xff]  }
 0x103   :  { %v212_v31 = vpack.c.bf16 %v210_v26, %v209_v21  ;;  %v8074_v21 = vld [vmem:[%s10551_s29 + $0x68] sm:$0xff]   ;;  %v1459_v26 = vld [vmem:[%s10556_s1 + $0x1f0] sm:$0xff] }
 0x104   :  { %v211_v32 = vpack.c.bf16 %v208_v30, %v207_v29  ;;  %v8078_v29 = vld [vmem:[%s10557_s2 + $0x8] sm:$0xff]   ;;  %v8079_v30 = vld [vmem:[%s10557_s2 + $0x10] sm:$0xff]  }
 0x105   :  { %1748 = vperm.xlu1 %8032, %v1454_v16  }
 0x106   :  { %7096 = vmatprep.mubr.bf16.mxu1 %v211_v32  ;;  %v8081_v32 = vld [vmem:[%s10557_s2 + $0x20] sm:$0xff]  }
 0x107   :  { %7097 = vmatmul.mubr.bf16.vlgmr.msra.gmra.mrb[0].mxu1 %v212_v31  ;;  %v8080_v31 = vld [vmem:[%s10557_s2 + $0x18] sm:$0xff]  }
 0x108   :  { %7121 = vmatpush3.bf16.msra.mxu1 %v8478_v28  ;;  %v1435_v28 = vld [vmem:[%s10556_s1 + $0x130] sm:$0xff] }
 0x109   :  { %7122 = vmatprep.subr.bf16.mxu1 %v8062_v34  ;;  %1653 = vperm.xlu0 %8031, %v1435_v28  }
 0x10a   :  { %1758 = vperm.xlu1 %8032, %v1456_v19  }
 0x10c   :  { %7123 = vmatpush3.bf16.msra.mxu1 %v8062_v34  ;;  %v8083_v34 = vld [vmem:[%s10557_s2 + $0x30] sm:$0xff]  }
 0x10d   :  { %7124 = vmatprep.subr.bf16.mxu1 %v8063_v37  ;;  %1663 = vperm.xlu0 %8031, %v1437_v41   ;;  %v8085_v41 = vld [vmem:[%s10518_s8] sm:$0xff]  }
 0x10e   :  { %1768 = vperm.xlu1 %8032, %v1458_v22   ;;  %7144 = vmatprep.mubr.msk.bf16.mxu0 %vm759_vm0, %v8085_v41 }
 0x110   :  { %7125 = vmatpush3.bf16.msra.mxu1 %v8063_v37  ;;  %v8799_v37 = vpop.permute.xlu1 %651 }
 0x111   :  { %7126 = vmatprep.subr.bf16.mxu1 %v8064_v39  ;;  %1673 = vperm.xlu0 %8031, %v1439_v44  }
 0x112   :  { %1778 = vperm.xlu1 %8032, %v1460_v25   ;;  %v5906_v25 = vld [vmem:[%s10519_s7 + $0x2] ss:$0 sm:$0xff] }
 0x114   :  { %7127 = vmatpush3.bf16.msra.mxu1 %v8064_v39  ;;  %v8803_v28 = vpop.permute.xlu1 %656  ;;  %v8805_v39 = vpop.permute.xlu0 %661 }
 0x115   :  { %7128 = vmatprep.subr.bf16.mxu1 %v8065_v42  ;;  %1683 = vperm.xlu0 %8031, %v1441_v47  }
 0x118   :  { %7129 = vmatpush3.bf16.msra.mxu1 %v8065_v42  ;;  %v8807_v40 = vpop.permute.xlu1 %666  ;;  %v8813_v42 = vpop.permute.xlu0 %671 }
 0x119   :  { %7130 = vmatprep.subr.bf16.mxu1 %v8066_v45  ;;  %1693 = vperm.xlu0 %8031, %v1443_v52  }
 0x11c   :  { %v7118_v51 = vpop.f32.mrb[4].mxu0  ;;  %7131 = vmatpush3.bf16.msra.mxu1 %v8066_v45  ;;  %v8815_v43 = vpop.permute.xlu1 %676 }
 0x11d   :  { %v467_v53 = vadd.f32 %v7118_v51, %v5878_v50  ;;  %v458_v54 = vpop.f32.mrb[5].mxu0  ;;  %7132 = vmatprep.subr.bf16.mxu1 %v8067_v48  ;;  %1703 = vperm.xlu0 %8031, %v1445_v62   ;;  %v8817_v44 = vpop.permute.xlu0 %681 }
 0x11e   :  { %v459_v57 = vadd.f32 %v5878_v50, %v458_v54  ;;  %v7119_v58 = vpop.f32.mrb[6].mxu0 }
 0x11f   :  { %v470_v59 = vadd.f32 %v7119_v58, %v5878_v50  ;;  %v461_v60 = vpop.f32.mrb[7].mxu0  ;;  %v475_v63 = vmax.f32 %v467_v53, 0.0 }
 0x120   :  { %v462_v61 = vadd.f32 %v5878_v50, %v461_v60  ;;  %7133 = vmatpush3.bf16.msra.mxu1 %v8067_v48  ;;  %v473_v3 = vmax.f32 %v459_v57, 0.0  ;;  %v8819_v45 = vpop.permute.xlu1 %686 }
 0x121   :  { %v476_v0 = vmax.f32 %v470_v59, 0.0  ;;  %7134 = vmatprep.subr.bf16.mxu1 %v8068_v55  ;;  %1713 = vperm.xlu0 %8031, %v1447_v8   ;;  %v8821_v46 = vpop.permute.xlu0 %691 }
 0x122   :  { %v474_v4 = vmax.f32 %v462_v61, 0.0 }
 0x123   :  { %v478_v5 = vpack.c.bf16 %v476_v0, %v475_v63 }
 0x124   :  { %v477_v6 = vpack.c.bf16 %v474_v4, %v473_v3  ;;  %7135 = vmatpush3.bf16.msra.mxu1 %v8068_v55  ;;  %v8823_v47 = vpop.permute.xlu1 %696  ;;  %v5852_v4 = vld [vmem:[%s10519_s7 + $0x3] ss:$0 sm:$0xff] }
 0x125   :  { %7160 = vmatprep.subr.bf16.mxu1 %v8069_v1  ;;  %1723 = vperm.xlu0 %8031, %v1449_v11   ;;  %v8825_v48 = vpop.permute.xlu0 %701 }
 0x126   :  { %7136 = vmatprep.mubr.bf16.mxu1 %v477_v6 }
 0x127   :  { %7137 = vmatmul.mubr.bf16.vlgmr.msra.gmra.mrb[4].mxu1 %v478_v5 }
 0x128   :  { %7161 = vmatpush3.bf16.msra.mxu1 %v8069_v1  ;;  %7176 = vmatprep.mubr.bf16.mxu1 %v8077_v7  ;;  %v8827_v49 = vpop.permute.xlu1 %706 }
 0x129   :  { %7162 = vmatprep.subr.bf16.mxu1 %v8070_v9  ;;  %1733 = vperm.xlu0 %8031, %v1451_v14   ;;  %v8829_v50 = vpop.permute.xlu0 %711 }
 0x12c   :  { %7163 = vmatpush3.bf16.msra.mxu1 %v8070_v9  ;;  %v8831_v51 = vpop.permute.xlu1 %716 }
 0x12d   :  { %7164 = vmatprep.subr.bf16.mxu1 %v8071_v12  ;;  %1743 = vperm.xlu0 %8031, %v1453_v17   ;;  %v8833_v52 = vpop.permute.xlu0 %1463 }
 0x130   :  { %7165 = vmatpush3.bf16.msra.mxu1 %v8071_v12  ;;  %v8835_v53 = vpop.permute.xlu1 %1468 }
 0x131   :  { %7166 = vmatprep.subr.bf16.mxu1 %v8072_v15  ;;  %1753 = vperm.xlu0 %8031, %v1455_v20   ;;  %v8837_v54 = vpop.permute.xlu0 %1473 }
 0x134   :  { %7167 = vmatpush3.bf16.msra.mxu1 %v8072_v15  ;;  %v8839_v55 = vpop.permute.xlu1 %1478 }
 0x135   :  { %7168 = vmatprep.subr.bf16.mxu1 %v8073_v18  ;;  %1763 = vperm.xlu0 %8031, %v1457_v23   ;;  %v8841_v56 = vpop.permute.xlu0 %1483 }
 0x138   :  { %7169 = vmatpush3.bf16.msra.mxu1 %v8073_v18  ;;  %v8843_v57 = vpop.permute.xlu1 %1488 }
 0x139   :  { %7170 = vmatprep.subr.bf16.mxu1 %v8074_v21  ;;  %1773 = vperm.xlu0 %8031, %v1459_v26   ;;  %v8845_v58 = vpop.permute.xlu0 %1493 }
 0x13c   :  { %7171 = vmatpush3.bf16.msra.mxu1 %v8074_v21  ;;  %v8847_v59 = vpop.permute.xlu1 %1498 }
 0x13d   :  { %7172 = vmatprep.subr.bf16.mxu1 %v8075_v24  ;;  %v8849_v60 = vpop.permute.xlu0 %1503 }
 0x140   :  { %7173 = vmatpush3.bf16.msra.mxu1 %v8075_v24  ;;  %v8851_v61 = vpop.permute.xlu1 %1508 }
 0x141   :  { %7174 = vmatprep.subr.bf16.mxu1 %v8076_v27  ;;  %v8853_v62 = vpop.permute.xlu0 %1513 }
 0x144   :  { %7175 = vmatpush3.bf16.msra.mxu1 %v8076_v27  ;;  %v8855_v63 = vpop.permute.xlu1 %1518 }
 0x145   :  { %v8857_v0 = vpop.permute.xlu0 %1523 }
 0x147   :  { %7177 = vmatmul.mubr.bf16.vlgmr.msra.gmra.mrb[8].mxu1 %v8078_v29 }
 0x148   :  { %7180 = vmatprep.mubr.bf16.mxu1 %v8079_v30  ;;  %v8859_v1 = vpop.permute.xlu1 %1528 }
 0x149   :  { %v8861_v2 = vpop.permute.xlu0 %1533 }
 0x14c   :  { %v8863_v3 = vpop.permute.xlu1 %1538 }
 0x14d   :  { %v8868_v7 = vpop.permute.xlu0 %1543 }
 0x14e   :  { %10558 = vst [vmem:[#allocation2_spill] sm:$0xff] %v8868_v7 }
 0x14f   :  { %7181 = vmatmul.mubr.bf16.gmra.mrb[12].mxu1 %v8080_v31 }
 0x150   :  { %7184 = vmatprep.mubr.bf16.mxu1 %v8081_v32  ;;  %v8876_v13 = vpop.permute.xlu1 %1548 }
 0x151   :  { %10559 = vst [vmem:[#allocation3_spill] sm:$0xff] %v8876_v13  ;;  %v8889_v17 = vpop.permute.xlu0 %1553 }
 0x154   :  { %v8895_v18 = vpop.permute.xlu1 %1558 }
 0x155   :  { %10560 = vst [vmem:[#allocation4_spill] sm:$0xff] %v8895_v18  ;;  %v8898_v19 = vpop.permute.xlu0 %1563 }
 0x156   :  { %10561 = vst [vmem:[#allocation5_spill] sm:$0xff] %v8898_v19 }
 0x157   :  { %7185 = vmatmul.mubr.bf16.gmra.mrb[16].mxu1 %v8082_v33 }
 0x158   :  { %7188 = vmatprep.mubr.bf16.mxu1 %v8083_v34  ;;  %v8900_v20 = vpop.permute.xlu1 %1568 }
 0x159   :  { %10562 = vst [vmem:[#allocation6_spill] sm:$0xff] %v8900_v20  ;;  %v8902_v21 = vpop.permute.xlu0 %1573 }
 0x15a   :  { %10563 = vst [vmem:[#allocation7_spill] sm:$0xff] %v8902_v21 }
 0x15c   :  { %v8904_v22 = vpop.permute.xlu1 %1578 }
 0x15d   :  { %10564 = vst [vmem:[#allocation8_spill] sm:$0xff] %v8904_v22  ;;  %v8906_v23 = vpop.permute.xlu0 %1583 }
 0x15e   :  { %10565 = vst [vmem:[#allocation9_spill] sm:$0xff] %v8906_v23 }
 0x15f   :  { %7189 = vmatmul.mubr.bf16.gmra.mrb[20].mxu1 %v8084_v35 }
 0x160   :  { %v8908_v24 = vpop.permute.xlu1 %1588 }
 0x161   :  { %10566 = vst [vmem:[#allocation10_spill] sm:$0xff] %v8908_v24  ;;  %v8913_v26 = vpop.permute.xlu0 %1593 }
 0x162   :  { %10567 = vst [vmem:[#allocation11_spill] sm:$0xff] %v8913_v26 }
 0x164   :  { %v8915_v31 = vpop.permute.xlu1 %1598 }
 0x165   :  { %10568 = vst [vmem:[#allocation12_spill] sm:$0xff] %v8915_v31 }
 0x1da   :  { %v7098_v5 = vpop.f32.mrb[0].mxu1 }
 0x1db   :  { %v320_v6 = vpop.f32.mrb[1].mxu1  ;;  %v8872_v10 = vadd.f32 %v7098_v5, %v5852_v4 }
 0x1dc   :  { %v8870_v8 = vadd.f32 %v5852_v4, %v320_v6  ;;  %v7099_v9 = vpop.f32.mrb[2].mxu1  ;;  %v8919_v6 = vpop.permute.xlu0 %1603 }
 0x1dd   :  { %v8874_v11 = vadd.f32 %v7099_v9, %v5852_v4  ;;  %v323_v12 = vpop.f32.mrb[3].mxu1  ;;  %10569 = vst [vmem:[#allocation13_spill] sm:$0xff] %v8919_v6 }
 0x1de   :  { %v8878_v14 = vadd.f32 %v5852_v4, %v323_v12  ;;  %5596 = vadd.xlane.f32.xlu0 %v8870_v8 }
 0x1df   :  { %v5323_v15 = vpack.c.bf16 %v8874_v11, %v8872_v10 }
 0x1e0   :  { %5598 = vadd.xlane.f32.xlu1 %v8878_v14  ;;  %v5322_v16 = vpack.c.bf16 %v8878_v14, %v8870_v8 }
 0x1e1   :  { %6696 = vst [vmem:[%s10520_s20 + $0x158] sm:$0xff] %v5323_v15  }
 0x1e2   :  { %5600 = vadd.xlane.f32.xlu0 %v8872_v10  ;;  %6695 = vst [vmem:[%s10520_s20 + $0x150] sm:$0xff] %v5322_v16   ;;  %v8923_v16 = vpop.permute.xlu1 %1608 }
 0x1e3   :  { %10570 = vst [vmem:[#allocation14_spill] sm:$0xff] %v8923_v16 }
 0x1e6   :  { %5602 = vadd.xlane.f32.xlu0 %v8874_v11 }
 0x1fa   :  { %v7138_v27 = vpop.f32.mrb[4].mxu1 }
 0x1fb   :  { %v595_v29 = vadd.f32 %v7138_v27, %v5906_v25  ;;  %v586_v30 = vpop.f32.mrb[5].mxu1 }
 0x1fc   :  { %v587_v32 = vadd.f32 %v5906_v25, %v586_v30  ;;  %v7139_v33 = vpop.f32.mrb[6].mxu1  ;;  %v8936_v30 = vpop.permute.xlu1 %1618 }
 0x1fd   :  { %v598_v34 = vadd.f32 %v7139_v33, %v5906_v25  ;;  %v589_v35 = vpop.f32.mrb[7].mxu1  ;;  %v603_v4 = vadd.f32 %v595_v29, %v8872_v10  ;;  %v8087_v29 = vld [vmem:[%s10553_s23 + $0x40] sm:$0xff]   ;;  %10572 = vst [vmem:[#allocation16_spill] sm:$0xff] %v8936_v30  ;;  %v8089_v33 = vld [vmem:[%s10518_s8 + $0x10] sm:$0xff]  }
 0x1fe   :  { %v590_v41 = vadd.f32 %v5906_v25, %v589_v35  ;;  %v601_v9 = vadd.f32 %v587_v32, %v8870_v8  ;;  %v8931_v25 = vpop.permute.xlu0 %1613  ;;  %v8086_v32 = vld [vmem:[%s10518_s8 + $0x8] sm:$0xff]  }
 0x1ff   :  { %v604_v5 = vadd.f32 %v598_v34, %v8874_v11  ;;  %10571 = vst [vmem:[#allocation15_spill] sm:$0xff] %v8931_v25  ;;  %v8088_v34 = vld [vmem:[%s10553_s23 + $0x48] sm:$0xff]  }
 0x200   :  { %v602_v12 = vadd.f32 %v590_v41, %v8878_v14  ;;  %v8091_v41 = vld [vmem:[%s10553_s23 + $0x50] sm:$0xff]  }
 0x201   :  { %v622_v15 = vpack.c.bf16 %v604_v5, %v603_v4  ;;  %v8954_v4 = vpop.permute.xlu1 %1628  ;;  %v8090_v5 = vld [vmem:[%s10518_s8 + $0x18] sm:$0xff]  }
 0x202   :  { %v621_v27 = vpack.c.bf16 %v602_v12, %v601_v9  ;;  %v8947_v35 = vpop.permute.xlu0 %1623  ;;  %10574 = vst [vmem:[#allocation18_spill] sm:$0xff] %v8954_v4  ;;  %v8093_v9 = vld [vmem:[%s10518_s8 + $0x20] sm:$0xff]   ;;  %v8092_v12 = vld [vmem:[%s10553_s23 + $0x58] sm:$0xff]  }
 0x203   :  { %6694 = vst [vmem:[%s10520_s20 + $0x148] sm:$0xff] %v622_v15   ;;  %10573 = vst [vmem:[#allocation17_spill] sm:$0xff] %v8947_v35 }
 0x204   :  { %6693 = vst [vmem:[%s10520_s20 + $0x140] sm:$0xff] %v621_v27   ;;  %7140 = vmatprep.subr.bf16.mxu0 %v621_v27 }
 0x205   :  { %7141 = vmatpush3.bf16.msra.mxu0 %v621_v27  ;;  %v8967_v27 = vpop.permute.xlu1 %1638 }
 0x206   :  { %7142 = vmatprep.subr.bf16.mxu0 %v622_v15  ;;  %10576 = vst [vmem:[#allocation20_spill] sm:$0xff] %v8967_v27 }
 0x209   :  { %7143 = vmatpush3.bf16.msra.mxu0 %v622_v15  ;;  %v8965_v15 = vpop.permute.xlu0 %1633 }
 0x20a   :  { %7192 = vmatprep.subr.bf16.mxu0 %v8087_v29  ;;  %10575 = vst [vmem:[#allocation19_spill] sm:$0xff] %v8965_v15 }
 0x20c   :  { %7145 = vmatmul.mubr.msk.bf16.vlgmr.msra.gmra.mrb[8].mxu0 %vm759_vm0, %v8086_v32 }
 0x20d   :  { %7193 = vmatpush3.bf16.msra.mxu0 %v8087_v29  ;;  %7148 = vmatprep.mubr.msk.bf16.mxu0 %vm759_vm0, %v8089_v33  ;;  %v8095_v29 = vld [vmem:[%s10553_s23 + $0x60] sm:$0xff]   ;;  %v8974_v32 = vpop.permute.xlu0 %1643 }
 0x20e   :  { %7194 = vmatprep.subr.bf16.mxu0 %v8088_v34  ;;  %10577 = vst [vmem:[#allocation21_spill] sm:$0xff] %v8974_v32  ;;  %v8979_v33 = vld [vmem:[%s10517_s5 + $0x1] ss:$0 sm:$0xff]  ;;  %v8096_v32 = vld [vmem:[%s10553_s23 + $0x68] sm:$0xff]  }
 0x211   :  { %7195 = vmatpush3.bf16.msra.mxu0 %v8088_v34  ;;  %v8094_v34 = vld [vmem:[%s10518_s8 + $0x28] sm:$0xff]  }
 0x212   :  { %7196 = vmatprep.subr.bf16.mxu0 %v8091_v41 }
 0x214   :  { %7149 = vmatmul.mubr.msk.bf16.gmra.mrb[12].mxu0 %vm759_vm0, %v8090_v5  ;;  %v8097_v5 = vld [vmem:[%s10518_s8 + $0x30] sm:$0xff]  }
 0x215   :  { %7197 = vmatpush3.bf16.msra.mxu0 %v8091_v41  ;;  %7152 = vmatprep.mubr.msk.bf16.mxu0 %vm759_vm0, %v8093_v9  ;;  %v8987_v41 = vpop.permute.xlu1 %1648 }
 0x216   :  { %7198 = vmatprep.subr.bf16.mxu0 %v8092_v12  ;;  %10578 = vst [vmem:[#allocation22_spill] sm:$0xff] %v8987_v41  ;;  %v8997_v41 = vpop.permute.xlu0 %1653 }
 0x217   :  { %10579 = vst [vmem:[#allocation23_spill] sm:$0xff] %v8997_v41 }
 0x219   :  { %7199 = vmatpush3.bf16.msra.mxu0 %v8092_v12 }
 0x21a   :  { %7200 = vmatprep.subr.bf16.mxu0 %v8095_v29  ;;  %v7178_v9 = vpop.f32.mrb[8].mxu1 }
 0x21b   :  { %v1061_v4 = vadd.f32 %v7178_v9, %v8979_v33  ;;  %v1052_v27 = vpop.f32.mrb[9].mxu1 }
 0x21c   :  { %7153 = vmatmul.mubr.msk.bf16.gmra.mrb[16].mxu0 %vm759_vm0, %v8094_v34  ;;  %v1053_v35 = vadd.f32 %v8979_v33, %v1052_v27  ;;  %v7179_v12 = vpop.f32.mrb[10].mxu1  ;;  %v8099_v34 = vld [vmem:[%s10553_s23 + $0x70] sm:$0xff]   ;;  %v9003_v27 = vpop.permute.xlu1 %1658 }
 0x21d   :  { %7201 = vmatpush3.bf16.msra.mxu0 %v8095_v29  ;;  %v1117_v15 = vmax.f32 %v1061_v4, 0.0  ;;  %v1064_v16 = vadd.f32 %v7179_v12, %v8979_v33  ;;  %v1055_v30 = vpop.f32.mrb[11].mxu1  ;;  %7156 = vmatprep.mubr.msk.bf16.mxu0 %vm759_vm0, %v8097_v5  ;;  %10580 = vst [vmem:[#allocation24_spill] sm:$0xff] %v9003_v27  ;;  %v8098_v4 = vld [vmem:[%s10518_s8 + $0x38] sm:$0xff]  }
 0x21e   :  { %v1115_v6 = vmax.f32 %v1053_v35, 0.0  ;;  %7202 = vmatprep.subr.bf16.mxu0 %v8096_v32  ;;  %v1056_v25 = vadd.f32 %v8979_v33, %v1055_v30  ;;  %v8100_v30 = vld [vmem:[%s10553_s23 + $0x78] sm:$0xff]  }
 0x21f   :  { %v1118_v9 = vmax.f32 %v1064_v16, 0.0  ;;  %v9012_v16 = vpop.permute.xlu0 %1663 }
 0x220   :  { %v1116_v29 = vmax.f32 %v1056_v25, 0.0  ;;  %10581 = vst [vmem:[#allocation25_spill] sm:$0xff] %v9012_v16  ;;  %v8101_v16 = vld [vmem:[%s10551_s29] sm:$0xff]  }
 0x221   :  { %v1132_v12 = vpack.c.bf16 %v1118_v9, %v1117_v15  ;;  %7203 = vmatpush3.bf16.msra.mxu0 %v8096_v32  ;;  %v9017_v9 = vpop.permute.xlu1 %1668 }
 0x222   :  { %v1131_v5 = vpack.c.bf16 %v1116_v29, %v1115_v6  ;;  %7204 = vmatprep.subr.bf16.mxu0 %v8099_v34  ;;  %v7182_v35 = vpop.f32.mrb[12].mxu1  ;;  %10582 = vst [vmem:[#allocation26_spill] sm:$0xff] %v9017_v9 }
 0x223   :  { %v1077_v41 = vadd.f32 %v7182_v35, %v8979_v33  ;;  %v1068_v24 = vpop.f32.mrb[13].mxu1 }
 0x224   :  { %7157 = vmatmul.mubr.msk.bf16.gmra.mrb[20].mxu0 %vm759_vm0, %v8098_v4  ;;  %v1069_v25 = vadd.f32 %v8979_v33, %v1068_v24  ;;  %v7183_v27 = vpop.f32.mrb[14].mxu1 }
 0x225   :  { %7205 = vmatpush3.bf16.msra.mxu0 %v8099_v34  ;;  %v1121_v15 = vmax.f32 %v1077_v41, 0.0  ;;  %v1080_v6 = vadd.f32 %v7183_v27, %v8979_v33  ;;  %7208 = vmatprep.mubr.bf16.mxu0 %v1131_v5  ;;  %v1071_v32 = vpop.f32.mrb[15].mxu1  ;;  %v9023_v34 = vpop.permute.xlu0 %1673  ;;  %v8102_v5 = vld [vmem:[%s10551_s29 + $0x8] sm:$0xff]  }
 0x226   :  { %v1119_v29 = vmax.f32 %v1069_v25, 0.0  ;;  %7206 = vmatprep.subr.bf16.mxu0 %v8100_v30  ;;  %v1072_v35 = vadd.f32 %v8979_v33, %v1071_v32  ;;  %10583 = vst [vmem:[#allocation27_spill] sm:$0xff] %v9023_v34  ;;  %v9029_v9 = vpop.permute.xlu1 %1678 }
 0x227   :  { %v1122_v4 = vmax.f32 %v1080_v6, 0.0  ;;  %10584 = vst [vmem:[#allocation28_spill] sm:$0xff] %v9029_v9 }
 0x228   :  { %v1120_v31 = vmax.f32 %v1072_v35, 0.0 }
 0x229   :  { %v1134_v24 = vpack.c.bf16 %v1122_v4, %v1121_v15  ;;  %7207 = vmatpush3.bf16.msra.mxu0 %v8100_v30  ;;  %v9037_v9 = vpop.permute.xlu0 %1683 }
 0x22a   :  { %v1133_v41 = vpack.c.bf16 %v1120_v31, %v1119_v29  ;;  %v7186_v27 = vpop.f32.mrb[16].mxu1  ;;  %7304 = vmatprep.subr.bf16.mxu0 %v8101_v16  ;;  %10585 = vst [vmem:[#allocation29_spill] sm:$0xff] %v9037_v9  ;;  %v9039_v23 = vpop.permute.xlu1 %1688 }
 0x22b   :  { %v1093_v25 = vadd.f32 %v7186_v27, %v8979_v33  ;;  %v1084_v32 = vpop.f32.mrb[17].mxu1  ;;  %v8103_v27 = vld [vmem:[%s10551_s29 + $0x10] sm:$0xff]   ;;  %10586 = vst [vmem:[#allocation30_spill] sm:$0xff] %v9039_v23 }
 0x22c   :  { %7209 = vmatmul.mubr.bf16.vlgmr.msra.gmra.mrb[8].mxu0 %v1132_v12  ;;  %v1085_v6 = vadd.f32 %v8979_v33, %v1084_v32  ;;  %v7187_v35 = vpop.f32.mrb[18].mxu1 }
 0x22d   :  { %v1125_v15 = vmax.f32 %v1093_v25, 0.0  ;;  %v1096_v30 = vadd.f32 %v7187_v35, %v8979_v33  ;;  %7212 = vmatprep.mubr.bf16.mxu0 %v1133_v41  ;;  %v1087_v31 = vpop.f32.mrb[19].mxu1  ;;  %7305 = vmatpush3.bf16.msra.mxu0 %v8101_v16  ;;  %v8104_v16 = vld [vmem:[%s10551_s29 + $0x18] sm:$0xff]  }
 0x22e   :  { %v1123_v29 = vmax.f32 %v1085_v6, 0.0  ;;  %v1088_v4 = vadd.f32 %v8979_v33, %v1087_v31  ;;  %7306 = vmatprep.subr.bf16.mxu0 %v8102_v5 }
 0x22f   :  { %v1126_v34 = vmax.f32 %v1096_v30, 0.0 }
 0x230   :  { %v1124_v12 = vmax.f32 %v1088_v4, 0.0 }
 0x231   :  { %v1136_v32 = vpack.c.bf16 %v1126_v34, %v1125_v15  ;;  %7307 = vmatpush3.bf16.msra.mxu0 %v8102_v5  ;;  %v9047_v5 = vpop.permute.xlu0 %1693 }
 0x232   :  { %v1135_v25 = vpack.c.bf16 %v1124_v12, %v1123_v29  ;;  %v7190_v41 = vpop.f32.mrb[20].mxu1  ;;  %7308 = vmatprep.subr.bf16.mxu0 %v8103_v27  ;;  %10587 = vst [vmem:[#allocation31_spill] sm:$0xff] %v9047_v5  ;;  %v8105_v12 = vld [vmem:[%s10551_s29 + $0x20] sm:$0xff]  }
 0x233   :  { %v1109_v6 = vadd.f32 %v7190_v41, %v8979_v33  ;;  %v1100_v35 = vpop.f32.mrb[21].mxu1  ;;  %v9053_v41 = vpop.permute.xlu1 %1698 }
 0x234   :  { %7213 = vmatmul.mubr.bf16.gmra.mrb[12].mxu0 %v1134_v24  ;;  %v1101_v30 = vadd.f32 %v8979_v33, %v1100_v35  ;;  %v7191_v31 = vpop.f32.mrb[22].mxu1  ;;  %10588 = vst [vmem:[#allocation32_spill] sm:$0xff] %v9053_v41 }
 0x235   :  { %v1129_v9 = vmax.f32 %v1109_v6, 0.0  ;;  %v1112_v34 = vadd.f32 %v7191_v31, %v8979_v33  ;;  %7216 = vmatprep.mubr.bf16.mxu0 %v1135_v25  ;;  %v1103_v15 = vpop.f32.mrb[23].mxu1  ;;  %7309 = vmatpush3.bf16.msra.mxu0 %v8103_v27  ;;  %v8106_v27 = vld [vmem:[%s10551_s29 + $0x28] sm:$0xff]   ;;  %v9058_v25 = vpop.permute.xlu0 %1703 }
 0x236   :  { %v1127_v29 = vmax.f32 %v1101_v30, 0.0  ;;  %v1104_v4 = vadd.f32 %v8979_v33, %v1103_v15  ;;  %7310 = vmatprep.subr.bf16.mxu0 %v8104_v16  ;;  %10589 = vst [vmem:[#allocation33_spill] sm:$0xff] %v9058_v25  ;;  %v8107_v30 = vld [vmem:[%s10551_s29 + $0x30] sm:$0xff]  }
 0x237   :  { %v1130_v24 = vmax.f32 %v1112_v34, 0.0  ;;  %v9060_v33 = vpop.permute.xlu1 %1708 }
 0x238   :  { %v1128_v35 = vmax.f32 %v1104_v4, 0.0  ;;  %10590 = vst [vmem:[#allocation34_spill] sm:$0xff] %v9060_v33 }
 0x239   :  { %v1138_v6 = vpack.c.bf16 %v1130_v24, %v1129_v9  ;;  %7311 = vmatpush3.bf16.msra.mxu0 %v8104_v16  ;;  %v9065_v9 = vpop.permute.xlu0 %1713  ;;  %v8109_v16 = vld [vmem:[%s10521_s0] sm:$0xff]  }
 0x23a   :  { %v1137_v31 = vpack.c.bf16 %v1128_v35, %v1127_v29  ;;  %7312 = vmatprep.subr.bf16.mxu0 %v8105_v12  ;;  %10591 = vst [vmem:[#allocation35_spill] sm:$0xff] %v9065_v9  ;;  %v8110_v29 = vld [vmem:[%s10521_s0 + $0x8] sm:$0xff]  }
 0x23b   :  { %v9073_v34 = vpop.permute.xlu1 %1718 }
 0x23c   :  { %7217 = vmatmul.mubr.bf16.gmra.mrb[16].mxu0 %v1136_v32  ;;  %v8108_v32 = vld [vmem:[%s10551_s29 + $0x38] sm:$0xff]   ;;  %10592 = vst [vmem:[#allocation36_spill] sm:$0xff] %v9073_v34 }
 0x23d   :  { %7220 = vmatprep.mubr.bf16.mxu0 %v1137_v31  ;;  %7313 = vmatpush3.bf16.msra.mxu0 %v8105_v12  ;;  %v9075_v15 = vpop.permute.xlu0 %1723  ;;  %v8111_v12 = vld [vmem:[%s10521_s0 + $0x10] sm:$0xff]   ;;  %v8113_v31 = vld [vmem:[%s10521_s0 + $0x20] sm:$0xff]  }
 0x23e   :  { %7314 = vmatprep.subr.bf16.mxu0 %v8106_v27  ;;  %10593 = vst [vmem:[#allocation37_spill] sm:$0xff] %v9075_v15 }
 0x23f   :  { %v9080_v4 = vpop.permute.xlu1 %1728 }
 0x240   :  { %10594 = vst [vmem:[#allocation38_spill] sm:$0xff] %v9080_v4 }
 0x241   :  { %7315 = vmatpush3.bf16.msra.mxu0 %v8106_v27  ;;  %v9085_v24 = vpop.permute.xlu0 %1733 }
 0x242   :  { %7316 = vmatprep.subr.bf16.mxu0 %v8107_v30  ;;  %10595 = vst [vmem:[#allocation39_spill] sm:$0xff] %v9085_v24  ;;  %v8120_v24 = vld [vmem:[%s10521_s0 + $0x58] sm:$0xff]  }
 0x243   :  { %v9087_v35 = vpop.permute.xlu1 %1738 }
 0x244   :  { %7221 = vmatmul.mubr.bf16.gmra.mrb[20].mxu0 %v1138_v6  ;;  %10596 = vst [vmem:[#allocation40_spill] sm:$0xff] %v9087_v35  ;;  %v8112_v6 = vld [vmem:[%s10521_s0 + $0x18] sm:$0xff]  }
 0x245   :  { %7317 = vmatpush3.bf16.msra.mxu0 %v8107_v30  ;;  %7320 = vmatprep.mubr.bf16.mxu0 %v8109_v16  ;;  %v9095_v27 = vpop.permute.xlu0 %1743  ;;  %v8114_v16 = vld [vmem:[%s10521_s0 + $0x28] sm:$0xff]  }
 0x246   :  { %7318 = vmatprep.subr.bf16.mxu0 %v8108_v32  ;;  %10597 = vst [vmem:[#allocation41_spill] sm:$0xff] %v9095_v27 }
 0x247   :  { %v9097_v30 = vpop.permute.xlu1 %1748 }
 0x248   :  { %10598 = vst [vmem:[#allocation42_spill] sm:$0xff] %v9097_v30  ;;  %v8117_v30 = vld [vmem:[%s10521_s0 + $0x40] sm:$0xff]  }
 0x249   :  { %7319 = vmatpush3.bf16.msra.mxu0 %v8108_v32  ;;  %v9102_v32 = vpop.permute.xlu0 %1753 }
 0x24a   :  { %10599 = vst [vmem:[#allocation43_spill] sm:$0xff] %v9102_v32 }
 0x24c   :  { %7321 = vmatmul.mubr.bf16.vlgmr.msra.gmra.mrb[24].mxu0 %v8110_v29  ;;  %v8115_v29 = vld [vmem:[%s10521_s0 + $0x30] sm:$0xff]  }
 0x24d   :  { %7324 = vmatprep.mubr.bf16.mxu0 %v8111_v12  ;;  %v9107_v12 = vpop.permute.xlu1 %1758  ;;  %v9109_v4 = vpop.permute.xlu0 %1763 }
 0x24e   :  { %10600 = vst [vmem:[#allocation44_spill] sm:$0xff] %v9107_v12  ;;  %10601 = vst [vmem:[#allocation45_spill] sm:$0xff] %v9109_v4 }
 0x251   :  { %v9119_v27 = vpop.permute.xlu0 %1773 }
 0x252   :  { %10603 = vst [vmem:[#allocation47_spill] sm:$0xff] %v9119_v27 }
 0x254   :  { %7325 = vmatmul.mubr.bf16.gmra.mrb[28].mxu0 %v8112_v6  ;;  %v8116_v6 = vld [vmem:[%s10521_s0 + $0x38] sm:$0xff]  }
 0x255   :  { %7328 = vmatprep.mubr.bf16.mxu0 %v8113_v31  ;;  %v9114_v31 = vpop.permute.xlu1 %1768 }
 0x256   :  { %10602 = vst [vmem:[#allocation46_spill] sm:$0xff] %v9114_v31 }
 0x259   :  { %v9121_v32 = vpop.permute.xlu1 %1778 }
 0x25a   :  { %10604 = vst [vmem:[#allocation48_spill] sm:$0xff] %v9121_v32 }
 0x25c   :  { %7329 = vmatmul.mubr.bf16.gmra.mrb[32].mxu0 %v8114_v16  ;;  %v8118_v16 = vld [vmem:[%s10521_s0 + $0x48] sm:$0xff]  }
 0x25d   :  { %7332 = vmatprep.mubr.bf16.mxu0 %v8115_v29  ;;  %v8119_v29 = vld [vmem:[%s10521_s0 + $0x50] sm:$0xff]  }
 0x264   :  { %7333 = vmatmul.mubr.bf16.gmra.mrb[36].mxu0 %v8116_v6 }
 0x265   :  { %7336 = vmatprep.mubr.bf16.mxu0 %v8117_v30 }
 0x26b   :  { %v5597_v4 = vpop.xlane.xlu0 %5596 }
 0x26c   :  { %v5605_v31 = vmul.f32 0.0078125, %v5597_v4  ;;  %7337 = vmatmul.mubr.bf16.gmra.mrb[40].mxu0 %v8118_v16  ;;  %v8121_v4 = vld [vmem:[%s10521_s0 + $0x60] sm:$0xff]  }
 0x26d   :  { %v5599_v12 = vpop.xlane.xlu1 %5598  ;;  %7340 = vmatprep.mubr.bf16.mxu0 %v8119_v29  ;;  %v8126_v29 = vld [vmem:[%s10521_s0 + $0x88] sm:$0xff]  }
 0x26e   :  { %v9130_v6 = vsub.f32 %v8870_v8, %v5605_v31  ;;  %v5606_v27 = vmul.f32 0.0078125, %v5599_v12 }
 0x26f   :  { %v5601_v30 = vpop.xlane.xlu0 %5600 }
 0x270   :  { %10605 = vst [vmem:[#allocation49_spill] sm:$0xff] %v9130_v6  ;;  %v9133_v32 = vsub.f32 %v8878_v14, %v5606_v27  ;;  %v5607_v35 = vmul.f32 0.0078125, %v5601_v30  ;;  %v5613_v15 = vmul.f32 %v9130_v6, %v9130_v6  ;;  %v8127_v30 = vld [vmem:[%s10521_s0 + $0x90] sm:$0xff]  }
 0x272   :  { %10606 = vst [vmem:[#allocation50_spill] sm:$0xff] %v9133_v32  ;;  %v9144_v8 = vsub.f32 %v8872_v10, %v5607_v35  ;;  %5617 = vadd.xlane.f32.xlu1 %v5613_v15  ;;  %v5614_v14 = vmul.f32 %v9133_v32, %v9133_v32  ;;  %v8122_v15 = vld [vmem:[%s10521_s0 + $0x68] sm:$0xff]   ;;  %v8123_v35 = vld [vmem:[%s10521_s0 + $0x70] sm:$0xff]  }
 0x273   :  { %v5603_v27 = vpop.xlane.xlu0 %5602 }
 0x274   :  { %10607 = vst [vmem:[#allocation51_spill] sm:$0xff] %v9144_v8  ;;  %v5608_v12 = vmul.f32 0.0078125, %v5603_v27  ;;  %5619 = vadd.xlane.f32.xlu0 %v5614_v14  ;;  %v5615_v31 = vmul.f32 %v9144_v8, %v9144_v8  ;;  %7341 = vmatmul.mubr.bf16.gmra.mrb[44].mxu0 %v8120_v24  ;;  %v8125_v24 = vld [vmem:[%s10521_s0 + $0x80] sm:$0xff]   ;;  %v8130_v27 = vld [vmem:[%s10521_s0 + $0xa8] sm:$0xff]  }
 0x275   :  { %7344 = vmatprep.mubr.bf16.mxu0 %v8121_v4  ;;  %v8128_v4 = vld [vmem:[%s10521_s0 + $0x98] sm:$0xff]   ;;  %v8129_v14 = vld [vmem:[%s10521_s0 + $0xa0] sm:$0xff]  }
 0x276   :  { %v9151_v16 = vsub.f32 %v8874_v11, %v5608_v12  ;;  %5621 = vadd.xlane.f32.xlu1 %v5615_v31  ;;  %v8124_v11 = vld [vmem:[%s10521_s0 + $0x78] sm:$0xff]   ;;  %v8131_v12 = vld [vmem:[%s10521_s0 + $0xb0] sm:$0xff]  }
 0x277   :  { %v8132_v31 = vld [vmem:[%s10521_s0 + $0xb8] sm:$0xff]  }
 0x278   :  { %10608 = vst [vmem:[#allocation52_spill] sm:$0xff] %v9151_v16  ;;  %v5616_v10 = vmul.f32 %v9151_v16, %v9151_v16 }
 0x27a   :  { %5623 = vadd.xlane.f32.xlu0 %v5616_v10  ;;  %v8134_v10 = vld [vmem:[%s10521_s0 + $0xc0] sm:$0xff]  }
 0x27c   :  { %7345 = vmatmul.mubr.bf16.gmra.mrb[48].mxu0 %v8122_v15  ;;  %v8133_v15 = vld [vmem:[%s10522_s10] sm:$0xff]  }
 0x27d   :  { %7348 = vmatprep.mubr.bf16.mxu0 %v8123_v35  ;;  %7240 = vmatprep.mubr.bf16.mxu1 %v8133_v15  ;;  %v8136_v35 = vld [vmem:[%s10521_s0 + $0xc8] sm:$0xff]  }
 0x284   :  { %7349 = vmatmul.mubr.bf16.gmra.mrb[52].mxu0 %v8124_v11  ;;  %v8139_v11 = vld [vmem:[%s10521_s0 + $0xd0] sm:$0xff]  }
 0x285   :  { %7352 = vmatprep.mubr.bf16.mxu0 %v8125_v24  ;;  %v8141_v24 = vld [vmem:[%s10521_s0 + $0xd8] sm:$0xff]  }
 0x28c   :  { %7353 = vmatmul.mubr.bf16.gmra.mrb[56].mxu0 %v8126_v29  ;;  %v8143_v29 = vld [vmem:[%s10521_s0 + $0xe0] sm:$0xff]  }
 0x28d   :  { %7356 = vmatprep.mubr.bf16.mxu0 %v8127_v30  ;;  %v8145_v30 = vld [vmem:[%s10521_s0 + $0xe8] sm:$0xff]  }
 0x294   :  { %7357 = vmatmul.mubr.bf16.gmra.mrb[60].mxu0 %v8128_v4  ;;  %v8148_v4 = vld [vmem:[%s10521_s0 + $0xf0] sm:$0xff]  }
 0x295   :  { %7360 = vmatprep.mubr.bf16.mxu0 %v8129_v14  ;;  %v8150_v14 = vld [vmem:[%s10521_s0 + $0xf8] sm:$0xff]  }
 0x29c   :  { %7361 = vmatmul.mubr.bf16.gmra.mrb[64].mxu0 %v8130_v27  ;;  %v9218_v27 = vld [vmem:[%s10519_s7 + $0x1] ss:$0 sm:$0xff] }
 0x29d   :  { %7364 = vmatprep.mubr.bf16.mxu0 %v8131_v12  ;;  %v7792_v12 = vadd.f32 %v9218_v27, %v8803_v28  ;;  %v7796_v28 = vadd.f32 %v9218_v27, %v8813_v42  ;;  %v7802_v42 = vadd.f32 %v9218_v27, %v8807_v40 }
 0x2a4   :  { %7365 = vmatmul.mubr.bf16.gmra.mrb[68].mxu0 %v8132_v31 }
 0x2a5   :  { %7368 = vmatprep.mubr.bf16.mxu0 %v8134_v10 }
 0x2ac   :  { %7369 = vmatmul.mubr.bf16.gmra.mrb[72].mxu0 %v8136_v35  ;;  %v7794_v35 = vadd.f32 %v9218_v27, %v8801_v38  ;;  %v7800_v38 = vadd.f32 %v9218_v27, %v8815_v43  ;;  %v7806_v43 = vadd.f32 %v9218_v27, %v8817_v44 }
 0x2ad   :  { %7372 = vmatprep.mubr.bf16.mxu0 %v8139_v11 }
 0x2b4   :  { %7373 = vmatmul.mubr.bf16.gmra.mrb[76].mxu0 %v8141_v24 }
 0x2b5   :  { %7376 = vmatprep.mubr.bf16.mxu0 %v8143_v29 }
 0x2bc   :  { %7377 = vmatmul.mubr.bf16.gmra.mrb[80].mxu0 %v8145_v30 }
 0x2bd   :  { %7380 = vmatprep.mubr.bf16.mxu0 %v8148_v4 }
 0x2c4   :  { %7381 = vmatmul.mubr.bf16.gmra.mrb[84].mxu0 %v8150_v14 }
 0x2ff   :  { %v7210_v31 = vpop.f32.mrb[8].mxu0 }
 0x300   :  { %v7788_v10 = vadd.f32 %v7210_v31, %v8799_v37  ;;  %v1246_v15 = vpop.f32.mrb[9].mxu0 }
 0x301   :  { %v7790_v11 = vadd.f32 %v1246_v15, %v8797_v36  ;;  %v7211_v24 = vpop.f32.mrb[10].mxu0  ;;  %v7798_v36 = vadd.f32 %v9218_v27, %v8805_v39 }
 0x302   :  { %v7789_v29 = vadd.f32 %v7788_v10, %v9218_v27  ;;  %v7793_v30 = vadd.f32 %v7792_v12, %v7211_v24  ;;  %v1249_v4 = vpop.f32.mrb[11].mxu0 }
 0x303   :  { %v7791_v14 = vadd.f32 %v7790_v11, %v9218_v27  ;;  %v7795_v6 = vadd.f32 %v7794_v35, %v1249_v4 }
 0x304   :  { %v1390_v8 = vpack.c.bf16 %v7793_v30, %v7789_v29  ;;  %v7804_v29 = vadd.f32 %v9218_v27, %v8821_v46  ;;  %v7810_v46 = vadd.f32 %v9218_v27, %v8819_v45 }
 0x305   :  { %v1389_v32 = vpack.c.bf16 %v7795_v6, %v7791_v14 }
 0x306   :  { %6686 = vst [vmem:[%s10520_s20 + $0x108] sm:$0xff] %v1390_v8  }
 0x307   :  { %6685 = vst [vmem:[%s10520_s20 + $0x100] sm:$0xff] %v1389_v32   ;;  %v7214_v37 = vpop.f32.mrb[12].mxu0  ;;  %7224 = vmatprep.subr.bf16.mxu1 %v1389_v32 }
 0x308   :  { %v7797_v6 = vadd.f32 %v7796_v28, %v7214_v37  ;;  %v1262_v12 = vpop.f32.mrb[13].mxu0  ;;  %7225 = vmatpush3.bf16.msra.mxu1 %v1389_v32  ;;  %v7808_v32 = vadd.f32 %v9218_v27, %v8823_v47  ;;  %v7814_v47 = vadd.f32 %v9218_v27, %v8825_v48 }
 0x309   :  { %v7799_v31 = vadd.f32 %v7798_v36, %v1262_v12  ;;  %v7215_v10 = vpop.f32.mrb[14].mxu0  ;;  %7226 = vmatprep.subr.bf16.mxu1 %v1390_v8  ;;  %v7816_v12 = vadd.f32 %v9218_v27, %v8831_v51 }
 0x30a   :  { %v7801_v15 = vadd.f32 %v7800_v38, %v7215_v10  ;;  %v1265_v39 = vpop.f32.mrb[15].mxu0 }
 0x30b   :  { %v7803_v35 = vadd.f32 %v7802_v42, %v1265_v39 }
 0x30c   :  { %v1392_v11 = vpack.c.bf16 %v7801_v15, %v7797_v6  ;;  %7227 = vmatpush3.bf16.msra.mxu1 %v1390_v8  ;;  %v7812_v6 = vadd.f32 %v9218_v27, %v8829_v50  ;;  %v7818_v50 = vadd.f32 %v9218_v27, %v8827_v49 }
 0x30d   :  { %v1391_v24 = vpack.c.bf16 %v7803_v35, %v7799_v31 }
 0x30e   :  { %6688 = vst [vmem:[%s10520_s20 + $0x118] sm:$0xff] %v1392_v11  }
 0x30f   :  { %6687 = vst [vmem:[%s10520_s20 + $0x110] sm:$0xff] %v1391_v24   ;;  %v7218_v40 = vpop.f32.mrb[16].mxu0  ;;  %7228 = vmatprep.subr.bf16.mxu1 %v1391_v24 }
 0x310   :  { %v7805_v8 = vadd.f32 %v7804_v29, %v7218_v40  ;;  %v1278_v30 = vpop.f32.mrb[17].mxu0  ;;  %7229 = vmatpush3.bf16.msra.mxu1 %v1391_v24  ;;  %v9273_v24 = vld [vmem:[%s10517_s5] ss:$0 sm:$0xff] }
 0x311   :  { %v7807_v4 = vadd.f32 %v7806_v43, %v1278_v30  ;;  %v7219_v14 = vpop.f32.mrb[18].mxu0  ;;  %7230 = vmatprep.subr.bf16.mxu1 %v1392_v11  ;;  %v8137_v43 = vld [vmem:[%s10553_s23] sm:$0xff]  }
 0x312   :  { %v7809_v28 = vadd.f32 %v7808_v32, %v7219_v14  ;;  %v1281_v44 = vpop.f32.mrb[19].mxu0 }
 0x313   :  { %v7811_v36 = vadd.f32 %v7810_v46, %v1281_v44  ;;  %v8138_v44 = vld [vmem:[%s10522_s10 + $0x10] sm:$0xff]  }
 0x314   :  { %v1394_v37 = vpack.c.bf16 %v7809_v28, %v7805_v8  ;;  %7231 = vmatpush3.bf16.msra.mxu1 %v1392_v11 }
 0x315   :  { %v1393_v38 = vpack.c.bf16 %v7811_v36, %v7807_v4  ;;  %v8135_v4 = vld [vmem:[%s10522_s10 + $0x8] sm:$0xff]  }
 0x316   :  { %6690 = vst [vmem:[%s10520_s20 + $0x128] sm:$0xff] %v1394_v37  }
 0x317   :  { %6689 = vst [vmem:[%s10520_s20 + $0x120] sm:$0xff] %v1393_v38   ;;  %v7222_v45 = vpop.f32.mrb[20].mxu0  ;;  %7232 = vmatprep.subr.bf16.mxu1 %v1393_v38 }
 0x318   :  { %v7813_v42 = vadd.f32 %v7812_v6, %v7222_v45  ;;  %v1294_v31 = vpop.f32.mrb[21].mxu0  ;;  %7233 = vmatpush3.bf16.msra.mxu1 %v1393_v38 }
 0x319   :  { %v7815_v10 = vadd.f32 %v7814_v47, %v1294_v31  ;;  %v7223_v15 = vpop.f32.mrb[22].mxu0  ;;  %7234 = vmatprep.subr.bf16.mxu1 %v1394_v37  ;;  %v8153_v31 = vld [vmem:[%s10553_s23 + $0x10] sm:$0xff]  }
 0x31a   :  { %v7817_v39 = vadd.f32 %v7816_v12, %v7223_v15  ;;  %v1297_v48 = vpop.f32.mrb[23].mxu0 }
 0x31b   :  { %v7819_v35 = vadd.f32 %v7818_v50, %v1297_v48 }
 0x31c   :  { %v1396_v11 = vpack.c.bf16 %v7817_v39, %v7813_v42  ;;  %7235 = vmatpush3.bf16.msra.mxu1 %v1394_v37  ;;  %v8146_v37 = vld [vmem:[%s10553_s23 + $0x8] sm:$0xff]  }
 0x31d   :  { %v1395_v51 = vpack.c.bf16 %v7819_v35, %v7815_v10  ;;  %v8140_v35 = vld [vmem:[%s10522_s10 + $0x18] sm:$0xff]  }
 0x31e   :  { %6692 = vst [vmem:[%s10520_s20 + $0x138] sm:$0xff] %v1396_v11  }
 0x31f   :  { %6691 = vst [vmem:[%s10520_s20 + $0x130] sm:$0xff] %v1395_v51   ;;  %7236 = vmatprep.subr.bf16.mxu1 %v1395_v51  ;;  %v7322_v49 = vpop.f32.mrb[24].mxu0 }
 0x320   :  { %7237 = vmatpush3.bf16.msra.mxu1 %v1395_v51  ;;  %v2632_v27 = vadd.f32 %v7322_v49, %v9273_v24  ;;  %v2623_v29 = vpop.f32.mrb[25].mxu0  ;;  %v8142_v49 = vld [vmem:[%s10522_s10 + $0x20] sm:$0xff]  }
 0x321   :  { %7238 = vmatprep.subr.bf16.mxu1 %v1396_v11  ;;  %v2624_v40 = vadd.f32 %v9273_v24, %v2623_v29  ;;  %v7323_v32 = vpop.f32.mrb[26].mxu0  ;;  %v8158_v29 = vld [vmem:[%s10553_s23 + $0x18] sm:$0xff]  }
 0x322   :  { %v2880_v8 = vmax.f32 %v2632_v27, 0.0  ;;  %v2635_v30 = vadd.f32 %v7323_v32, %v9273_v24  ;;  %v2626_v46 = vpop.f32.mrb[27].mxu0 }
 0x323   :  { %v2878_v14 = vmax.f32 %v2624_v40, 0.0  ;;  %v2627_v28 = vadd.f32 %v9273_v24, %v2626_v46 }
 0x324   :  { %7239 = vmatpush3.bf16.msra.mxu1 %v1396_v11  ;;  %v2881_v36 = vmax.f32 %v2635_v30, 0.0 }
 0x325   :  { %7384 = vmatprep.subr.bf16.mxu1 %v8137_v43  ;;  %v2879_v38 = vmax.f32 %v2627_v28, 0.0 }
 0x326   :  { %v9297_v6 = vpack.c.bf16 %v2881_v36, %v2880_v8 }
 0x327   :  { %7241 = vmatmul.mubr.bf16.vlgmr.msra.gmra.mrb[24].mxu1 %v8135_v4  ;;  %v9299_v47 = vpack.c.bf16 %v2879_v38, %v2878_v14  ;;  %v7326_v45 = vpop.f32.mrb[28].mxu0  ;;  %v8163_v4 = vld [vmem:[%s10553_s23 + $0x20] sm:$0xff]   ;;  %v8144_v38 = vld [vmem:[%s10522_s10 + $0x28] sm:$0xff]  }
 0x328   :  { %7385 = vmatpush3.bf16.msra.mxu1 %v8137_v43  ;;  %7244 = vmatprep.mubr.bf16.mxu1 %v8138_v44  ;;  %v2648_v12 = vadd.f32 %v7326_v45, %v9273_v24  ;;  %v2639_v42 = vpop.f32.mrb[29].mxu0 }
 0x329   :  { %7386 = vmatprep.subr.bf16.mxu1 %v8146_v37  ;;  %v2640_v50 = vadd.f32 %v9273_v24, %v2639_v42  ;;  %v7327_v10 = vpop.f32.mrb[30].mxu0  ;;  %v8147_v42 = vld [vmem:[%s10522_s10 + $0x30] sm:$0xff]  }
 0x32a   :  { %v2884_v15 = vmax.f32 %v2648_v12, 0.0  ;;  %v2651_v39 = vadd.f32 %v7327_v10, %v9273_v24  ;;  %v2642_v48 = vpop.f32.mrb[31].mxu0 }
 0x32b   :  { %v2882_v11 = vmax.f32 %v2640_v50, 0.0  ;;  %v2643_v51 = vadd.f32 %v9273_v24, %v2642_v48  ;;  %v8168_v50 = vld [vmem:[%s10553_s23 + $0x28] sm:$0xff]  }
 0x32c   :  { %7387 = vmatpush3.bf16.msra.mxu1 %v8146_v37  ;;  %v2885_v27 = vmax.f32 %v2651_v39, 0.0 }
 0x32d   :  { %7388 = vmatprep.subr.bf16.mxu1 %v8153_v31  ;;  %v2883_v43 = vmax.f32 %v2643_v51, 0.0  ;;  %v8173_v51 = vld [vmem:[%s10553_s23 + $0x30] sm:$0xff]  }
 0x32e   :  { %v9317_v40 = vpack.c.bf16 %v2885_v27, %v2884_v15 }
 0x32f   :  { %7245 = vmatmul.mubr.bf16.gmra.mrb[28].mxu1 %v8140_v35  ;;  %v9319_v32 = vpack.c.bf16 %v2883_v43, %v2882_v11  ;;  %v7330_v8 = vpop.f32.mrb[32].mxu0 }
 0x330   :  { %7248 = vmatprep.mubr.bf16.mxu1 %v8142_v49  ;;  %7389 = vmatpush3.bf16.msra.mxu1 %v8153_v31  ;;  %v2664_v30 = vadd.f32 %v7330_v8, %v9273_v24  ;;  %v2655_v46 = vpop.f32.mrb[33].mxu0 }
 0x331   :  { %7390 = vmatprep.subr.bf16.mxu1 %v8158_v29  ;;  %v2656_v14 = vadd.f32 %v9273_v24, %v2655_v46  ;;  %v7331_v28 = vpop.f32.mrb[34].mxu0 }
 0x332   :  { %v2888_v44 = vmax.f32 %v2664_v30, 0.0  ;;  %v2667_v36 = vadd.f32 %v7331_v28, %v9273_v24  ;;  %v2658_v37 = vpop.f32.mrb[35].mxu0  ;;  %v8149_v30 = vld [vmem:[%s10522_s10 + $0x38] sm:$0xff]  }
 0x333   :  { %v2886_v45 = vmax.f32 %v2656_v14, 0.0  ;;  %v2659_v12 = vadd.f32 %v9273_v24, %v2658_v37  ;;  %v8151_v14 = vld [vmem:[%s10522_s10 + $0x40] sm:$0xff]  }
 0x334   :  { %7391 = vmatpush3.bf16.msra.mxu1 %v8158_v29  ;;  %v2889_v31 = vmax.f32 %v2667_v36, 0.0 }
 0x335   :  { %7392 = vmatprep.subr.bf16.mxu1 %v8163_v4  ;;  %v2887_v10 = vmax.f32 %v2659_v12, 0.0 }
 0x336   :  { %v9337_v15 = vpack.c.bf16 %v2889_v31, %v2888_v44  ;;  %v8178_v44 = vld [vmem:[%s10553_s23 + $0x38] sm:$0xff]  }
 0x337   :  { %7249 = vmatmul.mubr.bf16.gmra.mrb[32].mxu1 %v8144_v38  ;;  %v9339_v39 = vpack.c.bf16 %v2887_v10, %v2886_v45  ;;  %v7334_v48 = vpop.f32.mrb[36].mxu0 }
 0x338   :  { %7252 = vmatprep.mubr.bf16.mxu1 %v8147_v42  ;;  %7393 = vmatpush3.bf16.msra.mxu1 %v8163_v4  ;;  %v2680_v35 = vadd.f32 %v7334_v48, %v9273_v24  ;;  %v2671_v11 = vpop.f32.mrb[37].mxu0 }
 0x339   :  { %7394 = vmatprep.subr.bf16.mxu1 %v8168_v50  ;;  %v2672_v49 = vadd.f32 %v9273_v24, %v2671_v11  ;;  %v7335_v27 = vpop.f32.mrb[38].mxu0  ;;  %v8152_v11 = vld [vmem:[%s10522_s10 + $0x48] sm:$0xff]  }
 0x33a   :  { %v2892_v29 = vmax.f32 %v2680_v35, 0.0  ;;  %v2683_v43 = vadd.f32 %v7335_v27, %v9273_v24  ;;  %v2674_v8 = vpop.f32.mrb[39].mxu0 }
 0x33b   :  { %v2890_v46 = vmax.f32 %v2672_v49, 0.0  ;;  %v2675_v4 = vadd.f32 %v9273_v24, %v2674_v8 }
 0x33c   :  { %7395 = vmatpush3.bf16.msra.mxu1 %v8168_v50  ;;  %v2893_v28 = vmax.f32 %v2683_v43, 0.0 }
 0x33d   :  { %7396 = vmatprep.subr.bf16.mxu1 %v8173_v51  ;;  %v2891_v36 = vmax.f32 %v2675_v4, 0.0 }
 0x33e   :  { %v9357_v37 = vpack.c.bf16 %v2893_v28, %v2892_v29 }
 0x33f   :  { %7253 = vmatmul.mubr.bf16.gmra.mrb[36].mxu1 %v8149_v30  ;;  %v9359_v38 = vpack.c.bf16 %v2891_v36, %v2890_v46  ;;  %v7338_v45 = vpop.f32.mrb[40].mxu0 }
 0x340   :  { %7256 = vmatprep.mubr.bf16.mxu1 %v8151_v14  ;;  %7397 = vmatpush3.bf16.msra.mxu1 %v8173_v51  ;;  %v2696_v12 = vadd.f32 %v7338_v45, %v9273_v24  ;;  %v2687_v42 = vpop.f32.mrb[41].mxu0  ;;  %v8154_v51 = vld [vmem:[%s10522_s10 + $0x50] sm:$0xff]  }
 0x341   :  { %7398 = vmatprep.subr.bf16.mxu1 %v8178_v44  ;;  %v2688_v31 = vadd.f32 %v9273_v24, %v2687_v42  ;;  %v7339_v50 = vpop.f32.mrb[42].mxu0 }
 0x342   :  { %v2896_v10 = vmax.f32 %v2696_v12, 0.0  ;;  %v2699_v48 = vadd.f32 %v7339_v50, %v9273_v24  ;;  %v2690_v35 = vpop.f32.mrb[43].mxu0 }
 0x343   :  { %v2894_v49 = vmax.f32 %v2688_v31, 0.0  ;;  %v2691_v27 = vadd.f32 %v9273_v24, %v2690_v35 }
 0x344   :  { %7399 = vmatpush3.bf16.msra.mxu1 %v8178_v44  ;;  %v2897_v29 = vmax.f32 %v2699_v48, 0.0  ;;  %v8155_v44 = vld [vmem:[%s10522_s10 + $0x58] sm:$0xff]  }
 0x345   :  { %v2895_v43 = vmax.f32 %v2691_v27, 0.0 }
 0x346   :  { %v9371_v8 = vpack.c.bf16 %v2897_v29, %v2896_v10  ;;  %v8156_v10 = vld [vmem:[%s10522_s10 + $0x60] sm:$0xff]  }
 0x347   :  { %7257 = vmatmul.mubr.bf16.gmra.mrb[40].mxu1 %v8152_v11  ;;  %v9373_v30 = vpack.c.bf16 %v2895_v43, %v2894_v49  ;;  %v7342_v46 = vpop.f32.mrb[44].mxu0 }
 0x348   :  { %7260 = vmatprep.mubr.bf16.mxu1 %v8154_v51  ;;  %v2712_v4 = vadd.f32 %v7342_v46, %v9273_v24  ;;  %v2703_v14 = vpop.f32.mrb[45].mxu0 }
 0x349   :  { %v2704_v28 = vadd.f32 %v9273_v24, %v2703_v14  ;;  %v7343_v36 = vpop.f32.mrb[46].mxu0 }
 0x34a   :  { %v2900_v45 = vmax.f32 %v2712_v4, 0.0  ;;  %v2715_v12 = vadd.f32 %v7343_v36, %v9273_v24  ;;  %v2706_v42 = vpop.f32.mrb[47].mxu0  ;;  %v8157_v36 = vld [vmem:[%s10522_s10 + $0x68] sm:$0xff]  }
 0x34b   :  { %v2898_v31 = vmax.f32 %v2704_v28, 0.0  ;;  %v2707_v50 = vadd.f32 %v9273_v24, %v2706_v42  ;;  %v8159_v42 = vld [vmem:[%s10522_s10 + $0x70] sm:$0xff]  }
 0x34c   :  { %v2901_v48 = vmax.f32 %v2715_v12, 0.0 }
 0x34d   :  { %v2899_v35 = vmax.f32 %v2707_v50, 0.0 }
 0x34e   :  { %v9385_v11 = vpack.c.bf16 %v2901_v48, %v2900_v45 }
 0x34f   :  { %7261 = vmatmul.mubr.bf16.gmra.mrb[44].mxu1 %v8155_v44  ;;  %v9387_v49 = vpack.c.bf16 %v2899_v35, %v2898_v31  ;;  %v7346_v27 = vpop.f32.mrb[48].mxu0 }
 0x350   :  { %7264 = vmatprep.mubr.bf16.mxu1 %v8156_v10  ;;  %v2728_v51 = vadd.f32 %v7346_v27, %v9273_v24  ;;  %v2719_v29 = vpop.f32.mrb[49].mxu0 }
 0x351   :  { %v2720_v43 = vadd.f32 %v9273_v24, %v2719_v29  ;;  %v7347_v46 = vpop.f32.mrb[50].mxu0 }
 0x352   :  { %v2904_v4 = vmax.f32 %v2728_v51, 0.0  ;;  %v2731_v14 = vadd.f32 %v7347_v46, %v9273_v24  ;;  %v2722_v28 = vpop.f32.mrb[51].mxu0 }
 0x353   :  { %v2902_v45 = vmax.f32 %v2720_v43, 0.0  ;;  %v2723_v12 = vadd.f32 %v9273_v24, %v2722_v28 }
 0x354   :  { %v2905_v44 = vmax.f32 %v2731_v14, 0.0 }
 0x355   :  { %v2903_v31 = vmax.f32 %v2723_v12, 0.0 }
 0x356   :  { %v9399_v50 = vpack.c.bf16 %v2905_v44, %v2904_v4  ;;  %v8160_v4 = vld [vmem:[%s10522_s10 + $0x78] sm:$0xff]  }
 0x357   :  { %7265 = vmatmul.mubr.bf16.gmra.mrb[48].mxu1 %v8157_v36  ;;  %v9401_v10 = vpack.c.bf16 %v2903_v31, %v2902_v45  ;;  %v7350_v48 = vpop.f32.mrb[52].mxu0  ;;  %v8161_v45 = vld [vmem:[%s10522_s10 + $0x80] sm:$0xff]  }
 0x358   :  { %7268 = vmatprep.mubr.bf16.mxu1 %v8159_v42  ;;  %v2744_v35 = vadd.f32 %v7350_v48, %v9273_v24  ;;  %v2735_v27 = vpop.f32.mrb[53].mxu0 }
 0x359   :  { %v2736_v51 = vadd.f32 %v9273_v24, %v2735_v27  ;;  %v7351_v29 = vpop.f32.mrb[54].mxu0 }
 0x35a   :  { %v2908_v43 = vmax.f32 %v2744_v35, 0.0  ;;  %v2747_v46 = vadd.f32 %v7351_v29, %v9273_v24  ;;  %v2738_v28 = vpop.f32.mrb[55].mxu0 }
 0x35b   :  { %v2906_v14 = vmax.f32 %v2736_v51, 0.0  ;;  %v2739_v36 = vadd.f32 %v9273_v24, %v2738_v28 }
 0x35c   :  { %v2909_v12 = vmax.f32 %v2747_v46, 0.0 }
 0x35d   :  { %v2907_v42 = vmax.f32 %v2739_v36, 0.0 }
 0x35e   :  { %v9413_v44 = vpack.c.bf16 %v2909_v12, %v2908_v43  ;;  %v8162_v43 = vld [vmem:[%s10522_s10 + $0x88] sm:$0xff]  }
 0x35f   :  { %7269 = vmatmul.mubr.bf16.gmra.mrb[52].mxu1 %v8160_v4  ;;  %v9415_v31 = vpack.c.bf16 %v2907_v42, %v2906_v14  ;;  %v7354_v48 = vpop.f32.mrb[56].mxu0  ;;  %v8164_v14 = vld [vmem:[%s10522_s10 + $0x90] sm:$0xff]  }
 0x360   :  { %7272 = vmatprep.mubr.bf16.mxu1 %v8161_v45  ;;  %v2760_v35 = vadd.f32 %v7354_v48, %v9273_v24  ;;  %v2751_v27 = vpop.f32.mrb[57].mxu0 }
 0x361   :  { %v2752_v51 = vadd.f32 %v9273_v24, %v2751_v27  ;;  %v7355_v29 = vpop.f32.mrb[58].mxu0 }
 0x362   :  { %v2912_v28 = vmax.f32 %v2760_v35, 0.0  ;;  %v2763_v16 = vadd.f32 %v7355_v29, %v9273_v24  ;;  %v2754_v33 = vpop.f32.mrb[59].mxu0 }
 0x363   :  { %v2910_v46 = vmax.f32 %v2752_v51, 0.0  ;;  %v2755_v4 = vadd.f32 %v9273_v24, %v2754_v33 }
 0x364   :  { %v2913_v36 = vmax.f32 %v2763_v16, 0.0  ;;  %v8165_v16 = vld [vmem:[%s10522_s10 + $0x98] sm:$0xff]  }
 0x365   :  { %v2911_v45 = vmax.f32 %v2755_v4, 0.0 }
 0x366   :  { %v9427_v12 = vpack.c.bf16 %v2913_v36, %v2912_v28 }
 0x367   :  { %7273 = vmatmul.mubr.bf16.gmra.mrb[56].mxu1 %v8162_v43  ;;  %v9429_v42 = vpack.c.bf16 %v2911_v45, %v2910_v46  ;;  %v7358_v48 = vpop.f32.mrb[60].mxu0  ;;  %v8166_v46 = vld [vmem:[%s10522_s10 + $0xa0] sm:$0xff]  }
 0x368   :  { %7276 = vmatprep.mubr.bf16.mxu1 %v8164_v14  ;;  %v2776_v35 = vadd.f32 %v7358_v48, %v9273_v24  ;;  %v2767_v27 = vpop.f32.mrb[61].mxu0 }
 0x369   :  { %v2768_v51 = vadd.f32 %v9273_v24, %v2767_v27  ;;  %v7359_v29 = vpop.f32.mrb[62].mxu0 }
 0x36a   :  { %v2916_v33 = vmax.f32 %v2776_v35, 0.0  ;;  %v2779_v34 = vadd.f32 %v7359_v29, %v9273_v24  ;;  %v2770_v25 = vpop.f32.mrb[63].mxu0 }
 0x36b   :  { %v2914_v28 = vmax.f32 %v2768_v51, 0.0  ;;  %v2771_v43 = vadd.f32 %v9273_v24, %v2770_v25 }
 0x36c   :  { %v2917_v4 = vmax.f32 %v2779_v34, 0.0  ;;  %v8167_v34 = vld [vmem:[%s10522_s10 + $0xa8] sm:$0xff]  }
 0x36d   :  { %v2915_v14 = vmax.f32 %v2771_v43, 0.0 }
 0x36e   :  { %v9441_v36 = vpack.c.bf16 %v2917_v4, %v2916_v33 }
 0x36f   :  { %7277 = vmatmul.mubr.bf16.gmra.mrb[60].mxu1 %v8165_v16  ;;  %v9443_v45 = vpack.c.bf16 %v2915_v14, %v2914_v28  ;;  %v7362_v48 = vpop.f32.mrb[64].mxu0  ;;  %v8169_v28 = vld [vmem:[%s10522_s10 + $0xb0] sm:$0xff]  }
 0x370   :  { %7280 = vmatprep.mubr.bf16.mxu1 %v8166_v46  ;;  %v2792_v35 = vadd.f32 %v7362_v48, %v9273_v24  ;;  %v2783_v27 = vpop.f32.mrb[65].mxu0 }
 0x371   :  { %v2784_v51 = vadd.f32 %v9273_v24, %v2783_v27  ;;  %v7363_v29 = vpop.f32.mrb[66].mxu0 }
 0x372   :  { %v2920_v25 = vmax.f32 %v2792_v35, 0.0  ;;  %v2795_v9 = vadd.f32 %v7363_v29, %v9273_v24  ;;  %v2786_v23 = vpop.f32.mrb[67].mxu0 }
 0x373   :  { %v2918_v33 = vmax.f32 %v2784_v51, 0.0  ;;  %v2787_v16 = vadd.f32 %v9273_v24, %v2786_v23 }
 0x374   :  { %v2921_v43 = vmax.f32 %v2795_v9, 0.0  ;;  %v8170_v9 = vld [vmem:[%s10522_s10 + $0xb8] sm:$0xff]  }
 0x375   :  { %v2919_v46 = vmax.f32 %v2787_v16, 0.0 }
 0x376   :  { %v9455_v4 = vpack.c.bf16 %v2921_v43, %v2920_v25 }
 0x377   :  { %7281 = vmatmul.mubr.bf16.gmra.mrb[64].mxu1 %v8167_v34  ;;  %v9457_v14 = vpack.c.bf16 %v2919_v46, %v2918_v33  ;;  %v7366_v48 = vpop.f32.mrb[68].mxu0  ;;  %v8171_v33 = vld [vmem:[%s10522_s10 + $0xc0] sm:$0xff]  }
 0x378   :  { %7284 = vmatprep.mubr.bf16.mxu1 %v8169_v28  ;;  %v2808_v35 = vadd.f32 %v7366_v48, %v9273_v24  ;;  %v2799_v27 = vpop.f32.mrb[69].mxu0 }
 0x379   :  { %v2800_v51 = vadd.f32 %v9273_v24, %v2799_v27  ;;  %v7367_v29 = vpop.f32.mrb[70].mxu0 }
 0x37a   :  { %v2924_v23 = vmax.f32 %v2808_v35, 0.0  ;;  %v2811_v41 = vadd.f32 %v7367_v29, %v9273_v24  ;;  %v2802_v5 = vpop.f32.mrb[71].mxu0 }
 0x37b   :  { %v2922_v25 = vmax.f32 %v2800_v51, 0.0  ;;  %v2803_v34 = vadd.f32 %v9273_v24, %v2802_v5  ;;  %v8181_v5 = vld [vmem:[%s10523_s12] sm:$0xff]  }
 0x37c   :  { %v2925_v16 = vmax.f32 %v2811_v41, 0.0  ;;  %7464 = vmatprep.subr.bf16.mxu0 %v8181_v5 }
 0x37d   :  { %v2923_v28 = vmax.f32 %v2803_v34, 0.0  ;;  %7465 = vmatpush3.bf16.msra.mxu0 %v8181_v5 }
 0x37e   :  { %v9469_v43 = vpack.c.bf16 %v2925_v16, %v2924_v23 }
 0x37f   :  { %7285 = vmatmul.mubr.bf16.gmra.mrb[68].mxu1 %v8170_v9  ;;  %v9471_v46 = vpack.c.bf16 %v2923_v28, %v2922_v25  ;;  %v7370_v48 = vpop.f32.mrb[72].mxu0  ;;  %v8172_v9 = vld [vmem:[%s10522_s10 + $0xc8] sm:$0xff]  }
 0x380   :  { %7288 = vmatprep.mubr.bf16.mxu1 %v8171_v33  ;;  %v2824_v35 = vadd.f32 %v7370_v48, %v9273_v24  ;;  %v2815_v27 = vpop.f32.mrb[73].mxu0  ;;  %v8174_v33 = vld [vmem:[%s10522_s10 + $0xd0] sm:$0xff]  }
 0x381   :  { %v2816_v51 = vadd.f32 %v9273_v24, %v2815_v27  ;;  %v7371_v29 = vpop.f32.mrb[74].mxu0 }
 0x382   :  { %v2928_v26 = vmax.f32 %v2824_v35, 0.0  ;;  %v2827_v41 = vadd.f32 %v7371_v29, %v9273_v24  ;;  %v2818_v23 = vpop.f32.mrb[75].mxu0 }
 0x383   :  { %v2926_v25 = vmax.f32 %v2816_v51, 0.0  ;;  %v2819_v34 = vadd.f32 %v9273_v24, %v2818_v23 }
 0x384   :  { %v2929_v16 = vmax.f32 %v2827_v41, 0.0 }
 0x385   :  { %v2927_v28 = vmax.f32 %v2819_v34, 0.0 }
 0x386   :  { %v9486_v48 = vpack.c.bf16 %v2929_v16, %v2928_v26  ;;  %v8175_v26 = vld [vmem:[%s10522_s10 + $0xd8] sm:$0xff]  }
 0x387   :  { %7289 = vmatmul.mubr.bf16.gmra.mrb[72].mxu1 %v8172_v9  ;;  %v9488_v35 = vpack.c.bf16 %v2927_v28, %v2926_v25  ;;  %v7374_v27 = vpop.f32.mrb[76].mxu0  ;;  %v8176_v25 = vld [vmem:[%s10522_s10 + $0xe0] sm:$0xff]  }
 0x388   :  { %7292 = vmatprep.mubr.bf16.mxu1 %v8174_v33  ;;  %v2840_v29 = vadd.f32 %v7374_v27, %v9273_v24  ;;  %v2831_v20 = vpop.f32.mrb[77].mxu0  ;;  %v8182_v27 = vld [vmem:[%s10523_s12 + $0x8] sm:$0xff]  }
 0x389   :  { %v2832_v51 = vadd.f32 %v9273_v24, %v2831_v20  ;;  %v7375_v23 = vpop.f32.mrb[78].mxu0  ;;  %7466 = vmatprep.subr.bf16.mxu0 %v8182_v27 }
 0x38a   :  { %v2932_v5 = vmax.f32 %v2840_v29, 0.0  ;;  %v2843_v22 = vadd.f32 %v7375_v23, %v9273_v24  ;;  %v2834_v19 = vpop.f32.mrb[79].mxu0  ;;  %7467 = vmatpush3.bf16.msra.mxu0 %v8182_v27 }
 0x38b   :  { %v2930_v41 = vmax.f32 %v2832_v51, 0.0  ;;  %v2835_v9 = vadd.f32 %v9273_v24, %v2834_v19 }
 0x38c   :  { %v2933_v34 = vmax.f32 %v2843_v22, 0.0 }
 0x38d   :  { %v2931_v33 = vmax.f32 %v2835_v9, 0.0 }
 0x38e   :  { %v9500_v16 = vpack.c.bf16 %v2933_v34, %v2932_v5 }
 0x38f   :  { %7293 = vmatmul.mubr.bf16.gmra.mrb[76].mxu1 %v8175_v26  ;;  %v9502_v20 = vpack.c.bf16 %v2931_v33, %v2930_v41  ;;  %v7378_v28 = vpop.f32.mrb[80].mxu0  ;;  %v8177_v26 = vld [vmem:[%s10522_s10 + $0xe8] sm:$0xff]  }
 0x390   :  { %7296 = vmatprep.mubr.bf16.mxu1 %v8176_v25  ;;  %v2856_v29 = vadd.f32 %v7378_v28, %v9273_v24  ;;  %v2847_v19 = vpop.f32.mrb[81].mxu0  ;;  %v8179_v25 = vld [vmem:[%s10522_s10 + $0xf0] sm:$0xff]  }
 0x391   :  { %v2848_v51 = vadd.f32 %v9273_v24, %v2847_v19  ;;  %v7379_v23 = vpop.f32.mrb[82].mxu0 }
 0x392   :  { %v2936_v22 = vmax.f32 %v2856_v29, 0.0  ;;  %v2859_v5 = vadd.f32 %v7379_v23, %v9273_v24  ;;  %v2850_v9 = vpop.f32.mrb[83].mxu0 }
 0x393   :  { %v2934_v41 = vmax.f32 %v2848_v51, 0.0  ;;  %v2851_v34 = vadd.f32 %v9273_v24, %v2850_v9 }
 0x394   :  { %v2937_v33 = vmax.f32 %v2859_v5, 0.0 }
 0x395   :  { %v2935_v28 = vmax.f32 %v2851_v34, 0.0 }
 0x396   :  { %v9517_v19 = vpack.c.bf16 %v2937_v33, %v2936_v22  ;;  %v8180_v22 = vld [vmem:[%s10522_s10 + $0xf8] sm:$0xff]  }
 0x397   :  { %7297 = vmatmul.mubr.bf16.gmra.mrb[80].mxu1 %v8177_v26  ;;  %v9519_v29 = vpack.c.bf16 %v2935_v28, %v2934_v41  ;;  %v7382_v23 = vpop.f32.mrb[84].mxu0 }
 0x398   :  { %7300 = vmatprep.mubr.bf16.mxu1 %v8179_v25  ;;  %v2872_v27 = vadd.f32 %v7382_v23, %v9273_v24  ;;  %v2863_v21 = vpop.f32.mrb[85].mxu0 }
 0x399   :  { %v2864_v51 = vadd.f32 %v9273_v24, %v2863_v21  ;;  %v7383_v13 = vpop.f32.mrb[86].mxu0  ;;  %v8183_v21 = vld [vmem:[%s10523_s12 + $0x10] sm:$0xff]  }
 0x39a   :  { %v2940_v9 = vmax.f32 %v2872_v27, 0.0  ;;  %v2875_v18 = vadd.f32 %v7383_v13, %v9273_v24  ;;  %v2866_v7 = vpop.f32.mrb[87].mxu0  ;;  %v8184_v13 = vld [vmem:[%s10523_s12 + $0x18] sm:$0xff]   ;;  %7468 = vmatprep.subr.bf16.mxu0 %v8183_v21 }
 0x39b   :  { %v2938_v5 = vmax.f32 %v2864_v51, 0.0  ;;  %v2867_v26 = vadd.f32 %v9273_v24, %v2866_v7  ;;  %7469 = vmatpush3.bf16.msra.mxu0 %v8183_v21  ;;  %v8185_v7 = vld [vmem:[%s10523_s12 + $0x20] sm:$0xff]   ;;  %v8187_v24 = vld [vmem:[%s10523_s12 + $0x30] sm:$0xff]  }
 0x39c   :  { %v2941_v41 = vmax.f32 %v2875_v18, 0.0  ;;  %7470 = vmatprep.subr.bf16.mxu0 %v8184_v13  ;;  %v8186_v18 = vld [vmem:[%s10523_s12 + $0x28] sm:$0xff]  }
 0x39d   :  { %v2939_v34 = vmax.f32 %v2867_v26, 0.0 }
 0x39e   :  { %v2973_v25 = vpack.c.bf16 %v2941_v41, %v2940_v9 }
 0x39f   :  { %7301 = vmatmul.mubr.bf16.gmra.mrb[84].mxu1 %v8180_v22  ;;  %v2972_v33 = vpack.c.bf16 %v2939_v34, %v2938_v5  ;;  %7471 = vmatpush3.bf16.msra.mxu0 %v8184_v13  ;;  %v8193_v22 = vld [vmem:[%s10523_s12 + $0x60] sm:$0xff]  }
 0x3a0   :  { %7400 = vmatprep.mubr.bf16.mxu1 %v9299_v47  ;;  %7472 = vmatprep.subr.bf16.mxu0 %v8185_v7  ;;  %v8189_v47 = vld [vmem:[%s10523_s12 + $0x40] sm:$0xff]  }
 0x3a3   :  { %7473 = vmatpush3.bf16.msra.mxu0 %v8185_v7 }
 0x3a4   :  { %7474 = vmatprep.subr.bf16.mxu0 %v8186_v18 }
 0x3a7   :  { %7401 = vmatmul.mubr.bf16.vlgmr.msra.gmra.mrb[24].mxu1 %v9297_v6  ;;  %7475 = vmatpush3.bf16.msra.mxu0 %v8186_v18  ;;  %v8188_v6 = vld [vmem:[%s10523_s12 + $0x38] sm:$0xff]  }
 0x3a8   :  { %7404 = vmatprep.mubr.bf16.mxu1 %v9319_v32  ;;  %7476 = vmatprep.subr.bf16.mxu0 %v8187_v24 }
 0x3ab   :  { %7477 = vmatpush3.bf16.msra.mxu0 %v8187_v24 }
 0x3ac   :  { %7478 = vmatprep.subr.bf16.mxu0 %v8188_v6 }
 0x3af   :  { %7405 = vmatmul.mubr.bf16.gmra.mrb[28].mxu1 %v9317_v40  ;;  %7479 = vmatpush3.bf16.msra.mxu0 %v8188_v6  ;;  %v9582_v40 = vld [vmem:[%s10519_s7] ss:$0 sm:$0xff]  ;;  %v8195_v6 = vld [vmem:[%s10523_s12 + $0x70] sm:$0xff]  }
 0x3b0   :  { %7408 = vmatprep.mubr.bf16.mxu1 %v9339_v39  ;;  %7624 = vmatprep.subr.bf16.mxu0 %v8189_v47  ;;  %v7842_v23 = vadd.f32 %v9582_v40, %v8851_v61  ;;  %v8194_v61 = vld [vmem:[%s10523_s12 + $0x68] sm:$0xff]   ;;  %v7846_v34 = vadd.f32 %v9582_v40, %v8857_v0  ;;  %v7850_v13 = vadd.f32 %v9582_v40, %v8859_v1  ;;  %v8196_v1 = vld [vmem:[%s10523_s12 + $0x78] sm:$0xff]  }
 0x3b7   :  { %7409 = vmatmul.mubr.bf16.gmra.mrb[32].mxu1 %v9337_v15  ;;  %v7824_v15 = vadd.f32 %v9582_v40, %v8839_v55  ;;  %v7828_v55 = vadd.f32 %v9582_v40, %v8845_v58  ;;  %v7832_v58 = vadd.f32 %v9582_v40, %v8847_v59  ;;  %v7836_v59 = vadd.f32 %v9582_v40, %v8853_v62 }
 0x3b8   :  { %7412 = vmatprep.mubr.bf16.mxu1 %v9359_v38  ;;  %v7826_v38 = vadd.f32 %v9582_v40, %v8835_v53  ;;  %v7830_v53 = vadd.f32 %v9582_v40, %v8841_v56  ;;  %v7840_v62 = vadd.f32 %v9582_v40, %v8855_v63  ;;  %v7844_v63 = vadd.f32 %v9582_v40, %v8861_v2 }
 0x3b9   :  { %v7848_v2 = vadd.f32 %v9582_v40, %v8863_v3  ;;  %v7852_v3 = vadd.f32 %v9582_v40, %v8889_v17 }
 0x3bf   :  { %7413 = vmatmul.mubr.bf16.gmra.mrb[36].mxu1 %v9357_v37 }
 0x3c0   :  { %7416 = vmatprep.mubr.bf16.mxu1 %v9373_v30 }
 0x3c7   :  { %7417 = vmatmul.mubr.bf16.gmra.mrb[40].mxu1 %v9371_v8 }
 0x3c8   :  { %7420 = vmatprep.mubr.bf16.mxu1 %v9387_v49 }
 0x3cf   :  { %7421 = vmatmul.mubr.bf16.gmra.mrb[44].mxu1 %v9385_v11 }
 0x3d0   :  { %7424 = vmatprep.mubr.bf16.mxu1 %v9401_v10 }
 0x3d7   :  { %7425 = vmatmul.mubr.bf16.gmra.mrb[48].mxu1 %v9399_v50 }
 0x3d8   :  { %7428 = vmatprep.mubr.bf16.mxu1 %v9415_v31 }
 0x3df   :  { %7429 = vmatmul.mubr.bf16.gmra.mrb[52].mxu1 %v9413_v44 }
 0x3e0   :  { %7432 = vmatprep.mubr.bf16.mxu1 %v9429_v42 }
 0x3e7   :  { %7433 = vmatmul.mubr.bf16.gmra.mrb[56].mxu1 %v9427_v12 }
 0x3e8   :  { %7436 = vmatprep.mubr.bf16.mxu1 %v9443_v45  ;;  %v7834_v45 = vadd.f32 %v9582_v40, %v8843_v57  ;;  %v8192_v57 = vld [vmem:[%s10523_s12 + $0x58] sm:$0xff]  }
 0x3ef   :  { %7437 = vmatmul.mubr.bf16.gmra.mrb[60].mxu1 %v9441_v36 }
 0x3f0   :  { %7440 = vmatprep.mubr.bf16.mxu1 %v9457_v14 }
 0x3f7   :  { %7441 = vmatmul.mubr.bf16.gmra.mrb[64].mxu1 %v9455_v4 }
 0x3f8   :  { %7444 = vmatprep.mubr.bf16.mxu1 %v9471_v46  ;;  %v8191_v46 = vld [vmem:[%s10523_s12 + $0x50] sm:$0xff]  }
 0x3ff   :  { %7445 = vmatmul.mubr.bf16.gmra.mrb[68].mxu1 %v9469_v43 }
 0x400   :  { %7448 = vmatprep.mubr.bf16.mxu1 %v9488_v35 }
 0x407   :  { %7449 = vmatmul.mubr.bf16.gmra.mrb[72].mxu1 %v9486_v48 }
 0x408   :  { %7452 = vmatprep.mubr.bf16.mxu1 %v9502_v20  ;;  %v7838_v20 = vadd.f32 %v9582_v40, %v8849_v60 }
 0x40f   :  { %7453 = vmatmul.mubr.bf16.gmra.mrb[76].mxu1 %v9500_v16 }
 0x410   :  { %7456 = vmatprep.mubr.bf16.mxu1 %v9519_v29 }
 0x417   :  { %7457 = vmatmul.mubr.bf16.gmra.mrb[80].mxu1 %v9517_v19 }
 0x418   :  { %7460 = vmatprep.mubr.bf16.mxu1 %v2972_v33 }
 0x41f   :  { %7461 = vmatmul.mubr.bf16.gmra.mrb[84].mxu1 %v2973_v25 }
 0x47a   :  { %v7402_v32 = vpop.f32.mrb[24].mxu1 }
 0x47b   :  { %v7820_v39 = vadd.f32 %v7402_v32, %v8837_v54  ;;  %v3079_v37 = vpop.f32.mrb[25].mxu1 }
 0x47c   :  { %v7822_v8 = vadd.f32 %v3079_v37, %v8833_v52  ;;  %v7403_v30 = vpop.f32.mrb[26].mxu1  ;;  %v8190_v52 = vld [vmem:[%s10523_s12 + $0x48] sm:$0xff]  }
 0x47d   :  { %v7821_v11 = vadd.f32 %v7820_v39, %v9582_v40  ;;  %v7825_v49 = vadd.f32 %v7824_v15, %v7403_v30  ;;  %v3082_v50 = vpop.f32.mrb[27].mxu1  ;;  %v10609_v39 = vld [vmem:[#allocation2_spill] sm:$0xff] }
 0x47e   :  { %v7823_v10 = vadd.f32 %v7822_v8, %v9582_v40  ;;  %v7827_v44 = vadd.f32 %v7826_v38, %v3082_v50  ;;  %v7854_v37 = vadd.f32 %v9582_v40, %v10609_v39  ;;  %v10610_v8 = vld [vmem:[#allocation4_spill] sm:$0xff] }
 0x47f   :  { %v3399_v31 = vpack.c.bf16 %v7825_v49, %v7821_v11  ;;  %v7856_v17 = vadd.f32 %v9582_v40, %v10610_v8  ;;  %v10611_v49 = vld [vmem:[#allocation3_spill] sm:$0xff]  ;;  %v10622_v39 = vld [vmem:[#allocation16_spill] sm:$0xff] }
 0x480   :  { %v3398_v12 = vpack.c.bf16 %v7827_v44, %v7823_v10  ;;  %v7858_v50 = vadd.f32 %v9582_v40, %v10611_v49 }
 0x481   :  { %6654 = vst [vmem:[%s10520_s20 + $0x8] sm:$0xff] %v3399_v31  }
 0x482   :  { %6438 = vst [vmem:[%s10520_s20] sm:$0xff] %v3398_v12   ;;  %v7406_v54 = vpop.f32.mrb[28].mxu1  ;;  %7480 = vmatprep.mubr.bf16.mxu0 %v3398_v12 }
 0x483   :  { %v7829_v42 = vadd.f32 %v7828_v55, %v7406_v54  ;;  %v3095_v36 = vpop.f32.mrb[29].mxu1  ;;  %7481 = vmatmul.mubr.bf16.vlgmr.msra.gmra.mrb[88].mxu0 %v3399_v31  ;;  %v8197_v31 = vld [vmem:[%s10524_s14] sm:$0xff]  }
 0x484   :  { %v7831_v4 = vadd.f32 %v7830_v53, %v3095_v36  ;;  %v7407_v14 = vpop.f32.mrb[30].mxu1  ;;  %7625 = vmatpush3.bf16.msra.mxu0 %v8189_v47  ;;  %7544 = vmatprep.subr.bf16.mxu1 %v8197_v31  ;;  %v10612_v36 = vld [vmem:[#allocation7_spill] sm:$0xff] }
 0x485   :  { %v7833_v43 = vadd.f32 %v7832_v58, %v7407_v14  ;;  %v3098_v56 = vpop.f32.mrb[31].mxu1  ;;  %7626 = vmatprep.subr.bf16.mxu0 %v8190_v52  ;;  %7545 = vmatpush3.bf16.msra.mxu1 %v8197_v31 }
 0x486   :  { %v7835_v48 = vadd.f32 %v7834_v45, %v3098_v56  ;;  %v7860_v45 = vadd.f32 %v9582_v40, %v10612_v36  ;;  %v10614_v56 = vld [vmem:[#allocation8_spill] sm:$0xff] }
 0x487   :  { %v3401_v35 = vpack.c.bf16 %v7833_v43, %v7829_v42  ;;  %v8199_v42 = vld [vmem:[%s10524_s14 + $0x10] sm:$0xff]  }
 0x488   :  { %v3400_v16 = vpack.c.bf16 %v7835_v48, %v7831_v4  ;;  %7627 = vmatpush3.bf16.msra.mxu0 %v8190_v52  ;;  %v8198_v52 = vld [vmem:[%s10524_s14 + $0x8] sm:$0xff]   ;;  %v10613_v4 = vld [vmem:[#allocation5_spill] sm:$0xff] }
 0x489   :  { %6656 = vst [vmem:[%s10520_s20 + $0x18] sm:$0xff] %v3401_v35   ;;  %7628 = vmatprep.subr.bf16.mxu0 %v8191_v46  ;;  %7546 = vmatprep.subr.bf16.mxu1 %v8198_v52  ;;  %v7862_v14 = vadd.f32 %v9582_v40, %v10613_v4 }
 0x48a   :  { %6655 = vst [vmem:[%s10520_s20 + $0x10] sm:$0xff] %v3400_v16   ;;  %v7410_v28 = vpop.f32.mrb[32].mxu1  ;;  %7484 = vmatprep.mubr.bf16.mxu0 %v3400_v16  ;;  %7547 = vmatpush3.bf16.msra.mxu1 %v8198_v52  ;;  %v10615_v16 = vld [vmem:[#allocation6_spill] sm:$0xff] }
 0x48b   :  { %v7837_v19 = vadd.f32 %v7836_v59, %v7410_v28  ;;  %v3111_v29 = vpop.f32.mrb[33].mxu1  ;;  %7485 = vmatmul.mubr.bf16.gmra.mrb[92].mxu0 %v3401_v35  ;;  %v7866_v59 = vadd.f32 %v9582_v40, %v10615_v16  ;;  %7548 = vmatprep.subr.bf16.mxu1 %v8199_v42  ;;  %v8200_v28 = vld [vmem:[%s10524_s14 + $0x18] sm:$0xff]  }
 0x48c   :  { %v7839_v27 = vadd.f32 %v7838_v20, %v3111_v29  ;;  %v7411_v51 = vpop.f32.mrb[34].mxu1  ;;  %7629 = vmatpush3.bf16.msra.mxu0 %v8191_v46  ;;  %v7864_v46 = vadd.f32 %v9582_v40, %v10614_v56 }
 0x48d   :  { %v7841_v9 = vadd.f32 %v7840_v62, %v7411_v51  ;;  %v3114_v60 = vpop.f32.mrb[35].mxu1  ;;  %7630 = vmatprep.subr.bf16.mxu0 %v8192_v57 }
 0x48e   :  { %v7843_v5 = vadd.f32 %v7842_v23, %v3114_v60  ;;  %v8201_v23 = vld [vmem:[%s10524_s14 + $0x20] sm:$0xff]   ;;  %7549 = vmatpush3.bf16.msra.mxu1 %v8199_v42  ;;  %v10626_v42 = vld [vmem:[#allocation20_spill] sm:$0xff] }
 0x48f   :  { %v3403_v26 = vpack.c.bf16 %v7841_v9, %v7837_v19  ;;  %7550 = vmatprep.subr.bf16.mxu1 %v8200_v28  ;;  %v10616_v9 = vld [vmem:[#allocation11_spill] sm:$0xff]  ;;  %v7888_v36 = vadd.f32 %v9582_v40, %v10626_v42 }
 0x490   :  { %v3402_v41 = vpack.c.bf16 %v7843_v5, %v7839_v27  ;;  %7631 = vmatpush3.bf16.msra.mxu0 %v8192_v57  ;;  %v7868_v60 = vadd.f32 %v9582_v40, %v10616_v9 }
 0x491   :  { %6658 = vst [vmem:[%s10520_s20 + $0x28] sm:$0xff] %v3403_v26   ;;  %7632 = vmatprep.subr.bf16.mxu0 %v8193_v22 }
 0x492   :  { %6657 = vst [vmem:[%s10520_s20 + $0x20] sm:$0xff] %v3402_v41   ;;  %v7414_v25 = vpop.f32.mrb[36].mxu1  ;;  %7488 = vmatprep.mubr.bf16.mxu0 %v3402_v41  ;;  %v10618_v41 = vld [vmem:[#allocation12_spill] sm:$0xff]  ;;  %7551 = vmatpush3.bf16.msra.mxu1 %v8200_v28 }
 0x493   :  { %v7845_v33 = vadd.f32 %v7844_v63, %v7414_v25  ;;  %v3127_v21 = vpop.f32.mrb[37].mxu1  ;;  %7489 = vmatmul.mubr.bf16.gmra.mrb[96].mxu0 %v3403_v26  ;;  %v7872_v63 = vadd.f32 %v9582_v40, %v10618_v41  ;;  %v10619_v25 = vld [vmem:[#allocation10_spill] sm:$0xff]  ;;  %7552 = vmatprep.subr.bf16.mxu1 %v8201_v23 }
 0x494   :  { %v7847_v7 = vadd.f32 %v7846_v34, %v3127_v21  ;;  %v7415_v18 = vpop.f32.mrb[38].mxu1  ;;  %7633 = vmatpush3.bf16.msra.mxu0 %v8193_v22  ;;  %v10617_v22 = vld [vmem:[#allocation9_spill] sm:$0xff] }
 0x495   :  { %v7849_v24 = vadd.f32 %v7848_v2, %v7415_v18  ;;  %v3130_v0 = vpop.f32.mrb[39].mxu1  ;;  %7634 = vmatprep.subr.bf16.mxu0 %v8194_v61  ;;  %v7870_v5 = vadd.f32 %v9582_v40, %v10617_v22  ;;  %v7874_v2 = vadd.f32 %v9582_v40, %v10619_v25 }
 0x496   :  { %v7851_v47 = vadd.f32 %v7850_v13, %v3130_v0  ;;  %v8202_v13 = vld [vmem:[%s10524_s14 + $0x28] sm:$0xff]   ;;  %7553 = vmatpush3.bf16.msra.mxu1 %v8201_v23  ;;  %v10630_v23 = vld [vmem:[#allocation24_spill] sm:$0xff] }
 0x497   :  { %v3405_v32 = vpack.c.bf16 %v7849_v24, %v7845_v33  ;;  %7554 = vmatprep.subr.bf16.mxu1 %v8202_v13 }
 0x498   :  { %v3404_v15 = vpack.c.bf16 %v7851_v47, %v7847_v7  ;;  %7635 = vmatpush3.bf16.msra.mxu0 %v8194_v61  ;;  %v10620_v47 = vld [vmem:[#allocation15_spill] sm:$0xff] }
 0x499   :  { %6660 = vst [vmem:[%s10520_s20 + $0x38] sm:$0xff] %v3405_v32   ;;  %7636 = vmatprep.subr.bf16.mxu0 %v8195_v6 }
 0x49a   :  { %6659 = vst [vmem:[%s10520_s20 + $0x30] sm:$0xff] %v3404_v15   ;;  %v7418_v38 = vpop.f32.mrb[40].mxu1  ;;  %7492 = vmatprep.mubr.bf16.mxu0 %v3404_v15  ;;  %v10621_v15 = vld [vmem:[#allocation13_spill] sm:$0xff]  ;;  %7555 = vmatpush3.bf16.msra.mxu1 %v8202_v13 }
 0x49b   :  { %v7853_v30 = vadd.f32 %v7852_v3, %v7418_v38  ;;  %v3143_v11 = vpop.f32.mrb[41].mxu1  ;;  %7493 = vmatmul.mubr.bf16.gmra.mrb[100].mxu0 %v3405_v32  ;;  %v7876_v32 = vadd.f32 %v9582_v40, %v10620_v47  ;;  %v7878_v3 = vadd.f32 %v9582_v40, %v10621_v15  ;;  %v10635_v47 = vld [vmem:[#allocation26_spill] sm:$0xff] }
 0x49c   :  { %v7855_v10 = vadd.f32 %v7854_v37, %v3143_v11  ;;  %v7419_v44 = vpop.f32.mrb[42].mxu1  ;;  %7637 = vmatpush3.bf16.msra.mxu0 %v8195_v6  ;;  %v7880_v37 = vadd.f32 %v9582_v40, %v10622_v39 }
 0x49d   :  { %v7857_v12 = vadd.f32 %v7856_v17, %v7419_v44  ;;  %v3146_v55 = vpop.f32.mrb[43].mxu1  ;;  %7638 = vmatprep.subr.bf16.mxu0 %v8196_v1  ;;  %v10623_v17 = vld [vmem:[#allocation14_spill] sm:$0xff] }
 0x49e   :  { %v7859_v53 = vadd.f32 %v7858_v50, %v3146_v55  ;;  %v10624_v55 = vld [vmem:[#allocation19_spill] sm:$0xff] }
 0x49f   :  { %v3407_v54 = vpack.c.bf16 %v7857_v12, %v7853_v30  ;;  %v7882_v30 = vadd.f32 %v9582_v40, %v10623_v17  ;;  %v7884_v52 = vadd.f32 %v9582_v40, %v10624_v55  ;;  %v10636_v17 = vld [vmem:[#allocation31_spill] sm:$0xff]  ;;  %v10639_v55 = vld [vmem:[#allocation30_spill] sm:$0xff] }
 0x4a0   :  { %v3406_v58 = vpack.c.bf16 %v7859_v53, %v7855_v10  ;;  %7639 = vmatpush3.bf16.msra.mxu0 %v8196_v1  ;;  %v10625_v53 = vld [vmem:[#allocation17_spill] sm:$0xff] }
 0x4a1   :  { %6662 = vst [vmem:[%s10520_s20 + $0x48] sm:$0xff] %v3407_v54  }
 0x4a2   :  { %6661 = vst [vmem:[%s10520_s20 + $0x40] sm:$0xff] %v3406_v58   ;;  %v7422_v43 = vpop.f32.mrb[44].mxu1  ;;  %7496 = vmatprep.mubr.bf16.mxu0 %v3406_v58 }
 0x4a3   :  { %v7861_v48 = vadd.f32 %v7860_v45, %v7422_v43  ;;  %v3159_v35 = vpop.f32.mrb[45].mxu1  ;;  %7497 = vmatmul.mubr.bf16.gmra.mrb[104].mxu0 %v3407_v54  ;;  %v7886_v54 = vadd.f32 %v9582_v40, %v10625_v53 }
 0x4a4   :  { %v7863_v57 = vadd.f32 %v7862_v14, %v3159_v35  ;;  %v7423_v20 = vpop.f32.mrb[46].mxu1  ;;  %v10627_v14 = vld [vmem:[#allocation18_spill] sm:$0xff] }
 0x4a5   :  { %v7865_v62 = vadd.f32 %v7864_v46, %v7423_v20  ;;  %v3162_v19 = vpop.f32.mrb[47].mxu1  ;;  %v7890_v43 = vadd.f32 %v9582_v40, %v10627_v14  ;;  %v10628_v20 = vld [vmem:[#allocation23_spill] sm:$0xff] }
 0x4a6   :  { %v7867_v29 = vadd.f32 %v7866_v59, %v3162_v19  ;;  %v7892_v28 = vadd.f32 %v9582_v40, %v10628_v20 }
 0x4a7   :  { %v3409_v27 = vpack.c.bf16 %v7865_v62, %v7861_v48  ;;  %v10629_v62 = vld [vmem:[#allocation21_spill] sm:$0xff] }
 0x4a8   :  { %v3408_v51 = vpack.c.bf16 %v7867_v29, %v7863_v57  ;;  %v7894_v19 = vadd.f32 %v9582_v40, %v10629_v62  ;;  %v10643_v62 = vld [vmem:[#allocation34_spill] sm:$0xff] }
 0x4a9   :  { %6664 = vst [vmem:[%s10520_s20 + $0x58] sm:$0xff] %v3409_v27  }
 0x4aa   :  { %6663 = vst [vmem:[%s10520_s20 + $0x50] sm:$0xff] %v3408_v51   ;;  %v7426_v26 = vpop.f32.mrb[48].mxu1  ;;  %7500 = vmatprep.mubr.bf16.mxu0 %v3408_v51 }
 0x4ab   :  { %v7869_v61 = vadd.f32 %v7868_v60, %v7426_v26  ;;  %v3175_v34 = vpop.f32.mrb[49].mxu1  ;;  %7501 = vmatmul.mubr.bf16.gmra.mrb[108].mxu0 %v3409_v27  ;;  %v7896_v27 = vadd.f32 %v9582_v40, %v10630_v23  ;;  %v10631_v60 = vld [vmem:[#allocation22_spill] sm:$0xff] }
 0x4ac   :  { %v7871_v33 = vadd.f32 %v7870_v5, %v3175_v34  ;;  %v7427_v21 = vpop.f32.mrb[50].mxu1  ;;  %v7898_v22 = vadd.f32 %v9582_v40, %v10631_v60 }
 0x4ad   :  { %v7873_v7 = vadd.f32 %v7872_v63, %v7427_v21  ;;  %v3178_v18 = vpop.f32.mrb[51].mxu1  ;;  %v10633_v21 = vld [vmem:[#allocation25_spill] sm:$0xff] }
 0x4ae   :  { %v7875_v24 = vadd.f32 %v7874_v2, %v3178_v18  ;;  %v10632_v2 = vld [vmem:[#allocation27_spill] sm:$0xff]  ;;  %v7902_v13 = vadd.f32 %v9582_v40, %v10633_v21  ;;  %v10634_v18 = vld [vmem:[#allocation28_spill] sm:$0xff]  ;;  %v10647_v21 = vld [vmem:[#allocation38_spill] sm:$0xff] }
 0x4af   :  { %v3411_v0 = vpack.c.bf16 %v7873_v7, %v7869_v61 }
 0x4b0   :  { %v3410_v6 = vpack.c.bf16 %v7875_v24, %v7871_v33  ;;  %v7900_v33 = vadd.f32 %v9582_v40, %v10632_v2  ;;  %v7904_v24 = vadd.f32 %v9582_v40, %v10634_v18 }
 0x4b1   :  { %6666 = vst [vmem:[%s10520_s20 + $0x68] sm:$0xff] %v3411_v0  }
 0x4b2   :  { %6665 = vst [vmem:[%s10520_s20 + $0x60] sm:$0xff] %v3410_v6   ;;  %v7430_v1 = vpop.f32.mrb[52].mxu1  ;;  %7504 = vmatprep.mubr.bf16.mxu0 %v3410_v6 }
 0x4b3   :  { %v7877_v38 = vadd.f32 %v7876_v32, %v7430_v1  ;;  %v3191_v8 = vpop.f32.mrb[53].mxu1  ;;  %7505 = vmatmul.mubr.bf16.gmra.mrb[112].mxu0 %v3411_v0  ;;  %v7906_v32 = vadd.f32 %v9582_v40, %v10635_v47 }
 0x4b4   :  { %v7879_v11 = vadd.f32 %v7878_v3, %v3191_v8  ;;  %v7431_v49 = vpop.f32.mrb[54].mxu1 }
 0x4b5   :  { %v7881_v50 = vadd.f32 %v7880_v37, %v7431_v49  ;;  %v3194_v10 = vpop.f32.mrb[55].mxu1 }
 0x4b6   :  { %v7883_v44 = vadd.f32 %v7882_v30, %v3194_v10  ;;  %v7908_v30 = vadd.f32 %v9582_v40, %v10636_v17  ;;  %v10638_v10 = vld [vmem:[#allocation32_spill] sm:$0xff] }
 0x4b7   :  { %v3413_v31 = vpack.c.bf16 %v7881_v50, %v7877_v38 }
 0x4b8   :  { %v3412_v12 = vpack.c.bf16 %v7883_v44, %v7879_v11  ;;  %v10637_v11 = vld [vmem:[#allocation29_spill] sm:$0xff]  ;;  %v7912_v44 = vadd.f32 %v9582_v40, %v10638_v10 }
 0x4b9   :  { %6668 = vst [vmem:[%s10520_s20 + $0x78] sm:$0xff] %v3413_v31   ;;  %v7910_v49 = vadd.f32 %v9582_v40, %v10637_v11  ;;  %v10651_v11 = vld [vmem:[#allocation42_spill] sm:$0xff] }
 0x4ba   :  { %6667 = vst [vmem:[%s10520_s20 + $0x70] sm:$0xff] %v3412_v12   ;;  %v7434_v58 = vpop.f32.mrb[56].mxu1  ;;  %7508 = vmatprep.mubr.bf16.mxu0 %v3412_v12 }
 0x4bb   :  { %v7885_v45 = vadd.f32 %v7884_v52, %v7434_v58  ;;  %v3207_v4 = vpop.f32.mrb[57].mxu1  ;;  %7509 = vmatmul.mubr.bf16.gmra.mrb[116].mxu0 %v3413_v31  ;;  %v7914_v52 = vadd.f32 %v9582_v40, %v10639_v55 }
 0x4bc   :  { %v7887_v56 = vadd.f32 %v7886_v54, %v3207_v4  ;;  %v7435_v46 = vpop.f32.mrb[58].mxu1  ;;  %v8203_v4 = vld [vmem:[%s10524_s14 + $0x30] sm:$0xff]  }
 0x4bd   :  { %v7889_v48 = vadd.f32 %v7888_v36, %v7435_v46  ;;  %v3210_v35 = vpop.f32.mrb[59].mxu1  ;;  %7556 = vmatprep.subr.bf16.mxu1 %v8203_v4  ;;  %v10641_v46 = vld [vmem:[#allocation33_spill] sm:$0xff] }
 0x4be   :  { %v7891_v16 = vadd.f32 %v7890_v43, %v3210_v35  ;;  %v10640_v43 = vld [vmem:[#allocation35_spill] sm:$0xff]  ;;  %7557 = vmatpush3.bf16.msra.mxu1 %v8203_v4 }
 0x4bf   :  { %v3415_v59 = vpack.c.bf16 %v7889_v48, %v7885_v45  ;;  %v7918_v48 = vadd.f32 %v9582_v40, %v10641_v46 }
 0x4c0   :  { %v3414_v57 = vpack.c.bf16 %v7891_v16, %v7887_v56  ;;  %v7916_v56 = vadd.f32 %v9582_v40, %v10640_v43  ;;  %v10642_v16 = vld [vmem:[#allocation36_spill] sm:$0xff]  ;;  %v10655_v43 = vld [vmem:[#allocation46_spill] sm:$0xff] }
 0x4c1   :  { %6670 = vst [vmem:[%s10520_s20 + $0x88] sm:$0xff] %v3415_v59  }
 0x4c2   :  { %6669 = vst [vmem:[%s10520_s20 + $0x80] sm:$0xff] %v3414_v57   ;;  %v7438_v29 = vpop.f32.mrb[60].mxu1  ;;  %7512 = vmatprep.mubr.bf16.mxu0 %v3414_v57 }
 0x4c3   :  { %v7893_v51 = vadd.f32 %v7892_v28, %v7438_v29  ;;  %v3223_v9 = vpop.f32.mrb[61].mxu1  ;;  %7513 = vmatmul.mubr.bf16.gmra.mrb[120].mxu0 %v3415_v59  ;;  %v7920_v59 = vadd.f32 %v9582_v40, %v10642_v16  ;;  %v8204_v28 = vld [vmem:[%s10524_s14 + $0x38] sm:$0xff]  }
 0x4c4   :  { %v7895_v5 = vadd.f32 %v7894_v19, %v3223_v9  ;;  %v7439_v26 = vpop.f32.mrb[62].mxu1  ;;  %v7922_v19 = vadd.f32 %v9582_v40, %v10643_v62  ;;  %7558 = vmatprep.subr.bf16.mxu1 %v8204_v28  ;;  %v8262_v62 = vld [vmem:[%s10520_s20 + $0x108] sm:$0xff] }
 0x4c5   :  { %v7897_v41 = vadd.f32 %v7896_v27, %v7439_v26  ;;  %v3226_v63 = vpop.f32.mrb[63].mxu1  ;;  %7559 = vmatpush3.bf16.msra.mxu1 %v8204_v28 }
 0x4c6   :  { %v7899_v61 = vadd.f32 %v7898_v22, %v3226_v63 }
 0x4c7   :  { %v3417_v34 = vpack.c.bf16 %v7897_v41, %v7893_v51  ;;  %v10645_v41 = vld [vmem:[#allocation37_spill] sm:$0xff] }
 0x4c8   :  { %v3416_v25 = vpack.c.bf16 %v7899_v61, %v7895_v5  ;;  %v10644_v5 = vld [vmem:[#allocation39_spill] sm:$0xff]  ;;  %v7926_v63 = vadd.f32 %v9582_v40, %v10645_v41  ;;  %v8212_v41 = vld [vmem:[%s10524_s14 + $0x58] sm:$0xff]  }
 0x4c9   :  { %6672 = vst [vmem:[%s10520_s20 + $0x98] sm:$0xff] %v3417_v34   ;;  %v7924_v26 = vadd.f32 %v9582_v40, %v10644_v5  ;;  %v8209_v5 = vld [vmem:[%s10524_s14 + $0x48] sm:$0xff]  }
 0x4ca   :  { %6671 = vst [vmem:[%s10520_s20 + $0x90] sm:$0xff] %v3416_v25   ;;  %v7442_v7 = vpop.f32.mrb[64].mxu1  ;;  %7516 = vmatprep.mubr.bf16.mxu0 %v3416_v25 }
 0x4cb   :  { %v7901_v0 = vadd.f32 %v7900_v33, %v7442_v7  ;;  %v3239_v6 = vpop.f32.mrb[65].mxu1  ;;  %7517 = vmatmul.mubr.bf16.gmra.mrb[124].mxu0 %v3417_v34  ;;  %v10646_v34 = vld [vmem:[#allocation40_spill] sm:$0xff] }
 0x4cc   :  { %v7903_v15 = vadd.f32 %v7902_v13, %v3239_v6  ;;  %v7443_v3 = vpop.f32.mrb[66].mxu1  ;;  %v7928_v25 = vadd.f32 %v9582_v40, %v10646_v34  ;;  %v7930_v13 = vadd.f32 %v9582_v40, %v10647_v21  ;;  %v9901_v34 = vld [vmem:[%s10525_s13] ss:$0 sm:$0xff]  ;;  %v8218_v21 = vld [vmem:[%s10524_s14 + $0x70] sm:$0xff]  }
 0x4cd   :  { %v7905_v1 = vadd.f32 %v7904_v24, %v7443_v3  ;;  %v3242_v39 = vpop.f32.mrb[67].mxu1 }
 0x4ce   :  { %v7907_v37 = vadd.f32 %v7906_v32, %v3242_v39 }
 0x4cf   :  { %v3419_v38 = vpack.c.bf16 %v7905_v1, %v7901_v0  ;;  %v10649_v1 = vld [vmem:[#allocation41_spill] sm:$0xff] }
 0x4d0   :  { %v3418_v8 = vpack.c.bf16 %v7907_v37, %v7903_v15  ;;  %v10648_v15 = vld [vmem:[#allocation43_spill] sm:$0xff]  ;;  %v7934_v39 = vadd.f32 %v9582_v40, %v10649_v1 }
 0x4d1   :  { %6674 = vst [vmem:[%s10520_s20 + $0xa8] sm:$0xff] %v3419_v38   ;;  %v7932_v3 = vadd.f32 %v9582_v40, %v10648_v15 }
 0x4d2   :  { %6673 = vst [vmem:[%s10520_s20 + $0xa0] sm:$0xff] %v3418_v8   ;;  %v7446_v50 = vpop.f32.mrb[68].mxu1  ;;  %7520 = vmatprep.mubr.bf16.mxu0 %v3418_v8 }
 0x4d3   :  { %v7909_v31 = vadd.f32 %v7908_v30, %v7446_v50  ;;  %v3255_v12 = vpop.f32.mrb[69].mxu1  ;;  %7521 = vmatmul.mubr.bf16.gmra.mrb[128].mxu0 %v3419_v38  ;;  %v10650_v38 = vld [vmem:[#allocation44_spill] sm:$0xff] }
 0x4d4   :  { %v7911_v53 = vadd.f32 %v7910_v49, %v3255_v12  ;;  %v7447_v54 = vpop.f32.mrb[70].mxu1  ;;  %v7936_v8 = vadd.f32 %v9582_v40, %v10650_v38  ;;  %v7938_v49 = vadd.f32 %v9582_v40, %v10651_v11 }
 0x4d5   :  { %v7913_v58 = vadd.f32 %v7912_v44, %v7447_v54  ;;  %v3258_v42 = vpop.f32.mrb[71].mxu1 }
 0x4d6   :  { %v7915_v36 = vadd.f32 %v7914_v52, %v3258_v42  ;;  %v10653_v42 = vld [vmem:[#allocation47_spill] sm:$0xff] }
 0x4d7   :  { %v3421_v45 = vpack.c.bf16 %v7913_v58, %v7909_v31 }
 0x4d8   :  { %v3420_v14 = vpack.c.bf16 %v7915_v36, %v7911_v53  ;;  %v10652_v53 = vld [vmem:[#allocation45_spill] sm:$0xff]  ;;  %v7940_v36 = vadd.f32 %v9582_v40, %v10653_v42 }
 0x4d9   :  { %6676 = vst [vmem:[%s10520_s20 + $0xb8] sm:$0xff] %v3421_v45   ;;  %v7942_v54 = vadd.f32 %v9582_v40, %v10652_v53 }
 0x4da   :  { %6675 = vst [vmem:[%s10520_s20 + $0xb0] sm:$0xff] %v3420_v14   ;;  %v7450_v35 = vpop.f32.mrb[72].mxu1  ;;  %7524 = vmatprep.mubr.bf16.mxu0 %v3420_v14 }
 0x4db   :  { %v7917_v57 = vadd.f32 %v7916_v56, %v7450_v35  ;;  %v3271_v20 = vpop.f32.mrb[73].mxu1  ;;  %7525 = vmatmul.mubr.bf16.gmra.mrb[132].mxu0 %v3421_v45  ;;  %v10654_v45 = vld [vmem:[#allocation48_spill] sm:$0xff]  ;;  %v7946_v56 = vadd.f32 %v9582_v40, %v10655_v43 }
 0x4dc   :  { %v7919_v29 = vadd.f32 %v7918_v48, %v3271_v20  ;;  %v7451_v23 = vpop.f32.mrb[74].mxu1  ;;  %v7944_v4 = vadd.f32 %v9582_v40, %v10654_v45  ;;  %v8261_v40 = vld [vmem:[%s10520_s20 + $0x100] sm:$0xff] }
 0x4dd   :  { %v7921_v27 = vadd.f32 %v7920_v59, %v7451_v23  ;;  %v3274_v51 = vpop.f32.mrb[75].mxu1  ;;  %v8265_v23 = vld [vmem:[%s10520_s20 + $0x120] sm:$0xff] }
 0x4de   :  { %v7923_v9 = vadd.f32 %v7922_v19, %v3274_v51  ;;  %v8263_v19 = vld [vmem:[%s10520_s20 + $0x110] sm:$0xff] }
 0x4df   :  { %v3423_v60 = vpack.c.bf16 %v7921_v27, %v7917_v57  ;;  %v8266_v27 = vld [vmem:[%s10520_s20 + $0x128] sm:$0xff]  ;;  %v8267_v51 = vld [vmem:[%s10520_s20 + $0x130] sm:$0xff] }
 0x4e0   :  { %v3422_v22 = vpack.c.bf16 %v7923_v9, %v7919_v29  ;;  %v8264_v29 = vld [vmem:[%s10520_s20 + $0x118] sm:$0xff] }
 0x4e1   :  { %6678 = vst [vmem:[%s10520_s20 + $0xc8] sm:$0xff] %v3423_v60   ;;  %v8268_v9 = vld [vmem:[%s10520_s20 + $0x138] sm:$0xff] }
 0x4e2   :  { %6677 = vst [vmem:[%s10520_s20 + $0xc0] sm:$0xff] %v3422_v22   ;;  %v7454_v61 = vpop.f32.mrb[76].mxu1  ;;  %7528 = vmatprep.mubr.bf16.mxu0 %v3422_v22  ;;  %v8208_v22 = vld [vmem:[%s10524_s14 + $0x40] sm:$0xff]  }
 0x4e3   :  { %v7925_v2 = vadd.f32 %v7924_v26, %v7454_v61  ;;  %v3287_v33 = vpop.f32.mrb[77].mxu1  ;;  %7529 = vmatmul.mubr.bf16.gmra.mrb[136].mxu0 %v3423_v60  ;;  %v8205_v60 = vld [vmem:[%s10523_s12 + $0xc0] sm:$0xff]   ;;  %7656 = vmatprep.subr.bf16.mxu0 %v8208_v22  ;;  %v8210_v26 = vld [vmem:[%s10524_s14 + $0x50] sm:$0xff]   ;;  %v8216_v61 = vld [vmem:[%s10524_s14 + $0x68] sm:$0xff]  }
 0x4e4   :  { %v7927_v7 = vadd.f32 %v7926_v63, %v3287_v33  ;;  %v7455_v18 = vpop.f32.mrb[78].mxu1  ;;  %7728 = vmatprep.subr.bf16.mxu1 %v8205_v60  ;;  %v8214_v63 = vld [vmem:[%s10524_s14 + $0x60] sm:$0xff]  }
 0x4e5   :  { %v7929_v24 = vadd.f32 %v7928_v25, %v7455_v18  ;;  %v3290_v0 = vpop.f32.mrb[79].mxu1 }
 0x4e6   :  { %v7931_v6 = vadd.f32 %v7930_v13, %v3290_v0 }
 0x4e7   :  { %v3425_v47 = vpack.c.bf16 %v7929_v24, %v7925_v2 }
 0x4e8   :  { %v3424_v32 = vpack.c.bf16 %v7931_v6, %v7927_v7 }
 0x4e9   :  { %6680 = vst [vmem:[%s10520_s20 + $0xd8] sm:$0xff] %v3425_v47  }
 0x4ea   :  { %6679 = vst [vmem:[%s10520_s20 + $0xd0] sm:$0xff] %v3424_v32   ;;  %v7458_v37 = vpop.f32.mrb[80].mxu1  ;;  %7532 = vmatprep.mubr.bf16.mxu0 %v3424_v32  ;;  %v8220_v32 = vld [vmem:[%s10524_s14 + $0x78] sm:$0xff]  }
 0x4eb   :  { %v7933_v17 = vadd.f32 %v7932_v3, %v7458_v37  ;;  %v3303_v30 = vpop.f32.mrb[81].mxu1  ;;  %7533 = vmatmul.mubr.bf16.gmra.mrb[140].mxu0 %v3425_v47 }
 0x4ec   :  { %v7935_v50 = vadd.f32 %v7934_v39, %v3303_v30  ;;  %v7459_v10 = vpop.f32.mrb[82].mxu1  ;;  %v9920_v30 = vld [vmem:[%s10523_s12 + $0x80] sm:$0xff]  }
 0x4ed   :  { %v7937_v44 = vadd.f32 %v7936_v8, %v7459_v10  ;;  %v3306_v31 = vpop.f32.mrb[83].mxu1 }
 0x4ee   :  { %v7939_v12 = vadd.f32 %v7938_v49, %v3306_v31  ;;  %v8207_v31 = vld [vmem:[%s10523_s12 + $0xd0] sm:$0xff]  }
 0x4ef   :  { %v3427_v55 = vpack.c.bf16 %v7937_v44, %v7933_v17  ;;  %v8206_v17 = vld [vmem:[%s10523_s12 + $0xc8] sm:$0xff]  }
 0x4f0   :  { %v3426_v52 = vpack.c.bf16 %v7939_v12, %v7935_v50 }
 0x4f1   :  { %6682 = vst [vmem:[%s10520_s20 + $0xe8] sm:$0xff] %v3427_v55  }
 0x4f2   :  { %6681 = vst [vmem:[%s10520_s20 + $0xe0] sm:$0xff] %v3426_v52   ;;  %v7462_v58 = vpop.f32.mrb[84].mxu1  ;;  %7536 = vmatprep.mubr.bf16.mxu0 %v3426_v52 }
 0x4f3   :  { %v3319_v14 = vpop.f32.mrb[85].mxu1  ;;  %7537 = vmatmul.mubr.bf16.gmra.mrb[144].mxu0 %v3427_v55  ;;  %v7941_v35 = vadd.f32 %v7940_v36, %v7462_v58 }
 0x4f4   :  { %v7943_v46 = vadd.f32 %v7942_v54, %v3319_v14  ;;  %v7463_v48 = vpop.f32.mrb[86].mxu1 }
 0x4f5   :  { %v7945_v16 = vadd.f32 %v7944_v4, %v7463_v48  ;;  %v3322_v59 = vpop.f32.mrb[87].mxu1  ;;  %v8211_v4 = vld [vmem:[%s10523_s12 + $0xd8] sm:$0xff]  }
 0x4f6   :  { %v7947_v57 = vadd.f32 %v7946_v56, %v3322_v59  ;;  %v8213_v59 = vld [vmem:[%s10523_s12 + $0xe0] sm:$0xff]  }
 0x4f7   :  { %v3429_v20 = vpack.c.bf16 %v7945_v16, %v7941_v35 }
 0x4f8   :  { %v3428_v28 = vpack.c.bf16 %v7947_v57, %v7943_v46 }
 0x4f9   :  { %6684 = vst [vmem:[%s10520_s20 + $0xf8] sm:$0xff] %v3429_v20  }
 0x4fa   :  { %6683 = vst [vmem:[%s10520_s20 + $0xf0] sm:$0xff] %v3428_v28   ;;  %7540 = vmatprep.mubr.bf16.mxu0 %v3428_v28 }
 0x4fb   :  { %7541 = vmatmul.mubr.bf16.gmra.mrb[148].mxu0 %v3429_v20 }
 0x4fc   :  { %7640 = vmatprep.mubr.bf16.mxu0 %v8261_v40 }
 0x503   :  { %7641 = vmatmul.mubr.bf16.vlgmr.msra.gmra.mrb[152].mxu0 %v8262_v62 }
 0x504   :  { %7644 = vmatprep.mubr.bf16.mxu0 %v8263_v19  ;;  %7657 = vmatpush3.bf16.msra.mxu0 %v8208_v22 }
 0x505   :  { %7658 = vmatprep.subr.bf16.mxu0 %v8209_v5 }
 0x508   :  { %7659 = vmatpush3.bf16.msra.mxu0 %v8209_v5 }
 0x509   :  { %7660 = vmatprep.subr.bf16.mxu0 %v8210_v26 }
 0x50b   :  { %7645 = vmatmul.mubr.bf16.gmra.mrb[156].mxu0 %v8264_v29 }
 0x50c   :  { %7648 = vmatprep.mubr.bf16.mxu0 %v8265_v23  ;;  %7661 = vmatpush3.bf16.msra.mxu0 %v8210_v26  ;;  %v8215_v23 = vld [vmem:[%s10523_s12 + $0xe8] sm:$0xff]  }
 0x50d   :  { %7662 = vmatprep.subr.bf16.mxu0 %v8212_v41 }
 0x510   :  { %7663 = vmatpush3.bf16.msra.mxu0 %v8212_v41  ;;  %v8217_v41 = vld [vmem:[%s10523_s12 + $0xf0] sm:$0xff]  }
 0x511   :  { %7664 = vmatprep.subr.bf16.mxu0 %v8214_v63 }
 0x513   :  { %7649 = vmatmul.mubr.bf16.gmra.mrb[160].mxu0 %v8266_v27 }
 0x514   :  { %7652 = vmatprep.mubr.bf16.mxu0 %v8267_v51  ;;  %7665 = vmatpush3.bf16.msra.mxu0 %v8214_v63 }
 0x515   :  { %7666 = vmatprep.subr.bf16.mxu0 %v8216_v61 }
 0x518   :  { %7667 = vmatpush3.bf16.msra.mxu0 %v8216_v61 }
 0x519   :  { %7668 = vmatprep.subr.bf16.mxu0 %v8218_v21 }
 0x51b   :  { %7653 = vmatmul.mubr.bf16.gmra.mrb[164].mxu0 %v8268_v9 }
 0x51c   :  { %7669 = vmatpush3.bf16.msra.mxu0 %v8218_v21 }
 0x51d   :  { %7670 = vmatprep.subr.bf16.mxu0 %v8220_v32 }
 0x520   :  { %7671 = vmatpush3.bf16.msra.mxu0 %v8220_v32 }
 0x521   :  { %7688 = vmatprep.subr.bf16.mxu0 %v9920_v30 }
 0x556   :  { %v7482_v25 = vpop.f32.mrb[88].mxu0 }
 0x557   :  { %v3832_v2 = vadd.f32 %v7482_v25, %v9901_v34  ;;  %v3823_v33 = vpop.f32.mrb[89].mxu0 }
 0x558   :  { %v3824_v13 = vadd.f32 %v9901_v34, %v3823_v33  ;;  %v7483_v7 = vpop.f32.mrb[90].mxu0 }
 0x559   :  { %v3835_v18 = vadd.f32 %v7483_v7, %v9901_v34  ;;  %v3826_v24 = vpop.f32.mrb[91].mxu0  ;;  %v4080_v6 = vmax.f32 %v3832_v2, 0.0  ;;  %v8219_v7 = vld [vmem:[%s10523_s12 + $0xf8] sm:$0xff]  }
 0x55a   :  { %v3827_v0 = vadd.f32 %v9901_v34, %v3826_v24  ;;  %v4078_v15 = vmax.f32 %v3824_v13, 0.0 }
 0x55b   :  { %v4081_v47 = vmax.f32 %v3835_v18, 0.0 }
 0x55c   :  { %v4079_v3 = vmax.f32 %v3827_v0, 0.0 }
 0x55d   :  { %v4143_v1 = vpack.c.bf16 %v4081_v47, %v4080_v6 }
 0x55e   :  { %v4142_v39 = vpack.c.bf16 %v4079_v3, %v4078_v15  ;;  %v7486_v37 = vpop.f32.mrb[92].mxu0 }
 0x55f   :  { %v3848_v38 = vadd.f32 %v7486_v37, %v9901_v34  ;;  %v3839_v8 = vpop.f32.mrb[93].mxu0 }
 0x560   :  { %v3840_v11 = vadd.f32 %v9901_v34, %v3839_v8  ;;  %v7487_v49 = vpop.f32.mrb[94].mxu0  ;;  %7560 = vmatprep.mubr.bf16.mxu1 %v4142_v39 }
 0x561   :  { %v3851_v50 = vadd.f32 %v7487_v49, %v9901_v34  ;;  %v3842_v10 = vpop.f32.mrb[95].mxu0  ;;  %7561 = vmatmul.mubr.bf16.vlgmr.msra.gmra.mrb[88].mxu1 %v4143_v1  ;;  %v4084_v12 = vmax.f32 %v3848_v38, 0.0 }
 0x562   :  { %v3843_v44 = vadd.f32 %v9901_v34, %v3842_v10  ;;  %7729 = vmatpush3.bf16.msra.mxu1 %v8205_v60  ;;  %v4082_v52 = vmax.f32 %v3840_v11, 0.0  ;;  %v8274_v11 = vmov 0.0  }
 0x563   :  { %v4085_v55 = vmax.f32 %v3851_v50, 0.0  ;;  %7730 = vmatprep.subr.bf16.mxu1 %v8206_v17 }
 0x564   :  { %v4083_v53 = vmax.f32 %v3843_v44, 0.0 }
 0x565   :  { %v4145_v54 = vpack.c.bf16 %v4085_v55, %v4084_v12 }
 0x566   :  { %v4144_v58 = vpack.c.bf16 %v4083_v53, %v4082_v52  ;;  %v7490_v42 = vpop.f32.mrb[96].mxu0  ;;  %7731 = vmatpush3.bf16.msra.mxu1 %v8206_v17 }
 0x567   :  { %v3864_v36 = vadd.f32 %v7490_v42, %v9901_v34  ;;  %v3855_v45 = vpop.f32.mrb[97].mxu0  ;;  %7732 = vmatprep.subr.bf16.mxu1 %v8207_v31 }
 0x568   :  { %v3856_v14 = vadd.f32 %v9901_v34, %v3855_v45  ;;  %v7491_v43 = vpop.f32.mrb[98].mxu0  ;;  %7564 = vmatprep.mubr.bf16.mxu1 %v4144_v58 }
 0x569   :  { %v3867_v56 = vadd.f32 %v7491_v43, %v9901_v34  ;;  %v3858_v46 = vpop.f32.mrb[99].mxu0  ;;  %7565 = vmatmul.mubr.bf16.gmra.mrb[92].mxu1 %v4145_v54  ;;  %v4088_v35 = vmax.f32 %v3864_v36, 0.0 }
 0x56a   :  { %v3859_v48 = vadd.f32 %v9901_v34, %v3858_v46  ;;  %7733 = vmatpush3.bf16.msra.mxu1 %v8207_v31  ;;  %v4086_v57 = vmax.f32 %v3856_v14, 0.0 }
 0x56b   :  { %v4089_v16 = vmax.f32 %v3867_v56, 0.0  ;;  %7734 = vmatprep.subr.bf16.mxu1 %v8211_v4 }
 0x56c   :  { %v4087_v20 = vmax.f32 %v3859_v48, 0.0 }
 0x56d   :  { %v4147_v28 = vpack.c.bf16 %v4089_v16, %v4088_v35 }
 0x56e   :  { %v4146_v40 = vpack.c.bf16 %v4087_v20, %v4086_v57  ;;  %v7494_v62 = vpop.f32.mrb[100].mxu0  ;;  %7735 = vmatpush3.bf16.msra.mxu1 %v8211_v4 }
 0x56f   :  { %v3880_v19 = vadd.f32 %v7494_v62, %v9901_v34  ;;  %v3871_v29 = vpop.f32.mrb[101].mxu0  ;;  %7736 = vmatprep.subr.bf16.mxu1 %v8213_v59 }
 0x570   :  { %v3872_v27 = vadd.f32 %v9901_v34, %v3871_v29  ;;  %v7495_v51 = vpop.f32.mrb[102].mxu0  ;;  %7568 = vmatprep.mubr.bf16.mxu1 %v4146_v40 }
 0x571   :  { %v3883_v9 = vadd.f32 %v7495_v51, %v9901_v34  ;;  %v3874_v60 = vpop.f32.mrb[103].mxu0  ;;  %7569 = vmatmul.mubr.bf16.gmra.mrb[96].mxu1 %v4147_v28  ;;  %v4092_v5 = vmax.f32 %v3880_v19, 0.0 }
 0x572   :  { %v3875_v22 = vadd.f32 %v9901_v34, %v3874_v60  ;;  %7737 = vmatpush3.bf16.msra.mxu1 %v8213_v59  ;;  %v4090_v63 = vmax.f32 %v3872_v27, 0.0 }
 0x573   :  { %v4093_v26 = vmax.f32 %v3883_v9, 0.0  ;;  %7738 = vmatprep.subr.bf16.mxu1 %v8215_v23 }
 0x574   :  { %v4091_v61 = vmax.f32 %v3875_v22, 0.0 }
 0x575   :  { %v4149_v25 = vpack.c.bf16 %v4093_v26, %v4092_v5 }
 0x576   :  { %v4148_v2 = vpack.c.bf16 %v4091_v61, %v4090_v63  ;;  %v7498_v33 = vpop.f32.mrb[104].mxu0  ;;  %7739 = vmatpush3.bf16.msra.mxu1 %v8215_v23 }
 0x577   :  { %v3896_v21 = vadd.f32 %v7498_v33, %v9901_v34  ;;  %v3887_v13 = vpop.f32.mrb[105].mxu0  ;;  %7740 = vmatprep.subr.bf16.mxu1 %v8217_v41 }
 0x578   :  { %v3888_v18 = vadd.f32 %v9901_v34, %v3887_v13  ;;  %v7499_v24 = vpop.f32.mrb[106].mxu0  ;;  %7572 = vmatprep.mubr.bf16.mxu1 %v4148_v2 }
 0x579   :  { %v3899_v0 = vadd.f32 %v7499_v24, %v9901_v34  ;;  %v3890_v6 = vpop.f32.mrb[107].mxu0  ;;  %7573 = vmatmul.mubr.bf16.gmra.mrb[100].mxu1 %v4149_v25  ;;  %v4096_v32 = vmax.f32 %v3896_v21, 0.0 }
 0x57a   :  { %v3891_v47 = vadd.f32 %v9901_v34, %v3890_v6  ;;  %7741 = vmatpush3.bf16.msra.mxu1 %v8217_v41  ;;  %v4094_v3 = vmax.f32 %v3888_v18, 0.0 }
 0x57b   :  { %v4097_v15 = vmax.f32 %v3899_v0, 0.0  ;;  %7742 = vmatprep.subr.bf16.mxu1 %v8219_v7 }
 0x57c   :  { %v4095_v1 = vmax.f32 %v3891_v47, 0.0 }
 0x57d   :  { %v4151_v39 = vpack.c.bf16 %v4097_v15, %v4096_v32 }
 0x57e   :  { %v4150_v37 = vpack.c.bf16 %v4095_v1, %v4094_v3  ;;  %v7502_v38 = vpop.f32.mrb[108].mxu0  ;;  %7743 = vmatpush3.bf16.msra.mxu1 %v8219_v7 }
 0x57f   :  { %v3912_v8 = vadd.f32 %v7502_v38, %v9901_v34  ;;  %v3903_v17 = vpop.f32.mrb[109].mxu0  ;;  %7768 = vmatprep.subr.bf16.mxu1 %v8274_v11 }
 0x580   :  { %v3904_v49 = vadd.f32 %v9901_v34, %v3903_v17  ;;  %v7503_v50 = vpop.f32.mrb[110].mxu0  ;;  %7576 = vmatprep.mubr.bf16.mxu1 %v4150_v37 }
 0x581   :  { %v3915_v10 = vadd.f32 %v7503_v50, %v9901_v34  ;;  %v3906_v44 = vpop.f32.mrb[111].mxu0  ;;  %7577 = vmatmul.mubr.bf16.gmra.mrb[104].mxu1 %v4151_v39  ;;  %v4100_v12 = vmax.f32 %v3912_v8, 0.0 }
 0x582   :  { %v3907_v31 = vadd.f32 %v9901_v34, %v3906_v44  ;;  %v4098_v52 = vmax.f32 %v3904_v49, 0.0 }
 0x583   :  { %v4101_v55 = vmax.f32 %v3915_v10, 0.0 }
 0x584   :  { %v4099_v53 = vmax.f32 %v3907_v31, 0.0 }
 0x585   :  { %v4153_v54 = vpack.c.bf16 %v4101_v55, %v4100_v12 }
 0x586   :  { %v4152_v58 = vpack.c.bf16 %v4099_v53, %v4098_v52  ;;  %v7506_v42 = vpop.f32.mrb[112].mxu0 }
 0x587   :  { %v3928_v36 = vadd.f32 %v7506_v42, %v9901_v34  ;;  %v3919_v45 = vpop.f32.mrb[113].mxu0 }
 0x588   :  { %v3920_v4 = vadd.f32 %v9901_v34, %v3919_v45  ;;  %v7507_v14 = vpop.f32.mrb[114].mxu0  ;;  %7580 = vmatprep.mubr.bf16.mxu1 %v4152_v58 }
 0x589   :  { %v3931_v43 = vadd.f32 %v7507_v14, %v9901_v34  ;;  %v3922_v56 = vpop.f32.mrb[115].mxu0  ;;  %7581 = vmatmul.mubr.bf16.gmra.mrb[108].mxu1 %v4153_v54  ;;  %v4104_v48 = vmax.f32 %v3928_v36, 0.0 }
 0x58a   :  { %v3923_v46 = vadd.f32 %v9901_v34, %v3922_v56  ;;  %v4102_v16 = vmax.f32 %v3920_v4, 0.0 }
 0x58b   :  { %v4105_v35 = vmax.f32 %v3931_v43, 0.0 }
 0x58c   :  { %v4103_v59 = vmax.f32 %v3923_v46, 0.0 }
 0x58d   :  { %v4155_v57 = vpack.c.bf16 %v4105_v35, %v4104_v48 }
 0x58e   :  { %v4154_v20 = vpack.c.bf16 %v4103_v59, %v4102_v16  ;;  %v7510_v28 = vpop.f32.mrb[116].mxu0 }
 0x58f   :  { %v3944_v40 = vadd.f32 %v7510_v28, %v9901_v34  ;;  %v3935_v62 = vpop.f32.mrb[117].mxu0 }
 0x590   :  { %v3936_v19 = vadd.f32 %v9901_v34, %v3935_v62  ;;  %v7511_v29 = vpop.f32.mrb[118].mxu0  ;;  %7584 = vmatprep.mubr.bf16.mxu1 %v4154_v20 }
 0x591   :  { %v3947_v23 = vadd.f32 %v7511_v29, %v9901_v34  ;;  %v3938_v27 = vpop.f32.mrb[119].mxu0  ;;  %7585 = vmatmul.mubr.bf16.gmra.mrb[112].mxu1 %v4155_v57  ;;  %v4108_v9 = vmax.f32 %v3944_v40, 0.0 }
 0x592   :  { %v3939_v51 = vadd.f32 %v9901_v34, %v3938_v27  ;;  %v4106_v22 = vmax.f32 %v3936_v19, 0.0  ;;  %v5620_v27 = vpop.xlane.xlu0 %5619 }
 0x593   :  { %v4109_v60 = vmax.f32 %v3947_v23, 0.0  ;;  %v5618_v23 = vpop.xlane.xlu1 %5617 }
 0x594   :  { %v4107_v5 = vmax.f32 %v3939_v51, 0.0 }
 0x595   :  { %v4157_v26 = vpack.c.bf16 %v4109_v60, %v4108_v9 }
 0x596   :  { %v4156_v41 = vpack.c.bf16 %v4107_v5, %v4106_v22  ;;  %v7514_v63 = vpop.f32.mrb[120].mxu0 }
 0x597   :  { %v3960_v61 = vadd.f32 %v7514_v63, %v9901_v34  ;;  %v3951_v25 = vpop.f32.mrb[121].mxu0  ;;  %v5624_v63 = vpop.xlane.xlu0 %5623 }
 0x598   :  { %v3952_v2 = vadd.f32 %v9901_v34, %v3951_v25  ;;  %v7515_v33 = vpop.f32.mrb[122].mxu0  ;;  %7588 = vmatprep.mubr.bf16.mxu1 %v4156_v41 }
 0x599   :  { %v3963_v21 = vadd.f32 %v7515_v33, %v9901_v34  ;;  %v3954_v13 = vpop.f32.mrb[123].mxu0  ;;  %7589 = vmatmul.mubr.bf16.gmra.mrb[116].mxu1 %v4157_v26  ;;  %v4112_v18 = vmax.f32 %v3960_v61, 0.0 }
 0x59a   :  { %v3955_v7 = vadd.f32 %v9901_v34, %v3954_v13  ;;  %v4110_v0 = vmax.f32 %v3952_v2, 0.0 }
 0x59b   :  { %v4113_v24 = vmax.f32 %v3963_v21, 0.0  ;;  %v5622_v21 = vpop.xlane.xlu1 %5621 }
 0x59c   :  { %v4111_v6 = vmax.f32 %v3955_v7, 0.0  ;;  %v5628_v7 = vmul.f32 0.0078125, %v5624_v63 }
 0x59d   :  { %v4159_v47 = vpack.c.bf16 %v4113_v24, %v4112_v18 }
 0x59e   :  { %v4158_v32 = vpack.c.bf16 %v4111_v6, %v4110_v0  ;;  %v7518_v15 = vpop.f32.mrb[124].mxu0  ;;  %v5626_v0 = vmul.f32 0.0078125, %v5620_v27 }
 0x59f   :  { %v3976_v3 = vadd.f32 %v7518_v15, %v9901_v34  ;;  %v3967_v1 = vpop.f32.mrb[125].mxu0 }
 0x5a0   :  { %v3968_v39 = vadd.f32 %v9901_v34, %v3967_v1  ;;  %v7519_v37 = vpop.f32.mrb[126].mxu0  ;;  %7592 = vmatprep.mubr.bf16.mxu1 %v4158_v32  ;;  %v5627_v32 = vmul.f32 0.0078125, %v5622_v21 }
 0x5a1   :  { %v3979_v38 = vadd.f32 %v7519_v37, %v9901_v34  ;;  %v3970_v8 = vpop.f32.mrb[127].mxu0  ;;  %7593 = vmatmul.mubr.bf16.gmra.mrb[120].mxu1 %v4159_v47  ;;  %v4116_v49 = vmax.f32 %v3976_v3, 0.0  ;;  %v5632_v37 = vadd.f32 1e-05, %v5628_v7 }
 0x5a2   :  { %v3971_v17 = vadd.f32 %v9901_v34, %v3970_v8  ;;  %v4114_v10 = vmax.f32 %v3968_v39, 0.0  ;;  %v5625_v39 = vmul.f32 0.0078125, %v5618_v23 }
 0x5a3   :  { %v4117_v50 = vmax.f32 %v3979_v38, 0.0  ;;  %8253 = vrsqrt.f32 %v5632_v37 }
 0x5a4   :  { %v4115_v44 = vmax.f32 %v3971_v17, 0.0  ;;  %v5630_v17 = vadd.f32 1e-05, %v5626_v0 }
 0x5a5   :  { %v4161_v31 = vpack.c.bf16 %v4117_v50, %v4116_v49 }
 0x5a6   :  { %v4160_v12 = vpack.c.bf16 %v4115_v44, %v4114_v10  ;;  %v7522_v55 = vpop.f32.mrb[128].mxu0  ;;  %v5631_v10 = vadd.f32 1e-05, %v5627_v32  ;;  %8255 = vrsqrt.f32 %v5630_v17 }
 0x5a7   :  { %v3992_v52 = vadd.f32 %v7522_v55, %v9901_v34  ;;  %v3983_v53 = vpop.f32.mrb[129].mxu0  ;;  %v5629_v55 = vadd.f32 1e-05, %v5625_v39 }
 0x5a8   :  { %v3984_v54 = vadd.f32 %v9901_v34, %v3983_v53  ;;  %v7523_v58 = vpop.f32.mrb[130].mxu0  ;;  %7596 = vmatprep.mubr.bf16.mxu1 %v4160_v12  ;;  %8257 = vrsqrt.f32 %v5631_v10 }
 0x5a9   :  { %v3995_v42 = vadd.f32 %v7523_v58, %v9901_v34  ;;  %v3986_v36 = vpop.f32.mrb[131].mxu0  ;;  %7597 = vmatmul.mubr.bf16.gmra.mrb[124].mxu1 %v4161_v31  ;;  %v4120_v4 = vmax.f32 %v3992_v52, 0.0  ;;  %8259 = vrsqrt.f32 %v5629_v55 }
 0x5aa   :  { %v3987_v45 = vadd.f32 %v9901_v34, %v3986_v36  ;;  %v4118_v43 = vmax.f32 %v3984_v54, 0.0 }
 0x5ab   :  { %v4121_v14 = vmax.f32 %v3995_v42, 0.0 }
 0x5ac   :  { %v4119_v56 = vmax.f32 %v3987_v45, 0.0 }
 0x5ad   :  { %v4163_v46 = vpack.c.bf16 %v4121_v14, %v4120_v4 }
 0x5ae   :  { %v4162_v48 = vpack.c.bf16 %v4119_v56, %v4118_v43  ;;  %v7526_v35 = vpop.f32.mrb[132].mxu0 }
 0x5af   :  { %v4008_v16 = vadd.f32 %v7526_v35, %v9901_v34  ;;  %v3999_v59 = vpop.f32.mrb[133].mxu0 }
 0x5b0   :  { %v4000_v57 = vadd.f32 %v9901_v34, %v3999_v59  ;;  %v7527_v20 = vpop.f32.mrb[134].mxu0  ;;  %7600 = vmatprep.mubr.bf16.mxu1 %v4162_v48 }
 0x5b1   :  { %v4011_v28 = vadd.f32 %v7527_v20, %v9901_v34  ;;  %v4002_v40 = vpop.f32.mrb[135].mxu0  ;;  %7601 = vmatmul.mubr.bf16.gmra.mrb[128].mxu1 %v4163_v46  ;;  %v4124_v19 = vmax.f32 %v4008_v16, 0.0 }
 0x5b2   :  { %v4003_v62 = vadd.f32 %v9901_v34, %v4002_v40  ;;  %v4122_v51 = vmax.f32 %v4000_v57, 0.0 }
 0x5b3   :  { %v4125_v29 = vmax.f32 %v4011_v28, 0.0  ;;  %v8254_v28 = vpop.eup %8253 }
 0x5b4   :  { %v4123_v9 = vmax.f32 %v4003_v62, 0.0  ;;  %v8256_v62 = vpop.eup %8255 }
 0x5b5   :  { %v4165_v60 = vpack.c.bf16 %v4125_v29, %v4124_v19  ;;  %v8258_v23 = vpop.eup %8257 }
 0x5b6   :  { %v4164_v22 = vpack.c.bf16 %v4123_v9, %v4122_v51  ;;  %v7530_v5 = vpop.f32.mrb[136].mxu0  ;;  %v10656_v9 = vld [vmem:[#allocation52_spill] sm:$0xff] }
 0x5b7   :  { %v4024_v26 = vadd.f32 %v7530_v5, %v9901_v34  ;;  %v4015_v41 = vpop.f32.mrb[137].mxu0 }
 0x5b8   :  { %v4016_v61 = vadd.f32 %v9901_v34, %v4015_v41  ;;  %v7531_v25 = vpop.f32.mrb[138].mxu0  ;;  %7604 = vmatprep.mubr.bf16.mxu1 %v4164_v22 }
 0x5b9   :  { %v4027_v2 = vadd.f32 %v7531_v25, %v9901_v34  ;;  %v4018_v33 = vpop.f32.mrb[139].mxu0  ;;  %7605 = vmatmul.mubr.bf16.gmra.mrb[132].mxu1 %v4165_v60  ;;  %v4128_v18 = vmax.f32 %v4024_v26, 0.0  ;;  %v5640_v60 = vmul.f32 %v8254_v28, %v10656_v9  ;;  %v8260_v26 = vpop.eup %8259 }
 0x5ba   :  { %v4019_v13 = vadd.f32 %v9901_v34, %v4018_v33  ;;  %v4126_v6 = vmax.f32 %v4016_v61, 0.0  ;;  %v10657_v61 = vld [vmem:[#allocation50_spill] sm:$0xff] }
 0x5bb   :  { %v4129_v24 = vmax.f32 %v4027_v2, 0.0  ;;  %v5638_v25 = vmul.f32 %v8256_v62, %v10657_v61  ;;  %v10658_v2 = vld [vmem:[#allocation51_spill] sm:$0xff] }
 0x5bc   :  { %v4127_v47 = vmax.f32 %v4019_v13, 0.0  ;;  %v5639_v33 = vmul.f32 %v8258_v23, %v10658_v2  ;;  %v6335_v13 = vld [vmem:[%s10527_s16] ss:$0 sm:$0xff] }
 0x5bd   :  { %v4167_v15 = vpack.c.bf16 %v4129_v24, %v4128_v18  ;;  %v10659_v24 = vld [vmem:[#allocation49_spill] sm:$0xff] }
 0x5be   :  { %v4166_v3 = vpack.c.bf16 %v4127_v47, %v4126_v6  ;;  %v7534_v1 = vpop.f32.mrb[140].mxu0  ;;  %v5637_v0 = vmul.f32 %v8260_v26, %v10659_v24  ;;  %v5651_v6 = vmul.f32 %v6335_v13, %v5640_v60  ;;  %v5650_v39 = vmul.f32 %v6335_v13, %v5639_v33 }
 0x5bf   :  { %v4040_v38 = vadd.f32 %v7534_v1, %v9901_v34  ;;  %v4031_v8 = vpop.f32.mrb[141].mxu0  ;;  %v5649_v1 = vmul.f32 %v6335_v13, %v5638_v25  ;;  %v8226_v25 = vld [vmem:[%s10526_s18 + $0x10] sm:$0xff]  }
 0x5c0   :  { %v4032_v49 = vadd.f32 %v9901_v34, %v4031_v8  ;;  %v7535_v50 = vpop.f32.mrb[142].mxu0  ;;  %7608 = vmatprep.mubr.bf16.mxu1 %v4166_v3 }
 0x5c1   :  { %v4043_v44 = vadd.f32 %v7535_v50, %v9901_v34  ;;  %v4034_v31 = vpop.f32.mrb[143].mxu0  ;;  %7609 = vmatmul.mubr.bf16.gmra.mrb[136].mxu1 %v4167_v15  ;;  %v4132_v52 = vmax.f32 %v4040_v38, 0.0  ;;  %v10011_v15 = vld [vmem:[%s10525_s13 + $0x1] ss:$0 sm:$0xff]  ;;  %v6336_v38 = vld [vmem:[%s10528_s17] ss:$0 sm:$0xff] }
 0x5c2   :  { %v4035_v12 = vadd.f32 %v9901_v34, %v4034_v31  ;;  %v4130_v54 = vmax.f32 %v4032_v49, 0.0  ;;  %v5648_v49 = vmul.f32 %v6335_v13, %v5637_v0  ;;  %v5662_v50 = vadd.f32 %v6336_v38, %v5651_v6  ;;  %v8227_v13 = vld [vmem:[%s10523_s12 + $0x98] sm:$0xff]  }
 0x5c3   :  { %v4133_v53 = vmax.f32 %v4043_v44, 0.0  ;;  %v5660_v55 = vadd.f32 %v6336_v38, %v5649_v1 }
 0x5c4   :  { %v4131_v58 = vmax.f32 %v4035_v12, 0.0 }
 0x5c5   :  { %v4169_v42 = vpack.c.bf16 %v4133_v53, %v4132_v52  ;;  %v5661_v52 = vadd.f32 %v6336_v38, %v5650_v39 }
 0x5c6   :  { %v4168_v36 = vpack.c.bf16 %v4131_v58, %v4130_v54  ;;  %v7538_v45 = vpop.f32.mrb[144].mxu0  ;;  %v8269_v54 = vld [vmem:[%s10520_s20 + $0x150] sm:$0xff] }
 0x5c7   :  { %v4056_v4 = vadd.f32 %v7538_v45, %v9901_v34  ;;  %v4047_v14 = vpop.f32.mrb[145].mxu0  ;;  %v5672_v45 = vadd.f32 %v5662_v50, %v5661_v52 }
 0x5c8   :  { %v4048_v43 = vadd.f32 %v9901_v34, %v4047_v14  ;;  %v7539_v56 = vpop.f32.mrb[146].mxu0  ;;  %7612 = vmatprep.mubr.bf16.mxu1 %v4168_v36  ;;  %v5659_v36 = vadd.f32 %v6336_v38, %v5648_v49 }
 0x5c9   :  { %v4059_v46 = vadd.f32 %v7539_v56, %v9901_v34  ;;  %v4050_v48 = vpop.f32.mrb[147].mxu0  ;;  %7613 = vmatmul.mubr.bf16.gmra.mrb[140].mxu1 %v4169_v42  ;;  %v4136_v16 = vmax.f32 %v4056_v4, 0.0 }
 0x5ca   :  { %v4051_v35 = vadd.f32 %v9901_v34, %v4050_v48  ;;  %v4134_v57 = vmax.f32 %v4048_v43, 0.0  ;;  %v5663_v56 = vadd.f32 %v5660_v55, %v5659_v36  ;;  %v8231_v55 = vld [vmem:[%s10523_s12 + $0xa8] sm:$0xff]  }
 0x5cb   :  { %v4137_v59 = vmax.f32 %v4059_v46, 0.0 }
 0x5cc   :  { %v4135_v20 = vmax.f32 %v4051_v35, 0.0  ;;  %v8222_v35 = vld [vmem:[%s10526_s18] sm:$0xff]  }
 0x5cd   :  { %v4171_v40 = vpack.c.bf16 %v4137_v59, %v4136_v16 }
 0x5ce   :  { %v4170_v19 = vpack.c.bf16 %v4135_v20, %v4134_v57  ;;  %v7542_v29 = vpop.f32.mrb[148].mxu0  ;;  %v8223_v57 = vld [vmem:[%s10523_s12 + $0x88] sm:$0xff]  }
 0x5cf   :  { %v4072_v27 = vadd.f32 %v7542_v29, %v9901_v34  ;;  %v4063_v51 = vpop.f32.mrb[149].mxu0  ;;  %v8270_v29 = vld [vmem:[%s10520_s20 + $0x158] sm:$0xff] }
 0x5d0   :  { %v4064_v22 = vadd.f32 %v9901_v34, %v4063_v51  ;;  %v7543_v5 = vpop.f32.mrb[150].mxu0  ;;  %7616 = vmatprep.mubr.bf16.mxu1 %v4170_v19  ;;  %v5664_v51 = vrot.slane %v5663_v56, 4 }
 0x5d1   :  { %v4075_v41 = vadd.f32 %v7543_v5, %v9901_v34  ;;  %v4066_v63 = vpop.f32.mrb[151].mxu0  ;;  %7617 = vmatmul.mubr.bf16.gmra.mrb[144].mxu1 %v4171_v40  ;;  %v4140_v7 = vmax.f32 %v4072_v27, 0.0  ;;  %v5673_v40 = vrot.slane %v5672_v45, 4  ;;  %v8224_v27 = vld [vmem:[%s10526_s18 + $0x8] sm:$0xff]  }
 0x5d2   :  { %v4067_v21 = vadd.f32 %v9901_v34, %v4066_v63  ;;  %v4138_v47 = vmax.f32 %v4064_v22, 0.0  ;;  %v8225_v22 = vld [vmem:[%s10523_s12 + $0x90] sm:$0xff]   ;;  %v5665_v2 = vadd.f32 %v5664_v51, %v5663_v56  ;;  %v10101_v51 = vld [vmem:[%s10529_s15] ss:$0 sm:$0xff] }
 0x5d3   :  { %v4141_v18 = vmax.f32 %v4075_v41, 0.0  ;;  %v8233_v56 = vld [vmem:[%s10523_s12 + $0xb0] sm:$0xff]  }
 0x5d4   :  { %v4139_v32 = vmax.f32 %v4067_v21, 0.0 }
 0x5d5   :  { %v4173_v3 = vpack.c.bf16 %v4141_v18, %v4140_v7 }
 0x5d6   :  { %v4172_v34 = vpack.c.bf16 %v4139_v32, %v4138_v47  ;;  %v7642_v37 = vpop.f32.mrb[152].mxu0  ;;  %v8228_v32 = vld [vmem:[%s10526_s18 + $0x18] sm:$0xff]  }
 0x5d7   :  { %v4786_v8 = vadd.f32 %v7642_v37, %v10011_v15  ;;  %v4777_v17 = vpop.f32.mrb[153].mxu0 }
 0x5d8   :  { %v4778_v10 = vadd.f32 %v10011_v15, %v4777_v17  ;;  %7620 = vmatprep.mubr.bf16.mxu1 %v4172_v34  ;;  %v7643_v44 = vpop.f32.mrb[154].mxu0  ;;  %v8229_v34 = vld [vmem:[%s10523_s12 + $0xa0] sm:$0xff]  }
 0x5d9   :  { %v4789_v31 = vadd.f32 %v7643_v44, %v10011_v15  ;;  %7621 = vmatmul.mubr.bf16.gmra.mrb[148].mxu1 %v4173_v3  ;;  %v4780_v12 = vpop.f32.mrb[155].mxu0  ;;  %v4842_v58 = vmax.f32 %v4786_v8, 0.0  ;;  %v5666_v3 = vrot.slane %v5665_v2, 2 }
 0x5da   :  { %v4781_v53 = vadd.f32 %v10011_v15, %v4780_v12  ;;  %7744 = vmatprep.mubr.bf16.mxu1 %v8269_v54  ;;  %v4840_v4 = vmax.f32 %v4778_v10, 0.0  ;;  %v8230_v10 = vld [vmem:[%s10526_s18 + $0x20] sm:$0xff]  }
 0x5db   :  { %v4843_v42 = vmax.f32 %v4789_v31, 0.0  ;;  %v5667_v44 = vadd.f32 %v5666_v3, %v5665_v2  ;;  %v8237_v2 = vld [vmem:[%s10524_s14 + $0x80] sm:$0xff]  }
 0x5dc   :  { %v4841_v14 = vmax.f32 %v4781_v53, 0.0 }
 0x5dd   :  { %v4857_v43 = vpack.c.bf16 %v4843_v42, %v4842_v58 }
 0x5de   :  { %v4856_v46 = vpack.c.bf16 %v4841_v14, %v4840_v4  ;;  %v7646_v48 = vpop.f32.mrb[156].mxu0  ;;  %v5668_v4 = vrot.slane %v5667_v44, 1 }
 0x5df   :  { %v4802_v16 = vadd.f32 %v7646_v48, %v10011_v15  ;;  %v4793_v59 = vpop.f32.mrb[157].mxu0 }
 0x5e0   :  { %v4794_v20 = vadd.f32 %v10011_v15, %v4793_v59  ;;  %v7647_v28 = vpop.f32.mrb[158].mxu0  ;;  %7672 = vmatprep.mubr.bf16.mxu0 %v4856_v46  ;;  %v8234_v59 = vld [vmem:[%s10526_s18 + $0x30] sm:$0xff]  }
 0x5e1   :  { %v4805_v62 = vadd.f32 %v7647_v28, %v10011_v15  ;;  %v4796_v19 = vpop.f32.mrb[159].mxu0  ;;  %7673 = vmatmul.mubr.bf16.vlgmr.msra.gmra.mrb[168].mxu0 %v4857_v43  ;;  %7745 = vmatmul.mubr.bf16.vlgmr.msra.gmra.mrb[152].mxu1 %v8270_v29  ;;  %v4846_v9 = vmax.f32 %v4802_v16, 0.0 }
 0x5e2   :  { %v4797_v23 = vadd.f32 %v10011_v15, %v4796_v19  ;;  %7769 = vmatpush3.bf16.msra.mxu1 %v8222_v35  ;;  %7689 = vmatpush3.bf16.msra.mxu0 %v9920_v30  ;;  %v4844_v5 = vmax.f32 %v4794_v20, 0.0  ;;  %v5674_v30 = vadd.f32 %v5673_v40, %v5672_v45  ;;  %v8232_v45 = vld [vmem:[%s10526_s18 + $0x28] sm:$0xff]   ;;  %v8235_v20 = vld [vmem:[%s10523_s12 + $0xb8] sm:$0xff]   ;;  %v8271_v19 = vld [vmem:[%s10520_s20 + $0x140] sm:$0xff] }
 0x5e3   :  { %v4847_v60 = vmax.f32 %v4805_v62, 0.0  ;;  %7770 = vmatprep.subr.bf16.mxu1 %v8274_v11  ;;  %7690 = vmatprep.subr.bf16.mxu0 %v8223_v57  ;;  %v8236_v40 = vld [vmem:[%s10526_s18 + $0x38] sm:$0xff]  }
 0x5e4   :  { %v4845_v26 = vmax.f32 %v4797_v23, 0.0  ;;  %7784 = vmatprep.mubr.msk.bf16.mxu1 %vm8275_vm1, %v8274_v11  ;;  %v5675_v24 = vrot.slane %v5674_v30, 2 }
 0x5e5   :  { %v4859_v41 = vpack.c.bf16 %v4847_v60, %v4846_v9 }
 0x5e6   :  { %v4858_v63 = vpack.c.bf16 %v4845_v26, %v4844_v5  ;;  %7771 = vmatpush3.bf16.msra.mxu1 %v8224_v27  ;;  %v7650_v61 = vpop.f32.mrb[160].mxu0  ;;  %7691 = vmatpush3.bf16.msra.mxu0 %v8223_v57  ;;  %v5676_v8 = vadd.f32 %v5675_v24, %v5674_v30  ;;  %v5669_v57 = vadd.f32 %v5668_v4, %v5667_v44  ;;  %v8272_v27 = vld [vmem:[%s10520_s20 + $0x148] sm:$0xff] }
 0x5e7   :  { %v4818_v33 = vadd.f32 %v7650_v61, %v10011_v15  ;;  %v4809_v21 = vpop.f32.mrb[161].mxu0  ;;  %7772 = vmatprep.subr.bf16.mxu1 %v8274_v11  ;;  %7692 = vmatprep.subr.bf16.mxu0 %v8225_v22  ;;  %v8238_v24 = vld [vmem:[%s10524_s14 + $0x88] sm:$0xff]  }
 0x5e8   :  { %v4810_v7 = vadd.f32 %v10011_v15, %v4809_v21  ;;  %v7651_v18 = vpop.f32.mrb[162].mxu0  ;;  %7676 = vmatprep.mubr.bf16.mxu0 %v4858_v63  ;;  %v5677_v54 = vrot.slane %v5676_v8, 1  ;;  %v5671_v62 = vmul.f32 0.0625, %v5669_v57 }
 0x5e9   :  { %v4821_v0 = vadd.f32 %v7651_v18, %v10011_v15  ;;  %v4812_v6 = vpop.f32.mrb[163].mxu0  ;;  %7677 = vmatmul.mubr.bf16.gmra.mrb[172].mxu0 %v4859_v41  ;;  %v4850_v1 = vmax.f32 %v4818_v33, 0.0 }
 0x5ea   :  { %v4813_v47 = vadd.f32 %v10011_v15, %v4812_v6  ;;  %7773 = vmatpush3.bf16.msra.mxu1 %v8226_v25  ;;  %7693 = vmatpush3.bf16.msra.mxu0 %v8225_v22  ;;  %v4848_v37 = vmax.f32 %v4810_v7, 0.0  ;;  %v5678_v35 = vadd.f32 %v5677_v54, %v5676_v8 }
 0x5eb   :  { %v4851_v39 = vmax.f32 %v4821_v0, 0.0  ;;  %7774 = vmatprep.subr.bf16.mxu1 %v8274_v11  ;;  %7694 = vmatprep.subr.bf16.mxu0 %v8227_v13 }
 0x5ec   :  { %v4849_v38 = vmax.f32 %v4813_v47, 0.0  ;;  %v5679_v28 = vmul.f32 0.0625, %v5678_v35 }
 0x5ed   :  { %v4861_v17 = vpack.c.bf16 %v4851_v39, %v4850_v1 }
 0x5ee   :  { %v4860_v49 = vpack.c.bf16 %v4849_v38, %v4848_v37  ;;  %7775 = vmatpush3.bf16.msra.mxu1 %v8228_v32  ;;  %v7654_v50 = vpop.f32.mrb[164].mxu0  ;;  %7695 = vmatpush3.bf16.msra.mxu0 %v8227_v13  ;;  %v5681_v29 = vsel %vm5680_vm2, %v5671_v62, %v5679_v28  ;;  %v8239_v32 = vld [vmem:[%s10524_s14 + $0x90] sm:$0xff]   ;;  %v8240_v38 = vld [vmem:[%s10524_s14 + $0x98] sm:$0xff]  }
 0x5ef   :  { %v4834_v31 = vadd.f32 %v7654_v50, %v10011_v15  ;;  %v4825_v12 = vpop.f32.mrb[165].mxu0  ;;  %7776 = vmatprep.subr.bf16.mxu1 %v8274_v11  ;;  %7696 = vmatprep.subr.bf16.mxu0 %v8229_v34  ;;  %v5682_v23 = vpack.c.bf16 %v5681_v29, %v5681_v29  ;;  %v8241_v50 = vld [vmem:[%s10524_s14 + $0xa0] sm:$0xff]  }
 0x5f0   :  { %v4826_v52 = vadd.f32 %v10011_v15, %v4825_v12  ;;  %v7655_v53 = vpop.f32.mrb[166].mxu0  ;;  %7680 = vmatprep.mubr.bf16.mxu0 %v4860_v49 }
 0x5f1   :  { %v4837_v58 = vadd.f32 %v7655_v53, %v10011_v15  ;;  %v4828_v42 = vpop.f32.mrb[167].mxu0  ;;  %7681 = vmatmul.mubr.bf16.gmra.mrb[176].mxu0 %v4861_v17  ;;  %v4854_v14 = vmax.f32 %v4834_v31, 0.0 }
 0x5f2   :  { %v4829_v36 = vadd.f32 %v10011_v15, %v4828_v42  ;;  %7777 = vmatpush3.bf16.msra.mxu1 %v8230_v10  ;;  %7697 = vmatpush3.bf16.msra.mxu0 %v8229_v34  ;;  %v4852_v46 = vmax.f32 %v4826_v52, 0.0  ;;  %v8242_v52 = vld [vmem:[%s10524_s14 + $0xa8] sm:$0xff]   ;;  %v8243_v42 = vld [vmem:[%s10524_s14 + $0xb0] sm:$0xff]  }
 0x5f3   :  { %v4855_v43 = vmax.f32 %v4837_v58, 0.0  ;;  %7778 = vmatprep.subr.bf16.mxu1 %v8274_v11  ;;  %7698 = vmatprep.subr.bf16.mxu0 %v8231_v55 }
 0x5f4   :  { %v4853_v48 = vmax.f32 %v4829_v36, 0.0 }
 0x5f5   :  { %v4863_v15 = vpack.c.bf16 %v4855_v43, %v4854_v14 }
 0x5f6   :  { %v4862_v16 = vpack.c.bf16 %v4853_v48, %v4852_v46  ;;  %7779 = vmatpush3.bf16.msra.mxu1 %v8232_v45  ;;  %7699 = vmatpush3.bf16.msra.mxu0 %v8231_v55 }
 0x5f7   :  { %7780 = vmatprep.subr.bf16.mxu1 %v8274_v11  ;;  %7700 = vmatprep.subr.bf16.mxu0 %v8233_v56 }
 0x5f8   :  { %7684 = vmatprep.mubr.bf16.mxu0 %v4862_v16 }
 0x5f9   :  { %7685 = vmatmul.mubr.bf16.gmra.mrb[180].mxu0 %v4863_v15  ;;  %v10211_v15 = vld [vmem:[%s10524_s14 + $0xc0] sm:$0xff]  }
 0x5fa   :  { %7781 = vmatpush3.bf16.msra.mxu1 %v8234_v59  ;;  %7701 = vmatpush3.bf16.msra.mxu0 %v8233_v56  ;;  %v8244_v56 = vld [vmem:[%s10524_s14 + $0xb8] sm:$0xff]  }
 0x5fb   :  { %7704 = vmatprep.mubr.bf16.mxu0 %v8271_v19  ;;  %7782 = vmatprep.subr.bf16.mxu1 %v8274_v11 }
 0x5fc   :  { %7702 = vmatprep.subr.bf16.mxu0 %v8235_v20 }
 0x5fe   :  { %7783 = vmatpush3.bf16.msra.mxu1 %v8236_v40  ;;  %7703 = vmatpush3.bf16.msra.mxu0 %v8235_v20 }
 0x5ff   :  { %7708 = vmatprep.subr.bf16.mxu0 %v8237_v2 }
 0x601   :  { %7785 = vmatmul.mubr.bf16.vlgmr.msra.gmra.mrb[156].mxu1 %v5682_v23  ;;  %7705 = vmatmul.mubr.bf16.vlgmr.msra.gmra.mrb[184].mxu0 %v8272_v27 }
 0x602   :  { %7709 = vmatpush3.bf16.msra.mxu0 %v8237_v2 }
 0x603   :  { %7710 = vmatprep.subr.bf16.mxu0 %v8238_v24 }
 0x606   :  { %7711 = vmatpush3.bf16.msra.mxu0 %v8238_v24 }
 0x607   :  { %7712 = vmatprep.subr.bf16.mxu0 %v8239_v32 }
 0x60a   :  { %7713 = vmatpush3.bf16.msra.mxu0 %v8239_v32 }
 0x60b   :  { %7714 = vmatprep.subr.bf16.mxu0 %v8240_v38 }
 0x60e   :  { %7715 = vmatpush3.bf16.msra.mxu0 %v8240_v38 }
 0x60f   :  { %7716 = vmatprep.subr.bf16.mxu0 %v8241_v50 }
 0x612   :  { %7717 = vmatpush3.bf16.msra.mxu0 %v8241_v50 }
 0x613   :  { %7718 = vmatprep.subr.bf16.mxu0 %v8242_v52 }
 0x616   :  { %7719 = vmatpush3.bf16.msra.mxu0 %v8242_v52 }
 0x617   :  { %7720 = vmatprep.subr.bf16.mxu0 %v8243_v42 }
 0x61a   :  { %7721 = vmatpush3.bf16.msra.mxu0 %v8243_v42 }
 0x61b   :  { %7722 = vmatprep.subr.bf16.mxu0 %v8244_v56 }
 0x61e   :  { %7723 = vmatpush3.bf16.msra.mxu0 %v8244_v56 }
 0x61f   :  { %7748 = vmatprep.subr.bf16.mxu0 %v10211_v15 }
 0x634   :  { %v7562_v9 = vpop.f32.mrb[88].mxu1 }
 0x635   :  { %v4288_v60 = vadd.f32 %v7562_v9, %v10101_v51  ;;  %v4279_v11 = vpop.f32.mrb[89].mxu1 }
 0x636   :  { %v4280_v22 = vadd.f32 %v10101_v51, %v4279_v11  ;;  %v7563_v5 = vpop.f32.mrb[90].mxu1 }
 0x637   :  { %4536 = vst [vmem:[%s10530_s21 + $0x10] sm:$0xff] %v4288_v60  ;;  %v4291_v26 = vadd.f32 %v7563_v5, %v10101_v51  ;;  %v4282_v30 = vpop.f32.mrb[91].mxu1 }
 0x638   :  { %4534 = vst [vmem:[%s10530_s21] sm:$0xff] %v4280_v22  ;;  %v4283_v41 = vadd.f32 %v10101_v51, %v4282_v30 }
 0x639   :  { %4537 = vst [vmem:[%s10530_s21 + $0x18] sm:$0xff] %v4291_v26 }
 0x63a   :  { %4535 = vst [vmem:[%s10530_s21 + $0x8] sm:$0xff] %v4283_v41 }
 0x63c   :  { %v7566_v63 = vpop.f32.mrb[92].mxu1 }
 0x63d   :  { %v4304_v61 = vadd.f32 %v7566_v63, %v10101_v51  ;;  %v4295_v25 = vpop.f32.mrb[93].mxu1 }
 0x63e   :  { %v4296_v33 = vadd.f32 %v10101_v51, %v4295_v25  ;;  %v7567_v21 = vpop.f32.mrb[94].mxu1 }
 0x63f   :  { %4540 = vst [vmem:[%s10530_s21 + $0x30] sm:$0xff] %v4304_v61  ;;  %v4307_v13 = vadd.f32 %v7567_v21, %v10101_v51  ;;  %v4298_v7 = vpop.f32.mrb[95].mxu1 }
 0x640   :  { %4538 = vst [vmem:[%s10530_s21 + $0x20] sm:$0xff] %v4296_v33  ;;  %v4299_v18 = vadd.f32 %v10101_v51, %v4298_v7 }
 0x641   :  { %4541 = vst [vmem:[%s10530_s21 + $0x38] sm:$0xff] %v4307_v13 }
 0x642   :  { %4539 = vst [vmem:[%s10530_s21 + $0x28] sm:$0xff] %v4299_v18 }
 0x644   :  { %v7570_v0 = vpop.f32.mrb[96].mxu1 }
 0x645   :  { %v4320_v6 = vadd.f32 %v7570_v0, %v10101_v51  ;;  %v4311_v47 = vpop.f32.mrb[97].mxu1 }
 0x646   :  { %v4312_v3 = vadd.f32 %v10101_v51, %v4311_v47  ;;  %v7571_v1 = vpop.f32.mrb[98].mxu1 }
 0x647   :  { %4544 = vst [vmem:[%s10530_s21 + $0x50] sm:$0xff] %v4320_v6  ;;  %v4323_v39 = vadd.f32 %v7571_v1, %v10101_v51  ;;  %v4314_v34 = vpop.f32.mrb[99].mxu1 }
 0x648   :  { %4542 = vst [vmem:[%s10530_s21 + $0x40] sm:$0xff] %v4312_v3  ;;  %v4315_v37 = vadd.f32 %v10101_v51, %v4314_v34 }
 0x649   :  { %4545 = vst [vmem:[%s10530_s21 + $0x58] sm:$0xff] %v4323_v39 }
 0x64a   :  { %4543 = vst [vmem:[%s10530_s21 + $0x48] sm:$0xff] %v4315_v37 }
 0x64c   :  { %v7574_v8 = vpop.f32.mrb[100].mxu1 }
 0x64d   :  { %v4336_v17 = vadd.f32 %v7574_v8, %v10101_v51  ;;  %v4327_v49 = vpop.f32.mrb[101].mxu1 }
 0x64e   :  { %v4328_v10 = vadd.f32 %v10101_v51, %v4327_v49  ;;  %v7575_v44 = vpop.f32.mrb[102].mxu1 }
 0x64f   :  { %4548 = vst [vmem:[%s10530_s21 + $0x70] sm:$0xff] %v4336_v17  ;;  %v4339_v31 = vadd.f32 %v7575_v44, %v10101_v51  ;;  %v4330_v12 = vpop.f32.mrb[103].mxu1 }
 0x650   :  { %4546 = vst [vmem:[%s10530_s21 + $0x60] sm:$0xff] %v4328_v10  ;;  %v4331_v55 = vadd.f32 %v10101_v51, %v4330_v12 }
 0x651   :  { %4549 = vst [vmem:[%s10530_s21 + $0x78] sm:$0xff] %v4339_v31 }
 0x652   :  { %4547 = vst [vmem:[%s10530_s21 + $0x68] sm:$0xff] %v4331_v55 }
 0x654   :  { %v7578_v53 = vpop.f32.mrb[104].mxu1 }
 0x655   :  { %v4352_v54 = vadd.f32 %v7578_v53, %v10101_v51  ;;  %v4343_v58 = vpop.f32.mrb[105].mxu1 }
 0x656   :  { %v4344_v36 = vadd.f32 %v10101_v51, %v4343_v58  ;;  %v7579_v45 = vpop.f32.mrb[106].mxu1 }
 0x657   :  { %4552 = vst [vmem:[%s10530_s21 + $0x90] sm:$0xff] %v4352_v54  ;;  %v4355_v4 = vadd.f32 %v7579_v45, %v10101_v51  ;;  %v4346_v14 = vpop.f32.mrb[107].mxu1 }
 0x658   :  { %4550 = vst [vmem:[%s10530_s21 + $0x80] sm:$0xff] %v4344_v36  ;;  %v4347_v43 = vadd.f32 %v10101_v51, %v4346_v14 }
 0x659   :  { %4553 = vst [vmem:[%s10530_s21 + $0x98] sm:$0xff] %v4355_v4 }
 0x65a   :  { %4551 = vst [vmem:[%s10530_s21 + $0x88] sm:$0xff] %v4347_v43 }
 0x65c   :  { %v7582_v46 = vpop.f32.mrb[108].mxu1 }
 0x65d   :  { %v4368_v48 = vadd.f32 %v7582_v46, %v10101_v51  ;;  %v4359_v35 = vpop.f32.mrb[109].mxu1 }
 0x65e   :  { %v4360_v16 = vadd.f32 %v10101_v51, %v4359_v35  ;;  %v7583_v59 = vpop.f32.mrb[110].mxu1 }
 0x65f   :  { %4556 = vst [vmem:[%s10530_s21 + $0xb0] sm:$0xff] %v4368_v48  ;;  %v4371_v57 = vadd.f32 %v7583_v59, %v10101_v51  ;;  %v4362_v20 = vpop.f32.mrb[111].mxu1 }
 0x660   :  { %4554 = vst [vmem:[%s10530_s21 + $0xa0] sm:$0xff] %v4360_v16  ;;  %v4363_v28 = vadd.f32 %v10101_v51, %v4362_v20 }
 0x661   :  { %4557 = vst [vmem:[%s10530_s21 + $0xb8] sm:$0xff] %v4371_v57 }
 0x662   :  { %4555 = vst [vmem:[%s10530_s21 + $0xa8] sm:$0xff] %v4363_v28 }
 0x664   :  { %v7586_v40 = vpop.f32.mrb[112].mxu1 }
 0x665   :  { %v4384_v62 = vadd.f32 %v7586_v40, %v10101_v51  ;;  %v4375_v19 = vpop.f32.mrb[113].mxu1 }
 0x666   :  { %v4376_v29 = vadd.f32 %v10101_v51, %v4375_v19  ;;  %v7587_v23 = vpop.f32.mrb[114].mxu1 }
 0x667   :  { %4560 = vst [vmem:[%s10530_s21 + $0xd0] sm:$0xff] %v4384_v62  ;;  %v4387_v27 = vadd.f32 %v7587_v23, %v10101_v51  ;;  %v4378_v9 = vpop.f32.mrb[115].mxu1 }
 0x668   :  { %4558 = vst [vmem:[%s10530_s21 + $0xc0] sm:$0xff] %v4376_v29  ;;  %v4379_v60 = vadd.f32 %v10101_v51, %v4378_v9 }
 0x669   :  { %4561 = vst [vmem:[%s10530_s21 + $0xd8] sm:$0xff] %v4387_v27 }
 0x66a   :  { %4559 = vst [vmem:[%s10530_s21 + $0xc8] sm:$0xff] %v4379_v60 }
 0x66c   :  { %v7590_v11 = vpop.f32.mrb[116].mxu1 }
 0x66d   :  { %v4400_v22 = vadd.f32 %v7590_v11, %v10101_v51  ;;  %v4391_v5 = vpop.f32.mrb[117].mxu1 }
 0x66e   :  { %v4392_v26 = vadd.f32 %v10101_v51, %v4391_v5  ;;  %v7591_v30 = vpop.f32.mrb[118].mxu1 }
 0x66f   :  { %4564 = vst [vmem:[%s10530_s21 + $0xf0] sm:$0xff] %v4400_v22  ;;  %v4403_v41 = vadd.f32 %v7591_v30, %v10101_v51  ;;  %v4394_v63 = vpop.f32.mrb[119].mxu1 }
 0x670   :  { %4562 = vst [vmem:[%s10530_s21 + $0xe0] sm:$0xff] %v4392_v26  ;;  %v4395_v61 = vadd.f32 %v10101_v51, %v4394_v63 }
 0x671   :  { %4565 = vst [vmem:[%s10530_s21 + $0xf8] sm:$0xff] %v4403_v41 }
 0x672   :  { %4563 = vst [vmem:[%s10530_s21 + $0xe8] sm:$0xff] %v4395_v61 }
 0x674   :  { %v7594_v25 = vpop.f32.mrb[120].mxu1 }
 0x675   :  { %v4416_v2 = vadd.f32 %v7594_v25, %v10101_v51  ;;  %v4407_v33 = vpop.f32.mrb[121].mxu1 }
 0x676   :  { %v4408_v21 = vadd.f32 %v10101_v51, %v4407_v33  ;;  %v7595_v13 = vpop.f32.mrb[122].mxu1  ;;  %v6214_v33 = vld [vmem:[%s10529_s15 + $0x1] ss:$0 sm:$0xff] }
 0x677   :  { %4568 = vst [vmem:[%s10530_s21 + $0x110] sm:$0xff] %v4416_v2  ;;  %v4419_v7 = vadd.f32 %v7595_v13, %v10101_v51  ;;  %v4410_v18 = vpop.f32.mrb[123].mxu1 }
 0x678   :  { %4566 = vst [vmem:[%s10530_s21 + $0x100] sm:$0xff] %v4408_v21  ;;  %v4411_v24 = vadd.f32 %v10101_v51, %v4410_v18  ;;  %v6300_v21 = vld [vmem:[%s10525_s13 + $0x3] ss:$0 sm:$0xff] }
 0x679   :  { %4569 = vst [vmem:[%s10530_s21 + $0x118] sm:$0xff] %v4419_v7 }
 0x67a   :  { %4567 = vst [vmem:[%s10530_s21 + $0x108] sm:$0xff] %v4411_v24 }
 0x67c   :  { %v7598_v0 = vpop.f32.mrb[124].mxu1 }
 0x67d   :  { %v4432_v6 = vadd.f32 %v7598_v0, %v10101_v51  ;;  %v4423_v47 = vpop.f32.mrb[125].mxu1 }
 0x67e   :  { %v4424_v32 = vadd.f32 %v10101_v51, %v4423_v47  ;;  %v7599_v3 = vpop.f32.mrb[126].mxu1 }
 0x67f   :  { %4572 = vst [vmem:[%s10530_s21 + $0x130] sm:$0xff] %v4432_v6  ;;  %v4435_v1 = vadd.f32 %v7599_v3, %v10101_v51  ;;  %v4426_v39 = vpop.f32.mrb[127].mxu1 }
 0x680   :  { %4570 = vst [vmem:[%s10530_s21 + $0x120] sm:$0xff] %v4424_v32  ;;  %v4427_v34 = vadd.f32 %v10101_v51, %v4426_v39 }
 0x681   :  { %4573 = vst [vmem:[%s10530_s21 + $0x138] sm:$0xff] %v4435_v1 }
 0x682   :  { %4571 = vst [vmem:[%s10530_s21 + $0x128] sm:$0xff] %v4427_v34 }
 0x684   :  { %v7602_v37 = vpop.f32.mrb[128].mxu1 }
 0x685   :  { %v4448_v38 = vadd.f32 %v7602_v37, %v10101_v51  ;;  %v4439_v8 = vpop.f32.mrb[129].mxu1 }
 0x686   :  { %v4440_v17 = vadd.f32 %v10101_v51, %v4439_v8  ;;  %v7603_v49 = vpop.f32.mrb[130].mxu1 }
 0x687   :  { %4576 = vst [vmem:[%s10530_s21 + $0x150] sm:$0xff] %v4448_v38  ;;  %v4451_v50 = vadd.f32 %v7603_v49, %v10101_v51  ;;  %v4442_v10 = vpop.f32.mrb[131].mxu1 }
 0x688   :  { %4574 = vst [vmem:[%s10530_s21 + $0x140] sm:$0xff] %v4440_v17  ;;  %v4443_v44 = vadd.f32 %v10101_v51, %v4442_v10 }
 0x689   :  { %4577 = vst [vmem:[%s10530_s21 + $0x158] sm:$0xff] %v4451_v50 }
 0x68a   :  { %4575 = vst [vmem:[%s10530_s21 + $0x148] sm:$0xff] %v4443_v44 }
 0x68c   :  { %v7606_v31 = vpop.f32.mrb[132].mxu1 }
 0x68d   :  { %v4464_v12 = vadd.f32 %v7606_v31, %v10101_v51  ;;  %v4455_v55 = vpop.f32.mrb[133].mxu1 }
 0x68e   :  { %v4456_v52 = vadd.f32 %v10101_v51, %v4455_v55  ;;  %v7607_v53 = vpop.f32.mrb[134].mxu1 }
 0x68f   :  { %4580 = vst [vmem:[%s10530_s21 + $0x170] sm:$0xff] %v4464_v12  ;;  %v4467_v54 = vadd.f32 %v7607_v53, %v10101_v51  ;;  %v4458_v58 = vpop.f32.mrb[135].mxu1 }
 0x690   :  { %4578 = vst [vmem:[%s10530_s21 + $0x160] sm:$0xff] %v4456_v52  ;;  %v4459_v42 = vadd.f32 %v10101_v51, %v4458_v58 }
 0x691   :  { %4581 = vst [vmem:[%s10530_s21 + $0x178] sm:$0xff] %v4467_v54 }
 0x692   :  { %4579 = vst [vmem:[%s10530_s21 + $0x168] sm:$0xff] %v4459_v42 }
 0x694   :  { %v7610_v36 = vpop.f32.mrb[136].mxu1 }
 0x695   :  { %v4480_v45 = vadd.f32 %v7610_v36, %v10101_v51  ;;  %v4471_v4 = vpop.f32.mrb[137].mxu1 }
 0x696   :  { %v4472_v14 = vadd.f32 %v10101_v51, %v4471_v4  ;;  %v7611_v43 = vpop.f32.mrb[138].mxu1 }
 0x697   :  { %4584 = vst [vmem:[%s10530_s21 + $0x190] sm:$0xff] %v4480_v45  ;;  %v4483_v56 = vadd.f32 %v7611_v43, %v10101_v51  ;;  %v4474_v46 = vpop.f32.mrb[139].mxu1 }
 0x698   :  { %4582 = vst [vmem:[%s10530_s21 + $0x180] sm:$0xff] %v4472_v14  ;;  %v4475_v48 = vadd.f32 %v10101_v51, %v4474_v46 }
 0x699   :  { %4585 = vst [vmem:[%s10530_s21 + $0x198] sm:$0xff] %v4483_v56 }
 0x69a   :  { %4583 = vst [vmem:[%s10530_s21 + $0x188] sm:$0xff] %v4475_v48 }
 0x69c   :  { %v7614_v35 = vpop.f32.mrb[140].mxu1 }
 0x69d   :  { %v4496_v16 = vadd.f32 %v7614_v35, %v10101_v51  ;;  %v4487_v59 = vpop.f32.mrb[141].mxu1 }
 0x69e   :  { %v4488_v57 = vadd.f32 %v10101_v51, %v4487_v59  ;;  %v7615_v20 = vpop.f32.mrb[142].mxu1 }
 0x69f   :  { %4588 = vst [vmem:[%s10530_s21 + $0x1b0] sm:$0xff] %v4496_v16  ;;  %v4499_v28 = vadd.f32 %v7615_v20, %v10101_v51  ;;  %v4490_v40 = vpop.f32.mrb[143].mxu1 }
 0x6a0   :  { %4586 = vst [vmem:[%s10530_s21 + $0x1a0] sm:$0xff] %v4488_v57  ;;  %v4491_v62 = vadd.f32 %v10101_v51, %v4490_v40 }
 0x6a1   :  { %4589 = vst [vmem:[%s10530_s21 + $0x1b8] sm:$0xff] %v4499_v28 }
 0x6a2   :  { %4587 = vst [vmem:[%s10530_s21 + $0x1a8] sm:$0xff] %v4491_v62 }
 0x6a4   :  { %v7618_v19 = vpop.f32.mrb[144].mxu1 }
 0x6a5   :  { %v4512_v29 = vadd.f32 %v7618_v19, %v10101_v51  ;;  %v4503_v23 = vpop.f32.mrb[145].mxu1 }
 0x6a6   :  { %v4504_v27 = vadd.f32 %v10101_v51, %v4503_v23  ;;  %v7619_v9 = vpop.f32.mrb[146].mxu1  ;;  %v6244_v23 = vld [vmem:[%s10525_s13 + $0x2] ss:$0 sm:$0xff] }
 0x6a7   :  { %4592 = vst [vmem:[%s10530_s21 + $0x1d0] sm:$0xff] %v4512_v29  ;;  %v4515_v60 = vadd.f32 %v7619_v9, %v10101_v51  ;;  %v4506_v11 = vpop.f32.mrb[147].mxu1  ;;  %v6337_v29 = vld [vmem:[%s10531_s19] ss:$0 sm:$0xff] }
 0x6a8   :  { %4590 = vst [vmem:[%s10530_s21 + $0x1c0] sm:$0xff] %v4504_v27  ;;  %v4507_v22 = vadd.f32 %v10101_v51, %v4506_v11 }
 0x6a9   :  { %4593 = vst [vmem:[%s10530_s21 + $0x1d8] sm:$0xff] %v4515_v60 }
 0x6aa   :  { %4591 = vst [vmem:[%s10530_s21 + $0x1c8] sm:$0xff] %v4507_v22 }
 0x6ac   :  { %v7622_v5 = vpop.f32.mrb[148].mxu1 }
 0x6ad   :  { %v4528_v26 = vadd.f32 %v7622_v5, %v10101_v51  ;;  %v4519_v30 = vpop.f32.mrb[149].mxu1 }
 0x6ae   :  { %v4520_v41 = vadd.f32 %v10101_v51, %v4519_v30  ;;  %v7623_v63 = vpop.f32.mrb[150].mxu1 }
 0x6af   :  { %4596 = vst [vmem:[%s10530_s21 + $0x1f0] sm:$0xff] %v4528_v26  ;;  %v4531_v61 = vadd.f32 %v7623_v63, %v10101_v51  ;;  %v4522_v25 = vpop.f32.mrb[151].mxu1 }
 0x6b0   :  { %4594 = vst [vmem:[%s10530_s21 + $0x1e0] sm:$0xff] %v4520_v41  ;;  %v4523_v2 = vadd.f32 %v10101_v51, %v4522_v25 }
 0x6b1   :  { %4597 = vst [vmem:[%s10530_s21 + $0x1f8] sm:$0xff] %v4531_v61 }
 0x6b2   :  { %4595 = vst [vmem:[%s10530_s21 + $0x1e8] sm:$0xff] %v4523_v2 }
 0x6b4   :  { %v7674_v13 = vpop.f32.mrb[168].mxu0  ;;  %v7746_v7 = vpop.f32.mrb[152].mxu1 }
 0x6b5   :  { %v4980_v18 = vadd.f32 %v7674_v13, %v6214_v33  ;;  %v5458_v51 = vadd.f32 %v7746_v7, %v6300_v21  ;;  %v4971_v24 = vpop.f32.mrb[169].mxu0  ;;  %v5449_v0 = vpop.f32.mrb[153].mxu1 }
 0x6b6   :  { %v4972_v6 = vadd.f32 %v6214_v33, %v4971_v24  ;;  %v5450_v47 = vadd.f32 %v6300_v21, %v5449_v0  ;;  %v7675_v32 = vpop.f32.mrb[170].mxu0  ;;  %v7747_v3 = vpop.f32.mrb[154].mxu1  ;;  %v8246_v24 = vld [vmem:[%s10524_s14 + $0xc8] sm:$0xff]   ;;  %v8247_v0 = vld [vmem:[%s10524_s14 + $0xd0] sm:$0xff]  }
 0x6b7   :  { %5036 = vst [vmem:[%s10530_s21 + $0x210] sm:$0xff] %v4980_v18  ;;  %v4983_v1 = vadd.f32 %v7675_v32, %v6214_v33  ;;  %v5461_v39 = vadd.f32 %v7747_v3, %v6300_v21  ;;  %v4974_v34 = vpop.f32.mrb[171].mxu0  ;;  %v5452_v37 = vpop.f32.mrb[155].mxu1  ;;  %v5466_v17 = vmax.f32 %v5458_v51, 0.0  ;;  %v8251_v32 = vld [vmem:[%s10524_s14 + $0xf0] sm:$0xff]   ;;  %v8252_v3 = vld [vmem:[%s10524_s14 + $0xf8] sm:$0xff]  }
 0x6b8   :  { %5034 = vst [vmem:[%s10530_s21 + $0x200] sm:$0xff] %v4972_v6  ;;  %v4975_v38 = vadd.f32 %v6214_v33, %v4974_v34  ;;  %v5453_v8 = vadd.f32 %v6300_v21, %v5452_v37  ;;  %v5464_v50 = vmax.f32 %v5450_v47, 0.0  ;;  %v8248_v6 = vld [vmem:[%s10524_s14 + $0xd8] sm:$0xff]   ;;  %v8249_v47 = vld [vmem:[%s10524_s14 + $0xe0] sm:$0xff]  }
 0x6b9   :  { %5037 = vst [vmem:[%s10530_s21 + $0x218] sm:$0xff] %v4983_v1  ;;  %v5467_v49 = vmax.f32 %v5461_v39, 0.0  ;;  %v6270_v1 = vld [vmem:[%s10529_s15 + $0x2] ss:$0 sm:$0xff] }
 0x6ba   :  { %5035 = vst [vmem:[%s10530_s21 + $0x208] sm:$0xff] %v4975_v38  ;;  %v5465_v10 = vmax.f32 %v5453_v8, 0.0 }
 0x6bb   :  { %v10407_v44 = vpack.c.bf16 %v5467_v49, %v5466_v17 }
 0x6bc   :  { %v10409_v31 = vpack.c.bf16 %v5465_v10, %v5464_v50  ;;  %v7678_v12 = vpop.f32.mrb[172].mxu0  ;;  %v6326_v10 = vld [vmem:[%s10529_s15 + $0x3] ss:$0 sm:$0xff] }
 0x6bd   :  { %v4996_v55 = vadd.f32 %v7678_v12, %v6214_v33  ;;  %v4987_v52 = vpop.f32.mrb[173].mxu0 }
 0x6be   :  { %v4988_v53 = vadd.f32 %v6214_v33, %v4987_v52  ;;  %v7679_v54 = vpop.f32.mrb[174].mxu0 }
 0x6bf   :  { %5040 = vst [vmem:[%s10530_s21 + $0x230] sm:$0xff] %v4996_v55  ;;  %v4999_v58 = vadd.f32 %v7679_v54, %v6214_v33  ;;  %v4990_v42 = vpop.f32.mrb[175].mxu0 }
 0x6c0   :  { %5038 = vst [vmem:[%s10530_s21 + $0x220] sm:$0xff] %v4988_v53  ;;  %v4991_v36 = vadd.f32 %v6214_v33, %v4990_v42 }
 0x6c1   :  { %5041 = vst [vmem:[%s10530_s21 + $0x238] sm:$0xff] %v4999_v58 }
 0x6c2   :  { %5039 = vst [vmem:[%s10530_s21 + $0x228] sm:$0xff] %v4991_v36 }
 0x6c4   :  { %v7682_v45 = vpop.f32.mrb[176].mxu0 }
 0x6c5   :  { %v5012_v4 = vadd.f32 %v7682_v45, %v6214_v33  ;;  %v5003_v14 = vpop.f32.mrb[177].mxu0 }
 0x6c6   :  { %v5004_v43 = vadd.f32 %v6214_v33, %v5003_v14  ;;  %v7683_v56 = vpop.f32.mrb[178].mxu0 }
 0x6c7   :  { %5044 = vst [vmem:[%s10530_s21 + $0x250] sm:$0xff] %v5012_v4  ;;  %v5015_v46 = vadd.f32 %v7683_v56, %v6214_v33  ;;  %v5006_v48 = vpop.f32.mrb[179].mxu0 }
 0x6c8   :  { %5042 = vst [vmem:[%s10530_s21 + $0x240] sm:$0xff] %v5004_v43  ;;  %v5007_v35 = vadd.f32 %v6214_v33, %v5006_v48 }
 0x6c9   :  { %5045 = vst [vmem:[%s10530_s21 + $0x258] sm:$0xff] %v5015_v46 }
 0x6ca   :  { %5043 = vst [vmem:[%s10530_s21 + $0x248] sm:$0xff] %v5007_v35 }
 0x6cc   :  { %v7686_v16 = vpop.f32.mrb[180].mxu0 }
 0x6cd   :  { %v5028_v59 = vadd.f32 %v7686_v16, %v6214_v33  ;;  %v5019_v57 = vpop.f32.mrb[181].mxu0 }
 0x6ce   :  { %v5020_v20 = vadd.f32 %v6214_v33, %v5019_v57  ;;  %v7687_v28 = vpop.f32.mrb[182].mxu0 }
 0x6cf   :  { %5048 = vst [vmem:[%s10530_s21 + $0x270] sm:$0xff] %v5028_v59  ;;  %v5031_v40 = vadd.f32 %v7687_v28, %v6214_v33  ;;  %v5022_v62 = vpop.f32.mrb[183].mxu0 }
 0x6d0   :  { %5046 = vst [vmem:[%s10530_s21 + $0x260] sm:$0xff] %v5020_v20  ;;  %v5023_v19 = vadd.f32 %v6214_v33, %v5022_v62 }
 0x6d1   :  { %5049 = vst [vmem:[%s10530_s21 + $0x278] sm:$0xff] %v5031_v40 }
 0x6d2   :  { %5047 = vst [vmem:[%s10530_s21 + $0x268] sm:$0xff] %v5023_v19 }
 0x6d4   :  { %v5788_v27 = vpop.f32.mrb[156].mxu1  ;;  %v7706_v9 = vpop.f32.mrb[184].mxu0 }
 0x6d5   :  { %v5789_v60 = vadd.f32 %v6337_v29, %v5788_v27  ;;  %v5184_v11 = vadd.f32 %v7706_v9, %v6244_v23  ;;  %v7786_v22 = vpop.f32.mrb[157].mxu1  ;;  %v5175_v5 = vpop.f32.mrb[185].mxu0 }
 0x6d6   :  { %v5176_v26 = vadd.f32 %v6244_v23, %v5175_v5  ;;  %v5791_v30 = vpop.f32.mrb[158].mxu1  ;;  %v7707_v41 = vpop.f32.mrb[186].mxu0 }
 0x6d7   :  { %5794 = vst [vmem:[%s10532_s22] sm:$0x3] %v5789_v60  ;;  %v5187_v63 = vadd.f32 %v7707_v41, %v6244_v23  ;;  %v7787_v61 = vpop.f32.mrb[159].mxu1  ;;  %v5178_v25 = vpop.f32.mrb[187].mxu0  ;;  %v5192_v33 = vmax.f32 %v5184_v11, 0.0 }
 0x6d8   :  { %v5179_v2 = vadd.f32 %v6244_v23, %v5178_v25  ;;  %v5190_v13 = vmax.f32 %v5176_v26, 0.0 }
 0x6d9   :  { %v5193_v21 = vmax.f32 %v5187_v63, 0.0 }
 0x6da   :  { %v5191_v7 = vmax.f32 %v5179_v2, 0.0 }
 0x6db   :  { %v5195_v18 = vpack.c.bf16 %v5193_v21, %v5192_v33 }
 0x6dc   :  { %v5194_v51 = vpack.c.bf16 %v5191_v7, %v5190_v13 }
 0x6de   :  { %7724 = vmatprep.mubr.bf16.mxu0 %v5194_v51 }
 0x6df   :  { %7725 = vmatmul.mubr.bf16.vlgmr.msra.gmra.mrb[188].mxu0 %v5195_v18 }
 0x6e0   :  { %7749 = vmatpush3.bf16.msra.mxu0 %v10211_v15  ;;  %7764 = vmatprep.mubr.bf16.mxu0 %v10409_v31  ;;  %v8250_v15 = vld [vmem:[%s10524_s14 + $0xe8] sm:$0xff]  }
 0x6e1   :  { %7750 = vmatprep.subr.bf16.mxu0 %v8246_v24 }
 0x6e4   :  { %7751 = vmatpush3.bf16.msra.mxu0 %v8246_v24 }
 0x6e5   :  { %7752 = vmatprep.subr.bf16.mxu0 %v8247_v0 }
 0x6e8   :  { %7753 = vmatpush3.bf16.msra.mxu0 %v8247_v0 }
 0x6e9   :  { %7754 = vmatprep.subr.bf16.mxu0 %v8248_v6 }
 0x6ec   :  { %7755 = vmatpush3.bf16.msra.mxu0 %v8248_v6 }
 0x6ed   :  { %7756 = vmatprep.subr.bf16.mxu0 %v8249_v47 }
 0x6f0   :  { %7757 = vmatpush3.bf16.msra.mxu0 %v8249_v47 }
 0x6f1   :  { %7758 = vmatprep.subr.bf16.mxu0 %v8250_v15 }
 0x6f4   :  { %7759 = vmatpush3.bf16.msra.mxu0 %v8250_v15 }
 0x6f5   :  { %7760 = vmatprep.subr.bf16.mxu0 %v8251_v32 }
 0x6f8   :  { %7761 = vmatpush3.bf16.msra.mxu0 %v8251_v32 }
 0x6f9   :  { %7762 = vmatprep.subr.bf16.mxu0 %v8252_v3 }
 0x6fc   :  { %7763 = vmatpush3.bf16.msra.mxu0 %v8252_v3 }
 0x6ff   :  { %7765 = vmatmul.mubr.bf16.vlgmr.msra.gmra.mrb[192].mxu0 %v10407_v44 }
 0x7b2   :  { %v7726_v39 = vpop.f32.mrb[188].mxu0 }
 0x7b3   :  { %v5312_v34 = vadd.f32 %v7726_v39, %v6270_v1  ;;  %v5303_v37 = vpop.f32.mrb[189].mxu0 }
 0x7b4   :  { %v5304_v38 = vadd.f32 %v6270_v1, %v5303_v37  ;;  %v7727_v8 = vpop.f32.mrb[190].mxu0 }
 0x7b5   :  { %5320 = vst [vmem:[%s10530_s21 + $0x290] sm:$0xff] %v5312_v34  ;;  %v5315_v17 = vadd.f32 %v7727_v8, %v6270_v1  ;;  %v5306_v49 = vpop.f32.mrb[191].mxu0 }
 0x7b6   :  { %5318 = vst [vmem:[%s10530_s21 + $0x280] sm:$0xff] %v5304_v38  ;;  %v5307_v50 = vadd.f32 %v6270_v1, %v5306_v49 }
 0x7b7   :  { %5321 = vst [vmem:[%s10530_s21 + $0x298] sm:$0xff] %v5315_v17 }
 0x7b8   :  { %5319 = vst [vmem:[%s10530_s21 + $0x288] sm:$0xff] %v5307_v50 }
 0x7d2   :  { %v7766_v44 = vpop.f32.mrb[192].mxu0 }
 0x7d3   :  { %v5586_v31 = vadd.f32 %v7766_v44, %v6326_v10  ;;  %v5577_v12 = vpop.f32.mrb[193].mxu0 }
 0x7d4   :  { %v5578_v55 = vadd.f32 %v6326_v10, %v5577_v12  ;;  %v7767_v52 = vpop.f32.mrb[194].mxu0 }
 0x7d5   :  { %5594 = vst [vmem:[%s10530_s21 + $0x2b0] sm:$0xff] %v5586_v31  ;;  %v5589_v53 = vadd.f32 %v7767_v52, %v6326_v10  ;;  %v5580_v54 = vpop.f32.mrb[195].mxu0 }
 0x7d6   :  { %5592 = vst [vmem:[%s10530_s21 + $0x2a0] sm:$0xff] %v5578_v55  ;;  %v5581_v58 = vadd.f32 %v6326_v10, %v5580_v54 }
 0x7d7   :  { %5595 = vst [vmem:[%s10530_s21 + $0x2b8] sm:$0xff] %v5589_v53 }
 0x7d8   :  { %5593 = vst [vmem:[%s10530_s21 + $0x2a8] sm:$0xff] %v5581_v58 }

// kernel: forward.5
= control target key start
LH: loop header
LB: loop body
LE: loop exit
PB: predicated region body
PF: predicated region fallthrough
CT: control target
= control target key end

     0   :  { %v1111_v0 = vmov 0.0   ;;  %vm1112_vm0 = vmmov 0   ;;  %v1113_v2 = vmov 0   ;;  %vm97_vm1 = vcmask 523264   ;;  %s1114_s23 = smov 104   ;;  %s1117_s8 = smov 120   ;;  %s1426_s0 = inlined_call_operand.vmem [shape: bf16[2,64,128], index: 0, kind: input, shape index: {}]   ;;  %s1427_s3 = inlined_call_operand.vmem [shape: f32[8,128], index: 3, kind: input, shape index: {}]   ;;  %s1428_s4 = inlined_call_operand.vmem [shape: bf16[128,128], index: 4, kind: input, shape index: {}]   ;;  %s1429_s1 = inlined_call_operand.vmem [shape: f32[8,64], index: 1, kind: input, shape index: {}]   ;;  %s1430_s2 = inlined_call_operand.vmem [shape: f32[8,128], index: 2, kind: input, shape index: {}]   ;;  %s1431_s5 = inlined_call_operand.vmem [shape: bf16[128,128], index: 5, kind: input, shape index: {}]   ;;  %s1432_s6 = inlined_call_operand.vmem [shape: f32[2,128], index: 6, kind: output, shape index: {}]  }
   0x1   :  { %949 = vmatprep.subr.bf16.mxu0 %v1111_v0  ;;  %v1083_v1 = vld [vmem:[%s1426_s0] sm:$0xff]   ;;  %957 = vmatprep.mubr.msk.bf16.mxu0 %vm1112_vm0, %v1111_v0  ;;  %v1084_v3 = vld [vmem:[%s1426_s0 + $0x8] sm:$0xff]   ;;  %v1085_v6 = vld [vmem:[%s1426_s0 + $0x10] sm:$0xff]   ;;  %v211_v17 = vlaneseq  ;;  %v1116_v55 = vmov 1   ;;  %vm334_vm2 = vcmask 64512   ;;  %vm852_vm3 = vcmask 1040384  }
   0x2   :  { %1080 = vset.pattern.permute.xlu0 %v1113_v2  ;;  %966 = vmatprep.subr.bf16.mxu1 %v1111_v0  ;;  %v1169_v4 = vld [vmem:[%s1427_s3] sm:$0xff]  ;;  %v1185_v7 = vld [vmem:[%s1428_s4 + $0x8] sm:$0xff]   ;;  %v1086_v8 = vld [vmem:[%s1426_s0 + $0x18] sm:$0xff]  }
   0x3   :  { %950 = vmatpush3.bf16.msra.mxu0 %v1083_v1  ;;  %982 = vmatprep.mubr.msk.bf16.mxu1 %vm1112_vm0, %v1111_v0  ;;  %v1175_v5 = vld [vmem:[%s1428_s4] sm:$0xff]   ;;  %v1199_v10 = vld [vmem:[%s1428_s4 + $0x10] sm:$0xff]   ;;  %v1206_v12 = vld [vmem:[%s1428_s4 + $0x18] sm:$0xff]   ;;  %v1244_v18 = vshrl.u32 %v211_v17, 7 }
   0x4   :  { %951 = vmatprep.subr.bf16.mxu0 %v1111_v0  ;;  %70 = vperm.xlu0 %1080, %v1169_v4   ;;  %v26_v9 = vld [vmem:[%s1429_s1] sm:$0xff]  ;;  %v1224_v14 = vld [vmem:[%s1428_s4 + $0x28] sm:$0xff]   ;;  %v1231_v15 = vld [vmem:[%s1428_s4 + $0x30] sm:$0xff]  }
   0x5   :  { %967 = vmatpush3.bf16.msra.mxu1 %v1175_v5  ;;  %v27_v11 = vpack.c.bf16 %v26_v9, %v26_v9  ;;  %v1217_v13 = vld [vmem:[%s1428_s4 + $0x20] sm:$0xff]   ;;  %v1239_v16 = vld [vmem:[%s1428_s4 + $0x38] sm:$0xff]   ;;  %223 = vrot.lane.b32.xlu1 %v1169_v4, %s1114_s23  ;;  %v213_v19 = vsub.s32 1, %v1244_v18  ;;  %v1096_v31 = vld [vmem:[%s1426_s0 + $0x28] sm:$0xff]   ;;  %v241_v34 = vsub.s32 2, %v1244_v18  ;;  %v220_v36 = vsub.s32 0, %v1244_v18 }
   0x6   :  { %968 = vmatprep.subr.bf16.mxu1 %v1111_v0  ;;  %v1250_v20 = vld [vmem:[%s1430_s2] sm:$0xff]  ;;  %v1097_v32 = vld [vmem:[%s1426_s0 + $0x30] sm:$0xff]   ;;  %v1098_v33 = vld [vmem:[%s1426_s0 + $0x38] sm:$0xff]   ;;  %1081 = vset.pattern.permute.xlu1 %v1116_v55 }
   0x7   :  { %952 = vmatpush3.bf16.msra.mxu0 %v1084_v3  ;;  %v1253_v22 = vrot.slane %v1250_v20, %v213_v19  ;;  %v1095_v27 = vld [vmem:[%s1426_s0 + $0x20] sm:$0xff]   ;;  %v1283_v35 = vrot.slane %v1250_v20, %v241_v34  ;;  %s1115_s0 = smov 16   ;;  %v1324_v17 = vld [vmem:[%s1431_s5 + $0x10] sm:$0xff]  }
   0x8   :  { %953 = vmatprep.subr.bf16.mxu0 %v1111_v0  ;;  %1082 = vset.pattern.permute.xlu0 %v1116_v55  ;;  %v1311_v9 = vld [vmem:[%s1431_s5] sm:$0xff]  }
   0x9   :  { %969 = vmatpush3.bf16.msra.mxu1 %v1185_v7 }
   0xa   :  { %970 = vmatprep.subr.bf16.mxu1 %v1111_v0 }
   0xb   :  { %954 = vmatpush3.bf16.msra.mxu0 %v1085_v6 }
   0xc   :  { %955 = vmatprep.subr.bf16.mxu0 %v1111_v0 }
   0xd   :  { %971 = vmatpush3.bf16.msra.mxu1 %v1199_v10 }
   0xe   :  { %972 = vmatprep.subr.bf16.mxu1 %v1111_v0 }
   0xf   :  { %956 = vmatpush3.bf16.msra.mxu0 %v1086_v8 }
  0x10   :  { %961 = vmatprep.subr.mxu0 %v1111_v0 }
  0x11   :  { %973 = vmatpush3.bf16.msra.mxu1 %v1206_v12 }
  0x12   :  { %958 = vmatmul.mubr.msk.bf16.vlgmr.msra.gmra.mrb[0].mxu0 %vm97_vm1, %v27_v11  ;;  %974 = vmatprep.subr.bf16.mxu1 %v1111_v0 }
  0x13   :  { %963 = vmatprep.mubr.msk.f32.mxu0 %vm1112_vm0, %v1111_v0 }
  0x15   :  { %975 = vmatpush3.bf16.msra.mxu1 %v1217_v13 }
  0x16   :  { %976 = vmatprep.subr.bf16.mxu1 %v1111_v0 }
  0x19   :  { %977 = vmatpush3.bf16.msra.mxu1 %v1224_v14 }
  0x1a   :  { %978 = vmatprep.subr.bf16.mxu1 %v1111_v0 }
  0x1d   :  { %979 = vmatpush3.bf16.msra.mxu1 %v1231_v15 }
  0x1e   :  { %980 = vmatprep.subr.bf16.mxu1 %v1111_v0 }
  0x21   :  { %981 = vmatpush3.bf16.msra.mxu1 %v1239_v16 }
  0x22   :  { %1011 = vmatprep.subr.bf16.mxu1 %v1111_v0 }
  0x77   :  { %v224_v38 = vpop.permute.xlu1 %223 }
  0x83   :  { %v71_v21 = vpop.permute.xlu0 %70 }
  0xe5   :  { %v135_v23 = vpop.f32.mrb[0].mxu0 }
  0xe6   :  { %v136_v24 = vadd.f32 %v135_v23, %v71_v21  ;;  %v959_v25 = vpop.f32.mrb[1].mxu0  ;;  %v1347_v23 = vld [vmem:[%s1431_s5 + $0x28] sm:$0xff]  }
  0xe7   :  { %v138_v26 = vpop.f32.mrb[2].mxu0  ;;  %v1360_v25 = vld [vmem:[%s1431_s5 + $0x38] sm:$0xff]  }
  0xe8   :  { %v960_v28 = vpop.f32.mrb[3].mxu0  ;;  %962 = vmatpush3.xpose.msra.mxu0 %v136_v24  ;;  %v238_v29 = vpack.c.bf16 %v136_v24, %v136_v24  ;;  %v215_v30 = vmul.f32 %v1253_v22, %v136_v24  ;;  %v1354_v24 = vld [vmem:[%s1431_s5 + $0x30] sm:$0xff]  }
  0xe9   :  { %986 = vmatprep.subr.mxu0 %v1111_v0  ;;  %v409_v28 = vsub.s32 3, %v1244_v18 }
  0xea   :  { %983 = vmatmul.mubr.bf16.vlgmr.msra.gmra.mrb[0].mxu1 %v238_v29  ;;  %216 = vadd.xlane.f32.xlu0 %v215_v30  ;;  %v414_v29 = vsub.s32 4, %v1244_v18 }
  0xeb   :  { %1012 = vmatpush3.bf16.msra.mxu1 %v1095_v27  ;;  %964 = vmatmul.mubr.f32.vlgmr.msra.gmra.mrb[4].mxu0 %v1250_v20  ;;  %v1370_v30 = vrot.slane %v1250_v20, %v409_v28 }
  0xec   :  { %1013 = vmatprep.subr.bf16.mxu1 %v1111_v0  ;;  %1019 = vmatprep.mubr.msk.bf16.mxu1 %vm1112_vm0, %v1111_v0 }
  0xed   :  { %988 = vmatprep.mubr.msk.f32.mxu0 %vm1112_vm0, %v1111_v0 }
  0xef   :  { %1014 = vmatpush3.bf16.msra.mxu1 %v1096_v31  ;;  %v1373_v31 = vrot.slane %v1250_v20, %v414_v29 }
  0xf0   :  { %1015 = vmatprep.subr.bf16.mxu1 %v1111_v0 }
  0xf3   :  { %1016 = vmatpush3.bf16.msra.mxu1 %v1097_v32 }
  0xf4   :  { %1017 = vmatprep.subr.bf16.mxu1 %v1111_v0 }
  0xf7   :  { %1018 = vmatpush3.bf16.msra.mxu1 %v1098_v33 }
  0xf8   :  { %1023 = vmatprep.subr.mxu1 %v1111_v0 }
  0xfa   :  { %1020 = vmatmul.mubr.msk.bf16.vlgmr.msra.gmra.mrb[4].mxu1 %vm97_vm1, %v27_v11  ;;  %v1317_v11 = vld [vmem:[%s1431_s5 + $0x8] sm:$0xff]  }
  0xfb   :  { %1025 = vmatprep.mubr.msk.f32.mxu1 %vm1112_vm0, %v1111_v0 }
 0x177   :  { %v217_v45 = vpop.xlane.xlu0 %216 }
 0x1bd   :  { %v325_v37 = vpop.f32.mrb[0].mxu1 }
 0x1be   :  { %v326_v39 = vadd.f32 %v325_v37, %v1283_v35  ;;  %v207_v40 = vpop.f32.mrb[4].mxu0  ;;  %v984_v41 = vpop.f32.mrb[1].mxu1 }
 0x1bf   :  { %v221_v42 = vrot.slane %v207_v40, %v220_v36  ;;  %v328_v43 = vpop.f32.mrb[2].mxu1  ;;  %v965_v44 = vpop.f32.mrb[5].mxu0 }
 0x1c0   :  { %v985_v46 = vpop.f32.mrb[3].mxu1  ;;  %987 = vmatpush3.msra.mxu0 %v326_v39 }
 0x1c1   :  { %v222_v47 = vsub.f32 %v221_v42, %v217_v45  ;;  %991 = vmatprep.subr.bf16.mxu0 %v1111_v0 }
 0x1c3   :  { %v226_v48 = vadd.f32 %v224_v38, %v222_v47 }
 0x1c5   :  { %1107 = vtanh.f32 %v226_v48 }
 0x1cd   :  { %v587_v49 = vpop.f32.mrb[4].mxu1 }
 0x1ce   :  { %v1288_v50 = vadd.f32 %v587_v49, %v71_v21  ;;  %v1021_v51 = vpop.f32.mrb[5].mxu1  ;;  %v1333_v21 = vld [vmem:[%s1431_s5 + $0x18] sm:$0xff]  }
 0x1cf   :  { %v1108_v52 = vpop.eup %1107  ;;  %v590_v53 = vpop.f32.mrb[6].mxu1 }
 0x1d0   :  { %1024 = vmatpush3.xpose.msra.mxu1 %v1288_v50  ;;  %229 = vrot.lane.b32.xlu1 %v1108_v52, %s1115_s0  ;;  %v1022_v54 = vpop.f32.mrb[7].mxu1  ;;  %v663_v62 = vmul.f32 %v1288_v50, %v1253_v22  ;;  %v1340_v22 = vld [vmem:[%s1431_s5 + $0x20] sm:$0xff]  }
 0x1d1   :  { %1048 = vmatprep.subr.mxu1 %v1111_v0 }
 0x1d3   :  { %1026 = vmatmul.mubr.f32.vlgmr.msra.gmra.mrb[8].mxu1 %v1250_v20 }
 0x1d4   :  { %1050 = vmatprep.mubr.msk.f32.mxu1 %vm1112_vm0, %v1111_v0 }
 0x242   :  { %v230_v56 = vpop.permute.xlu1 %229 }
 0x243   :  { %v232_v57 = vmul.f32 %v230_v56, %v1169_v4 }
 0x245   :  { %234 = vrot.lane.b32.xlu1 %v232_v57, %s1117_s8 }
 0x2a6   :  { %v659_v60 = vpop.f32.mrb[8].mxu1 }
 0x2a7   :  { %v1027_v61 = vpop.f32.mrb[9].mxu1  ;;  %v669_v2 = vrot.slane %v659_v60, %v220_v36 }
 0x2b7   :  { %v235_v58 = vpop.permute.xlu1 %234 }
 0x2b8   :  { %v237_v59 = vadd.f32 %v235_v58, %v1169_v4 }
 0x2ba   :  { %332 = vrot.lane.b32.xlu1 %v237_v59, %s1117_s8 }
 0x2be   :  { %418 = vperm.xlu1 %1081, %v1169_v4  }
 0x2e2   :  { %664 = vadd.xlane.f32.xlu1 %v663_v62 }
 0x32c   :  { %v333_v63 = vpop.permute.xlu1 %332 }
 0x32d   :  { %989 = vmatmul.mubr.msk.f32.vlgmr.msra.gmra.mrb[6].mxu0 %vm334_vm2, %v333_v63 }
 0x32e   :  { %1007 = vmatprep.mubr.msk.bf16.mxu0 %vm1112_vm0, %v1111_v0  ;;  %992 = vmatpush3.bf16.msra.mxu0 %v1311_v9 }
 0x32f   :  { %993 = vmatprep.subr.bf16.mxu0 %v1111_v0 }
 0x332   :  { %994 = vmatpush3.bf16.msra.mxu0 %v1317_v11 }
 0x333   :  { %995 = vmatprep.subr.bf16.mxu0 %v1111_v0 }
 0x336   :  { %996 = vmatpush3.bf16.msra.mxu0 %v1324_v17 }
 0x337   :  { %997 = vmatprep.subr.bf16.mxu0 %v1111_v0 }
 0x33a   :  { %998 = vmatpush3.bf16.msra.mxu0 %v1333_v21 }
 0x33b   :  { %999 = vmatprep.subr.bf16.mxu0 %v1111_v0 }
 0x33d   :  { %v1306_v1 = vpop.permute.xlu1 %418 }
 0x33e   :  { %1000 = vmatpush3.bf16.msra.mxu0 %v1340_v22 }
 0x33f   :  { %1001 = vmatprep.subr.bf16.mxu0 %v1111_v0 }
 0x342   :  { %1002 = vmatpush3.bf16.msra.mxu0 %v1347_v23 }
 0x343   :  { %1003 = vmatprep.subr.bf16.mxu0 %v1111_v0 }
 0x346   :  { %1004 = vmatpush3.bf16.msra.mxu0 %v1354_v24 }
 0x347   :  { %1005 = vmatprep.subr.bf16.mxu0 %v1111_v0 }
 0x34a   :  { %1006 = vmatpush3.bf16.msra.mxu0 %v1360_v25 }
 0x34b   :  { %1028 = vmatprep.subr.bf16.mxu0 %v1111_v0 }
 0x36f   :  { %v665_v3 = vpop.xlane.xlu1 %664 }
 0x370   :  { %v670_v6 = vsub.f32 %v669_v2, %v665_v3 }
 0x372   :  { %v671_v8 = vadd.f32 %v670_v6, %v224_v38 }
 0x374   :  { %1109 = vtanh.f32 %v671_v8 }
 0x37e   :  { %v1110_v19 = vpop.eup %1109 }
 0x37f   :  { %674 = vrot.lane.b32.xlu0 %v1110_v19, %s1115_s0 }
 0x3f1   :  { %v675_v26 = vpop.permute.xlu0 %674 }
 0x3f2   :  { %v677_v27 = vmul.f32 %v675_v26, %v1169_v4 }
 0x3f4   :  { %679 = vrot.lane.b32.xlu1 %v677_v27, %s1117_s8 }
 0x400   :  { %v403_v32 = vpop.f32.mrb[6].mxu0 }
 0x401   :  { %v411_v33 = vmul.f32 %v1370_v30, %v403_v32  ;;  %v990_v34 = vpop.f32.mrb[7].mxu0 }
 0x403   :  { %v416_v36 = vadd.f32 %v1373_v31, %v411_v33 }
 0x405   :  { %v421_v37 = vmul.f32 %v1306_v1, %v416_v36 }
 0x407   :  { %v422_v38 = vrot.slane %v421_v37, 4 }
 0x409   :  { %v423_v39 = vadd.f32 %v422_v38, %v421_v37 }
 0x40b   :  { %v424_v40 = vrot.slane %v423_v39, 2 }
 0x40d   :  { %v425_v41 = vadd.f32 %v424_v40, %v423_v39 }
 0x40f   :  { %v426_v42 = vrot.slane %v425_v41, 1 }
 0x411   :  { %v427_v18 = vadd.f32 %v426_v42, %v425_v41 }
 0x413   :  { %v428_v43 = vpack.c.bf16 %v427_v18, %v427_v18 }
 0x415   :  { %1008 = vmatmul.mubr.bf16.vlgmr.msra.gmra.mrb[8].mxu0 %v428_v43 }
 0x416   :  { %1029 = vmatpush3.bf16.msra.mxu0 %v1175_v5  ;;  %1044 = vmatprep.mubr.msk.bf16.mxu0 %vm1112_vm0, %v1111_v0  ;;  %v683_v5 = vpack.c.bf16 %v1288_v50, %v1288_v50 }
 0x417   :  { %1030 = vmatprep.subr.bf16.mxu0 %v1111_v0 }
 0x41a   :  { %1031 = vmatpush3.bf16.msra.mxu0 %v1185_v7 }
 0x41b   :  { %1032 = vmatprep.subr.bf16.mxu0 %v1111_v0 }
 0x41e   :  { %1033 = vmatpush3.bf16.msra.mxu0 %v1199_v10 }
 0x41f   :  { %1034 = vmatprep.subr.bf16.mxu0 %v1111_v0 }
 0x422   :  { %1035 = vmatpush3.bf16.msra.mxu0 %v1206_v12 }
 0x423   :  { %1036 = vmatprep.subr.bf16.mxu0 %v1111_v0 }
 0x426   :  { %1037 = vmatpush3.bf16.msra.mxu0 %v1217_v13 }
 0x427   :  { %1038 = vmatprep.subr.bf16.mxu0 %v1111_v0 }
 0x42a   :  { %1039 = vmatpush3.bf16.msra.mxu0 %v1224_v14 }
 0x42b   :  { %1040 = vmatprep.subr.bf16.mxu0 %v1111_v0 }
 0x42e   :  { %1041 = vmatpush3.bf16.msra.mxu0 %v1231_v15 }
 0x42f   :  { %1042 = vmatprep.subr.bf16.mxu0 %v1111_v0 }
 0x432   :  { %1043 = vmatpush3.bf16.msra.mxu0 %v1239_v16 }
 0x435   :  { %1045 = vmatmul.mubr.bf16.vlgmr.msra.gmra.mrb[12].mxu0 %v683_v5 }
 0x466   :  { %v680_v7 = vpop.permute.xlu1 %679 }
 0x467   :  { %v682_v10 = vadd.f32 %v680_v7, %v1169_v4 }
 0x469   :  { %725 = vrot.lane.b32.xlu0 %v682_v10, %s1117_s8 }
 0x4db   :  { %v726_v48 = vpop.permute.xlu0 %725 }
 0x4e8   :  { %v514_v12 = vpop.f32.mrb[8].mxu0 }
 0x4e9   :  { %v1009_v13 = vpop.f32.mrb[9].mxu0 }
 0x4ea   :  { %v517_v14 = vpop.f32.mrb[10].mxu0 }
 0x4eb   :  { %v1010_v44 = vpop.f32.mrb[11].mxu0 }
 0x508   :  { %v718_v45 = vpop.f32.mrb[12].mxu0 }
 0x509   :  { %v719_v15 = vadd.f32 %v718_v45, %v1283_v35  ;;  %v1046_v46 = vpop.f32.mrb[13].mxu0 }
 0x50a   :  { %v721_v47 = vpop.f32.mrb[14].mxu0 }
 0x50b   :  { %v1047_v16 = vpop.f32.mrb[15].mxu0  ;;  %1049 = vmatpush3.msra.mxu1 %v719_v15 }
 0x50c   :  { %1051 = vmatmul.mubr.msk.f32.vlgmr.msra.gmra.mrb[10].mxu1 %vm334_vm2, %v726_v48  ;;  %1053 = vmatprep.subr.bf16.mxu1 %v1111_v0 }
 0x50d   :  { %1054 = vmatpush3.bf16.msra.mxu1 %v1311_v9  ;;  %1069 = vmatprep.mubr.msk.bf16.mxu1 %vm1112_vm0, %v1111_v0 }
 0x50e   :  { %1055 = vmatprep.subr.bf16.mxu1 %v1111_v0 }
 0x511   :  { %1056 = vmatpush3.bf16.msra.mxu1 %v1317_v11 }
 0x512   :  { %1057 = vmatprep.subr.bf16.mxu1 %v1111_v0 }
 0x515   :  { %1058 = vmatpush3.bf16.msra.mxu1 %v1324_v17 }
 0x516   :  { %1059 = vmatprep.subr.bf16.mxu1 %v1111_v0 }
 0x519   :  { %1060 = vmatpush3.bf16.msra.mxu1 %v1333_v21 }
 0x51a   :  { %1061 = vmatprep.subr.bf16.mxu1 %v1111_v0 }
 0x51d   :  { %1062 = vmatpush3.bf16.msra.mxu1 %v1340_v22 }
 0x51e   :  { %1063 = vmatprep.subr.bf16.mxu1 %v1111_v0 }
 0x521   :  { %1064 = vmatpush3.bf16.msra.mxu1 %v1347_v23 }
 0x522   :  { %1065 = vmatprep.subr.bf16.mxu1 %v1111_v0 }
 0x525   :  { %1066 = vmatpush3.bf16.msra.mxu1 %v1354_v24 }
 0x526   :  { %1067 = vmatprep.subr.bf16.mxu1 %v1111_v0  ;;  %v478_v0 = vrot.slane %v1250_v20, 5 }
 0x528   :  { %v515_v63 = vadd.f32 %v514_v12, %v478_v0 }
 0x529   :  { %1068 = vmatpush3.bf16.msra.mxu1 %v1360_v25 }
 0x5df   :  { %v795_v4 = vpop.f32.mrb[10].mxu1 }
 0x5e0   :  { %v799_v35 = vmul.f32 %v795_v4, %v1370_v30  ;;  %v1052_v49 = vpop.f32.mrb[11].mxu1 }
 0x5e2   :  { %v800_v50 = vadd.f32 %v799_v35, %v1373_v31 }
 0x5e4   :  { %v801_v51 = vmul.f32 %v800_v50, %v1306_v1 }
 0x5e6   :  { %v802_v52 = vrot.slane %v801_v51, 4 }
 0x5e8   :  { %v803_v53 = vadd.f32 %v802_v52, %v801_v51 }
 0x5ea   :  { %v804_v54 = vrot.slane %v803_v53, 2 }
 0x5ec   :  { %v805_v55 = vadd.f32 %v804_v54, %v803_v53 }
 0x5ee   :  { %v806_v56 = vrot.slane %v805_v55, 1 }
 0x5f0   :  { %v807_v57 = vadd.f32 %v806_v56, %v805_v55 }
 0x5f2   :  { %v808_v58 = vpack.c.bf16 %v807_v57, %v807_v57 }
 0x5f4   :  { %1070 = vmatmul.mubr.bf16.vlgmr.msra.gmra.mrb[12].mxu1 %v808_v58 }
 0x6c7   :  { %v843_v59 = vpop.f32.mrb[12].mxu1 }
 0x6c8   :  { %v844_v60 = vadd.f32 %v843_v59, %v478_v0  ;;  %v1071_v61 = vpop.f32.mrb[13].mxu1 }
 0x6c9   :  { %v846_v62 = vpop.f32.mrb[14].mxu1 }
 0x6ca   :  { %v850_v2 = vrot.slane %v844_v60, 7  ;;  %v1072_v3 = vpop.f32.mrb[15].mxu1 }
 0x6cc   :  { %v853_v6 = vsel %vm852_vm3, %v515_v63, %v850_v2 }
 0x6cd   :  { %854 = vst [vmem:[%s1432_s6] sm:$0x3] %v853_v6 }

</bundles_post_ra>
